<compile_context>
chip_gen: v7x
topology: tpu7x:2x2x1
jax: 0.10.0
libtpu: 0.0.40
codegen_flags: <defaults>
</compile_context>

<pallas_src>
import functools

import jax
import jax.numpy as jnp
from jax.experimental import pallas as pl
from jax.experimental.pallas import tpu as pltpu

N_OUT = 10
LANE = 128


def _ann_fused_kernel(x_ref, w1_ref, b1_ref, w2_ref, b2_ref, w3_ref, b3_ref,
                      o_ref, acc_ref):
    c = pl.program_id(0)

    @pl.when(c == 0)
    def _init():
        acc_ref[...] = jnp.zeros_like(acc_ref)

    # Layer 1, current chunk of its output features: (M, tc)
    h1_c = jnp.dot(x_ref[...], w1_ref[...], preferred_element_type=jnp.float32)
    h1_c = jax.nn.sigmoid(h1_c + b1_ref[...])

    # Layer 2 partial contraction over this chunk of the hidden-1 axis.
    acc_ref[...] += jnp.dot(h1_c, w2_ref[...], preferred_element_type=jnp.float32)

    @pl.when(c == pl.num_programs(0) - 1)
    def _finish():
        h2 = jax.nn.sigmoid(acc_ref[...] + b2_ref[...])
        out = jnp.dot(h2, w3_ref[...], preferred_element_type=jnp.float32)
        o_ref[...] = (out + b3_ref[...]).astype(o_ref.dtype)


def ann_fused(x, w1_t, b1, w2_t, b2, w3_t_pad, b3_pad, *, tc=1024):
    """Fused sigmoid(sigmoid(x@W1t+b1)@W2t+b2)@W3t+b3 (output lane-padded)."""
    M, K1 = x.shape
    K1b, N1 = w1_t.shape
    N1b, N2 = w2_t.shape
    N2b, N3p = w3_t_pad.shape
    assert K1 == K1b and N1 == N1b and N2 == N2b
    assert N1 % tc == 0
    grid = (N1 // tc,)
    return pl.pallas_call(
        _ann_fused_kernel,
        out_shape=jax.ShapeDtypeStruct((M, N3p), x.dtype),
        grid=grid,
        in_specs=[
            pl.BlockSpec((M, K1), lambda c: (0, 0)),    # x: resident
            pl.BlockSpec((K1, tc), lambda c: (0, c)),   # W1t column chunk
            pl.BlockSpec((1, tc), lambda c: (0, c)),    # b1 chunk
            pl.BlockSpec((tc, N2), lambda c: (c, 0)),   # W2t row chunk
            pl.BlockSpec((1, N2), lambda c: (0, 0)),    # b2: resident
            pl.BlockSpec((N2, N3p), lambda c: (0, 0)),  # W3t (padded): resident
            pl.BlockSpec((1, N3p), lambda c: (0, 0)),   # b3 (padded): resident
        ],
        out_specs=pl.BlockSpec((M, N3p), lambda c: (0, 0)),
        scratch_shapes=[pltpu.VMEM((M, N2), jnp.float32)],
        compiler_params=pltpu.CompilerParams(
            dimension_semantics=("arbitrary",),        # accumulator carried on grid axis
            vmem_limit_bytes=48 * 1024 * 1024,
        ),
    )(x, w1_t, b1, w2_t, b2, w3_t_pad, b3_pad)


def xavier_uniform_t(key, in_features, out_features, dtype=jnp.float32):
    # torch.nn.init.xavier_uniform_ on a (out, in) weight, stored transposed (in, out):
    # U(-a, a) with a = sqrt(6 / (fan_in + fan_out)).
    limit = (6.0 / (in_features + out_features)) ** 0.5
    return jax.random.uniform(key, (in_features, out_features), dtype,
                              minval=-limit, maxval=limit)


def init_params(key):
    k1, k2, k3, kb1, kb2, kb3 = jax.random.split(key, 6)

    def bias(k, fan_in, n):
        # PyTorch default Linear bias init: U(-1/sqrt(fan_in), 1/sqrt(fan_in)).
        b = 1.0 / (fan_in ** 0.5)
        return jax.random.uniform(k, (1, n), jnp.float32, minval=-b, maxval=b)

    w3_t = xavier_uniform_t(k3, 1024, N_OUT)
    b3 = bias(kb3, 1024, N_OUT)
    n3_pad = ((N_OUT + LANE - 1) // LANE) * LANE
    # Pad layer-3 weight/bias to 128 lanes once at init (sliced back after the kernel).
    w3_t_pad = jnp.pad(w3_t, ((0, 0), (0, n3_pad - N_OUT)))
    b3_pad = jnp.pad(b3, ((0, 0), (0, n3_pad - N_OUT)))

    return {
        "w1_t": xavier_uniform_t(k1, 784, 2048),  "b1": bias(kb1, 784, 2048),
        "w2_t": xavier_uniform_t(k2, 2048, 1024), "b2": bias(kb2, 2048, 1024),
        "w3_t_pad": w3_t_pad, "b3_pad": b3_pad,
    }


@jax.jit
def ann_forward(x, params):
    out_pad = ann_fused(x, params["w1_t"], params["b1"],
                        params["w2_t"], params["b2"],
                        params["w3_t_pad"], params["b3_pad"])
    return out_pad[:, :N_OUT]


def ann_forward_ref(x, params):
    h1 = jax.nn.sigmoid(x @ params["w1_t"] + params["b1"])
    h2 = jax.nn.sigmoid(h1 @ params["w2_t"] + params["b2"])
    return (h2 @ params["w3_t_pad"] + params["b3_pad"])[:, :N_OUT]


if __name__ == "__main__":
    key = jax.random.PRNGKey(0)
    kx, kp = jax.random.split(key)
    batch = 8
    x = jax.random.normal(kx, (batch, 784), jnp.float32)
    params = init_params(kp)

    out = ann_forward(x, params)
    out = jax.block_until_ready(out)
    assert out.shape == (batch, N_OUT) and out.dtype == jnp.float32

    ref = ann_forward_ref(x, params)
    assert jnp.allclose(out, ref, atol=1e-4, rtol=1e-4), "mismatch vs JAX reference"

    print("KERNEL_OK")
</pallas_src>

<mosaic_0001>
module attributes {stable_mosaic.version = 11 : i64} {
  func.func @_ann_fused_kernel(%arg0: i32, %arg1: memref<8x784xf32, #tpu.memory_space<vmem>>, %arg2: memref<784x1024xf32, #tpu.memory_space<vmem>>, %arg3: memref<1x1024xf32, #tpu.memory_space<vmem>>, %arg4: memref<1024x1024xf32, #tpu.memory_space<vmem>>, %arg5: memref<1x1024xf32, #tpu.memory_space<vmem>>, %arg6: memref<1024x128xf32, #tpu.memory_space<vmem>>, %arg7: memref<1x128xf32, #tpu.memory_space<vmem>>, %arg8: memref<8x128xf32, #tpu.memory_space<vmem>>, %arg9: memref<8x1024xf32, #tpu.memory_space<vmem>>) attributes {dimension_semantics = [#tpu.dimension_semantics<arbitrary>], iteration_bounds = array<i64: 2>, scalar_prefetch = 0 : i64, scratch_operands = 1 : i64, tpu.core_type = #tpu.core_type<tc>, window_params = [{pipeline_mode = #tpu.pipeline_mode<synchronous>, transform_indices = @transform_0, window_bounds = array<i64: 8, 784>}, {transform_indices = @transform_1, window_bounds = array<i64: 784, 1024>}, {transform_indices = @transform_2, window_bounds = array<i64: 1, 1024>}, {transform_indices = @transform_3, window_bounds = array<i64: 1024, 1024>}, {pipeline_mode = #tpu.pipeline_mode<synchronous>, transform_indices = @transform_4, window_bounds = array<i64: 1, 1024>}, {pipeline_mode = #tpu.pipeline_mode<synchronous>, transform_indices = @transform_5, window_bounds = array<i64: 1024, 128>}, {pipeline_mode = #tpu.pipeline_mode<synchronous>, transform_indices = @transform_6, window_bounds = array<i64: 1, 128>}, {pipeline_mode = #tpu.pipeline_mode<synchronous>, transform_indices = @transform_7, window_bounds = array<i64: 8, 128>}]} {
    %c0_i32 = arith.constant 0 : i32
    %0 = arith.cmpi eq, %arg0, %c0_i32 : i32
    %1 = arith.extui %0 : i1 to i32
    %c0_i32_0 = arith.constant 0 : i32
    %2 = arith.cmpi ne, %1, %c0_i32_0 : i32
    scf.if %2 {
      %cst_15 = arith.constant 0.000000e+00 : f32
      %22 = vector.broadcast %cst_15 : f32 to vector<8x1024xf32>
      %c0_16 = arith.constant 0 : index
      %c0_17 = arith.constant 0 : index
      %23 = vector.load %arg9[%c0_16, %c0_17] : memref<8x1024xf32, #tpu.memory_space<vmem>>, vector<8x1024xf32>
      tpu.vector_store %arg9[%c0_16, %c0_17], %22 {strides = array<i32>} : memref<8x1024xf32, #tpu.memory_space<vmem>>, vector<8x1024xf32>,
    } else {
    }
    %c0 = arith.constant 0 : index
    %c0_1 = arith.constant 0 : index
    %3 = vector.load %arg1[%c0, %c0_1] : memref<8x784xf32, #tpu.memory_space<vmem>>, vector<8x784xf32>
    %c0_2 = arith.constant 0 : index
    %c0_3 = arith.constant 0 : index
    %4 = vector.load %arg2[%c0_2, %c0_3] : memref<784x1024xf32, #tpu.memory_space<vmem>>, vector<784x1024xf32>
    %cst = arith.constant dense<0.000000e+00> : vector<8x1024xf32>
    %5 = tpu.matmul %3, %4, %cst {dimension_numbers = #tpu.dot_dimension_numbers<[1], [0], [0], [1], [0, 0, 1, 1], [], []>} : vector<8x784xf32>, vector<784x1024xf32>, vector<8x1024xf32> -> vector<8x1024xf32>
    %c0_4 = arith.constant 0 : index
    %c0_5 = arith.constant 0 : index
    %6 = vector.load %arg3[%c0_4, %c0_5] : memref<1x1024xf32, #tpu.memory_space<vmem>>, vector<1x1024xf32>
    %7 = vector.broadcast %6 : vector<1x1024xf32> to vector<8x1024xf32>
    %8 = arith.addf %5, %7 : vector<8x1024xf32>
    %9 = arith.negf %8 : vector<8x1024xf32>
    %10 = math.exp %9 : vector<8x1024xf32>
    %cst_6 = arith.constant 1.000000e+00 : f32
    %11 = vector.broadcast %cst_6 : f32 to vector<8x1024xf32>
    %12 = arith.addf %11, %10 : vector<8x1024xf32>
    %13 = arith.divf %11, %12 : vector<8x1024xf32>
    %c0_7 = arith.constant 0 : index
    %c0_8 = arith.constant 0 : index
    %14 = vector.load %arg9[%c0_7, %c0_8] : memref<8x1024xf32, #tpu.memory_space<vmem>>, vector<8x1024xf32>
    %c0_9 = arith.constant 0 : index
    %c0_10 = arith.constant 0 : index
    %15 = vector.load %arg4[%c0_9, %c0_10] : memref<1024x1024xf32, #tpu.memory_space<vmem>>, vector<1024x1024xf32>
    %cst_11 = arith.constant dense<0.000000e+00> : vector<8x1024xf32>
    %16 = tpu.matmul %13, %15, %cst_11 {dimension_numbers = #tpu.dot_dimension_numbers<[1], [0], [0], [1], [0, 0, 1, 1], [], []>} : vector<8x1024xf32>, vector<1024x1024xf32>, vector<8x1024xf32> -> vector<8x1024xf32>
    %17 = arith.addf %14, %16 : vector<8x1024xf32>
    %c0_12 = arith.constant 0 : index
    %c0_13 = arith.constant 0 : index
    %18 = vector.load %arg9[%c0_12, %c0_13] : memref<8x1024xf32, #tpu.memory_space<vmem>>, vector<8x1024xf32>
    tpu.vector_store %arg9[%c0_12, %c0_13], %17 {strides = array<i32>} : memref<8x1024xf32, #tpu.memory_space<vmem>>, vector<8x1024xf32>,
    %c1_i32 = arith.constant 1 : i32
    %19 = arith.cmpi eq, %arg0, %c1_i32 : i32
    %20 = arith.extui %19 : i1 to i32
    %c0_i32_14 = arith.constant 0 : i32
    %21 = arith.cmpi ne, %20, %c0_i32_14 : i32
    scf.if %21 {
      %c0_15 = arith.constant 0 : index
      %c0_16 = arith.constant 0 : index
      %22 = vector.load %arg9[%c0_15, %c0_16] : memref<8x1024xf32, #tpu.memory_space<vmem>>, vector<8x1024xf32>
      %c0_17 = arith.constant 0 : index
      %c0_18 = arith.constant 0 : index
      %23 = vector.load %arg5[%c0_17, %c0_18] : memref<1x1024xf32, #tpu.memory_space<vmem>>, vector<1x1024xf32>
      %24 = vector.broadcast %23 : vector<1x1024xf32> to vector<8x1024xf32>
      %25 = arith.addf %22, %24 : vector<8x1024xf32>
      %26 = arith.negf %25 : vector<8x1024xf32>
      %27 = math.exp %26 : vector<8x1024xf32>
      %cst_19 = arith.constant 1.000000e+00 : f32
      %28 = vector.broadcast %cst_19 : f32 to vector<8x1024xf32>
      %29 = arith.addf %28, %27 : vector<8x1024xf32>
      %30 = arith.divf %28, %29 : vector<8x1024xf32>
      %c0_20 = arith.constant 0 : index
      %c0_21 = arith.constant 0 : index
      %31 = vector.load %arg6[%c0_20, %c0_21] : memref<1024x128xf32, #tpu.memory_space<vmem>>, vector<1024x128xf32>
      %cst_22 = arith.constant dense<0.000000e+00> : vector<8x128xf32>
      %32 = tpu.matmul %30, %31, %cst_22 {dimension_numbers = #tpu.dot_dimension_numbers<[1], [0], [0], [1], [0, 0, 1, 1], [], []>} : vector<8x1024xf32>, vector<1024x128xf32>, vector<8x128xf32> -> vector<8x128xf32>
      %c0_23 = arith.constant 0 : index
      %c0_24 = arith.constant 0 : index
      %33 = vector.load %arg7[%c0_23, %c0_24] : memref<1x128xf32, #tpu.memory_space<vmem>>, vector<1x128xf32>
      %34 = vector.broadcast %33 : vector<1x128xf32> to vector<8x128xf32>
      %35 = arith.addf %32, %34 : vector<8x128xf32>
      %c0_25 = arith.constant 0 : index
      %c0_26 = arith.constant 0 : index
      %36 = vector.load %arg8[%c0_25, %c0_26] : memref<8x128xf32, #tpu.memory_space<vmem>>, vector<8x128xf32>
      tpu.vector_store %arg8[%c0_25, %c0_26], %35 {strides = array<i32>} : memref<8x128xf32, #tpu.memory_space<vmem>>, vector<8x128xf32>,
    } else {
    }
    return
  }
  func.func @transform_0(%arg0: i32) -> (i32, i32) {
    %c0_i32 = arith.constant 0 : i32
    %c0_i32_0 = arith.constant 0 : i32
    %c0_i32_1 = arith.constant 0 : i32
    return %c0_i32, %c0_i32_0 : i32, i32
  }
  func.func @transform_1(%arg0: i32) -> (i32, i32) {
    %c0_i32 = arith.constant 0 : i32
    %c0_i32_0 = arith.constant 0 : i32
    return %c0_i32, %arg0 : i32, i32
  }
  func.func @transform_2(%arg0: i32) -> (i32, i32) {
    %c0_i32 = arith.constant 0 : i32
    %c0_i32_0 = arith.constant 0 : i32
    return %c0_i32, %arg0 : i32, i32
  }
  func.func @transform_3(%arg0: i32) -> (i32, i32) {
    %c0_i32 = arith.constant 0 : i32
    %c0_i32_0 = arith.constant 0 : i32
    return %arg0, %c0_i32 : i32, i32
  }
  func.func @transform_4(%arg0: i32) -> (i32, i32) {
    %c0_i32 = arith.constant 0 : i32
    %c0_i32_0 = arith.constant 0 : i32
    %c0_i32_1 = arith.constant 0 : i32
    return %c0_i32, %c0_i32_0 : i32, i32
  }
  func.func @transform_5(%arg0: i32) -> (i32, i32) {
    %c0_i32 = arith.constant 0 : i32
    %c0_i32_0 = arith.constant 0 : i32
    %c0_i32_1 = arith.constant 0 : i32
    return %c0_i32, %c0_i32_0 : i32, i32
  }
  func.func @transform_6(%arg0: i32) -> (i32, i32) {
    %c0_i32 = arith.constant 0 : i32
    %c0_i32_0 = arith.constant 0 : i32
    %c0_i32_1 = arith.constant 0 : i32
    return %c0_i32, %c0_i32_0 : i32, i32
  }
  func.func @transform_7(%arg0: i32) -> (i32, i32) {
    %c0_i32 = arith.constant 0 : i32
    %c0_i32_0 = arith.constant 0 : i32
    %c0_i32_1 = arith.constant 0 : i32
    return %c0_i32, %c0_i32_0 : i32, i32
  }
}

</mosaic_0001>

<bundles_post_ra>
// kernel: ann_forward.1
= control target key start
LH: loop header
LB: loop body
LE: loop exit
PB: predicated region body
PF: predicated region fallthrough
CT: control target
= control target key end

     0   :  { %s10279_s0 = inlined_call_operand.hbm [shape: f32[8,784], index: 0, kind: input, shape index: {}]   ;;  %s10280_s1 = inlined_call_operand.hbm [shape: f32[784,2048], index: 1, kind: input, shape index: {}]   ;;  %s10281_s2 = inlined_call_operand.hbm [shape: f32[1,2048], index: 2, kind: input, shape index: {}]   ;;  %s10282_s3 = inlined_call_operand.hbm [shape: f32[2048,1024], index: 3, kind: input, shape index: {}]   ;;  %s10283_s4 = inlined_call_operand.hbm [shape: f32[1,1024], index: 4, kind: input, shape index: {}]   ;;  %s10284_s5 = inlined_call_operand.hbm [shape: f32[1024,128], index: 5, kind: input, shape index: {}]   ;;  %s10285_s6 = inlined_call_operand.hbm [shape: f32[1,128], index: 6, kind: input, shape index: {}]   ;;  %s10286_s7 = inlined_call_operand.hbm [shape: f32[8,128], index: 7, kind: output, shape index: {}]  }
   0x1   :  { %10300 = sst [smem:[#allocation25_spill]] %s10280_s1 }
   0x2   :  { %10301 = sst [smem:[#allocation26_spill]] %s10283_s4 }
   0x3   :  { %10302 = sst [smem:[#allocation27_spill]] %s10284_s5 }
   0x4   :  { %12 = vsyncpa [#allocation4], 0 }
   0x5   :  { %13 = vsyncpa [#allocation7], 0 }
   0x6   :  { %15 = vsyncpa [#allocation7 + $0x1], 0 }
   0x7   :  { %16 = vsyncpa [#allocation10], 0 }
   0x8   :  { %18 = vsyncpa [#allocation10 + $0x1], 0 }
   0x9   :  { %19 = vsyncpa [#allocation13], 0 }
   0xa   :  { %20 = vsyncpa [#allocation5], 0  ;;  %s8002_s24 = smov 0   ;;  %s8004_s25 = smov 0  }
   0xb   :  { %s8006_s26 = smov 0   ;;  %s8008_s27 = smov 0  }
   0xc LB: > { %10303 = sst [smem:[#allocation22_spill]] %s7941_s26  ;;  %s8021_s28 = sadd.s32 4294967295, %s7945_s27   ;;  %s7945_s27 = sphi %s8008_s27, %s10328_s27   ;;  %s7941_s26 = sphi %s8006_s26, %s10330_s26   ;;  %s7937_s25 = sphi %s8004_s25, %s10332_s25   ;;  %s7933_s24 = sphi %s8002_s24, %s10331_s24  }
   0xd   : > { %p67_p0 = scmp.ne.s32.totalorder %s7937_s25, %s7933_s24  ;;  %p10287_p1 = scmp.eq.s32.totalorder %s8021_s28, 0 }
   0xe   : > { %p5300_p2 = scmp.ge.s32.totalorder %s7945_s27, 1  ;;  %p214_p3 = scmp.lt.s32.totalorder %s7945_s27, 3 }
   0xf   : > { %p8030_p5 = por %p10287_p1, %p67_p0  ;;  %s7947_s8 = smov [#allocation11]  }
  0x10   : > { %p8034_p6 = pnand %p5300_p2, %p214_p3  ;;  %s238_s9 = sshll.u32 %s7947_s8, 4  ;;  %s239_s9 = int_to_ptr.vmem [resolvable:$true] %s238_s9 }
  0x11   : > { %s10304_s29 = scalar_select %p8030_p5, 1, 0 }
  0x12   : > { %s10305_s30 = scalar_select %p8034_p6, 1, 0 }
  0x13   : > { %p7513_p7 = pneg %p8034_p6  ;;  %s7948_s10 = smov [#allocation12]  }
  0x14   : > { %s248_s11 = sshll.u32 %s7948_s10, 4  ;;  %s10307_s4 = sld [smem:[#allocation26_spill]]  ;;  %s8046_s11 = int_to_ptr.vmem [resolvable:$true] %s248_s11 }
  0x15   : > { %p8042_p8 = pnand %p7513_p7, %p10287_p1 }
  0x17   : > { %s10306_s12 = scalar_select %p8042_p8, 1, 0 }
  0x18   : > { %p8056_p10 = pneg %p8042_p8 }
  0x1a   : > { %s7663_s15 = scalar_lea.hbm %s10307_s4, 128 }
  0x1b   : > { %p7664_p9 = scmp.ne.s32.totalorder %s10307_s4, %s7663_s15  ;;  %p7670_p13 = scmp.lt.u32.totalorder %s7663_s15, %s10307_s4 }
  0x1c   : > { %s10308_s18 = scalar_select %p8056_p10, 1, 0 }
  0x1d   : > { %p7666_p11 = pnand %p8056_p10, %p7664_p9 }
  0x1f   : > { %p7667_p12 = pneg %p7666_p11 }
  0x21   : > { %p7672_p0 = pnand %p7670_p13, %p7667_p12 }
  0x23   : > { %7675 = shalt.err (!%p7672_p0)
}
  0x24   : > { %s7676_s21 = scalar_lea.vmem %s239_s9, 128  ;;  %p7684_p4 = scmp.lt.s32.totalorder %s239_s9, %s239_s9 }
  0x25   : > { %p7677_p2 = scmp.ne.s32.totalorder %s239_s9, %s7676_s21  ;;  %p7685_p1 = scmp.lt.s32.totalorder %s7676_s21, %s7676_s21 }
  0x27   : > { %p7679_p3 = pnand %p7677_p2, %p8056_p10  ;;  %p7686_p5 = por %p7685_p1, %p7684_p4 }
  0x29   : > { %p7680_p7 = pneg %p7679_p3 }
  0x2b   : > { %p7687_p6 = pnand %p7686_p5, %p7680_p7 }
  0x2d   : > { %7690 = shalt.err (!%p7687_p6)
}
  0x2e   : > { %7519 = dma.hbm_to_vmem [thread:$0]  (!%p8042_p8), %s10307_s4, 128, %s239_s9, [#allocation10]  }
  0x2f   : > { %s10309_s5 = sld [smem:[#allocation27_spill]] }
  0x35   : > { %s7691_s10 = scalar_lea.hbm %s10309_s5, 16384 }
  0x36   : > { %p7692_p9 = scmp.ne.s32.totalorder %s10309_s5, %s7691_s10  ;;  %p7698_p4 = scmp.lt.u32.totalorder %s7691_s10, %s10309_s5 }
  0x38   : > { %p7694_p11 = pnand %p7692_p9, %p8056_p10 }
  0x3a   : > { %p7695_p1 = pneg %p7694_p11 }
  0x3c   : > { %p7700_p5 = pnand %p7698_p4, %p7695_p1 }
  0x3e   : > { %7703 = shalt.err (!%p7700_p5)
}
  0x3f   : > { %s7704_s9 = scalar_lea.vmem %s8046_s11, 16384  ;;  %p7712_p0 = scmp.lt.s32.totalorder %s8046_s11, %s8046_s11 }
  0x40   : > { %p7705_p6 = scmp.ne.s32.totalorder %s8046_s11, %s7704_s9  ;;  %p7713_p2 = scmp.lt.s32.totalorder %s7704_s9, %s7704_s9 }
  0x42   : > { %p7707_p12 = pnand %p7705_p6, %p8056_p10  ;;  %p7714_p3 = por %p7713_p2, %p7712_p0 }
  0x44   : > { %p7708_p13 = pneg %p7707_p12 }
  0x46   : > { %p7715_p7 = pnand %p7714_p3, %p7708_p13 }
  0x48   : > { %7718 = shalt.err (!%p7715_p7)
}
  0x49   : > { %s7949_s17 = smov 128   ;;  %s7950_s19 = smov 8  }
  0x4a   : > { %7522 = dma.hbm_to_vmem [thread:$0]  (!%p8042_p8), %s10309_s5, 16384, %s8046_s11, [#allocation13], %s7949_s17, %s7949_s17, %s7950_s19  }
  0x4b   : > { %s8096_s22 = sadd.s32 1, %s7945_s27   ;;  %s54_s23 = sadd.s32 1, %s7941_s26 }
  0x4c   : > { %10310 = sst [smem:[#allocation23_spill]] %s8096_s22  ;;  %s51_s24 = ssub.s32 %s7945_s27, %s8096_s22 }
  0x4d   : > { %p61_p9 = scmp.ne.s32.totalorder %s7941_s26, %s7937_s25  ;;  %p52_p11 = scmp.eq.s32.totalorder %s51_s24, 0 }
  0x4e   : > { %p62_p1 = scmp.eq.s32.totalorder %s7945_s27, 0  ;;  %p7540_p4 = scmp.lt.s32.totalorder %s7945_s27, 2 }
  0x4f   : > { %s10290_s8 = sand.u32 1, %s7945_s27   ;;  %s8110_s13 = sand.u32 1, %s7941_s26  }
  0x50   : > { %s8107_s10 = scalar_select %p52_p11, %s7941_s26, %s54_s23  }
  0x51   : > { %p63_p5 = por %p62_p1, %p61_p9  ;;  %s5349_s14 = sshll.u32 %s7945_s27, 10 }
  0x52   : > { %10311 = sst [smem:[#allocation24_spill]] %s8107_s10  ;;  %s7485_s15 = smul.u32 6272, %s8110_s13 }
  0x53   : > { %s10312_s1 = sld [smem:[#allocation25_spill]]  ;;  %p8119_p6 = pnand %p7540_p4, %p63_p5 }
  0x54   : > { %s277_s19 = scalar_lea.vmem [#allocation6], %s7485_s15  ;;  %s8127_s21 = scalar_lea.sflag [#allocation7], %s10290_s8 }
  0x55   : > { %s10313_s17 = scalar_select %p8119_p6, 1, 0 }
  0x56   : > { %s284_s20 = sshll.u32 %s277_s19, 4  ;;  %p8133_p13 = pneg %p8119_p6  ;;  %s8123_s20 = int_to_ptr.vmem [resolvable:$true] %s284_s20 }
  0x59   : > { %s8117_s9 = scalar_lea.hbm %s10312_s1, %s5349_s14  ;;  %s7724_s15 = scalar_lea.hbm %s10312_s1, 200704 }
  0x5a   : > { %s7719_s23 = scalar_lea.hbm %s8117_s9, 100352  ;;  %p7725_p3 = scmp.lt.u32.totalorder %s8117_s9, %s10312_s1 }
  0x5b   : > { %p7720_p12 = scmp.ne.s32.totalorder %s8117_s9, %s7719_s23  ;;  %p7726_p7 = scmp.lt.u32.totalorder %s7724_s15, %s7719_s23 }
  0x5c   : > { %p7728_p11 = scmp.lt.u32.totalorder %s7719_s23, %s8117_s9 }
  0x5d   : > { %p7722_p0 = pnand %p8133_p13, %p7720_p12  ;;  %p7727_p9 = por %p7726_p7, %p7725_p3 }
  0x5f   : > { %p7723_p2 = pneg %p7722_p0  ;;  %p7729_p1 = por %p7728_p11, %p7727_p9 }
  0x61   : > { %p7730_p4 = pnand %p7729_p1, %p7723_p2 }
  0x63   : > { %7733 = shalt.err (!%p7730_p4)
}
  0x64   : > { %s7734_s8 = scalar_lea.vmem %s8123_s20, 100352  ;;  %s7951_s14 = smov [#allocation6]  }
  0x65   : > { %p7735_p5 = scmp.ne.s32.totalorder %s8123_s20, %s7734_s8  ;;  %s7739_s11 = sshll.u32 %s7951_s14, 4  ;;  %s7740_s11 = int_to_ptr.vmem [resolvable:$false] %s7739_s11 }
  0x66   : > { %s7741_s16 = scalar_lea.vmem %s7740_s11, 200704  ;;  %p7742_p8 = scmp.lt.s32.totalorder %s8123_s20, %s7740_s11 }
  0x67   : > { %p7737_p12 = pnand %p7735_p5, %p8133_p13  ;;  %p7743_p10 = scmp.lt.s32.totalorder %s7741_s16, %s7734_s8 }
  0x69   : > { %p7738_p0 = pneg %p7737_p12  ;;  %p7744_p3 = por %p7743_p10, %p7742_p8 }
  0x6b   : > { %p7745_p7 = pnand %p7744_p3, %p7738_p0 }
  0x6d   : > { %7748 = shalt.err (!%p7745_p7)
}
  0x6e   : > { %s7952_s23 = smov 2048   ;;  %s7953_s15 = smov 1024  }
  0x6f   : > { %s7954_s19 = smov 64   ;;  %s7955_s14 = smov [#allocation3]  }
  0x70   : > { %7529 = dma.hbm_to_vmem [thread:$0]  (!%p8119_p6), %s8117_s9, 100352, %s8123_s20, %s8127_s21, %s7952_s23, %s7953_s15, %s7954_s19  }
  0x71   : > { %s227_s1 = sshll.u32 %s7955_s14, 4  ;;  %s7956_s4 = smov [#allocation14]   ;;  %s228_s1 = int_to_ptr.vmem [resolvable:$true] %s227_s1 }
  0x72   : > { %s262_s11 = sshll.u32 %s7956_s4, 4  ;;  %s7749_s5 = scalar_lea.hbm %s10279_s0, 896  ;;  %s8159_s11 = int_to_ptr.vmem [resolvable:$true] %s262_s11 }
  0x73   : > { %p7750_p8 = scmp.ne.s32.totalorder %s10279_s0, %s7749_s5  ;;  %p10315_p10 = scmp.ne.s32.totalorder %s10308_s18, 0 }
  0x74   : > { %p7756_p11 = scmp.lt.u32.totalorder %s7749_s5, %s10279_s0 }
  0x75   : > { %p7752_p2 = pnand %p7750_p8, %p10315_p10 }
  0x77   : > { %p7753_p9 = pneg %p7752_p2 }
  0x79   : > { %p7758_p1 = pnand %p7756_p11, %p7753_p9 }
  0x7b   : > { %7761 = shalt.err (!%p7758_p1)
}
  0x7c   : > { %s7762_s4 = scalar_lea.vmem %s228_s1, 896  ;;  %p7770_p0 = scmp.lt.s32.totalorder %s228_s1, %s228_s1 }
  0x7d   : > { %p7763_p4 = scmp.ne.s32.totalorder %s228_s1, %s7762_s4  ;;  %p7771_p3 = scmp.lt.s32.totalorder %s7762_s4, %s7762_s4 }
  0x7f   : > { %p7765_p5 = pnand %p7763_p4, %p10315_p10  ;;  %p7772_p7 = por %p7771_p3, %p7770_p0 }
  0x81   : > { %p7766_p12 = pneg %p7765_p5 }
  0x83   : > { %p7773_p6 = pnand %p7772_p7, %p7766_p12 }
  0x85   : > { %7776 = shalt.err (!%p7773_p6)
}
  0x86   : > { %p10316_p8 = scmp.ne.s32.totalorder %s10306_s12, 0  ;;  %s7777_s20 = scalar_lea.hbm %s10285_s6, 16 }
  0x87   : > { %p7778_p2 = scmp.ne.s32.totalorder %s10285_s6, %s7777_s20  ;;  %p7784_p6 = scmp.lt.u32.totalorder %s7777_s20, %s10285_s6 }
  0x88   : > { %7516 = dma.hbm_to_vmem [thread:$0]  (!%p10316_p8), %s10279_s0, 896, %s228_s1, [#allocation4]  }
  0x89   : > { %p7780_p9 = pnand %p7778_p2, %p10315_p10 }
  0x8b   : > { %p7781_p11 = pneg %p7780_p9 }
  0x8d   : > { %p7786_p1 = pnand %p7784_p6, %p7781_p11 }
  0x8f   : > { %7789 = shalt.err (!%p7786_p1)
}
  0x90   : > { %s7790_s1 = scalar_lea.vmem %s8159_s11, 16  ;;  %s7797_s9 = scalar_lea.vmem %s8159_s11, 32 }
  0x91   : > { %p7791_p4 = scmp.ne.s32.totalorder %s8159_s11, %s7790_s1  ;;  %p7798_p0 = scmp.lt.s32.totalorder %s8159_s11, %s8159_s11 }
  0x92   : > { %p7799_p3 = scmp.lt.s32.totalorder %s7797_s9, %s7790_s1 }
  0x93   : > { %p7793_p5 = pnand %p7791_p4, %p10315_p10 }
  0x94   : > { %p7800_p7 = por %p7799_p3, %p7798_p0 }
  0x95   : > { %p7794_p12 = pneg %p7793_p5 }
  0x97   : > { %p7801_p2 = pnand %p7800_p7, %p7794_p12 }
  0x99   : > { %7804 = shalt.err (!%p7801_p2)
}
  0x9a   : > { %7525 = dma.hbm_to_vmem [thread:$0]  (!%p10316_p8), %s10285_s6, 16, %s8159_s11, [#allocation13]  }
  0x9b   : > { %s5308_s18 = sshll.u32 %s8110_s13, 3  ;;  %s5350_s10 = sshll.u32 %s7945_s27, 7 }
  0x9c   : > { %s8208_s20 = scalar_lea.hbm %s10281_s2, %s5350_s10  ;;  %s298_s12 = scalar_lea.vmem [#allocation8], %s5308_s18 }
  0x9d   : > { %s306_s23 = sshll.u32 %s298_s12, 4  ;;  %s5311_s14 = sshll.u32 %s8110_s13, 13  ;;  %s307_s23 = int_to_ptr.vmem [resolvable:$true] %s306_s23 }
  0x9e   : > { %s7805_s8 = scalar_lea.hbm %s8208_s20, 128  ;;  %s7810_s1 = scalar_lea.hbm %s10281_s2, 256 }
  0x9f   : > { %p7806_p10 = scmp.ne.s32.totalorder %s8208_s20, %s7805_s8  ;;  %p7811_p11 = scmp.lt.u32.totalorder %s8208_s20, %s10281_s2 }
  0xa0   : > { %p7812_p6 = scmp.lt.u32.totalorder %s7810_s1, %s7805_s8  ;;  %p7814_p4 = scmp.lt.u32.totalorder %s7805_s8, %s8208_s20 }
  0xa1   : > { %p7808_p9 = pnand %p7806_p10, %p8133_p13 }
  0xa2   : > { %p7813_p1 = por %p7812_p6, %p7811_p11 }
  0xa3   : > { %p7809_p8 = pneg %p7808_p9 }
  0xa4   : > { %p7815_p5 = por %p7814_p4, %p7813_p1 }
  0xa6   : > { %p7816_p12 = pnand %p7815_p5, %p7809_p8 }
  0xa8   : > { %7819 = shalt.err (!%p7816_p12)
}
  0xa9   : > { %s7820_s26 = scalar_lea.vmem %s307_s23, 128  ;;  %s7957_s18 = smov [#allocation8]  }
  0xaa   : > { %p7821_p0 = scmp.ne.s32.totalorder %s307_s23, %s7820_s26  ;;  %s7825_s10 = sshll.u32 %s7957_s18, 4  ;;  %s7826_s10 = int_to_ptr.vmem [resolvable:$false] %s7825_s10 }
  0xab   : > { %s7827_s5 = scalar_lea.vmem %s7826_s10, 256  ;;  %p7828_p2 = scmp.lt.s32.totalorder %s307_s23, %s7826_s10 }
  0xac   : > { %p7823_p3 = pnand %p7821_p0, %p8133_p13  ;;  %p7829_p10 = scmp.lt.s32.totalorder %s7827_s5, %s7820_s26 }
  0xae   : > { %p7824_p7 = pneg %p7823_p3  ;;  %p7830_p9 = por %p7829_p10, %p7828_p2 }
  0xb0   : > { %p7831_p6 = pnand %p7830_p9, %p7824_p7 }
  0xb2   : > { %7834 = shalt.err (!%p7831_p6)
}
  0xb3   : > { %p10317_p11 = scmp.ne.s32.totalorder %s10313_s17, 0  ;;  %s5352_s22 = sshll.u32 %s7945_s27, 17 }
  0xb4   : > { %s8233_s11 = scalar_lea.hbm %s10282_s3, %s5352_s22  ;;  %s317_s16 = scalar_lea.vmem [#allocation9], %s5311_s14 }
  0xb5   : > { %7532 = dma.hbm_to_vmem [thread:$0]  (!%p10317_p11), %s8208_s20, 128, %s307_s23, %s8127_s21  }
  0xb6   : > { %s325_s1 = sshll.u32 %s317_s16, 4  ;;  %s10318_s9 = sand.u32 1, %s7945_s27   ;;  %s8237_s1 = int_to_ptr.vmem [resolvable:$true] %s325_s1 }
  0xb7   : > { %s8241_s4 = scalar_lea.sflag [#allocation10], %s10318_s9  ;;  %s7835_s26 = scalar_lea.hbm %s8233_s11, 131072 }
  0xb8   : > { %p7836_p8 = scmp.ne.s32.totalorder %s8233_s11, %s7835_s26  ;;  %s7840_s13 = scalar_lea.hbm %s10282_s3, 262144 }
  0xb9   : > { %p7841_p5 = scmp.lt.u32.totalorder %s8233_s11, %s10282_s3  ;;  %p7842_p12 = scmp.lt.u32.totalorder %s7840_s13, %s7835_s26 }
  0xba   : > { %p7838_p1 = pnand %p7836_p8, %p8133_p13  ;;  %p7844_p3 = scmp.lt.u32.totalorder %s7835_s26, %s8233_s11 }
  0xbb   : > { %p7843_p0 = por %p7842_p12, %p7841_p5 }
  0xbc   : > { %p7839_p4 = pneg %p7838_p1 }
  0xbd   : > { %p7845_p7 = por %p7844_p3, %p7843_p0 }
  0xbf   : > { %p7846_p2 = pnand %p7845_p7, %p7839_p4 }
  0xc1   : > { %7849 = shalt.err (!%p7846_p2)
}
  0xc2   : > { %s7850_s27 = scalar_lea.vmem %s8237_s1, 131072  ;;  %s7958_s14 = smov [#allocation9]  }
  0xc3   : > { %p7851_p10 = scmp.ne.s32.totalorder %s8237_s1, %s7850_s27  ;;  %s7855_s10 = sshll.u32 %s7958_s14, 4  ;;  %s7856_s10 = int_to_ptr.vmem [resolvable:$false] %s7855_s10 }
  0xc4   : > { %s7857_s5 = scalar_lea.vmem %s7856_s10, 262144  ;;  %p7858_p8 = scmp.lt.s32.totalorder %s8237_s1, %s7856_s10 }
  0xc5   : > { %p7853_p9 = pnand %p7851_p10, %p8133_p13  ;;  %p7859_p1 = scmp.lt.s32.totalorder %s7857_s5, %s7850_s27 }
  0xc7   : > { %p7854_p6 = pneg %p7853_p9  ;;  %p7860_p5 = por %p7859_p1, %p7858_p8 }
  0xc9   : > { %p7861_p12 = pnand %p7860_p5, %p7854_p6 }
  0xcb   : > { %7864 = shalt.err (!%p7861_p12)
}
  0xcc   : > { %7535 = dma.hbm_to_vmem [thread:$0]  (!%p10317_p11), %s8233_s11, 131072, %s8237_s1, %s8241_s4, %s7953_s15, %s7953_s15, %s7954_s19  }
  0xcd   : > { %p10319_p13 = scmp.ne.s32.totalorder %s10305_s30, 0 }
  0xce   : > { %p10320_p4 = scmp.eq.s32.totalorder (!%p10319_p13), %s8021_s28, 0 }
  0xcf   : > { %337 = sbr.rel (%p10319_p13) target bundleno = 1727 (0x6bf), region = 48 }
  0xd6   : > { %7908 = dma.done.wait (%p10320_p4), [#allocation4], 896   ;;  %p10321_p0 = pmov %p10320_p4 }
  0xd7   : > { %s343_s17 = sand.u32 1, %s8021_s28   ;;  %s345_s24 = sand.u32 1, %s7937_s25  }
  0xd8   : > { %7910 = vsyncadd (%p10321_p0), [#allocation4], 4294966400  ;;  %s7486_s22 = smul.u32 6272, %s345_s24  ;;  %s344_s12 = scalar_lea.sflag [#allocation7], %s343_s17 }
  0xd9   : > { %p10322_p3 = scmp.ne.s32.totalorder %s10304_s29, 0 }
  0xda   : > { %s8276_s8 = scalar_lea.vmem [#allocation6], %s7486_s22 }
  0xdb   : > { %7912 = dma.done.wait (%p10322_p3), %s344_s12, 100480  }
  0xdc   : > { %7914 = vsyncadd (%p10322_p3), %s344_s12, 4294866816  ;;  %s5317_s30 = sshll.u32 %s345_s24, 3  ;;  %s5318_s15 = sshll.u32 %s345_s24, 13 }
  0xdd   : > { %s8282_s19 = scalar_lea.vmem [#allocation8], %s5317_s30  ;;  %s362_s11 = scalar_lea.sflag [#allocation10], %s343_s17 }
  0xde   : > { %s8284_s16 = scalar_lea.vmem [#allocation9], %s5318_s15 }
  0xdf   : > { %7916 = dma.done.wait (%p10322_p3), %s362_s11, 131072  }
  0xe0   : > { %7918 = vsyncadd (%p10322_p3), %s362_s11, 4294836224  ;;  %p10323_p11 = pmov %p10321_p0 }
  0xe1   : > { %p10324_p7 = pmov %p10321_p0 }
  0xe2   : > { %7920 = dma.done.wait (%p10323_p11), [#allocation10], 128  }
  0xe3   : > { %7922 = vsyncadd (%p10324_p7), [#allocation10], 4294967168  ;;  %p10325_p2 = pmov %p10321_p0 }
  0xe4   : > { %p10326_p10 = pmov %p10321_p0 }
  0xe5   : > { %7924 = dma.done.wait (%p10325_p2), [#allocation13], 16400  }
  0xe6   : > { %7926 = vsyncadd (%p10326_p10), [#allocation13], 4294950896  ;;  %p10327_p9 = scmp.ne.s32.totalorder %s8021_s28, 0 }
  0xe7   : > { %v7959_v0 = vmov (!%p10327_p9), 0.0  }
  0xe8   : > { %419 = sbr.rel (%p10327_p9) target bundleno = 239 (0xef), region = 80  ;;  %420 = vst [vmem:[#allocation2] sm:$0xff] (!%p10327_p9), %v7959_v0  ;;  %421 = vst [vmem:[#allocation2 + $0x8] sm:$0xff] (!%p10327_p9), %v7959_v0 }
  0xe9   : > { %422 = vst [vmem:[#allocation2 + $0x10] sm:$0xff] (!%p10327_p9), %v7959_v0  ;;  %423 = vst [vmem:[#allocation2 + $0x18] sm:$0xff] (!%p10327_p9), %v7959_v0 }
  0xea   : > { %424 = vst [vmem:[#allocation2 + $0x20] sm:$0xff] (!%p10327_p9), %v7959_v0  ;;  %425 = vst [vmem:[#allocation2 + $0x28] sm:$0xff] (!%p10327_p9), %v7959_v0 }
  0xeb   : > { %426 = vst [vmem:[#allocation2 + $0x30] sm:$0xff] (!%p10327_p9), %v7959_v0  ;;  %427 = vst [vmem:[#allocation2 + $0x38] sm:$0xff] (!%p10327_p9), %v7959_v0 }
  0xef PF: > { %v436_v1 = vld [vmem:[%s8276_s8 + $0x8] sm:$0xff]  ;;  %v438_v3 = vld [vmem:[%s8276_s8 + $0x18] sm:$0xff]  ;;  %v435_v6 = vld [vmem:[%s8276_s8] sm:$0xff]  ;;  %vm1261_vm0 = vcmask 130048   ;;  %p5335_p6 = scmp.ne.s32.totalorder %s8021_s28, 1 }
  0xf0   : > { %v444_v2 = vld [vmem:[%s8276_s8 + $0x48] sm:$0xff]  ;;  %v446_v5 = vld [vmem:[%s8276_s8 + $0x58] sm:$0xff]  ;;  %v443_v7 = vld [vmem:[%s8276_s8 + $0x40] sm:$0xff] }
  0xf1   : > { %v5493_v4 = vpack.c.bf16 %v444_v2, %v436_v1  ;;  %v5689_v8 = vpack.c.bf16 %v446_v5, %v438_v3  ;;  %v5495_v9 = vpack.c.bf16 %v443_v7, %v435_v6  ;;  %v437_v10 = vld [vmem:[%s8276_s8 + $0x10] sm:$0xff]  ;;  %v452_v12 = vld [vmem:[%s8276_s8 + $0x88] sm:$0xff]  ;;  %v454_v15 = vld [vmem:[%s8276_s8 + $0x98] sm:$0xff] }
  0xf2   : > { %v445_v11 = vld [vmem:[%s8276_s8 + $0x50] sm:$0xff]  ;;  %v460_v14 = vld [vmem:[%s8276_s8 + $0xc8] sm:$0xff]  ;;  %v462_v16 = vld [vmem:[%s8276_s8 + $0xd8] sm:$0xff] }
  0xf3   : > { %5494 = vmatprep.subr.bf16.mxu0 %v5493_v4  ;;  %v5691_v13 = vpack.c.bf16 %v445_v11, %v437_v10  ;;  %5690 = vmatprep.subr.bf16.mxu1 %v5689_v8  ;;  %v5497_v17 = vpack.c.bf16 %v460_v14, %v452_v12  ;;  %v5693_v18 = vpack.c.bf16 %v462_v16, %v454_v15  ;;  %v451_v19 = vld [vmem:[%s8276_s8 + $0x80] sm:$0xff]  ;;  %v453_v21 = vld [vmem:[%s8276_s8 + $0x90] sm:$0xff]  ;;  %v468_v24 = vld [vmem:[%s8276_s8 + $0x108] sm:$0xff] }
  0xf4   : > { %5496 = vmatpush1.bf16.msra.mxu0 %v5495_v9  ;;  %v459_v20 = vld [vmem:[%s8276_s8 + $0xc0] sm:$0xff]  ;;  %v461_v23 = vld [vmem:[%s8276_s8 + $0xd0] sm:$0xff]  ;;  %v476_v25 = vld [vmem:[%s8276_s8 + $0x148] sm:$0xff] }
  0xf5   : > { %5692 = vmatpush1.bf16.msra.mxu1 %v5691_v13  ;;  %v5499_v22 = vpack.c.bf16 %v459_v20, %v451_v19  ;;  %5498 = vmatprep.subr.bf16.mxu0 %v5497_v17  ;;  %v5695_v26 = vpack.c.bf16 %v461_v23, %v453_v21  ;;  %v5501_v27 = vpack.c.bf16 %v476_v25, %v468_v24  ;;  %v470_v28 = vld [vmem:[%s8276_s8 + $0x118] sm:$0xff]  ;;  %v467_v30 = vld [vmem:[%s8276_s8 + $0x100] sm:$0xff]  ;;  %v469_v33 = vld [vmem:[%s8276_s8 + $0x110] sm:$0xff] }
  0xf6   : > { %5694 = vmatprep.subr.bf16.mxu1 %v5693_v18  ;;  %v478_v29 = vld [vmem:[%s8276_s8 + $0x158] sm:$0xff]  ;;  %v475_v32 = vld [vmem:[%s8276_s8 + $0x140] sm:$0xff]  ;;  %v477_v34 = vld [vmem:[%s8276_s8 + $0x150] sm:$0xff] }
  0xf7   : > { %v5697_v31 = vpack.c.bf16 %v478_v29, %v470_v28  ;;  %v5503_v35 = vpack.c.bf16 %v475_v32, %v467_v30  ;;  %v484_v36 = vld [vmem:[%s8276_s8 + $0x188] sm:$0xff]  ;;  %v486_v38 = vld [vmem:[%s8276_s8 + $0x198] sm:$0xff]  ;;  %v5699_v39 = vpack.c.bf16 %v477_v34, %v469_v33  ;;  %v483_v42 = vld [vmem:[%s8276_s8 + $0x180] sm:$0xff] }
  0xf8   : > { %5500 = vmatpush1.bf16.msra.mxu0 %v5499_v22  ;;  %v492_v37 = vld [vmem:[%s8276_s8 + $0x1c8] sm:$0xff]  ;;  %v494_v41 = vld [vmem:[%s8276_s8 + $0x1d8] sm:$0xff]  ;;  %v491_v43 = vld [vmem:[%s8276_s8 + $0x1c0] sm:$0xff] }
  0xf9   : > { %5696 = vmatpush1.bf16.msra.mxu1 %v5695_v26  ;;  %5502 = vmatprep.subr.bf16.mxu0 %v5501_v27  ;;  %v5505_v40 = vpack.c.bf16 %v492_v37, %v484_v36  ;;  %v5701_v44 = vpack.c.bf16 %v494_v41, %v486_v38  ;;  %v485_v45 = vld [vmem:[%s8276_s8 + $0x190] sm:$0xff]  ;;  %v500_v47 = vld [vmem:[%s8276_s8 + $0x208] sm:$0xff]  ;;  %v502_v49 = vld [vmem:[%s8276_s8 + $0x218] sm:$0xff]  ;;  %v5507_v51 = vpack.c.bf16 %v491_v43, %v483_v42 }
  0xfa   : > { %5698 = vmatprep.subr.bf16.mxu1 %v5697_v31  ;;  %v493_v46 = vld [vmem:[%s8276_s8 + $0x1d0] sm:$0xff]  ;;  %v508_v48 = vld [vmem:[%s8276_s8 + $0x248] sm:$0xff]  ;;  %v510_v50 = vld [vmem:[%s8276_s8 + $0x258] sm:$0xff] }
  0xfb   : > { %v5703_v52 = vpack.c.bf16 %v493_v46, %v485_v45  ;;  %v5509_v53 = vpack.c.bf16 %v508_v48, %v500_v47  ;;  %v499_v54 = vld [vmem:[%s8276_s8 + $0x200] sm:$0xff]  ;;  %v501_v56 = vld [vmem:[%s8276_s8 + $0x210] sm:$0xff]  ;;  %v5705_v57 = vpack.c.bf16 %v510_v50, %v502_v49  ;;  %v516_v59 = vld [vmem:[%s8276_s8 + $0x288] sm:$0xff] }
  0xfc   : > { %5504 = vmatpush1.bf16.msra.mxu0 %v5503_v35  ;;  %v507_v55 = vld [vmem:[%s8276_s8 + $0x240] sm:$0xff]  ;;  %v509_v58 = vld [vmem:[%s8276_s8 + $0x250] sm:$0xff]  ;;  %v524_v60 = vld [vmem:[%s8276_s8 + $0x2c8] sm:$0xff] }
  0xfd   : > { %5700 = vmatpush1.bf16.msra.mxu1 %v5699_v39  ;;  %5506 = vmatprep.subr.bf16.mxu0 %v5505_v40  ;;  %v518_v61 = vld [vmem:[%s8276_s8 + $0x298] sm:$0xff]  ;;  %v5511_v63 = vpack.c.bf16 %v507_v55, %v499_v54  ;;  %v5707_v0 = vpack.c.bf16 %v509_v58, %v501_v56  ;;  %v5513_v1 = vpack.c.bf16 %v524_v60, %v516_v59  ;;  %v515_v2 = vld [vmem:[%s8276_s8 + $0x280] sm:$0xff]  ;;  %v517_v4 = vld [vmem:[%s8276_s8 + $0x290] sm:$0xff] }
  0xfe   : > { %5702 = vmatprep.subr.bf16.mxu1 %v5701_v44  ;;  %v526_v62 = vld [vmem:[%s8276_s8 + $0x2d8] sm:$0xff]  ;;  %v523_v3 = vld [vmem:[%s8276_s8 + $0x2c0] sm:$0xff]  ;;  %v525_v6 = vld [vmem:[%s8276_s8 + $0x2d0] sm:$0xff] }
  0xff   : > { %v5709_v5 = vpack.c.bf16 %v526_v62, %v518_v61  ;;  %v532_v7 = vld [vmem:[%s8276_s8 + $0x308] sm:$0xff]  ;;  %v534_v9 = vld [vmem:[%s8276_s8 + $0x318] sm:$0xff]  ;;  %v5515_v11 = vpack.c.bf16 %v523_v3, %v515_v2  ;;  %v5711_v12 = vpack.c.bf16 %v525_v6, %v517_v4  ;;  %v531_v14 = vld [vmem:[%s8276_s8 + $0x300] sm:$0xff] }
 0x100   : > { %5508 = vmatpush1.bf16.msra.mxu0 %v5507_v51  ;;  %v540_v8 = vld [vmem:[%s8276_s8 + $0x348] sm:$0xff]  ;;  %v542_v10 = vld [vmem:[%s8276_s8 + $0x358] sm:$0xff]  ;;  %v539_v15 = vld [vmem:[%s8276_s8 + $0x340] sm:$0xff] }
 0x101   : > { %5704 = vmatpush1.bf16.msra.mxu1 %v5703_v52  ;;  %5510 = vmatprep.subr.bf16.mxu0 %v5509_v53  ;;  %v5517_v13 = vpack.c.bf16 %v540_v8, %v532_v7  ;;  %v533_v16 = vld [vmem:[%s8276_s8 + $0x310] sm:$0xff]  ;;  %v5713_v17 = vpack.c.bf16 %v542_v10, %v534_v9  ;;  %v548_v19 = vld [vmem:[%s8276_s8 + $0x388] sm:$0xff]  ;;  %v550_v21 = vld [vmem:[%s8276_s8 + $0x398] sm:$0xff]  ;;  %v5519_v23 = vpack.c.bf16 %v539_v15, %v531_v14 }
 0x102   : > { %5706 = vmatprep.subr.bf16.mxu1 %v5705_v57  ;;  %v541_v18 = vld [vmem:[%s8276_s8 + $0x350] sm:$0xff]  ;;  %v556_v20 = vld [vmem:[%s8276_s8 + $0x3c8] sm:$0xff]  ;;  %v558_v22 = vld [vmem:[%s8276_s8 + $0x3d8] sm:$0xff] }
 0x103   : > { %v5715_v24 = vpack.c.bf16 %v541_v18, %v533_v16  ;;  %v5521_v25 = vpack.c.bf16 %v556_v20, %v548_v19  ;;  %v547_v26 = vld [vmem:[%s8276_s8 + $0x380] sm:$0xff]  ;;  %v549_v28 = vld [vmem:[%s8276_s8 + $0x390] sm:$0xff]  ;;  %v5717_v29 = vpack.c.bf16 %v558_v22, %v550_v21  ;;  %v564_v31 = vld [vmem:[%s8276_s8 + $0x408] sm:$0xff] }
 0x104   : > { %5512 = vmatpush1.bf16.msra.mxu0 %v5511_v63  ;;  %v555_v27 = vld [vmem:[%s8276_s8 + $0x3c0] sm:$0xff]  ;;  %v557_v30 = vld [vmem:[%s8276_s8 + $0x3d0] sm:$0xff]  ;;  %v572_v32 = vld [vmem:[%s8276_s8 + $0x448] sm:$0xff] }
 0x105   : > { %5708 = vmatpush1.bf16.msra.mxu1 %v5707_v0  ;;  %5514 = vmatprep.subr.bf16.mxu0 %v5513_v1  ;;  %v566_v33 = vld [vmem:[%s8276_s8 + $0x418] sm:$0xff]  ;;  %v5523_v35 = vpack.c.bf16 %v555_v27, %v547_v26  ;;  %v5719_v36 = vpack.c.bf16 %v557_v30, %v549_v28  ;;  %v5525_v37 = vpack.c.bf16 %v572_v32, %v564_v31  ;;  %v563_v38 = vld [vmem:[%s8276_s8 + $0x400] sm:$0xff]  ;;  %v565_v40 = vld [vmem:[%s8276_s8 + $0x410] sm:$0xff] }
 0x106   : > { %5710 = vmatprep.subr.bf16.mxu1 %v5709_v5  ;;  %v574_v34 = vld [vmem:[%s8276_s8 + $0x458] sm:$0xff]  ;;  %v571_v39 = vld [vmem:[%s8276_s8 + $0x440] sm:$0xff]  ;;  %v573_v42 = vld [vmem:[%s8276_s8 + $0x450] sm:$0xff] }
 0x107   : > { %v5721_v41 = vpack.c.bf16 %v574_v34, %v566_v33  ;;  %v580_v43 = vld [vmem:[%s8276_s8 + $0x488] sm:$0xff]  ;;  %v582_v45 = vld [vmem:[%s8276_s8 + $0x498] sm:$0xff]  ;;  %v5527_v47 = vpack.c.bf16 %v571_v39, %v563_v38  ;;  %v5723_v48 = vpack.c.bf16 %v573_v42, %v565_v40  ;;  %v579_v50 = vld [vmem:[%s8276_s8 + $0x480] sm:$0xff] }
 0x108   : > { %5516 = vmatpush1.bf16.msra.mxu0 %v5515_v11  ;;  %v588_v44 = vld [vmem:[%s8276_s8 + $0x4c8] sm:$0xff]  ;;  %v590_v46 = vld [vmem:[%s8276_s8 + $0x4d8] sm:$0xff]  ;;  %v587_v51 = vld [vmem:[%s8276_s8 + $0x4c0] sm:$0xff] }
 0x109   : > { %5712 = vmatpush1.bf16.msra.mxu1 %v5711_v12  ;;  %5518 = vmatprep.subr.bf16.mxu0 %v5517_v13  ;;  %v5529_v49 = vpack.c.bf16 %v588_v44, %v580_v43  ;;  %v581_v52 = vld [vmem:[%s8276_s8 + $0x490] sm:$0xff]  ;;  %v5725_v53 = vpack.c.bf16 %v590_v46, %v582_v45  ;;  %v596_v55 = vld [vmem:[%s8276_s8 + $0x508] sm:$0xff]  ;;  %v598_v57 = vld [vmem:[%s8276_s8 + $0x518] sm:$0xff]  ;;  %v5531_v59 = vpack.c.bf16 %v587_v51, %v579_v50 }
 0x10a   : > { %5714 = vmatprep.subr.bf16.mxu1 %v5713_v17  ;;  %v589_v54 = vld [vmem:[%s8276_s8 + $0x4d0] sm:$0xff]  ;;  %v604_v56 = vld [vmem:[%s8276_s8 + $0x548] sm:$0xff]  ;;  %v606_v58 = vld [vmem:[%s8276_s8 + $0x558] sm:$0xff] }
 0x10b   : > { %v5727_v60 = vpack.c.bf16 %v589_v54, %v581_v52  ;;  %v5533_v61 = vpack.c.bf16 %v604_v56, %v596_v55  ;;  %v595_v62 = vld [vmem:[%s8276_s8 + $0x500] sm:$0xff]  ;;  %v597_v0 = vld [vmem:[%s8276_s8 + $0x510] sm:$0xff]  ;;  %v5729_v1 = vpack.c.bf16 %v606_v58, %v598_v57  ;;  %v612_v3 = vld [vmem:[%s8276_s8 + $0x588] sm:$0xff] }
 0x10c   : > { %5520 = vmatpush1.bf16.msra.mxu0 %v5519_v23  ;;  %v603_v63 = vld [vmem:[%s8276_s8 + $0x540] sm:$0xff]  ;;  %v605_v2 = vld [vmem:[%s8276_s8 + $0x550] sm:$0xff]  ;;  %v620_v4 = vld [vmem:[%s8276_s8 + $0x5c8] sm:$0xff] }
 0x10d   : > { %5716 = vmatpush1.bf16.msra.mxu1 %v5715_v24  ;;  %5522 = vmatprep.subr.bf16.mxu0 %v5521_v25  ;;  %v614_v5 = vld [vmem:[%s8276_s8 + $0x598] sm:$0xff]  ;;  %v5535_v7 = vpack.c.bf16 %v603_v63, %v595_v62  ;;  %v611_v8 = vld [vmem:[%s8276_s8 + $0x580] sm:$0xff]  ;;  %v5731_v9 = vpack.c.bf16 %v605_v2, %v597_v0  ;;  %v5537_v10 = vpack.c.bf16 %v620_v4, %v612_v3  ;;  %v613_v12 = vld [vmem:[%s8276_s8 + $0x590] sm:$0xff] }
 0x10e   : > { %5718 = vmatprep.subr.bf16.mxu1 %v5717_v29  ;;  %v622_v6 = vld [vmem:[%s8276_s8 + $0x5d8] sm:$0xff]  ;;  %v619_v11 = vld [vmem:[%s8276_s8 + $0x5c0] sm:$0xff]  ;;  %v621_v13 = vld [vmem:[%s8276_s8 + $0x5d0] sm:$0xff] }
 0x10f   : > { %v5733_v14 = vpack.c.bf16 %v622_v6, %v614_v5  ;;  %v628_v15 = vld [vmem:[%s8276_s8 + $0x608] sm:$0xff]  ;;  %v429_v17 = vld [vmem:[#allocation3 + $0x8] sm:$0xff]  ;;  %v630_v18 = vld [vmem:[%s8276_s8 + $0x618] sm:$0xff]  ;;  %v5539_v20 = vpack.c.bf16 %v619_v11, %v611_v8  ;;  %v5735_v21 = vpack.c.bf16 %v621_v13, %v613_v12 }
 0x110   : > { %5524 = vmatpush1.bf16.msra.mxu0 %v5523_v35  ;;  %v636_v16 = vld [vmem:[%s8276_s8 + $0x648] sm:$0xff]  ;;  %v638_v19 = vld [vmem:[%s8276_s8 + $0x658] sm:$0xff]  ;;  %1329 = vmatprep.mubr.f32.mxu0 %v429_v17  ;;  %v627_v23 = vld [vmem:[%s8276_s8 + $0x600] sm:$0xff] }
 0x111   : > { %5720 = vmatpush1.bf16.msra.mxu1 %v5719_v36  ;;  %5526 = vmatprep.subr.bf16.mxu0 %v5525_v37  ;;  %v5541_v22 = vpack.c.bf16 %v636_v16, %v628_v15  ;;  %v635_v24 = vld [vmem:[%s8276_s8 + $0x640] sm:$0xff]  ;;  %v629_v25 = vld [vmem:[%s8276_s8 + $0x610] sm:$0xff]  ;;  %v5737_v26 = vpack.c.bf16 %v638_v19, %v630_v18  ;;  %v644_v28 = vld [vmem:[%s8276_s8 + $0x688] sm:$0xff] }
 0x112   : > { %5722 = vmatprep.subr.bf16.mxu1 %v5721_v41  ;;  %1613 = vmatprep.mubr.f32.mxu1 %v429_v17  ;;  %v637_v27 = vld [vmem:[%s8276_s8 + $0x650] sm:$0xff]  ;;  %v652_v29 = vld [vmem:[%s8276_s8 + $0x6c8] sm:$0xff]  ;;  %v646_v30 = vld [vmem:[%s8276_s8 + $0x698] sm:$0xff]  ;;  %v5543_v32 = vpack.c.bf16 %v635_v24, %v627_v23 }
 0x113   : > { %v654_v31 = vld [vmem:[%s8276_s8 + $0x6d8] sm:$0xff]  ;;  %v5739_v33 = vpack.c.bf16 %v637_v27, %v629_v25  ;;  %v5545_v34 = vpack.c.bf16 %v652_v29, %v644_v28  ;;  %v643_v35 = vld [vmem:[%s8276_s8 + $0x680] sm:$0xff]  ;;  %v645_v37 = vld [vmem:[%s8276_s8 + $0x690] sm:$0xff] }
 0x114   : > { %5528 = vmatpush1.bf16.msra.mxu0 %v5527_v47  ;;  %v651_v36 = vld [vmem:[%s8276_s8 + $0x6c0] sm:$0xff]  ;;  %v5741_v38 = vpack.c.bf16 %v654_v31, %v646_v30  ;;  %v653_v39 = vld [vmem:[%s8276_s8 + $0x6d0] sm:$0xff]  ;;  %v660_v40 = vld [vmem:[%s8276_s8 + $0x708] sm:$0xff] }
 0x115   : > { %5724 = vmatpush1.bf16.msra.mxu1 %v5723_v48  ;;  %5530 = vmatprep.subr.bf16.mxu0 %v5529_v49  ;;  %v668_v41 = vld [vmem:[%s8276_s8 + $0x748] sm:$0xff]  ;;  %v662_v42 = vld [vmem:[%s8276_s8 + $0x718] sm:$0xff]  ;;  %v5547_v44 = vpack.c.bf16 %v651_v36, %v643_v35  ;;  %v5743_v45 = vpack.c.bf16 %v653_v39, %v645_v37  ;;  %v659_v47 = vld [vmem:[%s8276_s8 + $0x700] sm:$0xff] }
 0x116   : > { %5726 = vmatprep.subr.bf16.mxu1 %v5725_v53  ;;  %v670_v43 = vld [vmem:[%s8276_s8 + $0x758] sm:$0xff]  ;;  %v5549_v46 = vpack.c.bf16 %v668_v41, %v660_v40  ;;  %v667_v48 = vld [vmem:[%s8276_s8 + $0x740] sm:$0xff]  ;;  %v661_v49 = vld [vmem:[%s8276_s8 + $0x710] sm:$0xff] }
 0x117   : > { %v5745_v50 = vpack.c.bf16 %v670_v43, %v662_v42  ;;  %v669_v51 = vld [vmem:[%s8276_s8 + $0x750] sm:$0xff]  ;;  %v676_v52 = vld [vmem:[%s8276_s8 + $0x788] sm:$0xff]  ;;  %v678_v54 = vld [vmem:[%s8276_s8 + $0x798] sm:$0xff]  ;;  %v5551_v56 = vpack.c.bf16 %v667_v48, %v659_v47 }
 0x118   : > { %5532 = vmatpush1.bf16.msra.mxu0 %v5531_v59  ;;  %v684_v53 = vld [vmem:[%s8276_s8 + $0x7c8] sm:$0xff]  ;;  %v686_v55 = vld [vmem:[%s8276_s8 + $0x7d8] sm:$0xff]  ;;  %v5747_v57 = vpack.c.bf16 %v669_v51, %v661_v49  ;;  %v675_v59 = vld [vmem:[%s8276_s8 + $0x780] sm:$0xff] }
 0x119   : > { %5728 = vmatpush1.bf16.msra.mxu1 %v5727_v60  ;;  %5534 = vmatprep.subr.bf16.mxu0 %v5533_v61  ;;  %v5553_v58 = vpack.c.bf16 %v684_v53, %v676_v52  ;;  %v683_v60 = vld [vmem:[%s8276_s8 + $0x7c0] sm:$0xff]  ;;  %v677_v61 = vld [vmem:[%s8276_s8 + $0x790] sm:$0xff]  ;;  %v5749_v62 = vpack.c.bf16 %v686_v55, %v678_v54  ;;  %v692_v0 = vld [vmem:[%s8276_s8 + $0x808] sm:$0xff] }
 0x11a   : > { %5730 = vmatprep.subr.bf16.mxu1 %v5729_v1  ;;  %v685_v63 = vld [vmem:[%s8276_s8 + $0x7d0] sm:$0xff]  ;;  %v700_v1 = vld [vmem:[%s8276_s8 + $0x848] sm:$0xff]  ;;  %v694_v2 = vld [vmem:[%s8276_s8 + $0x818] sm:$0xff]  ;;  %v5555_v4 = vpack.c.bf16 %v683_v60, %v675_v59 }
 0x11b   : > { %v702_v3 = vld [vmem:[%s8276_s8 + $0x858] sm:$0xff]  ;;  %v5751_v5 = vpack.c.bf16 %v685_v63, %v677_v61  ;;  %v5557_v6 = vpack.c.bf16 %v700_v1, %v692_v0  ;;  %v699_v8 = vld [vmem:[%s8276_s8 + $0x840] sm:$0xff]  ;;  %v701_v11 = vld [vmem:[%s8276_s8 + $0x850] sm:$0xff] }
 0x11c   : > { %5536 = vmatpush1.bf16.msra.mxu0 %v5535_v7  ;;  %v691_v7 = vld [vmem:[%s8276_s8 + $0x800] sm:$0xff]  ;;  %v708_v12 = vld [vmem:[%s8276_s8 + $0x888] sm:$0xff]  ;;  %v718_v15 = vld [vmem:[%s8276_s8 + $0x8d8] sm:$0xff] }
 0x11d   : > { %5732 = vmatpush1.bf16.msra.mxu1 %v5731_v9  ;;  %5538 = vmatprep.subr.bf16.mxu0 %v5537_v10  ;;  %v693_v9 = vld [vmem:[%s8276_s8 + $0x810] sm:$0xff]  ;;  %v5753_v10 = vpack.c.bf16 %v702_v3, %v694_v2  ;;  %v716_v13 = vld [vmem:[%s8276_s8 + $0x8c8] sm:$0xff]  ;;  %v5559_v17 = vpack.c.bf16 %v699_v8, %v691_v7  ;;  %v726_v27 = vld [vmem:[%s8276_s8 + $0x918] sm:$0xff] }
 0x11e   : > { %5734 = vmatprep.subr.bf16.mxu1 %v5733_v14  ;;  %v710_v14 = vld [vmem:[%s8276_s8 + $0x898] sm:$0xff]  ;;  %v428_v16 = vld [vmem:[#allocation3] sm:$0xff]  ;;  %v5755_v18 = vpack.c.bf16 %v701_v11, %v693_v9  ;;  %v5561_v19 = vpack.c.bf16 %v716_v13, %v708_v12  ;;  %v717_v24 = vld [vmem:[%s8276_s8 + $0x8d0] sm:$0xff] }
 0x11f   : > { %v5757_v23 = vpack.c.bf16 %v718_v15, %v710_v14  ;;  %v724_v25 = vld [vmem:[%s8276_s8 + $0x908] sm:$0xff]  ;;  %v734_v28 = vld [vmem:[%s8276_s8 + $0x958] sm:$0xff]  ;;  %v733_v36 = vld [vmem:[%s8276_s8 + $0x950] sm:$0xff] }
 0x120   : > { %5540 = vmatpush1.bf16.msra.mxu0 %v5539_v20  ;;  %v707_v20 = vld [vmem:[%s8276_s8 + $0x880] sm:$0xff]  ;;  %v5761_v35 = vpack.c.bf16 %v734_v28, %v726_v27  ;;  %v740_v37 = vld [vmem:[%s8276_s8 + $0x988] sm:$0xff]  ;;  %v742_v39 = vld [vmem:[%s8276_s8 + $0x998] sm:$0xff] }
 0x121   : > { %5736 = vmatpush1.bf16.msra.mxu1 %v5735_v21  ;;  %5542 = vmatprep.subr.bf16.mxu0 %v5541_v22  ;;  %v715_v21 = vld [vmem:[%s8276_s8 + $0x8c0] sm:$0xff]  ;;  %v709_v22 = vld [vmem:[%s8276_s8 + $0x890] sm:$0xff]  ;;  %v750_v40 = vld [vmem:[%s8276_s8 + $0x9d8] sm:$0xff] }
 0x122   : > { %5738 = vmatprep.subr.bf16.mxu1 %v5737_v26  ;;  %v732_v26 = vld [vmem:[%s8276_s8 + $0x948] sm:$0xff]  ;;  %v5563_v29 = vpack.c.bf16 %v715_v21, %v707_v20  ;;  %v5759_v30 = vpack.c.bf16 %v717_v24, %v709_v22  ;;  %v5765_v47 = vpack.c.bf16 %v750_v40, %v742_v39  ;;  %v749_v48 = vld [vmem:[%s8276_s8 + $0x9d0] sm:$0xff]  ;;  %v758_v51 = vld [vmem:[%s8276_s8 + $0xa18] sm:$0xff] }
 0x123   : > { %v5565_v31 = vpack.c.bf16 %v732_v26, %v724_v25  ;;  %v756_v49 = vld [vmem:[%s8276_s8 + $0xa08] sm:$0xff]  ;;  %v766_v52 = vld [vmem:[%s8276_s8 + $0xa58] sm:$0xff]  ;;  %v765_v60 = vld [vmem:[%s8276_s8 + $0xa50] sm:$0xff] }
 0x124   : > { %5544 = vmatpush1.bf16.msra.mxu0 %v5543_v32  ;;  %v723_v32 = vld [vmem:[%s8276_s8 + $0x900] sm:$0xff]  ;;  %v5769_v59 = vpack.c.bf16 %v766_v52, %v758_v51  ;;  %v772_v61 = vld [vmem:[%s8276_s8 + $0xa88] sm:$0xff]  ;;  %v774_v63 = vld [vmem:[%s8276_s8 + $0xa98] sm:$0xff] }
 0x125   : > { %5740 = vmatpush1.bf16.msra.mxu1 %v5739_v33  ;;  %5546 = vmatprep.subr.bf16.mxu0 %v5545_v34  ;;  %v731_v33 = vld [vmem:[%s8276_s8 + $0x940] sm:$0xff]  ;;  %v725_v34 = vld [vmem:[%s8276_s8 + $0x910] sm:$0xff]  ;;  %v782_v0 = vld [vmem:[%s8276_s8 + $0xad8] sm:$0xff] }
 0x126   : > { %5742 = vmatprep.subr.bf16.mxu1 %v5741_v38  ;;  %v748_v38 = vld [vmem:[%s8276_s8 + $0x9c8] sm:$0xff]  ;;  %v5567_v41 = vpack.c.bf16 %v731_v33, %v723_v32  ;;  %v5763_v42 = vpack.c.bf16 %v733_v36, %v725_v34  ;;  %v5773_v7 = vpack.c.bf16 %v782_v0, %v774_v63  ;;  %v781_v8 = vld [vmem:[%s8276_s8 + $0xad0] sm:$0xff]  ;;  %v790_v11 = vld [vmem:[%s8276_s8 + $0xb18] sm:$0xff] }
 0x127   : > { %v5569_v43 = vpack.c.bf16 %v748_v38, %v740_v37  ;;  %v788_v9 = vld [vmem:[%s8276_s8 + $0xb08] sm:$0xff]  ;;  %v798_v12 = vld [vmem:[%s8276_s8 + $0xb58] sm:$0xff]  ;;  %v787_v14 = vld [vmem:[%s8276_s8 + $0xb00] sm:$0xff] }
 0x128   : > { %5548 = vmatpush1.bf16.msra.mxu0 %v5547_v44  ;;  %v739_v44 = vld [vmem:[%s8276_s8 + $0x980] sm:$0xff]  ;;  %v5777_v20 = vpack.c.bf16 %v798_v12, %v790_v11  ;;  %v804_v21 = vld [vmem:[%s8276_s8 + $0xb88] sm:$0xff]  ;;  %v806_v24 = vld [vmem:[%s8276_s8 + $0xb98] sm:$0xff] }
 0x129   : > { %5744 = vmatpush1.bf16.msra.mxu1 %v5743_v45  ;;  %5550 = vmatprep.subr.bf16.mxu0 %v5549_v46  ;;  %v747_v45 = vld [vmem:[%s8276_s8 + $0x9c0] sm:$0xff]  ;;  %v741_v46 = vld [vmem:[%s8276_s8 + $0x990] sm:$0xff]  ;;  %v812_v22 = vld [vmem:[%s8276_s8 + $0xbc8] sm:$0xff] }
 0x12a   : > { %5746 = vmatprep.subr.bf16.mxu1 %v5745_v50  ;;  %v764_v50 = vld [vmem:[%s8276_s8 + $0xa48] sm:$0xff]  ;;  %v5571_v53 = vpack.c.bf16 %v747_v45, %v739_v44  ;;  %v5767_v54 = vpack.c.bf16 %v749_v48, %v741_v46  ;;  %v814_v25 = vld [vmem:[%s8276_s8 + $0xbd8] sm:$0xff]  ;;  %v5585_v28 = vpack.c.bf16 %v812_v22, %v804_v21  ;;  %v813_v33 = vld [vmem:[%s8276_s8 + $0xbd0] sm:$0xff] }
 0x12b   : > { %v5573_v55 = vpack.c.bf16 %v764_v50, %v756_v49  ;;  %v5781_v32 = vpack.c.bf16 %v814_v25, %v806_v24  ;;  %v820_v34 = vld [vmem:[%s8276_s8 + $0xc08] sm:$0xff]  ;;  %v822_v36 = vld [vmem:[%s8276_s8 + $0xc18] sm:$0xff]  ;;  %v829_v45 = vld [vmem:[%s8276_s8 + $0xc50] sm:$0xff] }
 0x12c   : > { %5552 = vmatpush1.bf16.msra.mxu0 %v5551_v56  ;;  %v755_v56 = vld [vmem:[%s8276_s8 + $0xa00] sm:$0xff]  ;;  %v830_v37 = vld [vmem:[%s8276_s8 + $0xc58] sm:$0xff]  ;;  %v836_v46 = vld [vmem:[%s8276_s8 + $0xc88] sm:$0xff] }
 0x12d   : > { %5748 = vmatpush1.bf16.msra.mxu1 %v5747_v57  ;;  %5554 = vmatprep.subr.bf16.mxu0 %v5553_v58  ;;  %v763_v57 = vld [vmem:[%s8276_s8 + $0xa40] sm:$0xff]  ;;  %v757_v58 = vld [vmem:[%s8276_s8 + $0xa10] sm:$0xff]  ;;  %v5785_v44 = vpack.c.bf16 %v830_v37, %v822_v36  ;;  %v838_v48 = vld [vmem:[%s8276_s8 + $0xc98] sm:$0xff] }
 0x12e   : > { %5750 = vmatprep.subr.bf16.mxu1 %v5749_v62  ;;  %v780_v62 = vld [vmem:[%s8276_s8 + $0xac8] sm:$0xff]  ;;  %v5575_v1 = vpack.c.bf16 %v763_v57, %v755_v56  ;;  %v5771_v2 = vpack.c.bf16 %v765_v60, %v757_v58  ;;  %v846_v49 = vld [vmem:[%s8276_s8 + $0xcd8] sm:$0xff]  ;;  %v845_v57 = vld [vmem:[%s8276_s8 + $0xcd0] sm:$0xff] }
 0x12f   : > { %v5577_v3 = vpack.c.bf16 %v780_v62, %v772_v61  ;;  %v5789_v56 = vpack.c.bf16 %v846_v49, %v838_v48  ;;  %v852_v58 = vld [vmem:[%s8276_s8 + $0xd08] sm:$0xff]  ;;  %v854_v60 = vld [vmem:[%s8276_s8 + $0xd18] sm:$0xff]  ;;  %v883_v25 = vld [vmem:[%s8276_s8 + $0xe00] sm:$0xff] }
 0x130   : > { %5556 = vmatpush1.bf16.msra.mxu0 %v5555_v4  ;;  %v771_v4 = vld [vmem:[%s8276_s8 + $0xa80] sm:$0xff]  ;;  %v862_v61 = vld [vmem:[%s8276_s8 + $0xd58] sm:$0xff] }
 0x131   : > { %5752 = vmatpush1.bf16.msra.mxu1 %v5751_v5  ;;  %5558 = vmatprep.subr.bf16.mxu0 %v5557_v6  ;;  %v779_v5 = vld [vmem:[%s8276_s8 + $0xac0] sm:$0xff]  ;;  %v773_v6 = vld [vmem:[%s8276_s8 + $0xa90] sm:$0xff]  ;;  %v894_v21 = vld [vmem:[%s8276_s8 + $0xe58] sm:$0xff] }
 0x132   : > { %5754 = vmatprep.subr.bf16.mxu1 %v5753_v10  ;;  %v796_v10 = vld [vmem:[%s8276_s8 + $0xb48] sm:$0xff]  ;;  %v5579_v13 = vpack.c.bf16 %v779_v5, %v771_v4  ;;  %v5775_v15 = vpack.c.bf16 %v781_v8, %v773_v6  ;;  %v5793_v4 = vpack.c.bf16 %v862_v61, %v854_v60  ;;  %v861_v5 = vld [vmem:[%s8276_s8 + $0xd50] sm:$0xff]  ;;  %v870_v8 = vld [vmem:[%s8276_s8 + $0xd98] sm:$0xff] }
 0x133   : > { %1330 = vmatmul.mubr.f32.vlgmr.msra.gmra.mrb[0].mxu0 %v428_v16  ;;  %v868_v6 = vld [vmem:[%s8276_s8 + $0xd88] sm:$0xff]  ;;  %v899_v37 = vld [vmem:[%s8276_s8 + $0xe80] sm:$0xff] }
 0x134   : > { %5560 = vmatpush1.bf16.msra.mxu0 %v5559_v17  ;;  %1614 = vmatmul.mubr.f32.vlgmr.msra.gmra.mrb[0].mxu1 %v428_v16  ;;  %v5581_v16 = vpack.c.bf16 %v796_v10, %v788_v9  ;;  %v795_v17 = vld [vmem:[%s8276_s8 + $0xb40] sm:$0xff]  ;;  %v878_v9 = vld [vmem:[%s8276_s8 + $0xdd8] sm:$0xff] }
 0x135   : > { %5756 = vmatpush1.bf16.msra.mxu1 %v5755_v18  ;;  %5562 = vmatprep.subr.bf16.mxu0 %v5561_v19  ;;  %v789_v18 = vld [vmem:[%s8276_s8 + $0xb10] sm:$0xff]  ;;  %v5583_v26 = vpack.c.bf16 %v795_v17, %v787_v14  ;;  %v875_v14 = vld [vmem:[%s8276_s8 + $0xdc0] sm:$0xff] }
 0x136   : > { %5758 = vmatprep.subr.bf16.mxu1 %v5757_v23  ;;  %v797_v19 = vld [vmem:[%s8276_s8 + $0xb50] sm:$0xff]  ;;  %v431_v23 = vld [vmem:[#allocation3 + $0x18] sm:$0xff] }
 0x137   : > { %1400 = vmatprep.mubr.f32.mxu0 %v431_v23  ;;  %1684 = vmatprep.mubr.f32.mxu1 %v431_v23  ;;  %v5779_v27 = vpack.c.bf16 %v797_v19, %v789_v18  ;;  %v877_v17 = vld [vmem:[%s8276_s8 + $0xdd0] sm:$0xff]  ;;  %v884_v18 = vld [vmem:[%s8276_s8 + $0xe08] sm:$0xff]  ;;  %v915_v49 = vld [vmem:[%s8276_s8 + $0xf00] sm:$0xff] }
 0x138   : > { %5564 = vmatpush1.bf16.msra.mxu0 %v5563_v29  ;;  %v803_v29 = vld [vmem:[%s8276_s8 + $0xb80] sm:$0xff]  ;;  %v892_v19 = vld [vmem:[%s8276_s8 + $0xe48] sm:$0xff] }
 0x139   : > { %5760 = vmatpush1.bf16.msra.mxu1 %v5759_v30  ;;  %5566 = vmatprep.subr.bf16.mxu0 %v5565_v31  ;;  %v811_v30 = vld [vmem:[%s8276_s8 + $0xbc0] sm:$0xff]  ;;  %v805_v31 = vld [vmem:[%s8276_s8 + $0xb90] sm:$0xff]  ;;  %v5605_v24 = vpack.c.bf16 %v892_v19, %v884_v18  ;;  %v430_v18 = vld [vmem:[#allocation3 + $0x10] sm:$0xff] }
 0x13a   : > { %5762 = vmatprep.subr.bf16.mxu1 %v5761_v35  ;;  %v828_v35 = vld [vmem:[%s8276_s8 + $0xc48] sm:$0xff]  ;;  %v5587_v38 = vpack.c.bf16 %v811_v30, %v803_v29  ;;  %v5783_v39 = vpack.c.bf16 %v813_v33, %v805_v31  ;;  %v893_v29 = vld [vmem:[%s8276_s8 + $0xe50] sm:$0xff]  ;;  %v910_v33 = vld [vmem:[%s8276_s8 + $0xed8] sm:$0xff] }
 0x13b   : > { %v5589_v40 = vpack.c.bf16 %v828_v35, %v820_v34  ;;  %v900_v30 = vld [vmem:[%s8276_s8 + $0xe88] sm:$0xff]  ;;  %v931_v61 = vld [vmem:[%s8276_s8 + $0xf80] sm:$0xff] }
 0x13c   : > { %5568 = vmatpush1.bf16.msra.mxu0 %v5567_v41  ;;  %v819_v41 = vld [vmem:[%s8276_s8 + $0xc00] sm:$0xff]  ;;  %v908_v31 = vld [vmem:[%s8276_s8 + $0xec8] sm:$0xff] }
 0x13d   : > { %5764 = vmatpush1.bf16.msra.mxu1 %v5763_v42  ;;  %5570 = vmatprep.subr.bf16.mxu0 %v5569_v43  ;;  %v827_v42 = vld [vmem:[%s8276_s8 + $0xc40] sm:$0xff]  ;;  %v821_v43 = vld [vmem:[%s8276_s8 + $0xc10] sm:$0xff]  ;;  %v5609_v36 = vpack.c.bf16 %v908_v31, %v900_v30  ;;  %v990_v30 = vld [vmem:[%s8276_s8 + $0x1158] sm:$0xff] }
 0x13e   : > { %5766 = vmatprep.subr.bf16.mxu1 %v5765_v47  ;;  %v844_v47 = vld [vmem:[%s8276_s8 + $0xcc8] sm:$0xff]  ;;  %v5591_v50 = vpack.c.bf16 %v827_v42, %v819_v41  ;;  %v5787_v51 = vpack.c.bf16 %v829_v45, %v821_v43  ;;  %v909_v41 = vld [vmem:[%s8276_s8 + $0xed0] sm:$0xff]  ;;  %v926_v45 = vld [vmem:[%s8276_s8 + $0xf58] sm:$0xff] }
 0x13f   : > { %v5593_v52 = vpack.c.bf16 %v844_v47, %v836_v46  ;;  %v916_v42 = vld [vmem:[%s8276_s8 + $0xf08] sm:$0xff]  ;;  %v433_v31 = vld [vmem:[#allocation3 + $0x28] sm:$0xff] }
 0x140   : > { %5572 = vmatpush1.bf16.msra.mxu0 %v5571_v53  ;;  %v835_v53 = vld [vmem:[%s8276_s8 + $0xc80] sm:$0xff]  ;;  %v924_v43 = vld [vmem:[%s8276_s8 + $0xf48] sm:$0xff] }
 0x141   : > { %5768 = vmatpush1.bf16.msra.mxu1 %v5767_v54  ;;  %5574 = vmatprep.subr.bf16.mxu0 %v5573_v55  ;;  %v843_v54 = vld [vmem:[%s8276_s8 + $0xcc0] sm:$0xff]  ;;  %v837_v55 = vld [vmem:[%s8276_s8 + $0xc90] sm:$0xff]  ;;  %v5613_v48 = vpack.c.bf16 %v924_v43, %v916_v42  ;;  %v998_v42 = vld [vmem:[%s8276_s8 + $0x1198] sm:$0xff] }
 0x142   : > { %5770 = vmatprep.subr.bf16.mxu1 %v5769_v59  ;;  %v860_v59 = vld [vmem:[%s8276_s8 + $0xd48] sm:$0xff]  ;;  %v5595_v62 = vpack.c.bf16 %v843_v54, %v835_v53  ;;  %v5791_v63 = vpack.c.bf16 %v845_v57, %v837_v55  ;;  %v925_v53 = vld [vmem:[%s8276_s8 + $0xf50] sm:$0xff]  ;;  %v942_v57 = vld [vmem:[%s8276_s8 + $0xfd8] sm:$0xff] }
 0x143   : > { %v5597_v0 = vpack.c.bf16 %v860_v59, %v852_v58  ;;  %v932_v54 = vld [vmem:[%s8276_s8 + $0xf88] sm:$0xff]  ;;  %v1006_v43 = vld [vmem:[%s8276_s8 + $0x11d8] sm:$0xff] }
 0x144   : > { %5576 = vmatpush1.bf16.msra.mxu0 %v5575_v1  ;;  %v851_v1 = vld [vmem:[%s8276_s8 + $0xd00] sm:$0xff]  ;;  %v940_v55 = vld [vmem:[%s8276_s8 + $0xfc8] sm:$0xff] }
 0x145   : > { %5772 = vmatpush1.bf16.msra.mxu1 %v5771_v2  ;;  %5578 = vmatprep.subr.bf16.mxu0 %v5577_v3  ;;  %v859_v2 = vld [vmem:[%s8276_s8 + $0xd40] sm:$0xff]  ;;  %v853_v3 = vld [vmem:[%s8276_s8 + $0xd10] sm:$0xff]  ;;  %v5617_v60 = vpack.c.bf16 %v940_v55, %v932_v54  ;;  %v1014_v54 = vld [vmem:[%s8276_s8 + $0x1218] sm:$0xff] }
 0x146   : > { %5774 = vmatprep.subr.bf16.mxu1 %v5773_v7  ;;  %v876_v7 = vld [vmem:[%s8276_s8 + $0xdc8] sm:$0xff]  ;;  %v5599_v10 = vpack.c.bf16 %v859_v2, %v851_v1  ;;  %v5795_v11 = vpack.c.bf16 %v861_v5, %v853_v3  ;;  %v941_v1 = vld [vmem:[%s8276_s8 + $0xfd0] sm:$0xff]  ;;  %v958_v5 = vld [vmem:[%s8276_s8 + $0x1058] sm:$0xff] }
 0x147   : > { %v5601_v12 = vpack.c.bf16 %v876_v7, %v868_v6  ;;  %v948_v2 = vld [vmem:[%s8276_s8 + $0x1008] sm:$0xff]  ;;  %v1022_v55 = vld [vmem:[%s8276_s8 + $0x1258] sm:$0xff] }
 0x148   : > { %5580 = vmatpush1.bf16.msra.mxu0 %v5579_v13  ;;  %v867_v13 = vld [vmem:[%s8276_s8 + $0xd80] sm:$0xff]  ;;  %v956_v3 = vld [vmem:[%s8276_s8 + $0x1048] sm:$0xff] }
 0x149   : > { %5776 = vmatpush1.bf16.msra.mxu1 %v5775_v15  ;;  %5582 = vmatprep.subr.bf16.mxu0 %v5581_v16  ;;  %v869_v15 = vld [vmem:[%s8276_s8 + $0xd90] sm:$0xff]  ;;  %v5797_v16 = vpack.c.bf16 %v878_v9, %v870_v8  ;;  %v5603_v22 = vpack.c.bf16 %v875_v14, %v867_v13  ;;  %v5621_v8 = vpack.c.bf16 %v956_v3, %v948_v2  ;;  %v947_v9 = vld [vmem:[%s8276_s8 + $0x1000] sm:$0xff]  ;;  %v964_v14 = vld [vmem:[%s8276_s8 + $0x1088] sm:$0xff] }
 0x14a   : > { %5778 = vmatprep.subr.bf16.mxu1 %v5777_v20  ;;  %v886_v20 = vld [vmem:[%s8276_s8 + $0xe18] sm:$0xff]  ;;  %v5799_v23 = vpack.c.bf16 %v877_v17, %v869_v15  ;;  %v957_v13 = vld [vmem:[%s8276_s8 + $0x1050] sm:$0xff]  ;;  %v972_v15 = vld [vmem:[%s8276_s8 + $0x10c8] sm:$0xff] }
 0x14b   : > { %v974_v17 = vld [vmem:[%s8276_s8 + $0x10d8] sm:$0xff] }
 0x14c   : > { %5584 = vmatpush1.bf16.msra.mxu0 %v5583_v26  ;;  %v891_v26 = vld [vmem:[%s8276_s8 + $0xe40] sm:$0xff]  ;;  %v1030_v2 = vld [vmem:[%s8276_s8 + $0x1298] sm:$0xff] }
 0x14d   : > { %5780 = vmatpush1.bf16.msra.mxu1 %v5779_v27  ;;  %5586 = vmatprep.subr.bf16.mxu0 %v5585_v28  ;;  %v885_v27 = vld [vmem:[%s8276_s8 + $0xe10] sm:$0xff]  ;;  %v5801_v28 = vpack.c.bf16 %v894_v21, %v886_v20  ;;  %v5607_v34 = vpack.c.bf16 %v891_v26, %v883_v25  ;;  %v5625_v21 = vpack.c.bf16 %v972_v15, %v964_v14  ;;  %v1038_v3 = vld [vmem:[%s8276_s8 + $0x12d8] sm:$0xff] }
 0x14e   : > { %5782 = vmatprep.subr.bf16.mxu1 %v5781_v32  ;;  %v902_v32 = vld [vmem:[%s8276_s8 + $0xe98] sm:$0xff]  ;;  %v5803_v35 = vpack.c.bf16 %v893_v29, %v885_v27  ;;  %v973_v26 = vld [vmem:[%s8276_s8 + $0x10d0] sm:$0xff]  ;;  %v980_v27 = vld [vmem:[%s8276_s8 + $0x1108] sm:$0xff] }
 0x14f   : > { %v982_v29 = vld [vmem:[%s8276_s8 + $0x1118] sm:$0xff] }
 0x150   : > { %5588 = vmatpush1.bf16.msra.mxu0 %v5587_v38  ;;  %v907_v38 = vld [vmem:[%s8276_s8 + $0xec0] sm:$0xff]  ;;  %v1046_v14 = vld [vmem:[%s8276_s8 + $0x1318] sm:$0xff] }
 0x151   : > { %5784 = vmatpush1.bf16.msra.mxu1 %v5783_v39  ;;  %5590 = vmatprep.subr.bf16.mxu0 %v5589_v40  ;;  %v901_v39 = vld [vmem:[%s8276_s8 + $0xe90] sm:$0xff]  ;;  %v5805_v40 = vpack.c.bf16 %v910_v33, %v902_v32  ;;  %v5611_v46 = vpack.c.bf16 %v907_v38, %v899_v37  ;;  %v5825_v38 = vpack.c.bf16 %v990_v30, %v982_v29  ;;  %v1054_v15 = vld [vmem:[%s8276_s8 + $0x1358] sm:$0xff] }
 0x152   : > { %5786 = vmatprep.subr.bf16.mxu1 %v5785_v44  ;;  %v918_v44 = vld [vmem:[%s8276_s8 + $0xf18] sm:$0xff]  ;;  %v5807_v47 = vpack.c.bf16 %v909_v41, %v901_v39  ;;  %v981_v37 = vld [vmem:[%s8276_s8 + $0x1110] sm:$0xff]  ;;  %v1004_v41 = vld [vmem:[%s8276_s8 + $0x11c8] sm:$0xff] }
 0x153   : > { %v989_v39 = vld [vmem:[%s8276_s8 + $0x1150] sm:$0xff] }
 0x154   : > { %5592 = vmatpush1.bf16.msra.mxu0 %v5591_v50  ;;  %v923_v50 = vld [vmem:[%s8276_s8 + $0xf40] sm:$0xff] }
 0x155   : > { %5788 = vmatpush1.bf16.msra.mxu1 %v5787_v51  ;;  %5594 = vmatprep.subr.bf16.mxu0 %v5593_v52  ;;  %v917_v51 = vld [vmem:[%s8276_s8 + $0xf10] sm:$0xff]  ;;  %v5809_v52 = vpack.c.bf16 %v926_v45, %v918_v44  ;;  %v5615_v58 = vpack.c.bf16 %v923_v50, %v915_v49  ;;  %v5827_v45 = vpack.c.bf16 %v989_v39, %v981_v37  ;;  %v1084_v37 = vld [vmem:[%s8276_s8 + $0x1448] sm:$0xff]  ;;  %v1086_v39 = vld [vmem:[%s8276_s8 + $0x1458] sm:$0xff] }
 0x156   : > { %5790 = vmatprep.subr.bf16.mxu1 %v5789_v56  ;;  %v934_v56 = vld [vmem:[%s8276_s8 + $0xf98] sm:$0xff]  ;;  %v5811_v59 = vpack.c.bf16 %v925_v53, %v917_v51  ;;  %v997_v49 = vld [vmem:[%s8276_s8 + $0x1190] sm:$0xff]  ;;  %v5829_v50 = vpack.c.bf16 %v1006_v43, %v998_v42  ;;  %v1020_v53 = vld [vmem:[%s8276_s8 + $0x1248] sm:$0xff] }
 0x157   : > { %v1005_v51 = vld [vmem:[%s8276_s8 + $0x11d0] sm:$0xff]  ;;  %v1075_v43 = vld [vmem:[%s8276_s8 + $0x1400] sm:$0xff] }
 0x158   : > { %5596 = vmatpush1.bf16.msra.mxu0 %v5595_v62  ;;  %v939_v62 = vld [vmem:[%s8276_s8 + $0xfc0] sm:$0xff] }
 0x159   : > { %5792 = vmatpush1.bf16.msra.mxu1 %v5791_v63  ;;  %5598 = vmatprep.subr.bf16.mxu0 %v5597_v0  ;;  %v933_v63 = vld [vmem:[%s8276_s8 + $0xf90] sm:$0xff]  ;;  %v5813_v0 = vpack.c.bf16 %v942_v57, %v934_v56  ;;  %v5619_v6 = vpack.c.bf16 %v939_v62, %v931_v61  ;;  %v5831_v57 = vpack.c.bf16 %v1005_v51, %v997_v49  ;;  %v1100_v49 = vld [vmem:[%s8276_s8 + $0x14c8] sm:$0xff]  ;;  %v1102_v51 = vld [vmem:[%s8276_s8 + $0x14d8] sm:$0xff] }
 0x15a   : > { %5794 = vmatprep.subr.bf16.mxu1 %v5793_v4  ;;  %v950_v4 = vld [vmem:[%s8276_s8 + $0x1018] sm:$0xff]  ;;  %v5815_v7 = vpack.c.bf16 %v941_v1, %v933_v63  ;;  %v1013_v61 = vld [vmem:[%s8276_s8 + $0x1210] sm:$0xff]  ;;  %v5833_v62 = vpack.c.bf16 %v1022_v55, %v1014_v54  ;;  %v1036_v1 = vld [vmem:[%s8276_s8 + $0x12c8] sm:$0xff] }
 0x15b   : > { %v1021_v63 = vld [vmem:[%s8276_s8 + $0x1250] sm:$0xff]  ;;  %v1091_v55 = vld [vmem:[%s8276_s8 + $0x1480] sm:$0xff] }
 0x15c   : > { %5600 = vmatpush1.bf16.msra.mxu0 %v5599_v10  ;;  %v955_v10 = vld [vmem:[%s8276_s8 + $0x1040] sm:$0xff] }
 0x15d   : > { %5796 = vmatpush1.bf16.msra.mxu1 %v5795_v11  ;;  %5602 = vmatprep.subr.bf16.mxu0 %v5601_v12  ;;  %v949_v11 = vld [vmem:[%s8276_s8 + $0x1010] sm:$0xff]  ;;  %v5817_v12 = vpack.c.bf16 %v958_v5, %v950_v4  ;;  %v5623_v19 = vpack.c.bf16 %v955_v10, %v947_v9  ;;  %v5835_v5 = vpack.c.bf16 %v1021_v63, %v1013_v61  ;;  %v1116_v61 = vld [vmem:[%s8276_s8 + $0x1548] sm:$0xff]  ;;  %v1118_v63 = vld [vmem:[%s8276_s8 + $0x1558] sm:$0xff] }
 0x15e   : > { %5798 = vmatprep.subr.bf16.mxu1 %v5797_v16  ;;  %v966_v16 = vld [vmem:[%s8276_s8 + $0x1098] sm:$0xff]  ;;  %v5819_v20 = vpack.c.bf16 %v957_v13, %v949_v11  ;;  %v1029_v9 = vld [vmem:[%s8276_s8 + $0x1290] sm:$0xff]  ;;  %v5837_v10 = vpack.c.bf16 %v1038_v3, %v1030_v2  ;;  %v1052_v13 = vld [vmem:[%s8276_s8 + $0x1348] sm:$0xff] }
 0x15f   : > { %v5821_v25 = vpack.c.bf16 %v974_v17, %v966_v16  ;;  %v1037_v11 = vld [vmem:[%s8276_s8 + $0x12d0] sm:$0xff]  ;;  %v1107_v3 = vld [vmem:[%s8276_s8 + $0x1500] sm:$0xff] }
 0x160   : > { %5604 = vmatpush1.bf16.msra.mxu0 %v5603_v22  ;;  %v963_v22 = vld [vmem:[%s8276_s8 + $0x1080] sm:$0xff]  ;;  %v5839_v17 = vpack.c.bf16 %v1037_v11, %v1029_v9  ;;  %v1132_v9 = vld [vmem:[%s8276_s8 + $0x15c8] sm:$0xff]  ;;  %v1134_v11 = vld [vmem:[%s8276_s8 + $0x15d8] sm:$0xff] }
 0x161   : > { %5800 = vmatpush1.bf16.msra.mxu1 %v5799_v23  ;;  %5606 = vmatprep.subr.bf16.mxu0 %v5605_v24  ;;  %v971_v23 = vld [vmem:[%s8276_s8 + $0x10c0] sm:$0xff]  ;;  %v965_v24 = vld [vmem:[%s8276_s8 + $0x1090] sm:$0xff] }
 0x162   : > { %5802 = vmatprep.subr.bf16.mxu1 %v5801_v28  ;;  %v988_v28 = vld [vmem:[%s8276_s8 + $0x1148] sm:$0xff]  ;;  %v5627_v32 = vpack.c.bf16 %v971_v23, %v963_v22  ;;  %v5823_v33 = vpack.c.bf16 %v973_v26, %v965_v24  ;;  %v5841_v22 = vpack.c.bf16 %v1054_v15, %v1046_v14  ;;  %v1053_v23 = vld [vmem:[%s8276_s8 + $0x1350] sm:$0xff]  ;;  %v1062_v26 = vld [vmem:[%s8276_s8 + $0x1398] sm:$0xff] }
 0x163   : > { %v1060_v24 = vld [vmem:[%s8276_s8 + $0x1388] sm:$0xff]  ;;  %v1123_v15 = vld [vmem:[%s8276_s8 + $0x1580] sm:$0xff] }
 0x164   : > { %5608 = vmatpush1.bf16.msra.mxu0 %v5607_v34  ;;  %v5629_v34 = vpack.c.bf16 %v988_v28, %v980_v27  ;;  %v1070_v27 = vld [vmem:[%s8276_s8 + $0x13d8] sm:$0xff] }
 0x165   : > { %5804 = vmatpush1.bf16.msra.mxu1 %v5803_v35  ;;  %5610 = vmatprep.subr.bf16.mxu0 %v5609_v36  ;;  %v979_v35 = vld [vmem:[%s8276_s8 + $0x1100] sm:$0xff] }
 0x166   : > { %5806 = vmatprep.subr.bf16.mxu1 %v5805_v40  ;;  %v987_v36 = vld [vmem:[%s8276_s8 + $0x1140] sm:$0xff]  ;;  %v996_v40 = vld [vmem:[%s8276_s8 + $0x1188] sm:$0xff] }
 0x167   : > { %v5631_v44 = vpack.c.bf16 %v987_v36, %v979_v35  ;;  %v1069_v35 = vld [vmem:[%s8276_s8 + $0x13d0] sm:$0xff]  ;;  %v1076_v36 = vld [vmem:[%s8276_s8 + $0x1408] sm:$0xff] }
 0x168   : > { %5612 = vmatpush1.bf16.msra.mxu0 %v5611_v46  ;;  %v5633_v46 = vpack.c.bf16 %v1004_v41, %v996_v40  ;;  %v5653_v42 = vpack.c.bf16 %v1084_v37, %v1076_v36 }
 0x169   : > { %5808 = vmatpush1.bf16.msra.mxu1 %v5807_v47  ;;  %5614 = vmatprep.subr.bf16.mxu0 %v5613_v48  ;;  %v995_v47 = vld [vmem:[%s8276_s8 + $0x1180] sm:$0xff] }
 0x16a   : > { %5810 = vmatprep.subr.bf16.mxu1 %v5809_v52  ;;  %v1003_v48 = vld [vmem:[%s8276_s8 + $0x11c0] sm:$0xff]  ;;  %v1012_v52 = vld [vmem:[%s8276_s8 + $0x1208] sm:$0xff] }
 0x16b   : > { %v5635_v56 = vpack.c.bf16 %v1003_v48, %v995_v47  ;;  %v1085_v47 = vld [vmem:[%s8276_s8 + $0x1450] sm:$0xff]  ;;  %v1092_v48 = vld [vmem:[%s8276_s8 + $0x1488] sm:$0xff] }
 0x16c   : > { %5616 = vmatpush1.bf16.msra.mxu0 %v5615_v58  ;;  %v5637_v58 = vpack.c.bf16 %v1020_v53, %v1012_v52  ;;  %v5657_v54 = vpack.c.bf16 %v1100_v49, %v1092_v48 }
 0x16d   : > { %5812 = vmatpush1.bf16.msra.mxu1 %v5811_v59  ;;  %5618 = vmatprep.subr.bf16.mxu0 %v5617_v60  ;;  %v1011_v59 = vld [vmem:[%s8276_s8 + $0x1200] sm:$0xff] }
 0x16e   : > { %5814 = vmatprep.subr.bf16.mxu1 %v5813_v0  ;;  %v1019_v60 = vld [vmem:[%s8276_s8 + $0x1240] sm:$0xff]  ;;  %v1028_v0 = vld [vmem:[%s8276_s8 + $0x1288] sm:$0xff] }
 0x16f   : > { %v5639_v4 = vpack.c.bf16 %v1019_v60, %v1011_v59  ;;  %v1101_v59 = vld [vmem:[%s8276_s8 + $0x14d0] sm:$0xff]  ;;  %v1108_v60 = vld [vmem:[%s8276_s8 + $0x1508] sm:$0xff] }
 0x170   : > { %5620 = vmatpush1.bf16.msra.mxu0 %v5619_v6  ;;  %v5641_v6 = vpack.c.bf16 %v1036_v1, %v1028_v0  ;;  %v5661_v2 = vpack.c.bf16 %v1116_v61, %v1108_v60 }
 0x171   : > { %5816 = vmatpush1.bf16.msra.mxu1 %v5815_v7  ;;  %5622 = vmatprep.subr.bf16.mxu0 %v5621_v8  ;;  %v1027_v7 = vld [vmem:[%s8276_s8 + $0x1280] sm:$0xff] }
 0x172   : > { %5818 = vmatprep.subr.bf16.mxu1 %v5817_v12  ;;  %v1035_v8 = vld [vmem:[%s8276_s8 + $0x12c0] sm:$0xff]  ;;  %v1044_v12 = vld [vmem:[%s8276_s8 + $0x1308] sm:$0xff] }
 0x173   : > { %1401 = vmatmul.mubr.f32.vlgmr.msra.gmra.mrb[0].mxu0 %v430_v18  ;;  %v5643_v16 = vpack.c.bf16 %v1035_v8, %v1027_v7  ;;  %v1117_v7 = vld [vmem:[%s8276_s8 + $0x1550] sm:$0xff]  ;;  %v1124_v8 = vld [vmem:[%s8276_s8 + $0x1588] sm:$0xff] }
 0x174   : > { %5624 = vmatpush1.bf16.msra.mxu0 %v5623_v19  ;;  %1685 = vmatmul.mubr.f32.vlgmr.msra.gmra.mrb[0].mxu1 %v430_v18  ;;  %v5645_v18 = vpack.c.bf16 %v1052_v13, %v1044_v12  ;;  %v1043_v19 = vld [vmem:[%s8276_s8 + $0x1300] sm:$0xff]  ;;  %v5665_v14 = vpack.c.bf16 %v1132_v9, %v1124_v8 }
 0x175   : > { %5820 = vmatpush1.bf16.msra.mxu1 %v5819_v20  ;;  %5626 = vmatprep.subr.bf16.mxu0 %v5625_v21  ;;  %v1051_v20 = vld [vmem:[%s8276_s8 + $0x1340] sm:$0xff]  ;;  %v1045_v21 = vld [vmem:[%s8276_s8 + $0x1310] sm:$0xff] }
 0x176   : > { %5822 = vmatprep.subr.bf16.mxu1 %v5821_v25  ;;  %1471 = vmatprep.mubr.f32.mxu0 %v433_v31  ;;  %v1068_v25 = vld [vmem:[%s8276_s8 + $0x13c8] sm:$0xff]  ;;  %v5647_v28 = vpack.c.bf16 %v1051_v20, %v1043_v19  ;;  %v5843_v29 = vpack.c.bf16 %v1053_v23, %v1045_v21  ;;  %v1133_v19 = vld [vmem:[%s8276_s8 + $0x15d0] sm:$0xff]  ;;  %v1150_v23 = vld [vmem:[%s8276_s8 + $0x1658] sm:$0xff] }
 0x177   : > { %1755 = vmatprep.mubr.f32.mxu1 %v433_v31  ;;  %v5649_v30 = vpack.c.bf16 %v1068_v25, %v1060_v24  ;;  %v1059_v31 = vld [vmem:[%s8276_s8 + $0x1380] sm:$0xff]  ;;  %v1140_v20 = vld [vmem:[%s8276_s8 + $0x1608] sm:$0xff] }
 0x178   : > { %5628 = vmatpush1.bf16.msra.mxu0 %v5627_v32  ;;  %v1067_v32 = vld [vmem:[%s8276_s8 + $0x13c0] sm:$0xff]  ;;  %v1148_v21 = vld [vmem:[%s8276_s8 + $0x1648] sm:$0xff] }
 0x179   : > { %5824 = vmatpush1.bf16.msra.mxu1 %v5823_v33  ;;  %5630 = vmatprep.subr.bf16.mxu0 %v5629_v34  ;;  %v1061_v33 = vld [vmem:[%s8276_s8 + $0x1390] sm:$0xff]  ;;  %v5845_v34 = vpack.c.bf16 %v1070_v27, %v1062_v26  ;;  %v5651_v40 = vpack.c.bf16 %v1067_v32, %v1059_v31  ;;  %v5669_v26 = vpack.c.bf16 %v1148_v21, %v1140_v20  ;;  %v1139_v27 = vld [vmem:[%s8276_s8 + $0x1600] sm:$0xff]  ;;  %v1156_v32 = vld [vmem:[%s8276_s8 + $0x1688] sm:$0xff] }
 0x17a   : > { %5826 = vmatprep.subr.bf16.mxu1 %v5825_v38  ;;  %v1078_v38 = vld [vmem:[%s8276_s8 + $0x1418] sm:$0xff]  ;;  %v5847_v41 = vpack.c.bf16 %v1069_v35, %v1061_v33  ;;  %v1149_v31 = vld [vmem:[%s8276_s8 + $0x1650] sm:$0xff]  ;;  %v1164_v33 = vld [vmem:[%s8276_s8 + $0x16c8] sm:$0xff] }
 0x17b   : > { %v1166_v35 = vld [vmem:[%s8276_s8 + $0x16d8] sm:$0xff] }
 0x17c   : > { %5632 = vmatpush1.bf16.msra.mxu0 %v5631_v44  ;;  %v1083_v44 = vld [vmem:[%s8276_s8 + $0x1440] sm:$0xff]  ;;  %v442_v20 = vld [vmem:[%s8276_s8 + $0x38] sm:$0xff] }
 0x17d   : > { %5828 = vmatpush1.bf16.msra.mxu1 %v5827_v45  ;;  %5634 = vmatprep.subr.bf16.mxu0 %v5633_v46  ;;  %v1077_v45 = vld [vmem:[%s8276_s8 + $0x1410] sm:$0xff]  ;;  %v5849_v46 = vpack.c.bf16 %v1086_v39, %v1078_v38  ;;  %v5655_v52 = vpack.c.bf16 %v1083_v44, %v1075_v43  ;;  %v5673_v38 = vpack.c.bf16 %v1164_v33, %v1156_v32  ;;  %v1155_v39 = vld [vmem:[%s8276_s8 + $0x1680] sm:$0xff]  ;;  %v1172_v44 = vld [vmem:[%s8276_s8 + $0x1708] sm:$0xff] }
 0x17e   : > { %5830 = vmatprep.subr.bf16.mxu1 %v5829_v50  ;;  %v1094_v50 = vld [vmem:[%s8276_s8 + $0x1498] sm:$0xff]  ;;  %v5851_v53 = vpack.c.bf16 %v1085_v47, %v1077_v45  ;;  %v1165_v43 = vld [vmem:[%s8276_s8 + $0x16d0] sm:$0xff]  ;;  %v1180_v45 = vld [vmem:[%s8276_s8 + $0x1748] sm:$0xff] }
 0x17f   : > { %v1182_v47 = vld [vmem:[%s8276_s8 + $0x1758] sm:$0xff] }
 0x180   : > { %5636 = vmatpush1.bf16.msra.mxu0 %v5635_v56  ;;  %v1099_v56 = vld [vmem:[%s8276_s8 + $0x14c0] sm:$0xff]  ;;  %v450_v21 = vld [vmem:[%s8276_s8 + $0x78] sm:$0xff] }
 0x181   : > { %5832 = vmatpush1.bf16.msra.mxu1 %v5831_v57  ;;  %5638 = vmatprep.subr.bf16.mxu0 %v5637_v58  ;;  %v1093_v57 = vld [vmem:[%s8276_s8 + $0x1490] sm:$0xff]  ;;  %v5853_v58 = vpack.c.bf16 %v1102_v51, %v1094_v50  ;;  %v5659_v0 = vpack.c.bf16 %v1099_v56, %v1091_v55  ;;  %v5677_v50 = vpack.c.bf16 %v1180_v45, %v1172_v44  ;;  %v1171_v51 = vld [vmem:[%s8276_s8 + $0x1700] sm:$0xff]  ;;  %v1188_v56 = vld [vmem:[%s8276_s8 + $0x1788] sm:$0xff] }
 0x182   : > { %5834 = vmatprep.subr.bf16.mxu1 %v5833_v62  ;;  %v1110_v62 = vld [vmem:[%s8276_s8 + $0x1518] sm:$0xff]  ;;  %v5855_v1 = vpack.c.bf16 %v1101_v59, %v1093_v57  ;;  %v1181_v55 = vld [vmem:[%s8276_s8 + $0x1750] sm:$0xff]  ;;  %v1196_v57 = vld [vmem:[%s8276_s8 + $0x17c8] sm:$0xff] }
 0x183   : > { %v1198_v59 = vld [vmem:[%s8276_s8 + $0x17d8] sm:$0xff]  ;;  %v480_v44 = vld [vmem:[%s8276_s8 + $0x168] sm:$0xff] }
 0x184   : > { %5640 = vmatpush1.bf16.msra.mxu0 %v5639_v4  ;;  %v1115_v4 = vld [vmem:[%s8276_s8 + $0x1540] sm:$0xff]  ;;  %v458_v32 = vld [vmem:[%s8276_s8 + $0xb8] sm:$0xff] }
 0x185   : > { %5836 = vmatpush1.bf16.msra.mxu1 %v5835_v5  ;;  %5642 = vmatprep.subr.bf16.mxu0 %v5641_v6  ;;  %v1109_v5 = vld [vmem:[%s8276_s8 + $0x1510] sm:$0xff]  ;;  %v5857_v6 = vpack.c.bf16 %v1118_v63, %v1110_v62  ;;  %v5663_v12 = vpack.c.bf16 %v1115_v4, %v1107_v3  ;;  %v5681_v62 = vpack.c.bf16 %v1196_v57, %v1188_v56  ;;  %v1187_v63 = vld [vmem:[%s8276_s8 + $0x1780] sm:$0xff]  ;;  %v1204_v4 = vld [vmem:[%s8276_s8 + $0x1808] sm:$0xff] }
 0x186   : > { %5838 = vmatprep.subr.bf16.mxu1 %v5837_v10  ;;  %v1126_v10 = vld [vmem:[%s8276_s8 + $0x1598] sm:$0xff]  ;;  %v5859_v13 = vpack.c.bf16 %v1117_v7, %v1109_v5  ;;  %v1197_v3 = vld [vmem:[%s8276_s8 + $0x17d0] sm:$0xff]  ;;  %v1212_v5 = vld [vmem:[%s8276_s8 + $0x1848] sm:$0xff] }
 0x187   : > { %v1214_v7 = vld [vmem:[%s8276_s8 + $0x1858] sm:$0xff]  ;;  %v496_v56 = vld [vmem:[%s8276_s8 + $0x1e8] sm:$0xff]  ;;  %v7623_v57 = vld [vmem:[#allocation3 + $0x8] sm:$0xff] }
 0x188   : > { %5644 = vmatpush1.bf16.msra.mxu0 %v5643_v16  ;;  %v1131_v16 = vld [vmem:[%s8276_s8 + $0x15c0] sm:$0xff]  ;;  %v466_v33 = vld [vmem:[%s8276_s8 + $0xf8] sm:$0xff] }
 0x189   : > { %5840 = vmatpush1.bf16.msra.mxu1 %v5839_v17  ;;  %5646 = vmatprep.subr.bf16.mxu0 %v5645_v18  ;;  %v1125_v17 = vld [vmem:[%s8276_s8 + $0x1590] sm:$0xff]  ;;  %v5861_v18 = vpack.c.bf16 %v1134_v11, %v1126_v10  ;;  %v5667_v24 = vpack.c.bf16 %v1131_v16, %v1123_v15  ;;  %v5685_v10 = vpack.c.bf16 %v1212_v5, %v1204_v4  ;;  %v1203_v11 = vld [vmem:[%s8276_s8 + $0x1800] sm:$0xff]  ;;  %v440_v16 = vld [vmem:[%s8276_s8 + $0x28] sm:$0xff] }
 0x18a   : > { %5842 = vmatprep.subr.bf16.mxu1 %v5841_v22  ;;  %v1142_v22 = vld [vmem:[%s8276_s8 + $0x1618] sm:$0xff]  ;;  %v5863_v25 = vpack.c.bf16 %v1133_v19, %v1125_v17  ;;  %v1213_v15 = vld [vmem:[%s8276_s8 + $0x1850] sm:$0xff]  ;;  %v448_v17 = vld [vmem:[%s8276_s8 + $0x68] sm:$0xff] }
 0x18b   : > { %v474_v45 = vld [vmem:[%s8276_s8 + $0x138] sm:$0xff]  ;;  %v504_v4 = vld [vmem:[%s8276_s8 + $0x228] sm:$0xff] }
 0x18c   : > { %5648 = vmatpush1.bf16.msra.mxu0 %v5647_v28  ;;  %v1147_v28 = vld [vmem:[%s8276_s8 + $0x1640] sm:$0xff]  ;;  %v512_v5 = vld [vmem:[%s8276_s8 + $0x268] sm:$0xff] }
 0x18d   : > { %5844 = vmatpush1.bf16.msra.mxu1 %v5843_v29  ;;  %5650 = vmatprep.subr.bf16.mxu0 %v5649_v30  ;;  %v1141_v29 = vld [vmem:[%s8276_s8 + $0x1610] sm:$0xff]  ;;  %v5865_v30 = vpack.c.bf16 %v1150_v23, %v1142_v22  ;;  %v5671_v36 = vpack.c.bf16 %v1147_v28, %v1139_v27  ;;  %v5885_v23 = vpack.c.bf16 %v448_v17, %v440_v16  ;;  %v447_v27 = vld [vmem:[%s8276_s8 + $0x60] sm:$0xff]  ;;  %v520_v16 = vld [vmem:[%s8276_s8 + $0x2a8] sm:$0xff] }
 0x18e   : > { %5846 = vmatprep.subr.bf16.mxu1 %v5845_v34  ;;  %v1158_v34 = vld [vmem:[%s8276_s8 + $0x1698] sm:$0xff]  ;;  %v5867_v37 = vpack.c.bf16 %v1149_v31, %v1141_v29  ;;  %v441_v28 = vld [vmem:[%s8276_s8 + $0x30] sm:$0xff]  ;;  %v464_v31 = vld [vmem:[%s8276_s8 + $0xe8] sm:$0xff] }
 0x18f   : > { %v449_v29 = vld [vmem:[%s8276_s8 + $0x70] sm:$0xff]  ;;  %v528_v17 = vld [vmem:[%s8276_s8 + $0x2e8] sm:$0xff] }
 0x190   : > { %5652 = vmatpush1.bf16.msra.mxu0 %v5651_v40  ;;  %v1163_v40 = vld [vmem:[%s8276_s8 + $0x16c0] sm:$0xff] }
 0x191   : > { %5848 = vmatpush1.bf16.msra.mxu1 %v5847_v41  ;;  %5654 = vmatprep.subr.bf16.mxu0 %v5653_v42  ;;  %v1157_v41 = vld [vmem:[%s8276_s8 + $0x1690] sm:$0xff]  ;;  %v5869_v42 = vpack.c.bf16 %v1166_v35, %v1158_v34  ;;  %v5675_v48 = vpack.c.bf16 %v1163_v40, %v1155_v39  ;;  %v434_v34 = vld [vmem:[#allocation3 + $0x30] sm:$0xff]  ;;  %v463_v39 = vld [vmem:[%s8276_s8 + $0xe0] sm:$0xff] }
 0x192   : > { %5850 = vmatprep.subr.bf16.mxu1 %v5849_v46  ;;  %v1174_v46 = vld [vmem:[%s8276_s8 + $0x1718] sm:$0xff]  ;;  %v5871_v49 = vpack.c.bf16 %v1165_v43, %v1157_v41  ;;  %v457_v40 = vld [vmem:[%s8276_s8 + $0xb0] sm:$0xff]  ;;  %v6085_v41 = vpack.c.bf16 %v466_v33, %v458_v32  ;;  %v472_v43 = vld [vmem:[%s8276_s8 + $0x128] sm:$0xff] }
 0x193   : > { %v546_v32 = vld [vmem:[%s8276_s8 + $0x378] sm:$0xff] }
 0x194   : > { %5656 = vmatpush1.bf16.msra.mxu0 %v5655_v52  ;;  %v1179_v52 = vld [vmem:[%s8276_s8 + $0x1740] sm:$0xff] }
 0x195   : > { %5852 = vmatpush1.bf16.msra.mxu1 %v5851_v53  ;;  %5658 = vmatprep.subr.bf16.mxu0 %v5657_v54  ;;  %v1173_v53 = vld [vmem:[%s8276_s8 + $0x1710] sm:$0xff]  ;;  %v5873_v54 = vpack.c.bf16 %v1182_v47, %v1174_v46  ;;  %v5679_v60 = vpack.c.bf16 %v1179_v52, %v1171_v51  ;;  %v482_v46 = vld [vmem:[%s8276_s8 + $0x178] sm:$0xff]  ;;  %v479_v51 = vld [vmem:[%s8276_s8 + $0x160] sm:$0xff] }
 0x196   : > { %5854 = vmatprep.subr.bf16.mxu1 %v5853_v58  ;;  %v1190_v58 = vld [vmem:[%s8276_s8 + $0x1798] sm:$0xff]  ;;  %v5875_v61 = vpack.c.bf16 %v1181_v55, %v1173_v53  ;;  %v473_v52 = vld [vmem:[%s8276_s8 + $0x130] sm:$0xff]  ;;  %v6089_v53 = vpack.c.bf16 %v482_v46, %v474_v45  ;;  %v488_v55 = vld [vmem:[%s8276_s8 + $0x1a8] sm:$0xff] }
 0x198   : > { %5660 = vmatpush1.bf16.msra.mxu0 %v5659_v0  ;;  %v1195_v0 = vld [vmem:[%s8276_s8 + $0x17c0] sm:$0xff] }
 0x199   : > { %5856 = vmatpush1.bf16.msra.mxu1 %v5855_v1  ;;  %5662 = vmatprep.subr.bf16.mxu0 %v5661_v2  ;;  %v1189_v1 = vld [vmem:[%s8276_s8 + $0x1790] sm:$0xff]  ;;  %v5877_v2 = vpack.c.bf16 %v1198_v59, %v1190_v58  ;;  %v5683_v8 = vpack.c.bf16 %v1195_v0, %v1187_v63  ;;  %v490_v58 = vld [vmem:[%s8276_s8 + $0x1b8] sm:$0xff]  ;;  %v487_v63 = vld [vmem:[%s8276_s8 + $0x1a0] sm:$0xff] }
 0x19a   : > { %5858 = vmatprep.subr.bf16.mxu1 %v5857_v6  ;;  %v1206_v6 = vld [vmem:[%s8276_s8 + $0x1818] sm:$0xff]  ;;  %v5879_v9 = vpack.c.bf16 %v1197_v3, %v1189_v1  ;;  %v495_v0 = vld [vmem:[%s8276_s8 + $0x1e0] sm:$0xff]  ;;  %v489_v1 = vld [vmem:[%s8276_s8 + $0x1b0] sm:$0xff] }
 0x19b   : > { %v498_v59 = vld [vmem:[%s8276_s8 + $0x1f8] sm:$0xff]  ;;  %v497_v3 = vld [vmem:[%s8276_s8 + $0x1f0] sm:$0xff] }
 0x19c   : > { %5664 = vmatpush1.bf16.msra.mxu0 %v5663_v12  ;;  %v1211_v12 = vld [vmem:[%s8276_s8 + $0x1840] sm:$0xff] }
 0x19d   : > { %5860 = vmatpush1.bf16.msra.mxu1 %v5859_v13  ;;  %5666 = vmatprep.subr.bf16.mxu0 %v5665_v14  ;;  %v5881_v13 = vpack.c.bf16 %v1214_v7, %v1206_v6  ;;  %v1205_v14 = vld [vmem:[%s8276_s8 + $0x1810] sm:$0xff]  ;;  %v5687_v19 = vpack.c.bf16 %v1211_v12, %v1203_v11  ;;  %v506_v6 = vld [vmem:[%s8276_s8 + $0x238] sm:$0xff]  ;;  %v503_v11 = vld [vmem:[%s8276_s8 + $0x220] sm:$0xff] }
 0x19e   : > { %5862 = vmatprep.subr.bf16.mxu1 %v5861_v18  ;;  %v432_v18 = vld [vmem:[#allocation3 + $0x20] sm:$0xff]  ;;  %v5883_v22 = vpack.c.bf16 %v1213_v15, %v1205_v14  ;;  %v514_v7 = vld [vmem:[%s8276_s8 + $0x278] sm:$0xff]  ;;  %v511_v12 = vld [vmem:[%s8276_s8 + $0x260] sm:$0xff] }
 0x19f   : > { %v6097_v14 = vpack.c.bf16 %v514_v7, %v506_v6  ;;  %v513_v15 = vld [vmem:[%s8276_s8 + $0x270] sm:$0xff] }
 0x1a0   : > { %5668 = vmatpush1.bf16.msra.mxu0 %v5667_v24  ;;  %v6081_v24 = vpack.c.bf16 %v450_v21, %v442_v20  ;;  %v5903_v20 = vpack.c.bf16 %v511_v12, %v503_v11  ;;  %v593_v12 = vld [vmem:[%s8276_s8 + $0x4f0] sm:$0xff] }
 0x1a1   : > { %5864 = vmatpush1.bf16.msra.mxu1 %v5863_v25  ;;  %5670 = vmatprep.subr.bf16.mxu0 %v5669_v26  ;;  %v7960_v25 = vmov 0.0   ;;  %v439_v26 = vld [vmem:[%s8276_s8 + $0x20] sm:$0xff] }
 0x1a2   : > { %5866 = vmatprep.subr.bf16.mxu1 %v5865_v30  ;;  %v456_v30 = vld [vmem:[%s8276_s8 + $0xa8] sm:$0xff]  ;;  %v5887_v35 = vpack.c.bf16 %v447_v27, %v439_v26  ;;  %v521_v26 = vld [vmem:[%s8276_s8 + $0x2b0] sm:$0xff] }
 0x1a4   : > { %5672 = vmatpush1.bf16.msra.mxu0 %v5671_v36  ;;  %v6083_v36 = vpack.c.bf16 %v449_v29, %v441_v28  ;;  %v529_v28 = vld [vmem:[%s8276_s8 + $0x2f0] sm:$0xff]  ;;  %v536_v29 = vld [vmem:[%s8276_s8 + $0x328] sm:$0xff] }
 0x1a5   : > { %5868 = vmatpush1.bf16.msra.mxu1 %v5867_v37  ;;  %5674 = vmatprep.subr.bf16.mxu0 %v5673_v38  ;;  %v5889_v37 = vpack.c.bf16 %v464_v31, %v456_v30  ;;  %v455_v38 = vld [vmem:[%s8276_s8 + $0xa0] sm:$0xff]  ;;  %v544_v30 = vld [vmem:[%s8276_s8 + $0x368] sm:$0xff]  ;;  %v538_v31 = vld [vmem:[%s8276_s8 + $0x338] sm:$0xff] }
 0x1a6   : > { %5870 = vmatprep.subr.bf16.mxu1 %v5869_v42  ;;  %v465_v42 = vld [vmem:[%s8276_s8 + $0xf0] sm:$0xff]  ;;  %v5891_v47 = vpack.c.bf16 %v463_v39, %v455_v38  ;;  %v6105_v39 = vpack.c.bf16 %v546_v32, %v538_v31 }
 0x1a7   : > { %v537_v38 = vld [vmem:[%s8276_s8 + $0x330] sm:$0xff] }
 0x1a8   : > { %5676 = vmatpush1.bf16.msra.mxu0 %v5675_v48  ;;  %v6087_v48 = vpack.c.bf16 %v465_v42, %v457_v40  ;;  %v545_v40 = vld [vmem:[%s8276_s8 + $0x370] sm:$0xff]  ;;  %v560_v42 = vld [vmem:[%s8276_s8 + $0x3e8] sm:$0xff] }
 0x1a9   : > { %5872 = vmatpush1.bf16.msra.mxu1 %v5871_v49  ;;  %5678 = vmatprep.subr.bf16.mxu0 %v5677_v50  ;;  %v5893_v49 = vpack.c.bf16 %v480_v44, %v472_v43  ;;  %v471_v50 = vld [vmem:[%s8276_s8 + $0x120] sm:$0xff]  ;;  %v554_v43 = vld [vmem:[%s8276_s8 + $0x3b8] sm:$0xff]  ;;  %v6107_v46 = vpack.c.bf16 %v545_v40, %v537_v38  ;;  %v632_v38 = vld [vmem:[%s8276_s8 + $0x628] sm:$0xff] }
 0x1aa   : > { %5874 = vmatprep.subr.bf16.mxu1 %v5873_v54  ;;  %v481_v54 = vld [vmem:[%s8276_s8 + $0x170] sm:$0xff]  ;;  %v562_v44 = vld [vmem:[%s8276_s8 + $0x3f8] sm:$0xff] }
 0x1ab   : > { %v634_v40 = vld [vmem:[%s8276_s8 + $0x638] sm:$0xff] }
 0x1ac   : > { %5680 = vmatpush1.bf16.msra.mxu0 %v5679_v60  ;;  %v5895_v60 = vpack.c.bf16 %v479_v51, %v471_v50  ;;  %v553_v50 = vld [vmem:[%s8276_s8 + $0x3b0] sm:$0xff]  ;;  %v6109_v51 = vpack.c.bf16 %v562_v44, %v554_v43 }
 0x1ad   : > { %5876 = vmatpush1.bf16.msra.mxu1 %v5875_v61  ;;  %5682 = vmatprep.subr.bf16.mxu0 %v5681_v62  ;;  %v6091_v61 = vpack.c.bf16 %v481_v54, %v473_v52  ;;  %v5897_v62 = vpack.c.bf16 %v496_v56, %v488_v55  ;;  %v561_v52 = vld [vmem:[%s8276_s8 + $0x3f0] sm:$0xff]  ;;  %v576_v54 = vld [vmem:[%s8276_s8 + $0x468] sm:$0xff]  ;;  %v570_v55 = vld [vmem:[%s8276_s8 + $0x438] sm:$0xff] }
 0x1ae   : > { %5878 = vmatprep.subr.bf16.mxu1 %v5877_v2  ;;  %v6093_v2 = vpack.c.bf16 %v498_v59, %v490_v58  ;;  %v578_v56 = vld [vmem:[%s8276_s8 + $0x478] sm:$0xff]  ;;  %v6111_v58 = vpack.c.bf16 %v561_v52, %v553_v50  ;;  %v648_v50 = vld [vmem:[%s8276_s8 + $0x6a8] sm:$0xff] }
 0x1af   : > { %v650_v52 = vld [vmem:[%s8276_s8 + $0x6b8] sm:$0xff] }
 0x1b0   : > { %5684 = vmatpush1.bf16.msra.mxu0 %v5683_v8  ;;  %v5899_v8 = vpack.c.bf16 %v495_v0, %v487_v63  ;;  %v6113_v63 = vpack.c.bf16 %v578_v56, %v570_v55  ;;  %v577_v0 = vld [vmem:[%s8276_s8 + $0x470] sm:$0xff] }
 0x1b1   : > { %5880 = vmatpush1.bf16.msra.mxu1 %v5879_v9  ;;  %5686 = vmatprep.subr.bf16.mxu0 %v5685_v10  ;;  %v6095_v9 = vpack.c.bf16 %v497_v3, %v489_v1  ;;  %v5901_v10 = vpack.c.bf16 %v512_v5, %v504_v4  ;;  %v584_v1 = vld [vmem:[%s8276_s8 + $0x4a8] sm:$0xff]  ;;  %v586_v3 = vld [vmem:[%s8276_s8 + $0x4b8] sm:$0xff] }
 0x1b2   : > { %5882 = vmatprep.subr.bf16.mxu1 %v5881_v13  ;;  %v505_v13 = vld [vmem:[%s8276_s8 + $0x230] sm:$0xff]  ;;  %v594_v4 = vld [vmem:[%s8276_s8 + $0x4f8] sm:$0xff] }
 0x1b3   : > { %1472 = vmatmul.mubr.f32.vlgmr.msra.gmra.mrb[0].mxu0 %v432_v18  ;;  %v6099_v21 = vpack.c.bf16 %v513_v15, %v505_v13  ;;  %v6117_v11 = vpack.c.bf16 %v594_v4, %v586_v3  ;;  %v600_v13 = vld [vmem:[%s8276_s8 + $0x528] sm:$0xff]  ;;  %v602_v15 = vld [vmem:[%s8276_s8 + $0x538] sm:$0xff] }
 0x1b4   : > { %1756 = vmatmul.mubr.f32.vlgmr.msra.gmra.mrb[0].mxu1 %v432_v18  ;;  %5688 = vmatpush1.bf16.msra.mxu0 %v5687_v19  ;;  %v522_v18 = vld [vmem:[%s8276_s8 + $0x2b8] sm:$0xff] }
 0x1b5   : > { %5884 = vmatpush1.bf16.msra.mxu1 %v5883_v22  ;;  %1542 = vmatprep.mubr.f32.mxu0 %v7960_v25  ;;  %v530_v19 = vld [vmem:[%s8276_s8 + $0x2f8] sm:$0xff]  ;;  %v5905_v22 = vpack.c.bf16 %v528_v17, %v520_v16 }
 0x1b6   : > { %1826 = vmatprep.mubr.f32.mxu1 %v7960_v25  ;;  %5886 = vmatprep.subr.bf16.mxu0 %v5885_v23  ;;  %v519_v23 = vld [vmem:[%s8276_s8 + $0x2a0] sm:$0xff]  ;;  %v6101_v27 = vpack.c.bf16 %v530_v19, %v522_v18  ;;  %v610_v16 = vld [vmem:[%s8276_s8 + $0x578] sm:$0xff] }
 0x1b7   : > { %6082 = vmatprep.subr.bf16.mxu1 %v6081_v24  ;;  %v527_v24 = vld [vmem:[%s8276_s8 + $0x2e0] sm:$0xff] }
 0x1b8   : > { %v5907_v33 = vpack.c.bf16 %v527_v24, %v519_v23  ;;  %v6121_v23 = vpack.c.bf16 %v610_v16, %v602_v15  ;;  %v609_v24 = vld [vmem:[%s8276_s8 + $0x570] sm:$0xff] }
 0x1bb   : > { %5323 = vmatmul.mubr.msk.f32.vlgmr.msra.gmra.mrb[0].mxu0 %vm1261_vm0, %v434_v34 }
 0x1bc   : > { %5324 = vmatmul.mubr.msk.f32.vlgmr.msra.gmra.mrb[0].mxu1 %vm1261_vm0, %v434_v34  ;;  %5888 = vmatpush1.bf16.msra.mxu0 %v5887_v35  ;;  %v6103_v34 = vpack.c.bf16 %v529_v28, %v521_v26  ;;  %v5909_v35 = vpack.c.bf16 %v544_v30, %v536_v29  ;;  %v616_v26 = vld [vmem:[%s8276_s8 + $0x5a8] sm:$0xff]  ;;  %v618_v28 = vld [vmem:[%s8276_s8 + $0x5b8] sm:$0xff] }
 0x1bd   : > { %6084 = vmatpush1.bf16.msra.mxu1 %v6083_v36  ;;  %5890 = vmatprep.subr.bf16.mxu0 %v5889_v37  ;;  %v535_v36 = vld [vmem:[%s8276_s8 + $0x320] sm:$0xff]  ;;  %v626_v29 = vld [vmem:[%s8276_s8 + $0x5f8] sm:$0xff] }
 0x1be   : > { %6086 = vmatprep.subr.bf16.mxu1 %v6085_v41  ;;  %1897 = vmatprep.mubr.f32.mxu0 %v7623_v57  ;;  %v543_v37 = vld [vmem:[%s8276_s8 + $0x360] sm:$0xff]  ;;  %v552_v41 = vld [vmem:[%s8276_s8 + $0x3a8] sm:$0xff] }
 0x1bf   : > { %2181 = vmatprep.mubr.f32.mxu1 %v7623_v57  ;;  %v5911_v45 = vpack.c.bf16 %v543_v37, %v535_v36  ;;  %v6125_v36 = vpack.c.bf16 %v626_v29, %v618_v28  ;;  %v625_v37 = vld [vmem:[%s8276_s8 + $0x5f0] sm:$0xff] }
 0x1c0   : > { %5892 = vmatpush1.bf16.msra.mxu0 %v5891_v47  ;;  %v5913_v47 = vpack.c.bf16 %v560_v42, %v552_v41  ;;  %v642_v41 = vld [vmem:[%s8276_s8 + $0x678] sm:$0xff] }
 0x1c1   : > { %6088 = vmatpush1.bf16.msra.mxu1 %v6087_v48  ;;  %5894 = vmatprep.subr.bf16.mxu0 %v5893_v49  ;;  %v551_v48 = vld [vmem:[%s8276_s8 + $0x3a0] sm:$0xff] }
 0x1c2   : > { %6090 = vmatprep.subr.bf16.mxu1 %v6089_v53  ;;  %v559_v49 = vld [vmem:[%s8276_s8 + $0x3e0] sm:$0xff]  ;;  %v568_v53 = vld [vmem:[%s8276_s8 + $0x428] sm:$0xff] }
 0x1c3   : > { %v5915_v57 = vpack.c.bf16 %v559_v49, %v551_v48  ;;  %v5917_v59 = vpack.c.bf16 %v576_v54, %v568_v53  ;;  %v6129_v48 = vpack.c.bf16 %v642_v41, %v634_v40  ;;  %v641_v49 = vld [vmem:[%s8276_s8 + $0x670] sm:$0xff]  ;;  %v658_v53 = vld [vmem:[%s8276_s8 + $0x6f8] sm:$0xff] }
 0x1c4   : > { %5896 = vmatpush1.bf16.msra.mxu0 %v5895_v60  ;;  %v567_v60 = vld [vmem:[%s8276_s8 + $0x420] sm:$0xff] }
 0x1c5   : > { %6092 = vmatpush1.bf16.msra.mxu1 %v6091_v61  ;;  %5898 = vmatprep.subr.bf16.mxu0 %v5897_v62  ;;  %v575_v61 = vld [vmem:[%s8276_s8 + $0x460] sm:$0xff]  ;;  %v569_v62 = vld [vmem:[%s8276_s8 + $0x430] sm:$0xff] }
 0x1c6   : > { %6094 = vmatprep.subr.bf16.mxu1 %v6093_v2  ;;  %v592_v2 = vld [vmem:[%s8276_s8 + $0x4e8] sm:$0xff]  ;;  %v5919_v5 = vpack.c.bf16 %v575_v61, %v567_v60  ;;  %v6115_v6 = vpack.c.bf16 %v577_v0, %v569_v62  ;;  %v6133_v60 = vpack.c.bf16 %v658_v53, %v650_v52  ;;  %v657_v61 = vld [vmem:[%s8276_s8 + $0x6f0] sm:$0xff]  ;;  %v666_v0 = vld [vmem:[%s8276_s8 + $0x738] sm:$0xff] }
 0x1c7   : > { %v5921_v7 = vpack.c.bf16 %v592_v2, %v584_v1  ;;  %v664_v62 = vld [vmem:[%s8276_s8 + $0x728] sm:$0xff]  ;;  %v674_v1 = vld [vmem:[%s8276_s8 + $0x778] sm:$0xff] }
 0x1c8   : > { %5900 = vmatpush1.bf16.msra.mxu0 %v5899_v8  ;;  %v583_v8 = vld [vmem:[%s8276_s8 + $0x4a0] sm:$0xff] }
 0x1c9   : > { %6096 = vmatpush1.bf16.msra.mxu1 %v6095_v9  ;;  %5902 = vmatprep.subr.bf16.mxu0 %v5901_v10  ;;  %v591_v9 = vld [vmem:[%s8276_s8 + $0x4e0] sm:$0xff]  ;;  %v585_v10 = vld [vmem:[%s8276_s8 + $0x4b0] sm:$0xff] }
 0x1ca   : > { %6098 = vmatprep.subr.bf16.mxu1 %v6097_v14  ;;  %v608_v14 = vld [vmem:[%s8276_s8 + $0x568] sm:$0xff]  ;;  %v5923_v17 = vpack.c.bf16 %v591_v9, %v583_v8  ;;  %v6119_v18 = vpack.c.bf16 %v593_v12, %v585_v10  ;;  %v6137_v8 = vpack.c.bf16 %v674_v1, %v666_v0  ;;  %v673_v9 = vld [vmem:[%s8276_s8 + $0x770] sm:$0xff]  ;;  %v682_v12 = vld [vmem:[%s8276_s8 + $0x7b8] sm:$0xff] }
 0x1cb   : > { %v5925_v19 = vpack.c.bf16 %v608_v14, %v600_v13  ;;  %v680_v10 = vld [vmem:[%s8276_s8 + $0x7a8] sm:$0xff]  ;;  %v690_v13 = vld [vmem:[%s8276_s8 + $0x7f8] sm:$0xff] }
 0x1cc   : > { %5904 = vmatpush1.bf16.msra.mxu0 %v5903_v20  ;;  %v599_v20 = vld [vmem:[%s8276_s8 + $0x520] sm:$0xff]  ;;  %v754_v0 = vld [vmem:[%s8276_s8 + $0x9f8] sm:$0xff] }
 0x1cd   : > { %6100 = vmatpush1.bf16.msra.mxu1 %v6099_v21  ;;  %5906 = vmatprep.subr.bf16.mxu0 %v5905_v22  ;;  %v607_v21 = vld [vmem:[%s8276_s8 + $0x560] sm:$0xff]  ;;  %v601_v22 = vld [vmem:[%s8276_s8 + $0x530] sm:$0xff] }
 0x1ce   : > { %6102 = vmatprep.subr.bf16.mxu1 %v6101_v27  ;;  %v624_v27 = vld [vmem:[%s8276_s8 + $0x5e8] sm:$0xff]  ;;  %v5927_v30 = vpack.c.bf16 %v607_v21, %v599_v20  ;;  %v6123_v31 = vpack.c.bf16 %v609_v24, %v601_v22  ;;  %v6141_v20 = vpack.c.bf16 %v690_v13, %v682_v12  ;;  %v689_v21 = vld [vmem:[%s8276_s8 + $0x7f0] sm:$0xff]  ;;  %v698_v24 = vld [vmem:[%s8276_s8 + $0x838] sm:$0xff] }
 0x1cf   : > { %v5929_v32 = vpack.c.bf16 %v624_v27, %v616_v26  ;;  %v696_v22 = vld [vmem:[%s8276_s8 + $0x828] sm:$0xff]  ;;  %v706_v26 = vld [vmem:[%s8276_s8 + $0x878] sm:$0xff] }
 0x1d0   : > { %5908 = vmatpush1.bf16.msra.mxu0 %v5907_v33  ;;  %v615_v33 = vld [vmem:[%s8276_s8 + $0x5a0] sm:$0xff]  ;;  %v770_v12 = vld [vmem:[%s8276_s8 + $0xa78] sm:$0xff] }
 0x1d1   : > { %6104 = vmatpush1.bf16.msra.mxu1 %v6103_v34  ;;  %5910 = vmatprep.subr.bf16.mxu0 %v5909_v35  ;;  %v623_v34 = vld [vmem:[%s8276_s8 + $0x5e0] sm:$0xff]  ;;  %v617_v35 = vld [vmem:[%s8276_s8 + $0x5b0] sm:$0xff] }
 0x1d2   : > { %6106 = vmatprep.subr.bf16.mxu1 %v6105_v39  ;;  %v640_v39 = vld [vmem:[%s8276_s8 + $0x668] sm:$0xff]  ;;  %v5931_v42 = vpack.c.bf16 %v623_v34, %v615_v33  ;;  %v6127_v43 = vpack.c.bf16 %v625_v37, %v617_v35  ;;  %v6145_v33 = vpack.c.bf16 %v706_v26, %v698_v24  ;;  %v705_v34 = vld [vmem:[%s8276_s8 + $0x870] sm:$0xff]  ;;  %v714_v37 = vld [vmem:[%s8276_s8 + $0x8b8] sm:$0xff] }
 0x1d3   : > { %v5933_v44 = vpack.c.bf16 %v640_v39, %v632_v38  ;;  %v712_v35 = vld [vmem:[%s8276_s8 + $0x8a8] sm:$0xff]  ;;  %v722_v38 = vld [vmem:[%s8276_s8 + $0x8f8] sm:$0xff] }
 0x1d4   : > { %5912 = vmatpush1.bf16.msra.mxu0 %v5911_v45  ;;  %v631_v45 = vld [vmem:[%s8276_s8 + $0x620] sm:$0xff]  ;;  %v786_v24 = vld [vmem:[%s8276_s8 + $0xaf8] sm:$0xff] }
 0x1d5   : > { %6108 = vmatpush1.bf16.msra.mxu1 %v6107_v46  ;;  %5914 = vmatprep.subr.bf16.mxu0 %v5913_v47  ;;  %v639_v46 = vld [vmem:[%s8276_s8 + $0x660] sm:$0xff]  ;;  %v633_v47 = vld [vmem:[%s8276_s8 + $0x630] sm:$0xff] }
 0x1d6   : > { %6110 = vmatprep.subr.bf16.mxu1 %v6109_v51  ;;  %v656_v51 = vld [vmem:[%s8276_s8 + $0x6e8] sm:$0xff]  ;;  %v5935_v54 = vpack.c.bf16 %v639_v46, %v631_v45  ;;  %v6131_v55 = vpack.c.bf16 %v641_v49, %v633_v47  ;;  %v6149_v45 = vpack.c.bf16 %v722_v38, %v714_v37  ;;  %v721_v46 = vld [vmem:[%s8276_s8 + $0x8f0] sm:$0xff]  ;;  %v802_v37 = vld [vmem:[%s8276_s8 + $0xb78] sm:$0xff] }
 0x1d7   : > { %v5937_v56 = vpack.c.bf16 %v656_v51, %v648_v50  ;;  %v728_v47 = vld [vmem:[%s8276_s8 + $0x928] sm:$0xff]  ;;  %v730_v50 = vld [vmem:[%s8276_s8 + $0x938] sm:$0xff] }
 0x1d8   : > { %5916 = vmatpush1.bf16.msra.mxu0 %v5915_v57  ;;  %v647_v57 = vld [vmem:[%s8276_s8 + $0x6a0] sm:$0xff]  ;;  %v7624_v49 = vld [vmem:[#allocation3] sm:$0xff]  ;;  %v738_v51 = vld [vmem:[%s8276_s8 + $0x978] sm:$0xff] }
 0x1d9   : > { %6112 = vmatpush1.bf16.msra.mxu1 %v6111_v58  ;;  %5918 = vmatprep.subr.bf16.mxu0 %v5917_v59  ;;  %v655_v58 = vld [vmem:[%s8276_s8 + $0x6e0] sm:$0xff]  ;;  %v649_v59 = vld [vmem:[%s8276_s8 + $0x6b0] sm:$0xff] }
 0x1da   : > { %6114 = vmatprep.subr.bf16.mxu1 %v6113_v63  ;;  %v672_v63 = vld [vmem:[%s8276_s8 + $0x768] sm:$0xff]  ;;  %v5939_v2 = vpack.c.bf16 %v655_v58, %v647_v57  ;;  %v6135_v3 = vpack.c.bf16 %v657_v61, %v649_v59  ;;  %v729_v57 = vld [vmem:[%s8276_s8 + $0x930] sm:$0xff]  ;;  %v6153_v58 = vpack.c.bf16 %v738_v51, %v730_v50 }
 0x1db   : > { %v5941_v4 = vpack.c.bf16 %v672_v63, %v664_v62  ;;  %v737_v59 = vld [vmem:[%s8276_s8 + $0x970] sm:$0xff]  ;;  %v752_v61 = vld [vmem:[%s8276_s8 + $0x9e8] sm:$0xff]  ;;  %v7625_v62 = vld [vmem:[#allocation3 + $0x18] sm:$0xff] }
 0x1dc   : > { %5920 = vmatpush1.bf16.msra.mxu0 %v5919_v5  ;;  %v663_v5 = vld [vmem:[%s8276_s8 + $0x720] sm:$0xff]  ;;  %v746_v63 = vld [vmem:[%s8276_s8 + $0x9b8] sm:$0xff] }
 0x1dd   : > { %6116 = vmatpush1.bf16.msra.mxu1 %v6115_v6  ;;  %5922 = vmatprep.subr.bf16.mxu0 %v5921_v7  ;;  %v671_v6 = vld [vmem:[%s8276_s8 + $0x760] sm:$0xff]  ;;  %v665_v7 = vld [vmem:[%s8276_s8 + $0x730] sm:$0xff] }
 0x1de   : > { %6118 = vmatprep.subr.bf16.mxu1 %v6117_v11  ;;  %v688_v11 = vld [vmem:[%s8276_s8 + $0x7e8] sm:$0xff]  ;;  %v5943_v14 = vpack.c.bf16 %v671_v6, %v663_v5  ;;  %v6139_v15 = vpack.c.bf16 %v673_v9, %v665_v7  ;;  %v751_v5 = vld [vmem:[%s8276_s8 + $0x9e0] sm:$0xff]  ;;  %v745_v6 = vld [vmem:[%s8276_s8 + $0x9b0] sm:$0xff]  ;;  %v6157_v7 = vpack.c.bf16 %v754_v0, %v746_v63 }
 0x1df   : > { %v5945_v16 = vpack.c.bf16 %v688_v11, %v680_v10  ;;  %v760_v9 = vld [vmem:[%s8276_s8 + $0xa28] sm:$0xff]  ;;  %v762_v11 = vld [vmem:[%s8276_s8 + $0xa38] sm:$0xff] }
 0x1e0   : > { %5924 = vmatpush1.bf16.msra.mxu0 %v5923_v17  ;;  %v679_v17 = vld [vmem:[%s8276_s8 + $0x7a0] sm:$0xff]  ;;  %v768_v10 = vld [vmem:[%s8276_s8 + $0xa68] sm:$0xff] }
 0x1e1   : > { %6120 = vmatpush1.bf16.msra.mxu1 %v6119_v18  ;;  %5926 = vmatprep.subr.bf16.mxu0 %v5925_v19  ;;  %v687_v18 = vld [vmem:[%s8276_s8 + $0x7e0] sm:$0xff]  ;;  %v681_v19 = vld [vmem:[%s8276_s8 + $0x7b0] sm:$0xff] }
 0x1e2   : > { %6122 = vmatprep.subr.bf16.mxu1 %v6121_v23  ;;  %v704_v23 = vld [vmem:[%s8276_s8 + $0x868] sm:$0xff]  ;;  %v5947_v27 = vpack.c.bf16 %v687_v18, %v679_v17  ;;  %v6143_v28 = vpack.c.bf16 %v689_v21, %v681_v19  ;;  %v767_v17 = vld [vmem:[%s8276_s8 + $0xa60] sm:$0xff]  ;;  %v761_v18 = vld [vmem:[%s8276_s8 + $0xa30] sm:$0xff]  ;;  %v6161_v19 = vpack.c.bf16 %v770_v12, %v762_v11 }
 0x1e3   : > { %v5949_v29 = vpack.c.bf16 %v704_v23, %v696_v22  ;;  %v776_v21 = vld [vmem:[%s8276_s8 + $0xaa8] sm:$0xff]  ;;  %v778_v23 = vld [vmem:[%s8276_s8 + $0xab8] sm:$0xff] }
 0x1e4   : > { %5928 = vmatpush1.bf16.msra.mxu0 %v5927_v30  ;;  %v695_v30 = vld [vmem:[%s8276_s8 + $0x820] sm:$0xff]  ;;  %v784_v22 = vld [vmem:[%s8276_s8 + $0xae8] sm:$0xff] }
 0x1e5   : > { %6124 = vmatpush1.bf16.msra.mxu1 %v6123_v31  ;;  %5930 = vmatprep.subr.bf16.mxu0 %v5929_v32  ;;  %v703_v31 = vld [vmem:[%s8276_s8 + $0x860] sm:$0xff]  ;;  %v697_v32 = vld [vmem:[%s8276_s8 + $0x830] sm:$0xff] }
 0x1e6   : > { %6126 = vmatprep.subr.bf16.mxu1 %v6125_v36  ;;  %v720_v36 = vld [vmem:[%s8276_s8 + $0x8e8] sm:$0xff]  ;;  %v5951_v39 = vpack.c.bf16 %v703_v31, %v695_v30  ;;  %v6147_v40 = vpack.c.bf16 %v705_v34, %v697_v32  ;;  %v783_v30 = vld [vmem:[%s8276_s8 + $0xae0] sm:$0xff]  ;;  %v777_v31 = vld [vmem:[%s8276_s8 + $0xab0] sm:$0xff]  ;;  %v6165_v32 = vpack.c.bf16 %v786_v24, %v778_v23 }
 0x1e7   : > { %v5953_v41 = vpack.c.bf16 %v720_v36, %v712_v35  ;;  %v792_v34 = vld [vmem:[%s8276_s8 + $0xb28] sm:$0xff]  ;;  %v794_v36 = vld [vmem:[%s8276_s8 + $0xb38] sm:$0xff] }
 0x1e8   : > { %5932 = vmatpush1.bf16.msra.mxu0 %v5931_v42  ;;  %v711_v42 = vld [vmem:[%s8276_s8 + $0x8a0] sm:$0xff]  ;;  %v800_v35 = vld [vmem:[%s8276_s8 + $0xb68] sm:$0xff] }
 0x1e9   : > { %6128 = vmatpush1.bf16.msra.mxu1 %v6127_v43  ;;  %5934 = vmatprep.subr.bf16.mxu0 %v5933_v44  ;;  %v719_v43 = vld [vmem:[%s8276_s8 + $0x8e0] sm:$0xff]  ;;  %v713_v44 = vld [vmem:[%s8276_s8 + $0x8b0] sm:$0xff] }
 0x1ea   : > { %6130 = vmatprep.subr.bf16.mxu1 %v6129_v48  ;;  %v736_v48 = vld [vmem:[%s8276_s8 + $0x968] sm:$0xff]  ;;  %v5955_v52 = vpack.c.bf16 %v719_v43, %v711_v42  ;;  %v6151_v53 = vpack.c.bf16 %v721_v46, %v713_v44  ;;  %v799_v42 = vld [vmem:[%s8276_s8 + $0xb60] sm:$0xff]  ;;  %v793_v43 = vld [vmem:[%s8276_s8 + $0xb30] sm:$0xff]  ;;  %v6169_v44 = vpack.c.bf16 %v802_v37, %v794_v36 }
 0x1eb   : > { %v808_v46 = vld [vmem:[%s8276_s8 + $0xba8] sm:$0xff] }
 0x1ec   : > { %5936 = vmatpush1.bf16.msra.mxu0 %v5935_v54  ;;  %v5957_v54 = vpack.c.bf16 %v736_v48, %v728_v47  ;;  %v816_v47 = vld [vmem:[%s8276_s8 + $0xbe8] sm:$0xff]  ;;  %v810_v48 = vld [vmem:[%s8276_s8 + $0xbb8] sm:$0xff] }
 0x1ed   : > { %6132 = vmatpush1.bf16.msra.mxu1 %v6131_v55  ;;  %5938 = vmatprep.subr.bf16.mxu0 %v5937_v56  ;;  %v727_v55 = vld [vmem:[%s8276_s8 + $0x920] sm:$0xff] }
 0x1ee   : > { %6134 = vmatprep.subr.bf16.mxu1 %v6133_v60  ;;  %v735_v56 = vld [vmem:[%s8276_s8 + $0x960] sm:$0xff]  ;;  %v744_v60 = vld [vmem:[%s8276_s8 + $0x9a8] sm:$0xff] }
 0x1ef   : > { %v5959_v1 = vpack.c.bf16 %v735_v56, %v727_v55  ;;  %v809_v55 = vld [vmem:[%s8276_s8 + $0xbb0] sm:$0xff] }
 0x1f0   : > { %5940 = vmatpush1.bf16.msra.mxu0 %v5939_v2  ;;  %v6155_v2 = vpack.c.bf16 %v737_v59, %v729_v57  ;;  %v817_v57 = vld [vmem:[%s8276_s8 + $0xbf0] sm:$0xff]  ;;  %v832_v59 = vld [vmem:[%s8276_s8 + $0xc68] sm:$0xff] }
 0x1f1   : > { %6136 = vmatpush1.bf16.msra.mxu1 %v6135_v3  ;;  %5942 = vmatprep.subr.bf16.mxu0 %v5941_v4  ;;  %v5961_v3 = vpack.c.bf16 %v752_v61, %v744_v60  ;;  %v743_v4 = vld [vmem:[%s8276_s8 + $0x9a0] sm:$0xff]  ;;  %v826_v60 = vld [vmem:[%s8276_s8 + $0xc38] sm:$0xff]  ;;  %v6175_v63 = vpack.c.bf16 %v817_v57, %v809_v55  ;;  %v904_v55 = vld [vmem:[%s8276_s8 + $0xea8] sm:$0xff] }
 0x1f2   : > { %6138 = vmatprep.subr.bf16.mxu1 %v6137_v8  ;;  %v753_v8 = vld [vmem:[%s8276_s8 + $0x9f0] sm:$0xff]  ;;  %v5963_v13 = vpack.c.bf16 %v751_v5, %v743_v4  ;;  %v834_v61 = vld [vmem:[%s8276_s8 + $0xc78] sm:$0xff] }
 0x1f3   : > { %v6177_v4 = vpack.c.bf16 %v834_v61, %v826_v60  ;;  %v833_v5 = vld [vmem:[%s8276_s8 + $0xc70] sm:$0xff]  ;;  %v906_v57 = vld [vmem:[%s8276_s8 + $0xeb8] sm:$0xff] }
 0x1f4   : > { %5944 = vmatpush1.bf16.msra.mxu0 %v5943_v14  ;;  %v6159_v14 = vpack.c.bf16 %v753_v8, %v745_v6  ;;  %v840_v6 = vld [vmem:[%s8276_s8 + $0xca8] sm:$0xff]  ;;  %v842_v8 = vld [vmem:[%s8276_s8 + $0xcb8] sm:$0xff] }
 0x1f5   : > { %6140 = vmatpush1.bf16.msra.mxu1 %v6139_v15  ;;  %5946 = vmatprep.subr.bf16.mxu0 %v5945_v16  ;;  %v5965_v15 = vpack.c.bf16 %v768_v10, %v760_v9  ;;  %v759_v16 = vld [vmem:[%s8276_s8 + $0xa20] sm:$0xff]  ;;  %v850_v9 = vld [vmem:[%s8276_s8 + $0xcf8] sm:$0xff] }
 0x1f6   : > { %6142 = vmatprep.subr.bf16.mxu1 %v6141_v20  ;;  %v769_v20 = vld [vmem:[%s8276_s8 + $0xa70] sm:$0xff]  ;;  %v5967_v26 = vpack.c.bf16 %v767_v17, %v759_v16  ;;  %v6181_v16 = vpack.c.bf16 %v850_v9, %v842_v8 }
 0x1f7   : > { %v849_v17 = vld [vmem:[%s8276_s8 + $0xcf0] sm:$0xff] }
 0x1f8   : > { %5948 = vmatpush1.bf16.msra.mxu0 %v5947_v27  ;;  %v6163_v27 = vpack.c.bf16 %v769_v20, %v761_v18  ;;  %v856_v18 = vld [vmem:[%s8276_s8 + $0xd28] sm:$0xff]  ;;  %v858_v20 = vld [vmem:[%s8276_s8 + $0xd38] sm:$0xff] }
 0x1f9   : > { %6144 = vmatpush1.bf16.msra.mxu1 %v6143_v28  ;;  %5950 = vmatprep.subr.bf16.mxu0 %v5949_v29  ;;  %v5969_v28 = vpack.c.bf16 %v784_v22, %v776_v21  ;;  %v775_v29 = vld [vmem:[%s8276_s8 + $0xaa0] sm:$0xff]  ;;  %v866_v21 = vld [vmem:[%s8276_s8 + $0xd78] sm:$0xff] }
 0x1fa   : > { %6146 = vmatprep.subr.bf16.mxu1 %v6145_v33  ;;  %v785_v33 = vld [vmem:[%s8276_s8 + $0xaf0] sm:$0xff]  ;;  %v5971_v38 = vpack.c.bf16 %v783_v30, %v775_v29  ;;  %v6185_v29 = vpack.c.bf16 %v866_v21, %v858_v20 }
 0x1fb   : > { %1898 = vmatmul.mubr.f32.vlgmr.msra.gmra.mrb[2].mxu0 %v7624_v49  ;;  %v865_v30 = vld [vmem:[%s8276_s8 + $0xd70] sm:$0xff] }
 0x1fc   : > { %5952 = vmatpush1.bf16.msra.mxu0 %v5951_v39  ;;  %2182 = vmatmul.mubr.f32.vlgmr.msra.gmra.mrb[2].mxu1 %v7624_v49  ;;  %v6167_v39 = vpack.c.bf16 %v785_v33, %v777_v31  ;;  %v818_v49 = vld [vmem:[%s8276_s8 + $0xbf8] sm:$0xff]  ;;  %v872_v31 = vld [vmem:[%s8276_s8 + $0xda8] sm:$0xff] }
 0x1fd   : > { %6148 = vmatpush1.bf16.msra.mxu1 %v6147_v40  ;;  %5954 = vmatprep.subr.bf16.mxu0 %v5953_v41  ;;  %v5973_v40 = vpack.c.bf16 %v800_v35, %v792_v34  ;;  %v791_v41 = vld [vmem:[%s8276_s8 + $0xb20] sm:$0xff]  ;;  %v6173_v56 = vpack.c.bf16 %v818_v49, %v810_v48  ;;  %v874_v33 = vld [vmem:[%s8276_s8 + $0xdb8] sm:$0xff] }
 0x1fe   : > { %6150 = vmatprep.subr.bf16.mxu1 %v6149_v45  ;;  %1968 = vmatprep.mubr.f32.mxu0 %v7625_v62  ;;  %v801_v45 = vld [vmem:[%s8276_s8 + $0xb70] sm:$0xff]  ;;  %v5975_v50 = vpack.c.bf16 %v799_v42, %v791_v41  ;;  %v882_v34 = vld [vmem:[%s8276_s8 + $0xdf8] sm:$0xff] }
 0x1ff   : > { %2252 = vmatprep.mubr.f32.mxu1 %v7625_v62  ;;  %v6171_v51 = vpack.c.bf16 %v801_v45, %v793_v43  ;;  %v6189_v41 = vpack.c.bf16 %v882_v34, %v874_v33  ;;  %v881_v42 = vld [vmem:[%s8276_s8 + $0xdf0] sm:$0xff]  ;;  %v888_v43 = vld [vmem:[%s8276_s8 + $0xe28] sm:$0xff]  ;;  %v890_v45 = vld [vmem:[%s8276_s8 + $0xe38] sm:$0xff] }
 0x200   : > { %5956 = vmatpush1.bf16.msra.mxu0 %v5955_v52  ;;  %v5977_v52 = vpack.c.bf16 %v816_v47, %v808_v46  ;;  %v898_v46 = vld [vmem:[%s8276_s8 + $0xe78] sm:$0xff] }
 0x201   : > { %6152 = vmatpush1.bf16.msra.mxu1 %v6151_v53  ;;  %5958 = vmatprep.subr.bf16.mxu0 %v5957_v54  ;;  %v807_v53 = vld [vmem:[%s8276_s8 + $0xba0] sm:$0xff] }
 0x202   : > { %6154 = vmatprep.subr.bf16.mxu1 %v6153_v58  ;;  %v815_v54 = vld [vmem:[%s8276_s8 + $0xbe0] sm:$0xff]  ;;  %v824_v58 = vld [vmem:[%s8276_s8 + $0xc28] sm:$0xff] }
 0x203   : > { %v5979_v62 = vpack.c.bf16 %v815_v54, %v807_v53  ;;  %v5981_v0 = vpack.c.bf16 %v832_v59, %v824_v58  ;;  %v6193_v53 = vpack.c.bf16 %v898_v46, %v890_v45  ;;  %v897_v54 = vld [vmem:[%s8276_s8 + $0xe70] sm:$0xff]  ;;  %v914_v58 = vld [vmem:[%s8276_s8 + $0xef8] sm:$0xff] }
 0x204   : > { %5960 = vmatpush1.bf16.msra.mxu0 %v5959_v1  ;;  %v823_v1 = vld [vmem:[%s8276_s8 + $0xc20] sm:$0xff] }
 0x205   : > { %6156 = vmatpush1.bf16.msra.mxu1 %v6155_v2  ;;  %5962 = vmatprep.subr.bf16.mxu0 %v5961_v3  ;;  %v831_v2 = vld [vmem:[%s8276_s8 + $0xc60] sm:$0xff]  ;;  %v825_v3 = vld [vmem:[%s8276_s8 + $0xc30] sm:$0xff] }
 0x206   : > { %6158 = vmatprep.subr.bf16.mxu1 %v6157_v7  ;;  %v848_v7 = vld [vmem:[%s8276_s8 + $0xce8] sm:$0xff]  ;;  %v5983_v10 = vpack.c.bf16 %v831_v2, %v823_v1  ;;  %v6179_v11 = vpack.c.bf16 %v833_v5, %v825_v3  ;;  %v6197_v1 = vpack.c.bf16 %v914_v58, %v906_v57  ;;  %v913_v2 = vld [vmem:[%s8276_s8 + $0xef0] sm:$0xff]  ;;  %v922_v5 = vld [vmem:[%s8276_s8 + $0xf38] sm:$0xff] }
 0x207   : > { %v5985_v12 = vpack.c.bf16 %v848_v7, %v840_v6  ;;  %v920_v3 = vld [vmem:[%s8276_s8 + $0xf28] sm:$0xff]  ;;  %v930_v6 = vld [vmem:[%s8276_s8 + $0xf78] sm:$0xff] }
 0x208   : > { %5964 = vmatpush1.bf16.msra.mxu0 %v5963_v13  ;;  %v839_v13 = vld [vmem:[%s8276_s8 + $0xca0] sm:$0xff] }
 0x209   : > { %6160 = vmatpush1.bf16.msra.mxu1 %v6159_v14  ;;  %5966 = vmatprep.subr.bf16.mxu0 %v5965_v15  ;;  %v847_v14 = vld [vmem:[%s8276_s8 + $0xce0] sm:$0xff]  ;;  %v841_v15 = vld [vmem:[%s8276_s8 + $0xcb0] sm:$0xff] }
 0x20a   : > { %6162 = vmatprep.subr.bf16.mxu1 %v6161_v19  ;;  %v864_v19 = vld [vmem:[%s8276_s8 + $0xd68] sm:$0xff]  ;;  %v5987_v22 = vpack.c.bf16 %v847_v14, %v839_v13  ;;  %v6183_v23 = vpack.c.bf16 %v849_v17, %v841_v15  ;;  %v6201_v13 = vpack.c.bf16 %v930_v6, %v922_v5  ;;  %v929_v14 = vld [vmem:[%s8276_s8 + $0xf70] sm:$0xff]  ;;  %v938_v17 = vld [vmem:[%s8276_s8 + $0xfb8] sm:$0xff] }
 0x20b   : > { %v5989_v24 = vpack.c.bf16 %v864_v19, %v856_v18  ;;  %v936_v15 = vld [vmem:[%s8276_s8 + $0xfa8] sm:$0xff]  ;;  %v946_v18 = vld [vmem:[%s8276_s8 + $0xff8] sm:$0xff] }
 0x20c   : > { %5968 = vmatpush1.bf16.msra.mxu0 %v5967_v26  ;;  %v855_v26 = vld [vmem:[%s8276_s8 + $0xd20] sm:$0xff]  ;;  %v1010_v5 = vld [vmem:[%s8276_s8 + $0x11f8] sm:$0xff] }
 0x20d   : > { %6164 = vmatpush1.bf16.msra.mxu1 %v6163_v27  ;;  %5970 = vmatprep.subr.bf16.mxu0 %v5969_v28  ;;  %v863_v27 = vld [vmem:[%s8276_s8 + $0xd60] sm:$0xff]  ;;  %v857_v28 = vld [vmem:[%s8276_s8 + $0xd30] sm:$0xff] }
 0x20e   : > { %6166 = vmatprep.subr.bf16.mxu1 %v6165_v32  ;;  %v880_v32 = vld [vmem:[%s8276_s8 + $0xde8] sm:$0xff]  ;;  %v5991_v35 = vpack.c.bf16 %v863_v27, %v855_v26  ;;  %v6187_v36 = vpack.c.bf16 %v865_v30, %v857_v28  ;;  %v6205_v26 = vpack.c.bf16 %v946_v18, %v938_v17  ;;  %v945_v27 = vld [vmem:[%s8276_s8 + $0xff0] sm:$0xff]  ;;  %v954_v30 = vld [vmem:[%s8276_s8 + $0x1038] sm:$0xff] }
 0x20f   : > { %v5993_v37 = vpack.c.bf16 %v880_v32, %v872_v31  ;;  %v952_v28 = vld [vmem:[%s8276_s8 + $0x1028] sm:$0xff]  ;;  %v962_v31 = vld [vmem:[%s8276_s8 + $0x1078] sm:$0xff] }
 0x210   : > { %5972 = vmatpush1.bf16.msra.mxu0 %v5971_v38  ;;  %v871_v38 = vld [vmem:[%s8276_s8 + $0xda0] sm:$0xff]  ;;  %v1026_v17 = vld [vmem:[%s8276_s8 + $0x1278] sm:$0xff] }
 0x211   : > { %6168 = vmatpush1.bf16.msra.mxu1 %v6167_v39  ;;  %5974 = vmatprep.subr.bf16.mxu0 %v5973_v40  ;;  %v879_v39 = vld [vmem:[%s8276_s8 + $0xde0] sm:$0xff]  ;;  %v873_v40 = vld [vmem:[%s8276_s8 + $0xdb0] sm:$0xff] }
 0x212   : > { %6170 = vmatprep.subr.bf16.mxu1 %v6169_v44  ;;  %v896_v44 = vld [vmem:[%s8276_s8 + $0xe68] sm:$0xff]  ;;  %v5995_v47 = vpack.c.bf16 %v879_v39, %v871_v38  ;;  %v6191_v48 = vpack.c.bf16 %v881_v42, %v873_v40  ;;  %v6209_v38 = vpack.c.bf16 %v962_v31, %v954_v30  ;;  %v961_v39 = vld [vmem:[%s8276_s8 + $0x1070] sm:$0xff]  ;;  %v970_v42 = vld [vmem:[%s8276_s8 + $0x10b8] sm:$0xff] }
 0x213   : > { %v5997_v49 = vpack.c.bf16 %v896_v44, %v888_v43  ;;  %v968_v40 = vld [vmem:[%s8276_s8 + $0x10a8] sm:$0xff]  ;;  %v978_v43 = vld [vmem:[%s8276_s8 + $0x10f8] sm:$0xff] }
 0x214   : > { %5976 = vmatpush1.bf16.msra.mxu0 %v5975_v50  ;;  %v887_v50 = vld [vmem:[%s8276_s8 + $0xe20] sm:$0xff]  ;;  %v1042_v30 = vld [vmem:[%s8276_s8 + $0x12f8] sm:$0xff] }
 0x215   : > { %6172 = vmatpush1.bf16.msra.mxu1 %v6171_v51  ;;  %5978 = vmatprep.subr.bf16.mxu0 %v5977_v52  ;;  %v895_v51 = vld [vmem:[%s8276_s8 + $0xe60] sm:$0xff]  ;;  %v889_v52 = vld [vmem:[%s8276_s8 + $0xe30] sm:$0xff] }
 0x216   : > { %6174 = vmatprep.subr.bf16.mxu1 %v6173_v56  ;;  %v912_v56 = vld [vmem:[%s8276_s8 + $0xee8] sm:$0xff]  ;;  %v5999_v59 = vpack.c.bf16 %v895_v51, %v887_v50  ;;  %v6195_v60 = vpack.c.bf16 %v897_v54, %v889_v52  ;;  %v6213_v50 = vpack.c.bf16 %v978_v43, %v970_v42  ;;  %v977_v51 = vld [vmem:[%s8276_s8 + $0x10f0] sm:$0xff]  ;;  %v7626_v54 = vld [vmem:[#allocation3 + $0x10] sm:$0xff] }
 0x217   : > { %v6001_v61 = vpack.c.bf16 %v912_v56, %v904_v55  ;;  %v984_v52 = vld [vmem:[%s8276_s8 + $0x1128] sm:$0xff]  ;;  %v986_v55 = vld [vmem:[%s8276_s8 + $0x1138] sm:$0xff] }
 0x218   : > { %5980 = vmatpush1.bf16.msra.mxu0 %v5979_v62  ;;  %v903_v62 = vld [vmem:[%s8276_s8 + $0xea0] sm:$0xff]  ;;  %v994_v56 = vld [vmem:[%s8276_s8 + $0x1178] sm:$0xff] }
 0x219   : > { %6176 = vmatpush1.bf16.msra.mxu1 %v6175_v63  ;;  %5982 = vmatprep.subr.bf16.mxu0 %v5981_v0  ;;  %v911_v63 = vld [vmem:[%s8276_s8 + $0xee0] sm:$0xff]  ;;  %v905_v0 = vld [vmem:[%s8276_s8 + $0xeb0] sm:$0xff]  ;;  %v1058_v42 = vld [vmem:[%s8276_s8 + $0x1378] sm:$0xff] }
 0x21a   : > { %6178 = vmatprep.subr.bf16.mxu1 %v6177_v4  ;;  %v928_v4 = vld [vmem:[%s8276_s8 + $0xf68] sm:$0xff]  ;;  %v6003_v7 = vpack.c.bf16 %v911_v63, %v903_v62  ;;  %v6199_v8 = vpack.c.bf16 %v913_v2, %v905_v0  ;;  %v985_v62 = vld [vmem:[%s8276_s8 + $0x1130] sm:$0xff]  ;;  %v6217_v63 = vpack.c.bf16 %v994_v56, %v986_v55 }
 0x21b   : > { %v6005_v9 = vpack.c.bf16 %v928_v4, %v920_v3  ;;  %v993_v0 = vld [vmem:[%s8276_s8 + $0x1170] sm:$0xff]  ;;  %v1008_v2 = vld [vmem:[%s8276_s8 + $0x11e8] sm:$0xff]  ;;  %v1002_v4 = vld [vmem:[%s8276_s8 + $0x11b8] sm:$0xff] }
 0x21c   : > { %5984 = vmatpush1.bf16.msra.mxu0 %v5983_v10  ;;  %v919_v10 = vld [vmem:[%s8276_s8 + $0xf20] sm:$0xff]  ;;  %v7627_v3 = vld [vmem:[#allocation3 + $0x28] sm:$0xff] }
 0x21d   : > { %6180 = vmatpush1.bf16.msra.mxu1 %v6179_v11  ;;  %5986 = vmatprep.subr.bf16.mxu0 %v5985_v12  ;;  %v927_v11 = vld [vmem:[%s8276_s8 + $0xf60] sm:$0xff]  ;;  %v921_v12 = vld [vmem:[%s8276_s8 + $0xf30] sm:$0xff] }
 0x21e   : > { %6182 = vmatprep.subr.bf16.mxu1 %v6181_v16  ;;  %v944_v16 = vld [vmem:[%s8276_s8 + $0xfe8] sm:$0xff]  ;;  %v6007_v19 = vpack.c.bf16 %v927_v11, %v919_v10  ;;  %v6203_v20 = vpack.c.bf16 %v929_v14, %v921_v12  ;;  %v1007_v10 = vld [vmem:[%s8276_s8 + $0x11e0] sm:$0xff]  ;;  %v1001_v11 = vld [vmem:[%s8276_s8 + $0x11b0] sm:$0xff]  ;;  %v6221_v12 = vpack.c.bf16 %v1010_v5, %v1002_v4 }
 0x21f   : > { %v6009_v21 = vpack.c.bf16 %v944_v16, %v936_v15  ;;  %v1016_v14 = vld [vmem:[%s8276_s8 + $0x1228] sm:$0xff]  ;;  %v1018_v16 = vld [vmem:[%s8276_s8 + $0x1238] sm:$0xff] }
 0x220   : > { %5988 = vmatpush1.bf16.msra.mxu0 %v5987_v22  ;;  %v935_v22 = vld [vmem:[%s8276_s8 + $0xfa0] sm:$0xff]  ;;  %v1024_v15 = vld [vmem:[%s8276_s8 + $0x1268] sm:$0xff] }
 0x221   : > { %6184 = vmatpush1.bf16.msra.mxu1 %v6183_v23  ;;  %5990 = vmatprep.subr.bf16.mxu0 %v5989_v24  ;;  %v943_v23 = vld [vmem:[%s8276_s8 + $0xfe0] sm:$0xff]  ;;  %v937_v24 = vld [vmem:[%s8276_s8 + $0xfb0] sm:$0xff] }
 0x222   : > { %6186 = vmatprep.subr.bf16.mxu1 %v6185_v29  ;;  %v960_v29 = vld [vmem:[%s8276_s8 + $0x1068] sm:$0xff]  ;;  %v6011_v32 = vpack.c.bf16 %v943_v23, %v935_v22  ;;  %v6207_v33 = vpack.c.bf16 %v945_v27, %v937_v24  ;;  %v1023_v22 = vld [vmem:[%s8276_s8 + $0x1260] sm:$0xff]  ;;  %v1017_v23 = vld [vmem:[%s8276_s8 + $0x1230] sm:$0xff]  ;;  %v6225_v24 = vpack.c.bf16 %v1026_v17, %v1018_v16 }
 0x223   : > { %v6013_v34 = vpack.c.bf16 %v960_v29, %v952_v28  ;;  %v1032_v27 = vld [vmem:[%s8276_s8 + $0x12a8] sm:$0xff]  ;;  %v1034_v29 = vld [vmem:[%s8276_s8 + $0x12b8] sm:$0xff] }
 0x224   : > { %5992 = vmatpush1.bf16.msra.mxu0 %v5991_v35  ;;  %v951_v35 = vld [vmem:[%s8276_s8 + $0x1020] sm:$0xff]  ;;  %v1040_v28 = vld [vmem:[%s8276_s8 + $0x12e8] sm:$0xff] }
 0x225   : > { %6188 = vmatpush1.bf16.msra.mxu1 %v6187_v36  ;;  %5994 = vmatprep.subr.bf16.mxu0 %v5993_v37  ;;  %v959_v36 = vld [vmem:[%s8276_s8 + $0x1060] sm:$0xff]  ;;  %v953_v37 = vld [vmem:[%s8276_s8 + $0x1030] sm:$0xff] }
 0x226   : > { %6190 = vmatprep.subr.bf16.mxu1 %v6189_v41  ;;  %v976_v41 = vld [vmem:[%s8276_s8 + $0x10e8] sm:$0xff]  ;;  %v6015_v44 = vpack.c.bf16 %v959_v36, %v951_v35  ;;  %v6211_v45 = vpack.c.bf16 %v961_v39, %v953_v37  ;;  %v1039_v35 = vld [vmem:[%s8276_s8 + $0x12e0] sm:$0xff]  ;;  %v1033_v36 = vld [vmem:[%s8276_s8 + $0x12b0] sm:$0xff]  ;;  %v6229_v37 = vpack.c.bf16 %v1042_v30, %v1034_v29 }
 0x227   : > { %v6017_v46 = vpack.c.bf16 %v976_v41, %v968_v40  ;;  %v1048_v39 = vld [vmem:[%s8276_s8 + $0x1328] sm:$0xff]  ;;  %v1050_v41 = vld [vmem:[%s8276_s8 + $0x1338] sm:$0xff] }
 0x228   : > { %5996 = vmatpush1.bf16.msra.mxu0 %v5995_v47  ;;  %v967_v47 = vld [vmem:[%s8276_s8 + $0x10a0] sm:$0xff]  ;;  %v1056_v40 = vld [vmem:[%s8276_s8 + $0x1368] sm:$0xff] }
 0x229   : > { %6192 = vmatpush1.bf16.msra.mxu1 %v6191_v48  ;;  %5998 = vmatprep.subr.bf16.mxu0 %v5997_v49  ;;  %v975_v48 = vld [vmem:[%s8276_s8 + $0x10e0] sm:$0xff]  ;;  %v969_v49 = vld [vmem:[%s8276_s8 + $0x10b0] sm:$0xff] }
 0x22a   : > { %6194 = vmatprep.subr.bf16.mxu1 %v6193_v53  ;;  %v992_v53 = vld [vmem:[%s8276_s8 + $0x1168] sm:$0xff]  ;;  %v6019_v57 = vpack.c.bf16 %v975_v48, %v967_v47  ;;  %v6215_v58 = vpack.c.bf16 %v977_v51, %v969_v49  ;;  %v1055_v47 = vld [vmem:[%s8276_s8 + $0x1360] sm:$0xff]  ;;  %v1049_v48 = vld [vmem:[%s8276_s8 + $0x1330] sm:$0xff]  ;;  %v6233_v49 = vpack.c.bf16 %v1058_v42, %v1050_v41 }
 0x22b   : > { %v1064_v51 = vld [vmem:[%s8276_s8 + $0x13a8] sm:$0xff] }
 0x22c   : > { %6000 = vmatpush1.bf16.msra.mxu0 %v5999_v59  ;;  %v6021_v59 = vpack.c.bf16 %v992_v53, %v984_v52  ;;  %v1072_v52 = vld [vmem:[%s8276_s8 + $0x13e8] sm:$0xff]  ;;  %v1066_v53 = vld [vmem:[%s8276_s8 + $0x13b8] sm:$0xff] }
 0x22d   : > { %6196 = vmatpush1.bf16.msra.mxu1 %v6195_v60  ;;  %6002 = vmatprep.subr.bf16.mxu0 %v6001_v61  ;;  %v983_v60 = vld [vmem:[%s8276_s8 + $0x1120] sm:$0xff] }
 0x22e   : > { %6198 = vmatprep.subr.bf16.mxu1 %v6197_v1  ;;  %v991_v61 = vld [vmem:[%s8276_s8 + $0x1160] sm:$0xff]  ;;  %v1000_v1 = vld [vmem:[%s8276_s8 + $0x11a8] sm:$0xff] }
 0x22f   : > { %v6023_v6 = vpack.c.bf16 %v991_v61, %v983_v60  ;;  %v1065_v60 = vld [vmem:[%s8276_s8 + $0x13b0] sm:$0xff] }
 0x230   : > { %6004 = vmatpush1.bf16.msra.mxu0 %v6003_v7  ;;  %v6219_v7 = vpack.c.bf16 %v993_v0, %v985_v62  ;;  %v1073_v62 = vld [vmem:[%s8276_s8 + $0x13f0] sm:$0xff]  ;;  %v1088_v0 = vld [vmem:[%s8276_s8 + $0x1468] sm:$0xff] }
 0x231   : > { %6200 = vmatpush1.bf16.msra.mxu1 %v6199_v8  ;;  %6006 = vmatprep.subr.bf16.mxu0 %v6005_v9  ;;  %v6025_v8 = vpack.c.bf16 %v1008_v2, %v1000_v1  ;;  %v999_v9 = vld [vmem:[%s8276_s8 + $0x11a0] sm:$0xff]  ;;  %v1082_v1 = vld [vmem:[%s8276_s8 + $0x1438] sm:$0xff]  ;;  %v6239_v4 = vpack.c.bf16 %v1073_v62, %v1065_v60  ;;  %v1160_v60 = vld [vmem:[%s8276_s8 + $0x16a8] sm:$0xff] }
 0x232   : > { %6202 = vmatprep.subr.bf16.mxu1 %v6201_v13  ;;  %v1009_v13 = vld [vmem:[%s8276_s8 + $0x11f0] sm:$0xff]  ;;  %v6027_v18 = vpack.c.bf16 %v1007_v10, %v999_v9  ;;  %v1090_v2 = vld [vmem:[%s8276_s8 + $0x1478] sm:$0xff] }
 0x233   : > { %v6241_v9 = vpack.c.bf16 %v1090_v2, %v1082_v1  ;;  %v1089_v10 = vld [vmem:[%s8276_s8 + $0x1470] sm:$0xff]  ;;  %v1162_v62 = vld [vmem:[%s8276_s8 + $0x16b8] sm:$0xff] }
 0x234   : > { %6008 = vmatpush1.bf16.msra.mxu0 %v6007_v19  ;;  %v6223_v19 = vpack.c.bf16 %v1009_v13, %v1001_v11  ;;  %v1096_v11 = vld [vmem:[%s8276_s8 + $0x14a8] sm:$0xff]  ;;  %v1098_v13 = vld [vmem:[%s8276_s8 + $0x14b8] sm:$0xff] }
 0x235   : > { %6204 = vmatpush1.bf16.msra.mxu1 %v6203_v20  ;;  %6010 = vmatprep.subr.bf16.mxu0 %v6009_v21  ;;  %v6029_v20 = vpack.c.bf16 %v1024_v15, %v1016_v14  ;;  %v1015_v21 = vld [vmem:[%s8276_s8 + $0x1220] sm:$0xff]  ;;  %v1106_v14 = vld [vmem:[%s8276_s8 + $0x14f8] sm:$0xff] }
 0x236   : > { %6206 = vmatprep.subr.bf16.mxu1 %v6205_v26  ;;  %v1025_v26 = vld [vmem:[%s8276_s8 + $0x1270] sm:$0xff]  ;;  %v6031_v31 = vpack.c.bf16 %v1023_v22, %v1015_v21  ;;  %v6245_v21 = vpack.c.bf16 %v1106_v14, %v1098_v13 }
 0x237   : > { %v1105_v22 = vld [vmem:[%s8276_s8 + $0x14f0] sm:$0xff] }
 0x238   : > { %6012 = vmatpush1.bf16.msra.mxu0 %v6011_v32  ;;  %v6227_v32 = vpack.c.bf16 %v1025_v26, %v1017_v23  ;;  %v1112_v23 = vld [vmem:[%s8276_s8 + $0x1528] sm:$0xff]  ;;  %v1114_v26 = vld [vmem:[%s8276_s8 + $0x1538] sm:$0xff] }
 0x239   : > { %6208 = vmatpush1.bf16.msra.mxu1 %v6207_v33  ;;  %6014 = vmatprep.subr.bf16.mxu0 %v6013_v34  ;;  %v6033_v33 = vpack.c.bf16 %v1040_v28, %v1032_v27  ;;  %v1031_v34 = vld [vmem:[%s8276_s8 + $0x12a0] sm:$0xff]  ;;  %v1122_v27 = vld [vmem:[%s8276_s8 + $0x1578] sm:$0xff] }
 0x23a   : > { %6210 = vmatprep.subr.bf16.mxu1 %v6209_v38  ;;  %v1041_v38 = vld [vmem:[%s8276_s8 + $0x12f0] sm:$0xff]  ;;  %v6035_v43 = vpack.c.bf16 %v1039_v35, %v1031_v34  ;;  %v6249_v34 = vpack.c.bf16 %v1122_v27, %v1114_v26 }
 0x23b   : > { %1969 = vmatmul.mubr.f32.vlgmr.msra.gmra.mrb[2].mxu0 %v7626_v54  ;;  %v1121_v35 = vld [vmem:[%s8276_s8 + $0x1570] sm:$0xff] }
 0x23c   : > { %6016 = vmatpush1.bf16.msra.mxu0 %v6015_v44  ;;  %2253 = vmatmul.mubr.f32.vlgmr.msra.gmra.mrb[2].mxu1 %v7626_v54  ;;  %v6231_v44 = vpack.c.bf16 %v1041_v38, %v1033_v36  ;;  %v1074_v54 = vld [vmem:[%s8276_s8 + $0x13f8] sm:$0xff]  ;;  %v1128_v36 = vld [vmem:[%s8276_s8 + $0x15a8] sm:$0xff] }
 0x23d   : > { %6212 = vmatpush1.bf16.msra.mxu1 %v6211_v45  ;;  %6018 = vmatprep.subr.bf16.mxu0 %v6017_v46  ;;  %v6037_v45 = vpack.c.bf16 %v1056_v40, %v1048_v39  ;;  %v1047_v46 = vld [vmem:[%s8276_s8 + $0x1320] sm:$0xff]  ;;  %v6237_v61 = vpack.c.bf16 %v1074_v54, %v1066_v53  ;;  %v1130_v38 = vld [vmem:[%s8276_s8 + $0x15b8] sm:$0xff] }
 0x23e   : > { %6214 = vmatprep.subr.bf16.mxu1 %v6213_v50  ;;  %2039 = vmatprep.mubr.f32.mxu0 %v7627_v3  ;;  %v1057_v50 = vld [vmem:[%s8276_s8 + $0x1370] sm:$0xff]  ;;  %v6039_v55 = vpack.c.bf16 %v1055_v47, %v1047_v46  ;;  %v1138_v39 = vld [vmem:[%s8276_s8 + $0x15f8] sm:$0xff] }
 0x23f   : > { %2323 = vmatprep.mubr.f32.mxu1 %v7627_v3  ;;  %v6235_v56 = vpack.c.bf16 %v1057_v50, %v1049_v48  ;;  %v6253_v46 = vpack.c.bf16 %v1138_v39, %v1130_v38  ;;  %v1137_v47 = vld [vmem:[%s8276_s8 + $0x15f0] sm:$0xff]  ;;  %v1144_v48 = vld [vmem:[%s8276_s8 + $0x1628] sm:$0xff]  ;;  %v1146_v50 = vld [vmem:[%s8276_s8 + $0x1638] sm:$0xff] }
 0x240   : > { %6020 = vmatpush1.bf16.msra.mxu0 %v6019_v57  ;;  %v6041_v57 = vpack.c.bf16 %v1072_v52, %v1064_v51  ;;  %v1154_v51 = vld [vmem:[%s8276_s8 + $0x1678] sm:$0xff] }
 0x241   : > { %6216 = vmatpush1.bf16.msra.mxu1 %v6215_v58  ;;  %6022 = vmatprep.subr.bf16.mxu0 %v6021_v59  ;;  %v1063_v58 = vld [vmem:[%s8276_s8 + $0x13a0] sm:$0xff] }
 0x242   : > { %6218 = vmatprep.subr.bf16.mxu1 %v6217_v63  ;;  %v1071_v59 = vld [vmem:[%s8276_s8 + $0x13e0] sm:$0xff]  ;;  %v1080_v63 = vld [vmem:[%s8276_s8 + $0x1428] sm:$0xff] }
 0x243   : > { %v6043_v3 = vpack.c.bf16 %v1071_v59, %v1063_v58  ;;  %v6045_v5 = vpack.c.bf16 %v1088_v0, %v1080_v63  ;;  %v6257_v58 = vpack.c.bf16 %v1154_v51, %v1146_v50  ;;  %v1153_v59 = vld [vmem:[%s8276_s8 + $0x1670] sm:$0xff]  ;;  %v1170_v63 = vld [vmem:[%s8276_s8 + $0x16f8] sm:$0xff] }
 0x244   : > { %6024 = vmatpush1.bf16.msra.mxu0 %v6023_v6  ;;  %v1079_v6 = vld [vmem:[%s8276_s8 + $0x1420] sm:$0xff] }
 0x245   : > { %6220 = vmatpush1.bf16.msra.mxu1 %v6219_v7  ;;  %6026 = vmatprep.subr.bf16.mxu0 %v6025_v8  ;;  %v1087_v7 = vld [vmem:[%s8276_s8 + $0x1460] sm:$0xff]  ;;  %v1081_v8 = vld [vmem:[%s8276_s8 + $0x1430] sm:$0xff] }
 0x246   : > { %6222 = vmatprep.subr.bf16.mxu1 %v6221_v12  ;;  %v1104_v12 = vld [vmem:[%s8276_s8 + $0x14e8] sm:$0xff]  ;;  %v6047_v15 = vpack.c.bf16 %v1087_v7, %v1079_v6  ;;  %v6243_v16 = vpack.c.bf16 %v1089_v10, %v1081_v8  ;;  %v6261_v6 = vpack.c.bf16 %v1170_v63, %v1162_v62  ;;  %v1169_v7 = vld [vmem:[%s8276_s8 + $0x16f0] sm:$0xff]  ;;  %v1178_v10 = vld [vmem:[%s8276_s8 + $0x1738] sm:$0xff]  ;;  %v1221_v63 = vlaneseq }
 0x247   : > { %v6049_v17 = vpack.c.bf16 %v1104_v12, %v1096_v11  ;;  %v1176_v8 = vld [vmem:[%s8276_s8 + $0x1728] sm:$0xff]  ;;  %v1186_v11 = vld [vmem:[%s8276_s8 + $0x1778] sm:$0xff] }
 0x248   : > { %6028 = vmatpush1.bf16.msra.mxu0 %v6027_v18  ;;  %v1095_v18 = vld [vmem:[%s8276_s8 + $0x14a0] sm:$0xff] }
 0x249   : > { %6224 = vmatpush1.bf16.msra.mxu1 %v6223_v19  ;;  %6030 = vmatprep.subr.bf16.mxu0 %v6029_v20  ;;  %v1103_v19 = vld [vmem:[%s8276_s8 + $0x14e0] sm:$0xff]  ;;  %v1097_v20 = vld [vmem:[%s8276_s8 + $0x14b0] sm:$0xff] }
 0x24a   : > { %6226 = vmatprep.subr.bf16.mxu1 %v6225_v24  ;;  %v1120_v24 = vld [vmem:[%s8276_s8 + $0x1568] sm:$0xff]  ;;  %v6051_v28 = vpack.c.bf16 %v1103_v19, %v1095_v18  ;;  %v6247_v29 = vpack.c.bf16 %v1105_v22, %v1097_v20  ;;  %v6265_v18 = vpack.c.bf16 %v1186_v11, %v1178_v10  ;;  %v1185_v19 = vld [vmem:[%s8276_s8 + $0x1770] sm:$0xff]  ;;  %v1194_v22 = vld [vmem:[%s8276_s8 + $0x17b8] sm:$0xff] }
 0x24b   : > { %v6053_v30 = vpack.c.bf16 %v1120_v24, %v1112_v23  ;;  %v1192_v20 = vld [vmem:[%s8276_s8 + $0x17a8] sm:$0xff]  ;;  %v1202_v23 = vld [vmem:[%s8276_s8 + $0x17f8] sm:$0xff] }
 0x24c   : > { %6032 = vmatpush1.bf16.msra.mxu0 %v6031_v31  ;;  %v1111_v31 = vld [vmem:[%s8276_s8 + $0x1520] sm:$0xff]  ;;  %v2500_v10 = vld [vmem:[%s8284_s16 + $0x158] sm:$0xff] }
 0x24d   : > { %6228 = vmatpush1.bf16.msra.mxu1 %v6227_v32  ;;  %6034 = vmatprep.subr.bf16.mxu0 %v6033_v33  ;;  %v1119_v32 = vld [vmem:[%s8276_s8 + $0x1560] sm:$0xff]  ;;  %v1113_v33 = vld [vmem:[%s8276_s8 + $0x1530] sm:$0xff] }
 0x24e   : > { %6230 = vmatprep.subr.bf16.mxu1 %v6229_v37  ;;  %v1136_v37 = vld [vmem:[%s8276_s8 + $0x15e8] sm:$0xff]  ;;  %v6055_v40 = vpack.c.bf16 %v1119_v32, %v1111_v31  ;;  %v6251_v41 = vpack.c.bf16 %v1121_v35, %v1113_v33  ;;  %v6269_v31 = vpack.c.bf16 %v1202_v23, %v1194_v22  ;;  %v1201_v32 = vld [vmem:[%s8276_s8 + $0x17f0] sm:$0xff]  ;;  %v1210_v35 = vld [vmem:[%s8276_s8 + $0x1838] sm:$0xff] }
 0x24f   : > { %v6057_v42 = vpack.c.bf16 %v1136_v37, %v1128_v36  ;;  %v1208_v33 = vld [vmem:[%s8276_s8 + $0x1828] sm:$0xff]  ;;  %v1218_v36 = vld [vmem:[%s8276_s8 + $0x1878] sm:$0xff] }
 0x250   : > { %6036 = vmatpush1.bf16.msra.mxu0 %v6035_v43  ;;  %v1127_v43 = vld [vmem:[%s8276_s8 + $0x15a0] sm:$0xff]  ;;  %v2508_v22 = vld [vmem:[%s8284_s16 + $0x198] sm:$0xff] }
 0x251   : > { %6232 = vmatpush1.bf16.msra.mxu1 %v6231_v44  ;;  %6038 = vmatprep.subr.bf16.mxu0 %v6037_v45  ;;  %v1135_v44 = vld [vmem:[%s8276_s8 + $0x15e0] sm:$0xff]  ;;  %v1129_v45 = vld [vmem:[%s8276_s8 + $0x15b0] sm:$0xff]  ;;  %v2516_v23 = vld [vmem:[%s8284_s16 + $0x1d8] sm:$0xff] }
 0x252   : > { %6234 = vmatprep.subr.bf16.mxu1 %v6233_v49  ;;  %v1152_v49 = vld [vmem:[%s8276_s8 + $0x1668] sm:$0xff]  ;;  %v6059_v52 = vpack.c.bf16 %v1135_v44, %v1127_v43  ;;  %v6255_v53 = vpack.c.bf16 %v1137_v47, %v1129_v45  ;;  %v1209_v43 = vld [vmem:[%s8276_s8 + $0x1830] sm:$0xff]  ;;  %v2458_v45 = vld [vmem:[%s8284_s16 + $0x8] sm:$0xff] }
 0x253   : > { %v6061_v54 = vpack.c.bf16 %v1152_v49, %v1144_v48  ;;  %v1217_v44 = vld [vmem:[%s8276_s8 + $0x1870] sm:$0xff]  ;;  %v2460_v48 = vld [vmem:[%s8284_s16 + $0x18] sm:$0xff] }
 0x254   : > { %6040 = vmatpush1.bf16.msra.mxu0 %v6039_v55  ;;  %v1143_v55 = vld [vmem:[%s8276_s8 + $0x1620] sm:$0xff]  ;;  %v2468_v49 = vld [vmem:[%s8284_s16 + $0x58] sm:$0xff]  ;;  %v6275_v50 = vpack.c.bf16 %v1217_v44, %v1209_v43  ;;  %v2521_v43 = vld [vmem:[%s8284_s16 + $0x200] sm:$0xff] }
 0x255   : > { %6236 = vmatpush1.bf16.msra.mxu1 %v6235_v56  ;;  %6042 = vmatprep.subr.bf16.mxu0 %v6041_v57  ;;  %v1151_v56 = vld [vmem:[%s8276_s8 + $0x1660] sm:$0xff]  ;;  %v1145_v57 = vld [vmem:[%s8276_s8 + $0x1630] sm:$0xff] }
 0x256   : > { %6238 = vmatprep.subr.bf16.mxu1 %v6237_v61  ;;  %v1168_v61 = vld [vmem:[%s8276_s8 + $0x16e8] sm:$0xff]  ;;  %v6063_v0 = vpack.c.bf16 %v1151_v56, %v1143_v55  ;;  %v6259_v1 = vpack.c.bf16 %v1153_v59, %v1145_v57  ;;  %v2465_v55 = vld [vmem:[%s8284_s16 + $0x40] sm:$0xff]  ;;  %v2459_v56 = vld [vmem:[%s8284_s16 + $0x10] sm:$0xff] }
 0x257   : > { %v6065_v2 = vpack.c.bf16 %v1168_v61, %v1160_v60  ;;  %v2467_v57 = vld [vmem:[%s8284_s16 + $0x50] sm:$0xff]  ;;  %v2482_v59 = vld [vmem:[%s8284_s16 + $0xc8] sm:$0xff]  ;;  %v2476_v60 = vld [vmem:[%s8284_s16 + $0x98] sm:$0xff] }
 0x258   : > { %6044 = vmatpush1.bf16.msra.mxu0 %v6043_v3  ;;  %v1159_v3 = vld [vmem:[%s8276_s8 + $0x16a0] sm:$0xff]  ;;  %v2484_v61 = vld [vmem:[%s8284_s16 + $0xd8] sm:$0xff]  ;;  %v2529_v44 = vld [vmem:[%s8284_s16 + $0x240] sm:$0xff] }
 0x259   : > { %6240 = vmatpush1.bf16.msra.mxu1 %v6239_v4  ;;  %6046 = vmatprep.subr.bf16.mxu0 %v6045_v5  ;;  %v1167_v4 = vld [vmem:[%s8276_s8 + $0x16e0] sm:$0xff]  ;;  %v1161_v5 = vld [vmem:[%s8276_s8 + $0x16b0] sm:$0xff] }
 0x25a   : > { %6242 = vmatprep.subr.bf16.mxu1 %v6241_v9  ;;  %v1184_v9 = vld [vmem:[%s8276_s8 + $0x1768] sm:$0xff]  ;;  %v6067_v12 = vpack.c.bf16 %v1167_v4, %v1159_v3  ;;  %v6263_v13 = vpack.c.bf16 %v1169_v7, %v1161_v5  ;;  %v2481_v3 = vld [vmem:[%s8284_s16 + $0xc0] sm:$0xff]  ;;  %v2475_v4 = vld [vmem:[%s8284_s16 + $0x90] sm:$0xff] }
 0x25b   : > { %v6069_v14 = vpack.c.bf16 %v1184_v9, %v1176_v8  ;;  %v2483_v5 = vld [vmem:[%s8284_s16 + $0xd0] sm:$0xff]  ;;  %v2498_v7 = vld [vmem:[%s8284_s16 + $0x148] sm:$0xff]  ;;  %v2492_v9 = vld [vmem:[%s8284_s16 + $0x118] sm:$0xff] }
 0x25c   : > { %6048 = vmatpush1.bf16.msra.mxu0 %v6047_v15  ;;  %v1175_v15 = vld [vmem:[%s8276_s8 + $0x1720] sm:$0xff]  ;;  %v7629_v8 = vld [vmem:[#allocation3 + $0x30] sm:$0xff] }
 0x25d   : > { %6244 = vmatpush1.bf16.msra.mxu1 %v6243_v16  ;;  %6050 = vmatprep.subr.bf16.mxu0 %v6049_v17  ;;  %v1183_v16 = vld [vmem:[%s8276_s8 + $0x1760] sm:$0xff]  ;;  %v1177_v17 = vld [vmem:[%s8276_s8 + $0x1730] sm:$0xff] }
 0x25e   : > { %6246 = vmatprep.subr.bf16.mxu1 %v6245_v21  ;;  %v1200_v21 = vld [vmem:[%s8276_s8 + $0x17e8] sm:$0xff]  ;;  %v6071_v24 = vpack.c.bf16 %v1183_v16, %v1175_v15  ;;  %v6267_v26 = vpack.c.bf16 %v1185_v19, %v1177_v17  ;;  %v2489_v15 = vld [vmem:[%s8284_s16 + $0x100] sm:$0xff]  ;;  %v2491_v17 = vld [vmem:[%s8284_s16 + $0x110] sm:$0xff] }
 0x25f   : > { %v6073_v27 = vpack.c.bf16 %v1200_v21, %v1192_v20  ;;  %v2497_v16 = vld [vmem:[%s8284_s16 + $0x140] sm:$0xff]  ;;  %v2499_v19 = vld [vmem:[%s8284_s16 + $0x150] sm:$0xff]  ;;  %v2506_v20 = vld [vmem:[%s8284_s16 + $0x188] sm:$0xff] }
 0x260   : > { %6052 = vmatpush1.bf16.msra.mxu0 %v6051_v28  ;;  %v1191_v28 = vld [vmem:[%s8276_s8 + $0x17a0] sm:$0xff]  ;;  %v2514_v21 = vld [vmem:[%s8284_s16 + $0x1c8] sm:$0xff] }
 0x261   : > { %6248 = vmatpush1.bf16.msra.mxu1 %v6247_v29  ;;  %6054 = vmatprep.subr.bf16.mxu0 %v6053_v30  ;;  %v1199_v29 = vld [vmem:[%s8276_s8 + $0x17e0] sm:$0xff]  ;;  %v1193_v30 = vld [vmem:[%s8276_s8 + $0x17b0] sm:$0xff] }
 0x262   : > { %6250 = vmatprep.subr.bf16.mxu1 %v6249_v34  ;;  %v1216_v34 = vld [vmem:[%s8276_s8 + $0x1868] sm:$0xff]  ;;  %v6075_v37 = vpack.c.bf16 %v1199_v29, %v1191_v28  ;;  %v6271_v38 = vpack.c.bf16 %v1201_v32, %v1193_v30  ;;  %v6543_v28 = vpack.c.bf16 %v2499_v19, %v2491_v17  ;;  %v6289_v29 = vpack.c.bf16 %v2514_v21, %v2506_v20  ;;  %v2505_v30 = vld [vmem:[%s8284_s16 + $0x180] sm:$0xff]  ;;  %v2507_v32 = vld [vmem:[%s8284_s16 + $0x190] sm:$0xff] }
 0x263   : > { %v6077_v39 = vpack.c.bf16 %v1216_v34, %v1208_v33  ;;  %v6545_v33 = vpack.c.bf16 %v2516_v23, %v2508_v22  ;;  %v2515_v34 = vld [vmem:[%s8284_s16 + $0x1d0] sm:$0xff]  ;;  %v2572_v17 = vld [vmem:[%s8284_s16 + $0x398] sm:$0xff]  ;;  %v2569_v23 = vld [vmem:[%s8284_s16 + $0x380] sm:$0xff] }
 0x264   : > { %6056 = vmatpush1.bf16.msra.mxu0 %v6055_v40  ;;  %v1207_v40 = vld [vmem:[%s8276_s8 + $0x1820] sm:$0xff] }
 0x265   : > { %6252 = vmatpush1.bf16.msra.mxu1 %v6251_v41  ;;  %6058 = vmatprep.subr.bf16.mxu0 %v6057_v42  ;;  %v1215_v41 = vld [vmem:[%s8276_s8 + $0x1860] sm:$0xff]  ;;  %v6273_v42 = vpack.c.bf16 %v1218_v36, %v1210_v35  ;;  %v2522_v35 = vld [vmem:[%s8284_s16 + $0x208] sm:$0xff] }
 0x266   : > { %6254 = vmatprep.subr.bf16.mxu1 %v6253_v46  ;;  %v2466_v46 = vld [vmem:[%s8284_s16 + $0x48] sm:$0xff]  ;;  %v6079_v47 = vpack.c.bf16 %v1215_v41, %v1207_v40  ;;  %v6547_v41 = vpack.c.bf16 %v2515_v34, %v2507_v32  ;;  %v2588_v34 = vld [vmem:[%s8284_s16 + $0x418] sm:$0xff] }
 0x267   : > { %v6277_v51 = vpack.c.bf16 %v2466_v46, %v2458_v45  ;;  %v2530_v36 = vld [vmem:[%s8284_s16 + $0x248] sm:$0xff]  ;;  %v2523_v45 = vld [vmem:[%s8284_s16 + $0x210] sm:$0xff] }
 0x268   : > { %6060 = vmatpush1.bf16.msra.mxu0 %v6059_v52  ;;  %v7628_v52 = vld [vmem:[#allocation3 + $0x20] sm:$0xff]  ;;  %v2594_v32 = vld [vmem:[%s8284_s16 + $0x448] sm:$0xff] }
 0x269   : > { %6256 = vmatpush1.bf16.msra.mxu1 %v6255_v53  ;;  %6062 = vmatprep.subr.bf16.mxu0 %v6061_v54  ;;  %v6533_v53 = vpack.c.bf16 %v2468_v49, %v2460_v48  ;;  %v2457_v54 = vld [vmem:[%s8284_s16] sm:$0xff]  ;;  %v2531_v48 = vld [vmem:[%s8284_s16 + $0x250] sm:$0xff]  ;;  %v2538_v49 = vld [vmem:[%s8284_s16 + $0x288] sm:$0xff] }
 0x26a   : > { %6258 = vmatprep.subr.bf16.mxu1 %v6257_v58  ;;  %v2474_v58 = vld [vmem:[%s8284_s16 + $0x88] sm:$0xff]  ;;  %v6279_v62 = vpack.c.bf16 %v2465_v55, %v2457_v54  ;;  %v2548_v54 = vld [vmem:[%s8284_s16 + $0x2d8] sm:$0xff] }
 0x26c   : > { %6064 = vmatpush1.bf16.msra.mxu0 %v6063_v0  ;;  %v6535_v0 = vpack.c.bf16 %v2467_v57, %v2459_v56  ;;  %v6295_v57 = vpack.c.bf16 %v2529_v44, %v2521_v43  ;;  %v2595_v44 = vld [vmem:[%s8284_s16 + $0x450] sm:$0xff] }
 0x26d   : > { %6260 = vmatpush1.bf16.msra.mxu1 %v6259_v1  ;;  %6066 = vmatprep.subr.bf16.mxu0 %v6065_v2  ;;  %v6281_v1 = vpack.c.bf16 %v2482_v59, %v2474_v58  ;;  %v2473_v2 = vld [vmem:[%s8284_s16 + $0x80] sm:$0xff]  ;;  %v6551_v58 = vpack.c.bf16 %v2531_v48, %v2523_v45  ;;  %v2602_v45 = vld [vmem:[%s8284_s16 + $0x488] sm:$0xff] }
 0x26e   : > { %6262 = vmatprep.subr.bf16.mxu1 %v6261_v6  ;;  %v2490_v6 = vld [vmem:[%s8284_s16 + $0x108] sm:$0xff]  ;;  %v6283_v11 = vpack.c.bf16 %v2481_v3, %v2473_v2 }
 0x26f   : > { %v2554_v2 = vld [vmem:[%s8284_s16 + $0x308] sm:$0xff] }
 0x270   : > { %6068 = vmatpush1.bf16.msra.mxu0 %v6067_v12  ;;  %v9112_v12 = vshrl.u32 %v1221_v63, 7  ;;  %v2562_v3 = vld [vmem:[%s8284_s16 + $0x348] sm:$0xff] }
 0x271   : > { %6264 = vmatpush1.bf16.msra.mxu1 %v6263_v13  ;;  %6070 = vmatprep.subr.bf16.mxu0 %v6069_v14  ;;  %v6539_v13 = vpack.c.bf16 %v2483_v5, %v2475_v4  ;;  %v6285_v14 = vpack.c.bf16 %v2498_v7, %v2490_v6  ;;  %v2556_v4 = vld [vmem:[%s8284_s16 + $0x318] sm:$0xff]  ;;  %v6301_v7 = vpack.c.bf16 %v2562_v3, %v2554_v2 }
 0x272   : > { %6266 = vmatprep.subr.bf16.mxu1 %v6265_v18  ;;  %v6541_v18 = vpack.c.bf16 %v2500_v10, %v2492_v9  ;;  %v2561_v9 = vld [vmem:[%s8284_s16 + $0x340] sm:$0xff]  ;;  %v2555_v10 = vld [vmem:[%s8284_s16 + $0x310] sm:$0xff]  ;;  %v1235_v20 = vsub.s32 3, %v9112_v12  ;;  %v2628_v2 = vld [vmem:[%s8284_s16 + $0x558] sm:$0xff] }
 0x274   : > { %6072 = vmatpush1.bf16.msra.mxu0 %v6071_v24  ;;  %v6287_v24 = vpack.c.bf16 %v2497_v16, %v2489_v15  ;;  %v2578_v15 = vld [vmem:[%s8284_s16 + $0x3c8] sm:$0xff]  ;;  %v1223_v16 = vsub.s32 0, %v9112_v12 }
 0x275   : > { %6268 = vmatpush1.bf16.msra.mxu1 %v6267_v26  ;;  %6074 = vmatprep.subr.bf16.mxu0 %v6073_v27  ;;  %v9123_v26 = vld [vmem:[%s8282_s19] sm:$0xff]  ;;  %v1227_v27 = vsub.s32 1, %v9112_v12 }
 0x276   : > { %6270 = vmatprep.subr.bf16.mxu1 %v6269_v31  ;;  %v2513_v31 = vld [vmem:[%s8284_s16 + $0x1c0] sm:$0xff] }
 0x277   : > { %v1228_v40 = vrot.slane %v9123_v26, %v1227_v27 }
 0x278   : > { %6076 = vmatpush1.bf16.msra.mxu0 %v6075_v37  ;;  %v2524_v37 = vld [vmem:[%s8284_s16 + $0x218] sm:$0xff] }
 0x279   : > { %6272 = vmatpush1.bf16.msra.mxu1 %v6271_v38  ;;  %6078 = vmatprep.subr.bf16.mxu0 %v6077_v39  ;;  %v2532_v38 = vld [vmem:[%s8284_s16 + $0x258] sm:$0xff]  ;;  %v6291_v39 = vpack.c.bf16 %v2513_v31, %v2505_v30  ;;  %v2579_v30 = vld [vmem:[%s8284_s16 + $0x3d0] sm:$0xff]  ;;  %v2586_v31 = vld [vmem:[%s8284_s16 + $0x408] sm:$0xff] }
 0x27a   : > { %6274 = vmatprep.subr.bf16.mxu1 %v6273_v42  ;;  %v6293_v42 = vpack.c.bf16 %v2530_v36, %v2522_v35  ;;  %v2596_v35 = vld [vmem:[%s8284_s16 + $0x458] sm:$0xff] }
 0x27b   : > { %2040 = vmatmul.mubr.f32.vlgmr.msra.gmra.mrb[2].mxu0 %v7628_v52  ;;  %v6565_v43 = vpack.c.bf16 %v2596_v35, %v2588_v34 }
 0x27c   : > { %2324 = vmatmul.mubr.f32.vlgmr.msra.gmra.mrb[2].mxu1 %v7628_v52  ;;  %6080 = vmatpush1.bf16.msra.mxu0 %v6079_v47  ;;  %v6549_v47 = vpack.c.bf16 %v2532_v38, %v2524_v37  ;;  %v1236_v37 = vrot.slane %v9123_v26, %v1235_v20 }
 0x27d   : > { %6276 = vmatpush1.bf16.msra.mxu1 %v6275_v50  ;;  %2110 = vmatprep.mubr.f32.mxu0 %v7960_v25  ;;  %v2546_v50 = vld [vmem:[%s8284_s16 + $0x2c8] sm:$0xff] }
 0x27e   : > { %2394 = vmatprep.mubr.f32.mxu1 %v7960_v25  ;;  %6278 = vmatprep.subr.bf16.mxu0 %v6277_v51  ;;  %v6537_v25 = vpack.c.bf16 %v2484_v61, %v2476_v60  ;;  %v6297_v59 = vpack.c.bf16 %v2546_v50, %v2538_v49  ;;  %v2537_v60 = vld [vmem:[%s8284_s16 + $0x280] sm:$0xff]  ;;  %v2604_v50 = vld [vmem:[%s8284_s16 + $0x498] sm:$0xff] }
 0x27f   : > { %6534 = vmatprep.subr.bf16.mxu1 %v6533_v53  ;;  %v2540_v53 = vld [vmem:[%s8284_s16 + $0x298] sm:$0xff]  ;;  %v2545_v61 = vld [vmem:[%s8284_s16 + $0x2c0] sm:$0xff] }
 0x280   : > { %v6299_v5 = vpack.c.bf16 %v2545_v61, %v2537_v60  ;;  %v2609_v60 = vld [vmem:[%s8284_s16 + $0x4c0] sm:$0xff]  ;;  %v2603_v61 = vld [vmem:[%s8284_s16 + $0x490] sm:$0xff] }
 0x283   : > { %5325 = vmatmul.mubr.msk.f32.vlgmr.msra.gmra.mrb[2].mxu0 %vm1261_vm0, %v7629_v8 }
 0x284   : > { %5326 = vmatmul.mubr.msk.f32.vlgmr.msra.gmra.mrb[2].mxu1 %vm1261_vm0, %v7629_v8  ;;  %6280 = vmatpush1.bf16.msra.mxu0 %v6279_v62  ;;  %v2539_v62 = vld [vmem:[%s8284_s16 + $0x290] sm:$0xff]  ;;  %v2553_v8 = vld [vmem:[%s8284_s16 + $0x300] sm:$0xff] }
 0x285   : > { %6536 = vmatpush1.bf16.msra.mxu1 %v6535_v0  ;;  %6282 = vmatprep.subr.bf16.mxu0 %v6281_v1  ;;  %v6553_v0 = vpack.c.bf16 %v2548_v54, %v2540_v53  ;;  %v2547_v1 = vld [vmem:[%s8284_s16 + $0x2d0] sm:$0xff]  ;;  %v6303_v19 = vpack.c.bf16 %v2561_v9, %v2553_v8 }
 0x286   : > { %6538 = vmatprep.subr.bf16.mxu1 %v6537_v25  ;;  %v2564_v25 = vld [vmem:[%s8284_s16 + $0x358] sm:$0xff]  ;;  %v6555_v6 = vpack.c.bf16 %v2547_v1, %v2539_v62  ;;  %v2611_v62 = vld [vmem:[%s8284_s16 + $0x4d0] sm:$0xff] }
 0x287   : > { %v2619_v9 = vld [vmem:[%s8284_s16 + $0x510] sm:$0xff] }
 0x288   : > { %6284 = vmatpush1.bf16.msra.mxu0 %v6283_v11  ;;  %v6557_v11 = vpack.c.bf16 %v2564_v25, %v2556_v4  ;;  %v6571_v25 = vpack.c.bf16 %v2611_v62, %v2603_v61  ;;  %v2684_v61 = vld [vmem:[%s8284_s16 + $0x718] sm:$0xff] }
 0x289   : > { %6540 = vmatpush1.bf16.msra.mxu1 %v6539_v13  ;;  %6286 = vmatprep.subr.bf16.mxu0 %v6285_v14  ;;  %v2563_v13 = vld [vmem:[%s8284_s16 + $0x350] sm:$0xff]  ;;  %v2570_v14 = vld [vmem:[%s8284_s16 + $0x388] sm:$0xff] }
 0x28a   : > { %6542 = vmatprep.subr.bf16.mxu1 %v6541_v18  ;;  %v2580_v18 = vld [vmem:[%s8284_s16 + $0x3d8] sm:$0xff]  ;;  %v6559_v21 = vpack.c.bf16 %v2563_v13, %v2555_v10  ;;  %v6305_v22 = vpack.c.bf16 %v2578_v15, %v2570_v14  ;;  %v2627_v10 = vld [vmem:[%s8284_s16 + $0x550] sm:$0xff]  ;;  %v2642_v13 = vld [vmem:[%s8284_s16 + $0x5c8] sm:$0xff] }
 0x28b   : > { %v2636_v15 = vld [vmem:[%s8284_s16 + $0x598] sm:$0xff] }
 0x28c   : > { %6288 = vmatpush1.bf16.msra.mxu0 %v6287_v24  ;;  %v2577_v24 = vld [vmem:[%s8284_s16 + $0x3c0] sm:$0xff] }
 0x28d   : > { %6544 = vmatpush1.bf16.msra.mxu1 %v6543_v28  ;;  %6290 = vmatprep.subr.bf16.mxu0 %v6289_v29  ;;  %v2571_v28 = vld [vmem:[%s8284_s16 + $0x390] sm:$0xff]  ;;  %v6561_v29 = vpack.c.bf16 %v2580_v18, %v2572_v17  ;;  %v6307_v36 = vpack.c.bf16 %v2577_v24, %v2569_v23  ;;  %v2644_v17 = vld [vmem:[%s8284_s16 + $0x5d8] sm:$0xff]  ;;  %v6575_v18 = vpack.c.bf16 %v2627_v10, %v2619_v9 }
 0x28e   : > { %6546 = vmatprep.subr.bf16.mxu1 %v6545_v33  ;;  %v9140_v46 = vpop.f32.mrb[0].mxu0  ;;  %v1224_v33 = vrot.slane %v9123_v26, %v1223_v16  ;;  %v6563_v38 = vpack.c.bf16 %v2579_v30, %v2571_v28  ;;  %v2643_v24 = vld [vmem:[%s8284_s16 + $0x5d0] sm:$0xff]  ;;  %v2650_v28 = vld [vmem:[%s8284_s16 + $0x608] sm:$0xff]  ;;  %v6577_v30 = vpack.c.bf16 %v2644_v17, %v2636_v15  ;;  %v2708_v9 = vld [vmem:[%s8284_s16 + $0x7d8] sm:$0xff] }
 0x28f   : > { %v9145_v51 = vpop.f32.mrb[0].mxu1  ;;  %v1546_v52 = vpop.f32.mrb[1].mxu0  ;;  %v2705_v15 = vld [vmem:[%s8284_s16 + $0x7c0] sm:$0xff]  ;;  %v2699_v17 = vld [vmem:[%s8284_s16 + $0x790] sm:$0xff] }
 0x290   : > { %6292 = vmatpush1.bf16.msra.mxu0 %v6291_v39  ;;  %v7430_v55 = vadd.f32 %v1546_v52, %v1228_v40  ;;  %v9149_v56 = vpop.f32.mrb[1].mxu1  ;;  %v6309_v39 = vpack.c.bf16 %v2594_v32, %v2586_v31  ;;  %v2585_v40 = vld [vmem:[%s8284_s16 + $0x400] sm:$0xff]  ;;  %v7429_v49 = vadd.f32 %v9140_v46, %v1224_v33  ;;  %v2612_v52 = vld [vmem:[%s8284_s16 + $0x4d8] sm:$0xff] }
 0x291   : > { %6548 = vmatpush1.bf16.msra.mxu1 %v6547_v41  ;;  %6294 = vmatprep.subr.bf16.mxu0 %v6293_v42  ;;  %v2593_v41 = vld [vmem:[%s8284_s16 + $0x440] sm:$0xff]  ;;  %v2587_v42 = vld [vmem:[%s8284_s16 + $0x410] sm:$0xff]  ;;  %v6569_v46 = vpack.c.bf16 %v2612_v52, %v2604_v50  ;;  %v2652_v31 = vld [vmem:[%s8284_s16 + $0x618] sm:$0xff] }
 0x292   : > { %v5328_v63 = vmul.f32 -1.442695, %v7430_v55  ;;  %6550 = vmatprep.subr.bf16.mxu1 %v6549_v47  ;;  %v2610_v47 = vld [vmem:[%s8284_s16 + $0x4c8] sm:$0xff]  ;;  %v6311_v54 = vpack.c.bf16 %v2593_v41, %v2585_v40  ;;  %v7432_v55 = vadd.f32 %v9149_v56, %v1236_v37  ;;  %v5327_v1 = vmul.f32 -1.442695, %v7429_v49  ;;  %v2620_v56 = vld [vmem:[%s8284_s16 + $0x518] sm:$0xff] }
 0x293   : > { %v6573_v8 = vpack.c.bf16 %v2628_v2, %v2620_v56  ;;  %v2660_v32 = vld [vmem:[%s8284_s16 + $0x658] sm:$0xff]  ;;  %v2649_v37 = vld [vmem:[%s8284_s16 + $0x600] sm:$0xff]  ;;  %v2659_v41 = vld [vmem:[%s8284_s16 + $0x650] sm:$0xff] }
 0x294   : > { %6296 = vmatpush1.bf16.msra.mxu0 %v6295_v57  ;;  %7591 = vpow2.f32 %v5328_v63  ;;  %v6567_v57 = vpack.c.bf16 %v2595_v44, %v2587_v42  ;;  %v2618_v63 = vld [vmem:[%s8284_s16 + $0x508] sm:$0xff]  ;;  %v5330_v4 = vmul.f32 -1.442695, %v7432_v55  ;;  %v6581_v40 = vpack.c.bf16 %v2660_v32, %v2652_v31  ;;  %v2668_v44 = vld [vmem:[%s8284_s16 + $0x698] sm:$0xff]  ;;  %v2665_v52 = vld [vmem:[%s8284_s16 + $0x680] sm:$0xff] }
 0x295   : > { %6552 = vmatpush1.bf16.msra.mxu1 %v6551_v58  ;;  %6298 = vmatprep.subr.bf16.mxu0 %v6297_v59  ;;  %v6313_v58 = vpack.c.bf16 %v2610_v47, %v2602_v45  ;;  %v2601_v59 = vld [vmem:[%s8284_s16 + $0x480] sm:$0xff]  ;;  %v2666_v42 = vld [vmem:[%s8284_s16 + $0x688] sm:$0xff]  ;;  %v2676_v45 = vld [vmem:[%s8284_s16 + $0x6d8] sm:$0xff] }
 0x296   : > { %6554 = vmatprep.subr.bf16.mxu1 %v6553_v0  ;;  %v2626_v0 = vld [vmem:[%s8284_s16 + $0x548] sm:$0xff]  ;;  %v6315_v3 = vpack.c.bf16 %v2609_v60, %v2601_v59  ;;  %v6585_v55 = vpack.c.bf16 %v2676_v45, %v2668_v44  ;;  %v2681_v56 = vld [vmem:[%s8284_s16 + $0x700] sm:$0xff]  ;;  %v2731_v45 = vld [vmem:[%s8284_s16 + $0x890] sm:$0xff] }
 0x297   : > { %v2690_v59 = vld [vmem:[%s8284_s16 + $0x748] sm:$0xff]  ;;  %v2689_v2 = vld [vmem:[%s8284_s16 + $0x740] sm:$0xff] }
 0x298   : > { %6300 = vmatpush1.bf16.msra.mxu0 %v6299_v5  ;;  %v6317_v5 = vpack.c.bf16 %v2626_v0, %v2618_v63  ;;  %v6335_v10 = vpack.c.bf16 %v2689_v2, %v2681_v56  ;;  %v2713_v31 = vld [vmem:[%s8284_s16 + $0x800] sm:$0xff]  ;;  %v2770_v56 = vld [vmem:[%s8284_s16 + $0x9c8] sm:$0xff]  ;;  %v2764_v2 = vld [vmem:[%s8284_s16 + $0x998] sm:$0xff] }
 0x299   : > { %6556 = vmatpush1.bf16.msra.mxu1 %v6555_v6  ;;  %6302 = vmatprep.subr.bf16.mxu0 %v6301_v7  ;;  %v2617_v6 = vld [vmem:[%s8284_s16 + $0x500] sm:$0xff] }
 0x29a   : > { %6558 = vmatprep.subr.bf16.mxu1 %v6557_v11  ;;  %v2625_v7 = vld [vmem:[%s8284_s16 + $0x540] sm:$0xff]  ;;  %v2634_v11 = vld [vmem:[%s8284_s16 + $0x588] sm:$0xff] }
 0x29b   : > { %v6319_v14 = vpack.c.bf16 %v2625_v7, %v2617_v6  ;;  %v6321_v23 = vpack.c.bf16 %v2642_v13, %v2634_v11  ;;  %v2698_v6 = vld [vmem:[%s8284_s16 + $0x788] sm:$0xff]  ;;  %v2721_v32 = vld [vmem:[%s8284_s16 + $0x840] sm:$0xff] }
 0x29c   : > { %6304 = vmatpush1.bf16.msra.mxu0 %v6303_v19  ;;  %v2633_v19 = vld [vmem:[%s8284_s16 + $0x580] sm:$0xff]  ;;  %v2706_v7 = vld [vmem:[%s8284_s16 + $0x7c8] sm:$0xff] }
 0x29d   : > { %6560 = vmatpush1.bf16.msra.mxu1 %v6559_v21  ;;  %6306 = vmatprep.subr.bf16.mxu0 %v6305_v22  ;;  %v2641_v21 = vld [vmem:[%s8284_s16 + $0x5c0] sm:$0xff]  ;;  %v2635_v22 = vld [vmem:[%s8284_s16 + $0x590] sm:$0xff]  ;;  %v6337_v13 = vpack.c.bf16 %v2706_v7, %v2698_v6 }
 0x29e   : > { %6562 = vmatprep.subr.bf16.mxu1 %v6561_v29  ;;  %v7592_v48 = vpop.eup %7591  ;;  %v2658_v29 = vld [vmem:[%s8284_s16 + $0x648] sm:$0xff]  ;;  %v6323_v34 = vpack.c.bf16 %v2641_v21, %v2633_v19  ;;  %v6579_v35 = vpack.c.bf16 %v2643_v24, %v2635_v22  ;;  %v2707_v19 = vld [vmem:[%s8284_s16 + $0x7d0] sm:$0xff]  ;;  %v2724_v24 = vld [vmem:[%s8284_s16 + $0x858] sm:$0xff] }
 0x29f   : > { %v2426_v53 = vadd.f32 1.0, %v7592_v48  ;;  %v2714_v21 = vld [vmem:[%s8284_s16 + $0x808] sm:$0xff]  ;;  %v2737_v44 = vld [vmem:[%s8284_s16 + $0x8c0] sm:$0xff] }
 0x2a0   : > { %6308 = vmatpush1.bf16.msra.mxu0 %v6307_v36  ;;  %v6325_v36 = vpack.c.bf16 %v2658_v29, %v2650_v28  ;;  %v2722_v22 = vld [vmem:[%s8284_s16 + $0x848] sm:$0xff]  ;;  %v6595_v29 = vpack.c.bf16 %v2707_v19, %v2699_v17  ;;  %v2761_v6 = vld [vmem:[%s8284_s16 + $0x980] sm:$0xff] }
 0x2a1   : > { %6564 = vmatpush1.bf16.msra.mxu1 %v6563_v38  ;;  %6310 = vmatprep.subr.bf16.mxu0 %v6309_v39  ;;  %7593 = vrcp.f32 %v2426_v53  ;;  %v2657_v38 = vld [vmem:[%s8284_s16 + $0x640] sm:$0xff]  ;;  %v2651_v39 = vld [vmem:[%s8284_s16 + $0x610] sm:$0xff] }
 0x2a2   : > { %6566 = vmatprep.subr.bf16.mxu1 %v6565_v43  ;;  %7595 = vpow2.f32 %v5327_v1  ;;  %v2674_v43 = vld [vmem:[%s8284_s16 + $0x6c8] sm:$0xff]  ;;  %v6327_v47 = vpack.c.bf16 %v2657_v38, %v2649_v37  ;;  %v6583_v49 = vpack.c.bf16 %v2659_v41, %v2651_v39  ;;  %v2673_v53 = vld [vmem:[%s8284_s16 + $0x6c0] sm:$0xff]  ;;  %v6343_v39 = vpack.c.bf16 %v2721_v32, %v2713_v31  ;;  %v2740_v41 = vld [vmem:[%s8284_s16 + $0x8d8] sm:$0xff] }
 0x2a3   : > { %7597 = vpow2.f32 %v5330_v4  ;;  %v6329_v50 = vpack.c.bf16 %v2674_v43, %v2666_v42  ;;  %v6331_v63 = vpack.c.bf16 %v2673_v53, %v2665_v52  ;;  %v2730_v37 = vld [vmem:[%s8284_s16 + $0x888] sm:$0xff]  ;;  %v2729_v43 = vld [vmem:[%s8284_s16 + $0x880] sm:$0xff]  ;;  %v2796_v31 = vld [vmem:[%s8284_s16 + $0xa98] sm:$0xff] }
 0x2a4   : > { %6312 = vmatpush1.bf16.msra.mxu0 %v6311_v54  ;;  %v2667_v54 = vld [vmem:[%s8284_s16 + $0x690] sm:$0xff]  ;;  %v2738_v38 = vld [vmem:[%s8284_s16 + $0x8c8] sm:$0xff]  ;;  %v2769_v7 = vld [vmem:[%s8284_s16 + $0x9c0] sm:$0xff] }
 0x2a5   : > { %6568 = vmatpush1.bf16.msra.mxu1 %v6567_v57  ;;  %6314 = vmatprep.subr.bf16.mxu0 %v6313_v58  ;;  %v2675_v57 = vld [vmem:[%s8284_s16 + $0x6d0] sm:$0xff]  ;;  %v2682_v58 = vld [vmem:[%s8284_s16 + $0x708] sm:$0xff]  ;;  %v6355_v17 = vpack.c.bf16 %v2769_v7, %v2761_v6  ;;  %v2804_v32 = vld [vmem:[%s8284_s16 + $0xad8] sm:$0xff] }
 0x2a6   : > { %6570 = vmatprep.subr.bf16.mxu1 %v6569_v46  ;;  %v2692_v46 = vld [vmem:[%s8284_s16 + $0x758] sm:$0xff]  ;;  %v6587_v0 = vpack.c.bf16 %v2675_v57, %v2667_v54  ;;  %v6333_v1 = vpack.c.bf16 %v2690_v59, %v2682_v58  ;;  %v2754_v52 = vld [vmem:[%s8284_s16 + $0x948] sm:$0xff]  ;;  %v6347_v58 = vpack.c.bf16 %v2737_v44, %v2729_v43 }
 0x2a7   : > { %v2748_v54 = vld [vmem:[%s8284_s16 + $0x918] sm:$0xff]  ;;  %v2818_v43 = vld [vmem:[%s8284_s16 + $0xb48] sm:$0xff] }
 0x2a8   : > { %6316 = vmatpush1.bf16.msra.mxu0 %v6315_v3  ;;  %v2683_v3 = vld [vmem:[%s8284_s16 + $0x710] sm:$0xff]  ;;  %v2812_v44 = vld [vmem:[%s8284_s16 + $0xb18] sm:$0xff]  ;;  %v2850_v6 = vld [vmem:[%s8284_s16 + $0xc48] sm:$0xff] }
 0x2a9   : > { %6572 = vmatpush1.bf16.msra.mxu1 %v6571_v25  ;;  %6318 = vmatprep.subr.bf16.mxu0 %v6317_v5  ;;  %v6589_v25 = vpack.c.bf16 %v2692_v46, %v2684_v61  ;;  %v2691_v5 = vld [vmem:[%s8284_s16 + $0x750] sm:$0xff]  ;;  %v2745_v61 = vld [vmem:[%s8284_s16 + $0x900] sm:$0xff] }
 0x2aa   : > { %6574 = vmatprep.subr.bf16.mxu1 %v6573_v8  ;;  %v2700_v8 = vld [vmem:[%s8284_s16 + $0x798] sm:$0xff]  ;;  %v6591_v11 = vpack.c.bf16 %v2691_v5, %v2683_v3  ;;  %v2753_v46 = vld [vmem:[%s8284_s16 + $0x940] sm:$0xff] }
 0x2ab   : > { %v9217_v33 = vpop.eup %7593  ;;  %v2772_v3 = vld [vmem:[%s8284_s16 + $0x9d8] sm:$0xff] }
 0x2ac   : > { %6320 = vmatpush1.bf16.msra.mxu0 %v6319_v14  ;;  %3545 = vmatprep.mubr.f32.mxu0 %v9217_v33  ;;  %v7596_v48 = vpop.eup %7595  ;;  %v2697_v14 = vld [vmem:[%s8284_s16 + $0x780] sm:$0xff] }
 0x2ad   : > { %6576 = vmatpush1.bf16.msra.mxu1 %v6575_v18  ;;  %3829 = vmatprep.mubr.f32.mxu1 %v9217_v33  ;;  %v7598_v60 = vpop.eup %7597  ;;  %v2425_v62 = vadd.f32 1.0, %v7596_v48  ;;  %v6593_v18 = vpack.c.bf16 %v2708_v9, %v2700_v8  ;;  %v6339_v28 = vpack.c.bf16 %v2705_v15, %v2697_v14  ;;  %v6345_v48 = vpack.c.bf16 %v2738_v38, %v2730_v37  ;;  %v2763_v8 = vld [vmem:[%s8284_s16 + $0x990] sm:$0xff]  ;;  %v2780_v14 = vld [vmem:[%s8284_s16 + $0xa18] sm:$0xff]  ;;  %v2793_v37 = vld [vmem:[%s8284_s16 + $0xa80] sm:$0xff] }
 0x2ae   : > { %6322 = vmatprep.subr.bf16.mxu0 %v6321_v23  ;;  %6578 = vmatprep.subr.bf16.mxu1 %v6577_v30  ;;  %v2428_v4 = vadd.f32 1.0, %v7598_v60  ;;  %v2716_v23 = vld [vmem:[%s8284_s16 + $0x818] sm:$0xff]  ;;  %v6341_v30 = vpack.c.bf16 %v2722_v22, %v2714_v21  ;;  %v6609_v9 = vpack.c.bf16 %v2772_v3, %v2764_v2  ;;  %v2777_v21 = vld [vmem:[%s8284_s16 + $0xa00] sm:$0xff]  ;;  %v2827_v3 = vld [vmem:[%s8284_s16 + $0xb90] sm:$0xff] }
 0x2af   : > { %7599 = vrcp.f32 %v2425_v62  ;;  %v2747_v62 = vld [vmem:[%s8284_s16 + $0x910] sm:$0xff]  ;;  %v2788_v15 = vld [vmem:[%s8284_s16 + $0xa58] sm:$0xff]  ;;  %v2785_v22 = vld [vmem:[%s8284_s16 + $0xa40] sm:$0xff] }
 0x2b0   : > { %6324 = vmatpush1.bf16.msra.mxu0 %v6323_v34  ;;  %7601 = vrcp.f32 %v2428_v4  ;;  %v6597_v34 = vpack.c.bf16 %v2724_v24, %v2716_v23  ;;  %v6351_v4 = vpack.c.bf16 %v2753_v46, %v2745_v61  ;;  %v2779_v23 = vld [vmem:[%s8284_s16 + $0xa10] sm:$0xff]  ;;  %v6613_v24 = vpack.c.bf16 %v2788_v15, %v2780_v14  ;;  %v2801_v38 = vld [vmem:[%s8284_s16 + $0xac0] sm:$0xff]  ;;  %v2828_v46 = vld [vmem:[%s8284_s16 + $0xb98] sm:$0xff] }
 0x2b1   : > { %6580 = vmatpush1.bf16.msra.mxu1 %v6579_v35  ;;  %6326 = vmatprep.subr.bf16.mxu0 %v6325_v36  ;;  %v2715_v35 = vld [vmem:[%s8284_s16 + $0x810] sm:$0xff]  ;;  %v1231_v61 = vsub.s32 2, %v9112_v12  ;;  %v2833_v2 = vld [vmem:[%s8284_s16 + $0xbc0] sm:$0xff] }
 0x2b2   : > { %6582 = vmatprep.subr.bf16.mxu1 %v6581_v40  ;;  %v2723_v36 = vld [vmem:[%s8284_s16 + $0x850] sm:$0xff]  ;;  %v2732_v40 = vld [vmem:[%s8284_s16 + $0x898] sm:$0xff]  ;;  %v2841_v14 = vld [vmem:[%s8284_s16 + $0xc00] sm:$0xff] }
 0x2b3   : > { %v6599_v42 = vpack.c.bf16 %v2723_v36, %v2715_v35  ;;  %v6601_v53 = vpack.c.bf16 %v2740_v41, %v2732_v40  ;;  %v6617_v40 = vpack.c.bf16 %v2804_v32, %v2796_v31  ;;  %v2803_v41 = vld [vmem:[%s8284_s16 + $0xad0] sm:$0xff]  ;;  %v1232_v7 = vrot.slane %v9123_v26, %v1231_v61  ;;  %v2849_v15 = vld [vmem:[%s8284_s16 + $0xc40] sm:$0xff] }
 0x2b4   : > { %6328 = vmatpush1.bf16.msra.mxu0 %v6327_v47  ;;  %v2851_v26 = vld [vmem:[%s8284_s16 + $0xc50] sm:$0xff]  ;;  %v2857_v31 = vld [vmem:[%s8284_s16 + $0xc80] sm:$0xff] }
 0x2b5   : > { %6584 = vmatpush1.bf16.msra.mxu1 %v6583_v49  ;;  %6330 = vmatprep.subr.bf16.mxu0 %v6329_v50  ;;  %v2739_v49 = vld [vmem:[%s8284_s16 + $0x8d0] sm:$0xff]  ;;  %v2746_v50 = vld [vmem:[%s8284_s16 + $0x908] sm:$0xff]  ;;  %v2865_v32 = vld [vmem:[%s8284_s16 + $0xcc0] sm:$0xff] }
 0x2b6   : > { %6586 = vmatprep.subr.bf16.mxu1 %v6585_v55  ;;  %v2756_v55 = vld [vmem:[%s8284_s16 + $0x958] sm:$0xff]  ;;  %v6603_v59 = vpack.c.bf16 %v2739_v49, %v2731_v45  ;;  %v6349_v60 = vpack.c.bf16 %v2754_v52, %v2746_v50  ;;  %v2809_v52 = vld [vmem:[%s8284_s16 + $0xb00] sm:$0xff] }
 0x2b7   : > { %v2820_v45 = vld [vmem:[%s8284_s16 + $0xb58] sm:$0xff] }
 0x2b8   : > { %6332 = vmatpush1.bf16.msra.mxu0 %v6331_v63  ;;  %v6605_v63 = vpack.c.bf16 %v2756_v55, %v2748_v54  ;;  %v2811_v54 = vld [vmem:[%s8284_s16 + $0xb10] sm:$0xff]  ;;  %v6621_v55 = vpack.c.bf16 %v2820_v45, %v2812_v44  ;;  %v2873_v44 = vld [vmem:[%s8284_s16 + $0xd00] sm:$0xff] }
 0x2b9   : > { %6588 = vmatpush1.bf16.msra.mxu1 %v6587_v0  ;;  %6334 = vmatprep.subr.bf16.mxu0 %v6333_v1  ;;  %v9264_v47 = vpop.eup %7599  ;;  %v2755_v0 = vld [vmem:[%s8284_s16 + $0x950] sm:$0xff]  ;;  %v2762_v1 = vld [vmem:[%s8284_s16 + $0x988] sm:$0xff]  ;;  %v2881_v45 = vld [vmem:[%s8284_s16 + $0xd40] sm:$0xff] }
 0x2ba   : > { %6590 = vmatprep.subr.bf16.mxu1 %v6589_v25  ;;  %v9272_v57 = vpop.eup %7601  ;;  %v6607_v25 = vpack.c.bf16 %v2755_v0, %v2747_v62  ;;  %v6353_v5 = vpack.c.bf16 %v2770_v56, %v2762_v1  ;;  %v2836_v62 = vld [vmem:[%s8284_s16 + $0xbd8] sm:$0xff]  ;;  %v2825_v56 = vld [vmem:[%s8284_s16 + $0xb80] sm:$0xff] }
 0x2bc   : > { %6336 = vmatpush1.bf16.msra.mxu0 %v6335_v10  ;;  %v2771_v10 = vld [vmem:[%s8284_s16 + $0x9d0] sm:$0xff] }
 0x2bd   : > { %6592 = vmatpush1.bf16.msra.mxu1 %v6591_v11  ;;  %6338 = vmatprep.subr.bf16.mxu0 %v6337_v13  ;;  %v2778_v11 = vld [vmem:[%s8284_s16 + $0xa08] sm:$0xff] }
 0x2be   : > { %6594 = vmatprep.subr.bf16.mxu1 %v6593_v18  ;;  %v2786_v13 = vld [vmem:[%s8284_s16 + $0xa48] sm:$0xff]  ;;  %v6611_v18 = vpack.c.bf16 %v2771_v10, %v2763_v8  ;;  %v2844_v8 = vld [vmem:[%s8284_s16 + $0xc18] sm:$0xff]  ;;  %v6371_v10 = vpack.c.bf16 %v2833_v2, %v2825_v56 }
 0x2bf   : > { %v6357_v19 = vpack.c.bf16 %v2786_v13, %v2778_v11  ;;  %v2906_v56 = vld [vmem:[%s8284_s16 + $0xe08] sm:$0xff] }
 0x2c0   : > { %6340 = vmatpush1.bf16.msra.mxu0 %v6339_v28  ;;  %v2787_v28 = vld [vmem:[%s8284_s16 + $0xa50] sm:$0xff]  ;;  %v2914_v2 = vld [vmem:[%s8284_s16 + $0xe48] sm:$0xff] }
 0x2c1   : > { %6596 = vmatpush1.bf16.msra.mxu1 %v6595_v29  ;;  %6342 = vmatprep.subr.bf16.mxu0 %v6341_v30  ;;  %v2794_v29 = vld [vmem:[%s8284_s16 + $0xa88] sm:$0xff]  ;;  %v6615_v35 = vpack.c.bf16 %v2787_v28, %v2779_v23  ;;  %v2860_v23 = vld [vmem:[%s8284_s16 + $0xc98] sm:$0xff]  ;;  %v6375_v28 = vpack.c.bf16 %v2849_v15, %v2841_v14 }
 0x2c2   : > { %6598 = vmatprep.subr.bf16.mxu1 %v6597_v34  ;;  %v2802_v30 = vld [vmem:[%s8284_s16 + $0xac8] sm:$0xff]  ;;  %v6359_v34 = vpack.c.bf16 %v2785_v22, %v2777_v21  ;;  %v7431_v22 = vadd.f32 %v9145_v51, %v1232_v7  ;;  %v2867_v51 = vld [vmem:[%s8284_s16 + $0xcd0] sm:$0xff]  ;;  %v2905_v7 = vld [vmem:[%s8284_s16 + $0xe00] sm:$0xff] }
 0x2c3   : > { %3546 = vmatmul.mubr.f32.vlgmr.msra.gmra.mrb[4].mxu0 %v9264_v47  ;;  %v6361_v36 = vpack.c.bf16 %v2802_v30, %v2794_v29  ;;  %v2866_v21 = vld [vmem:[%s8284_s16 + $0xcc8] sm:$0xff]  ;;  %v2924_v15 = vld [vmem:[%s8284_s16 + $0xe98] sm:$0xff] }
 0x2c4   : > { %3830 = vmatmul.mubr.f32.vlgmr.msra.gmra.mrb[4].mxu1 %v9264_v47  ;;  %6344 = vmatpush1.bf16.msra.mxu0 %v6343_v39  ;;  %v2795_v39 = vld [vmem:[%s8284_s16 + $0xa90] sm:$0xff]  ;;  %v2930_v14 = vld [vmem:[%s8284_s16 + $0xec8] sm:$0xff] }
 0x2c5   : > { %3616 = vmatprep.mubr.f32.mxu0 %v9272_v57  ;;  %6600 = vmatpush1.bf16.msra.mxu1 %v6599_v42  ;;  %v2810_v42 = vld [vmem:[%s8284_s16 + $0xb08] sm:$0xff]  ;;  %v6619_v49 = vpack.c.bf16 %v2803_v41, %v2795_v39  ;;  %v2876_v39 = vld [vmem:[%s8284_s16 + $0xd18] sm:$0xff]  ;;  %v6379_v41 = vpack.c.bf16 %v2865_v32, %v2857_v31 }
 0x2c6   : > { %3900 = vmatprep.mubr.f32.mxu1 %v9272_v57  ;;  %6346 = vmatprep.subr.bf16.mxu0 %v6345_v48  ;;  %v6363_v48 = vpack.c.bf16 %v2801_v38, %v2793_v37  ;;  %v6365_v50 = vpack.c.bf16 %v2818_v43, %v2810_v42  ;;  %v2882_v37 = vld [vmem:[%s8284_s16 + $0xd48] sm:$0xff]  ;;  %v5329_v38 = vmul.f32 -1.442695, %v7431_v22  ;;  %v2921_v22 = vld [vmem:[%s8284_s16 + $0xe80] sm:$0xff]  ;;  %v2940_v32 = vld [vmem:[%s8284_s16 + $0xf18] sm:$0xff] }
 0x2c7   : > { %6602 = vmatprep.subr.bf16.mxu1 %v6601_v53  ;;  %v2817_v53 = vld [vmem:[%s8284_s16 + $0xb40] sm:$0xff]  ;;  %v2946_v31 = vld [vmem:[%s8284_s16 + $0xf48] sm:$0xff] }
 0x2c8   : > { %6348 = vmatpush1.bf16.msra.mxu0 %v6347_v58  ;;  %v2819_v58 = vld [vmem:[%s8284_s16 + $0xb50] sm:$0xff]  ;;  %7603 = vpow2.f32 %v5329_v38  ;;  %v2937_v38 = vld [vmem:[%s8284_s16 + $0xf00] sm:$0xff] }
 0x2c9   : > { %6604 = vmatpush1.bf16.msra.mxu1 %v6603_v59  ;;  %6350 = vmatprep.subr.bf16.mxu0 %v6349_v60  ;;  %v2826_v59 = vld [vmem:[%s8284_s16 + $0xb88] sm:$0xff]  ;;  %v6623_v0 = vpack.c.bf16 %v2819_v58, %v2811_v54  ;;  %v2892_v54 = vld [vmem:[%s8284_s16 + $0xd98] sm:$0xff]  ;;  %v6383_v58 = vpack.c.bf16 %v2881_v45, %v2873_v44 }
 0x2ca   : > { %6606 = vmatprep.subr.bf16.mxu1 %v6605_v63  ;;  %v2834_v60 = vld [vmem:[%s8284_s16 + $0xbc8] sm:$0xff]  ;;  %v6367_v63 = vpack.c.bf16 %v2817_v53, %v2809_v52  ;;  %v2956_v45 = vld [vmem:[%s8284_s16 + $0xf98] sm:$0xff] }
 0x2cb   : > { %v6369_v1 = vpack.c.bf16 %v2834_v60, %v2826_v59  ;;  %v2890_v52 = vld [vmem:[%s8284_s16 + $0xd88] sm:$0xff] }
 0x2cc   : > { %6352 = vmatpush1.bf16.msra.mxu0 %v6351_v4  ;;  %v6625_v4 = vpack.c.bf16 %v2836_v62, %v2828_v46  ;;  %v2898_v53 = vld [vmem:[%s8284_s16 + $0xdc8] sm:$0xff]  ;;  %v2889_v46 = vld [vmem:[%s8284_s16 + $0xd80] sm:$0xff] }
 0x2cd   : > { %6608 = vmatpush1.bf16.msra.mxu1 %v6607_v25  ;;  %6354 = vmatprep.subr.bf16.mxu0 %v6353_v5  ;;  %v2835_v25 = vld [vmem:[%s8284_s16 + $0xbd0] sm:$0xff]  ;;  %v2842_v5 = vld [vmem:[%s8284_s16 + $0xc08] sm:$0xff]  ;;  %v6385_v60 = vpack.c.bf16 %v2898_v53, %v2890_v52  ;;  %v2897_v62 = vld [vmem:[%s8284_s16 + $0xdc0] sm:$0xff] }
 0x2ce   : > { %6610 = vmatprep.subr.bf16.mxu1 %v6609_v9  ;;  %v2852_v9 = vld [vmem:[%s8284_s16 + $0xc58] sm:$0xff]  ;;  %v6627_v11 = vpack.c.bf16 %v2835_v25, %v2827_v3  ;;  %v6373_v13 = vpack.c.bf16 %v2850_v6, %v2842_v5  ;;  %v6387_v25 = vpack.c.bf16 %v2897_v62, %v2889_v46  ;;  %v6389_v6 = vpack.c.bf16 %v2914_v2, %v2906_v56  ;;  %v2962_v44 = vld [vmem:[%s8284_s16 + $0xfc8] sm:$0xff]  ;;  %v2953_v53 = vld [vmem:[%s8284_s16 + $0xf80] sm:$0xff] }
 0x2cf   : > { %v2908_v3 = vld [vmem:[%s8284_s16 + $0xe18] sm:$0xff]  ;;  %v2978_v46 = vld [vmem:[%s8284_s16 + $0x1048] sm:$0xff]  ;;  %v2969_v2 = vld [vmem:[%s8284_s16 + $0x1000] sm:$0xff] }
 0x2d0   : > { %6356 = vmatpush1.bf16.msra.mxu0 %v6355_v17  ;;  %v2843_v17 = vld [vmem:[%s8284_s16 + $0xc10] sm:$0xff]  ;;  %v2972_v62 = vld [vmem:[%s8284_s16 + $0x1018] sm:$0xff] }
 0x2d1   : > { %6612 = vmatpush1.bf16.msra.mxu1 %v6611_v18  ;;  %6358 = vmatprep.subr.bf16.mxu0 %v6357_v19  ;;  %v6629_v18 = vpack.c.bf16 %v2852_v9, %v2844_v8  ;;  %v2858_v19 = vld [vmem:[%s8284_s16 + $0xc88] sm:$0xff]  ;;  %v6631_v29 = vpack.c.bf16 %v2851_v26, %v2843_v17  ;;  %v2913_v8 = vld [vmem:[%s8284_s16 + $0xe40] sm:$0xff]  ;;  %v2907_v9 = vld [vmem:[%s8284_s16 + $0xe10] sm:$0xff] }
 0x2d2   : > { %6614 = vmatprep.subr.bf16.mxu1 %v6613_v24  ;;  %v2868_v24 = vld [vmem:[%s8284_s16 + $0xcd8] sm:$0xff]  ;;  %v6377_v30 = vpack.c.bf16 %v2866_v21, %v2858_v19  ;;  %v7604_v26 = vpop.eup %7603 }
 0x2d3   : > { %v2932_v17 = vld [vmem:[%s8284_s16 + $0xed8] sm:$0xff] }
 0x2d4   : > { %6360 = vmatpush1.bf16.msra.mxu0 %v6359_v34  ;;  %v2859_v34 = vld [vmem:[%s8284_s16 + $0xc90] sm:$0xff] }
 0x2d5   : > { %6616 = vmatpush1.bf16.msra.mxu1 %v6615_v35  ;;  %6362 = vmatprep.subr.bf16.mxu0 %v6361_v36  ;;  %v6633_v35 = vpack.c.bf16 %v2868_v24, %v2860_v23  ;;  %v2874_v36 = vld [vmem:[%s8284_s16 + $0xd08] sm:$0xff]  ;;  %v6635_v42 = vpack.c.bf16 %v2867_v51, %v2859_v34  ;;  %v2929_v23 = vld [vmem:[%s8284_s16 + $0xec0] sm:$0xff]  ;;  %v2923_v24 = vld [vmem:[%s8284_s16 + $0xe90] sm:$0xff] }
 0x2d6   : > { %6618 = vmatprep.subr.bf16.mxu1 %v6617_v40  ;;  %v2884_v40 = vld [vmem:[%s8284_s16 + $0xd58] sm:$0xff]  ;;  %v6381_v43 = vpack.c.bf16 %v2882_v37, %v2874_v36  ;;  %v6395_v51 = vpack.c.bf16 %v2929_v23, %v2921_v22  ;;  %v3010_v22 = vld [vmem:[%s8284_s16 + $0x1148] sm:$0xff] }
 0x2d7   : > { %v2948_v34 = vld [vmem:[%s8284_s16 + $0xf58] sm:$0xff] }
 0x2d8   : > { %6364 = vmatpush1.bf16.msra.mxu0 %v6363_v48  ;;  %v2875_v48 = vld [vmem:[%s8284_s16 + $0xd10] sm:$0xff]  ;;  %v3004_v23 = vld [vmem:[%s8284_s16 + $0x1118] sm:$0xff] }
 0x2d9   : > { %6620 = vmatpush1.bf16.msra.mxu1 %v6619_v49  ;;  %6366 = vmatprep.subr.bf16.mxu0 %v6365_v50  ;;  %v6637_v49 = vpack.c.bf16 %v2884_v40, %v2876_v39  ;;  %v2883_v50 = vld [vmem:[%s8284_s16 + $0xd50] sm:$0xff]  ;;  %v2945_v39 = vld [vmem:[%s8284_s16 + $0xf40] sm:$0xff] }
 0x2da   : > { %6622 = vmatprep.subr.bf16.mxu1 %v6621_v55  ;;  %v2900_v55 = vld [vmem:[%s8284_s16 + $0xdd8] sm:$0xff]  ;;  %v6639_v59 = vpack.c.bf16 %v2883_v50, %v2875_v48  ;;  %v2939_v40 = vld [vmem:[%s8284_s16 + $0xf10] sm:$0xff] }
 0x2db   : > { %v2964_v48 = vld [vmem:[%s8284_s16 + $0xfd8] sm:$0xff] }
 0x2dc   : > { %6368 = vmatpush1.bf16.msra.mxu0 %v6367_v63  ;;  %v2891_v63 = vld [vmem:[%s8284_s16 + $0xd90] sm:$0xff] }
 0x2dd   : > { %6624 = vmatpush1.bf16.msra.mxu1 %v6623_v0  ;;  %6370 = vmatprep.subr.bf16.mxu0 %v6369_v1  ;;  %v6641_v0 = vpack.c.bf16 %v2900_v55, %v2892_v54  ;;  %v2899_v1 = vld [vmem:[%s8284_s16 + $0xdd0] sm:$0xff]  ;;  %v2961_v54 = vld [vmem:[%s8284_s16 + $0xfc0] sm:$0xff] }
 0x2de   : > { %6626 = vmatprep.subr.bf16.mxu1 %v6625_v4  ;;  %v2916_v4 = vld [vmem:[%s8284_s16 + $0xe58] sm:$0xff]  ;;  %v6643_v5 = vpack.c.bf16 %v2899_v1, %v2891_v63  ;;  %v2955_v55 = vld [vmem:[%s8284_s16 + $0xf90] sm:$0xff] }
 0x2df   : > { %v2980_v63 = vld [vmem:[%s8284_s16 + $0x1058] sm:$0xff] }
 0x2e0   : > { %6372 = vmatpush1.bf16.msra.mxu0 %v6371_v10  ;;  %v6645_v10 = vpack.c.bf16 %v2916_v4, %v2908_v3  ;;  %v2977_v3 = vld [vmem:[%s8284_s16 + $0x1040] sm:$0xff]  ;;  %v2971_v4 = vld [vmem:[%s8284_s16 + $0x1010] sm:$0xff] }
 0x2e1   : > { %6628 = vmatpush1.bf16.msra.mxu1 %v6627_v11  ;;  %6374 = vmatprep.subr.bf16.mxu0 %v6373_v13  ;;  %v2915_v11 = vld [vmem:[%s8284_s16 + $0xe50] sm:$0xff]  ;;  %v2922_v13 = vld [vmem:[%s8284_s16 + $0xe88] sm:$0xff] }
 0x2e2   : > { %6630 = vmatprep.subr.bf16.mxu1 %v6629_v18  ;;  %v6391_v18 = vpack.c.bf16 %v2913_v8, %v2905_v7  ;;  %v6647_v19 = vpack.c.bf16 %v2915_v11, %v2907_v9  ;;  %v6393_v21 = vpack.c.bf16 %v2930_v14, %v2922_v13  ;;  %v2994_v7 = vld [vmem:[%s8284_s16 + $0x10c8] sm:$0xff]  ;;  %v2988_v8 = vld [vmem:[%s8284_s16 + $0x1098] sm:$0xff]  ;;  %v2985_v14 = vld [vmem:[%s8284_s16 + $0x1080] sm:$0xff] }
 0x2e3   : > { %v2996_v9 = vld [vmem:[%s8284_s16 + $0x10d8] sm:$0xff] }
 0x2e4   : > { %6376 = vmatpush1.bf16.msra.mxu0 %v6375_v28  ;;  %v6649_v28 = vpack.c.bf16 %v2932_v17, %v2924_v15  ;;  %v2993_v15 = vld [vmem:[%s8284_s16 + $0x10c0] sm:$0xff]  ;;  %v2987_v17 = vld [vmem:[%s8284_s16 + $0x1090] sm:$0xff] }
 0x2e5   : > { %6632 = vmatpush1.bf16.msra.mxu1 %v6631_v29  ;;  %6378 = vmatprep.subr.bf16.mxu0 %v6377_v30  ;;  %v2931_v29 = vld [vmem:[%s8284_s16 + $0xed0] sm:$0xff]  ;;  %v2938_v30 = vld [vmem:[%s8284_s16 + $0xf08] sm:$0xff] }
 0x2e6   : > { %6634 = vmatprep.subr.bf16.mxu1 %v6633_v35  ;;  %v2427_v35 = vadd.f32 1.0, %v7604_v26  ;;  %v6651_v36 = vpack.c.bf16 %v2931_v29, %v2923_v24  ;;  %v6397_v37 = vpack.c.bf16 %v2946_v31, %v2938_v30  ;;  %v6665_v26 = vpack.c.bf16 %v2996_v9, %v2988_v8  ;;  %v3012_v24 = vld [vmem:[%s8284_s16 + $0x1158] sm:$0xff]  ;;  %v3001_v31 = vld [vmem:[%s8284_s16 + $0x1100] sm:$0xff]  ;;  %v3051_v8 = vld [vmem:[%s8284_s16 + $0x1290] sm:$0xff] }
 0x2e8   : > { %6380 = vmatpush1.bf16.msra.mxu0 %v6379_v41  ;;  %v6653_v41 = vpack.c.bf16 %v2948_v34, %v2940_v32  ;;  %7605 = vrcp.f32 %v2427_v35  ;;  %v3009_v32 = vld [vmem:[%s8284_s16 + $0x1140] sm:$0xff]  ;;  %v3003_v34 = vld [vmem:[%s8284_s16 + $0x1110] sm:$0xff]  ;;  %v6669_v35 = vpack.c.bf16 %v3012_v24, %v3004_v23 }
 0x2e9   : > { %6636 = vmatpush1.bf16.msra.mxu1 %v6635_v42  ;;  %6382 = vmatprep.subr.bf16.mxu0 %v6381_v43  ;;  %v2947_v42 = vld [vmem:[%s8284_s16 + $0xf50] sm:$0xff]  ;;  %v2954_v43 = vld [vmem:[%s8284_s16 + $0xf88] sm:$0xff] }
 0x2ea   : > { %6638 = vmatprep.subr.bf16.mxu1 %v6637_v49  ;;  %v6399_v49 = vpack.c.bf16 %v2945_v39, %v2937_v38  ;;  %v6655_v50 = vpack.c.bf16 %v2947_v42, %v2939_v40  ;;  %v6401_v52 = vpack.c.bf16 %v2962_v44, %v2954_v43  ;;  %v3020_v38 = vld [vmem:[%s8284_s16 + $0x1198] sm:$0xff]  ;;  %v6415_v40 = vpack.c.bf16 %v3009_v32, %v3001_v31  ;;  %v3017_v43 = vld [vmem:[%s8284_s16 + $0x1180] sm:$0xff]  ;;  %v3067_v23 = vld [vmem:[%s8284_s16 + $0x1310] sm:$0xff] }
 0x2eb   : > { %v3028_v39 = vld [vmem:[%s8284_s16 + $0x11d8] sm:$0xff]  ;;  %v3025_v44 = vld [vmem:[%s8284_s16 + $0x11c0] sm:$0xff] }
 0x2ec   : > { %6384 = vmatpush1.bf16.msra.mxu0 %v6383_v58  ;;  %v6657_v58 = vpack.c.bf16 %v2964_v48, %v2956_v45  ;;  %v3019_v45 = vld [vmem:[%s8284_s16 + $0x1190] sm:$0xff]  ;;  %v6673_v48 = vpack.c.bf16 %v3028_v39, %v3020_v38  ;;  %v3084_v31 = vld [vmem:[%s8284_s16 + $0x1398] sm:$0xff] }
 0x2ed   : > { %6640 = vmatpush1.bf16.msra.mxu1 %v6639_v59  ;;  %6386 = vmatprep.subr.bf16.mxu0 %v6385_v60  ;;  %v2963_v59 = vld [vmem:[%s8284_s16 + $0xfd0] sm:$0xff]  ;;  %v2970_v60 = vld [vmem:[%s8284_s16 + $0x1008] sm:$0xff]  ;;  %v3092_v32 = vld [vmem:[%s8284_s16 + $0x13d8] sm:$0xff] }
 0x2ee   : > { %6642 = vmatprep.subr.bf16.mxu1 %v6641_v0  ;;  %v6403_v0 = vpack.c.bf16 %v2961_v54, %v2953_v53  ;;  %v6659_v1 = vpack.c.bf16 %v2963_v59, %v2955_v55  ;;  %v6405_v56 = vpack.c.bf16 %v2978_v46, %v2970_v60  ;;  %v3036_v53 = vld [vmem:[%s8284_s16 + $0x1218] sm:$0xff]  ;;  %v6419_v55 = vpack.c.bf16 %v3025_v44, %v3017_v43  ;;  %v3033_v60 = vld [vmem:[%s8284_s16 + $0x1200] sm:$0xff]  ;;  %v3083_v38 = vld [vmem:[%s8284_s16 + $0x1390] sm:$0xff] }
 0x2ef   : > { %v3044_v54 = vld [vmem:[%s8284_s16 + $0x1258] sm:$0xff]  ;;  %v3041_v46 = vld [vmem:[%s8284_s16 + $0x1240] sm:$0xff]  ;;  %v6689_v39 = vpack.c.bf16 %v3092_v32, %v3084_v31  ;;  %v3147_v31 = vld [vmem:[%s8284_s16 + $0x1590] sm:$0xff] }
 0x2f0   : > { %6388 = vmatpush1.bf16.msra.mxu0 %v6387_v25  ;;  %v6661_v25 = vpack.c.bf16 %v2980_v63, %v2972_v62  ;;  %v3035_v62 = vld [vmem:[%s8284_s16 + $0x1210] sm:$0xff]  ;;  %v6677_v63 = vpack.c.bf16 %v3044_v54, %v3036_v53  ;;  %v3100_v43 = vld [vmem:[%s8284_s16 + $0x1418] sm:$0xff] }
 0x2f1   : > { %6644 = vmatpush1.bf16.msra.mxu1 %v6643_v5  ;;  %6390 = vmatprep.subr.bf16.mxu0 %v6389_v6  ;;  %v2979_v5 = vld [vmem:[%s8284_s16 + $0x1050] sm:$0xff]  ;;  %v2986_v6 = vld [vmem:[%s8284_s16 + $0x1088] sm:$0xff]  ;;  %v3108_v44 = vld [vmem:[%s8284_s16 + $0x1458] sm:$0xff] }
 0x2f2   : > { %6646 = vmatprep.subr.bf16.mxu1 %v6645_v10  ;;  %v6407_v10 = vpack.c.bf16 %v2977_v3, %v2969_v2  ;;  %v6663_v11 = vpack.c.bf16 %v2979_v5, %v2971_v4  ;;  %v6409_v13 = vpack.c.bf16 %v2994_v7, %v2986_v6  ;;  %v3052_v2 = vld [vmem:[%s8284_s16 + $0x1298] sm:$0xff]  ;;  %v6423_v4 = vpack.c.bf16 %v3041_v46, %v3033_v60  ;;  %v3049_v6 = vld [vmem:[%s8284_s16 + $0x1280] sm:$0xff]  ;;  %v3099_v53 = vld [vmem:[%s8284_s16 + $0x1410] sm:$0xff] }
 0x2f3   : > { %v3060_v3 = vld [vmem:[%s8284_s16 + $0x12d8] sm:$0xff]  ;;  %v3057_v7 = vld [vmem:[%s8284_s16 + $0x12c0] sm:$0xff]  ;;  %v6693_v54 = vpack.c.bf16 %v3108_v44, %v3100_v43  ;;  %v3163_v43 = vld [vmem:[%s8284_s16 + $0x1610] sm:$0xff] }
 0x2f4   : > { %6392 = vmatpush1.bf16.msra.mxu0 %v6391_v18  ;;  %v9405_v18 = vpop.eup %7605  ;;  %v6681_v9 = vpack.c.bf16 %v3060_v3, %v3052_v2  ;;  %v3116_v60 = vld [vmem:[%s8284_s16 + $0x1498] sm:$0xff]  ;;  %v3115_v2 = vld [vmem:[%s8284_s16 + $0x1490] sm:$0xff] }
 0x2f5   : > { %6648 = vmatpush1.bf16.msra.mxu1 %v6647_v19  ;;  %6394 = vmatprep.subr.bf16.mxu0 %v6393_v21  ;;  %v2995_v19 = vld [vmem:[%s8284_s16 + $0x10d0] sm:$0xff]  ;;  %v3002_v21 = vld [vmem:[%s8284_s16 + $0x1108] sm:$0xff]  ;;  %v3124_v46 = vld [vmem:[%s8284_s16 + $0x14d8] sm:$0xff] }
 0x2f6   : > { %6650 = vmatprep.subr.bf16.mxu1 %v6649_v28  ;;  %v6411_v28 = vpack.c.bf16 %v2993_v15, %v2985_v14  ;;  %v6667_v29 = vpack.c.bf16 %v2995_v19, %v2987_v17  ;;  %v6413_v30 = vpack.c.bf16 %v3010_v22, %v3002_v21  ;;  %v3068_v14 = vld [vmem:[%s8284_s16 + $0x1318] sm:$0xff]  ;;  %v6427_v17 = vpack.c.bf16 %v3057_v7, %v3049_v6  ;;  %v3065_v21 = vld [vmem:[%s8284_s16 + $0x1300] sm:$0xff] }
 0x2f7   : > { %v3076_v15 = vld [vmem:[%s8284_s16 + $0x1358] sm:$0xff]  ;;  %v3073_v22 = vld [vmem:[%s8284_s16 + $0x1340] sm:$0xff]  ;;  %v6697_v3 = vpack.c.bf16 %v3124_v46, %v3116_v60  ;;  %v3179_v60 = vld [vmem:[%s8284_s16 + $0x1690] sm:$0xff] }
 0x2f8   : > { %6396 = vmatpush1.bf16.msra.mxu0 %v6395_v51  ;;  %v3011_v51 = vld [vmem:[%s8284_s16 + $0x1150] sm:$0xff]  ;;  %v6685_v24 = vpack.c.bf16 %v3076_v15, %v3068_v14  ;;  %v3132_v6 = vld [vmem:[%s8284_s16 + $0x1518] sm:$0xff] }
 0x2f9   : > { %6652 = vmatpush1.bf16.msra.mxu1 %v6651_v36  ;;  %6398 = vmatprep.subr.bf16.mxu0 %v6397_v37  ;;  %v3018_v36 = vld [vmem:[%s8284_s16 + $0x1188] sm:$0xff]  ;;  %v3140_v7 = vld [vmem:[%s8284_s16 + $0x1558] sm:$0xff]  ;;  %v3131_v14 = vld [vmem:[%s8284_s16 + $0x1510] sm:$0xff] }
 0x2fa   : > { %6654 = vmatprep.subr.bf16.mxu1 %v6653_v41  ;;  %v3026_v37 = vld [vmem:[%s8284_s16 + $0x11c8] sm:$0xff]  ;;  %v6671_v41 = vpack.c.bf16 %v3011_v51, %v3003_v34  ;;  %v6431_v34 = vpack.c.bf16 %v3073_v22, %v3065_v21  ;;  %v6701_v15 = vpack.c.bf16 %v3140_v7, %v3132_v6  ;;  %v3148_v21 = vld [vmem:[%s8284_s16 + $0x1598] sm:$0xff]  ;;  %v3195_v6 = vld [vmem:[%s8284_s16 + $0x1710] sm:$0xff] }
 0x2fb   : > { %v6417_v42 = vpack.c.bf16 %v3026_v37, %v3018_v36  ;;  %v3081_v36 = vld [vmem:[%s8284_s16 + $0x1380] sm:$0xff]  ;;  %v3156_v22 = vld [vmem:[%s8284_s16 + $0x15d8] sm:$0xff] }
 0x2fc   : > { %6400 = vmatpush1.bf16.msra.mxu0 %v6399_v49  ;;  %v3027_v49 = vld [vmem:[%s8284_s16 + $0x11d0] sm:$0xff]  ;;  %v3089_v37 = vld [vmem:[%s8284_s16 + $0x13c0] sm:$0xff]  ;;  %v6705_v32 = vpack.c.bf16 %v3156_v22, %v3148_v21 }
 0x2fd   : > { %6656 = vmatpush1.bf16.msra.mxu1 %v6655_v50  ;;  %6402 = vmatprep.subr.bf16.mxu0 %v6401_v52  ;;  %v3034_v50 = vld [vmem:[%s8284_s16 + $0x1208] sm:$0xff]  ;;  %v3211_v21 = vld [vmem:[%s8284_s16 + $0x1790] sm:$0xff] }
 0x2fe   : > { %6658 = vmatprep.subr.bf16.mxu1 %v6657_v58  ;;  %v3042_v52 = vld [vmem:[%s8284_s16 + $0x1248] sm:$0xff]  ;;  %v6675_v58 = vpack.c.bf16 %v3027_v49, %v3019_v45  ;;  %v6435_v45 = vpack.c.bf16 %v3089_v37, %v3081_v36  ;;  %v3164_v36 = vld [vmem:[%s8284_s16 + $0x1618] sm:$0xff] }
 0x2ff   : > { %v6421_v59 = vpack.c.bf16 %v3042_v52, %v3034_v50  ;;  %v3097_v50 = vld [vmem:[%s8284_s16 + $0x1400] sm:$0xff]  ;;  %v3172_v37 = vld [vmem:[%s8284_s16 + $0x1658] sm:$0xff] }
 0x300   : > { %6404 = vmatpush1.bf16.msra.mxu0 %v6403_v0  ;;  %v3043_v0 = vld [vmem:[%s8284_s16 + $0x1250] sm:$0xff]  ;;  %v3105_v52 = vld [vmem:[%s8284_s16 + $0x1440] sm:$0xff]  ;;  %v6709_v44 = vpack.c.bf16 %v3172_v37, %v3164_v36  ;;  %v1243_v36 = vsub.s32 5, %v9112_v12  ;;  %v1251_v37 = vsub.s32 7, %v9112_v12 }
 0x301   : > { %6660 = vmatpush1.bf16.msra.mxu1 %v6659_v1  ;;  %6406 = vmatprep.subr.bf16.mxu0 %v6405_v56  ;;  %v3050_v1 = vld [vmem:[%s8284_s16 + $0x1288] sm:$0xff] }
 0x302   : > { %6662 = vmatprep.subr.bf16.mxu1 %v6661_v25  ;;  %v3058_v56 = vld [vmem:[%s8284_s16 + $0x12c8] sm:$0xff]  ;;  %v6679_v25 = vpack.c.bf16 %v3043_v0, %v3035_v62  ;;  %v6439_v62 = vpack.c.bf16 %v3105_v52, %v3097_v50  ;;  %v3180_v50 = vld [vmem:[%s8284_s16 + $0x1698] sm:$0xff] }
 0x303   : > { %3617 = vmatmul.mubr.f32.vlgmr.msra.gmra.mrb[4].mxu0 %v9405_v18  ;;  %v6425_v5 = vpack.c.bf16 %v3058_v56, %v3050_v1  ;;  %v3113_v1 = vld [vmem:[%s8284_s16 + $0x1480] sm:$0xff]  ;;  %v3188_v52 = vld [vmem:[%s8284_s16 + $0x16d8] sm:$0xff] }
 0x304   : > { %3901 = vmatmul.mubr.f32.vlgmr.msra.gmra.mrb[4].mxu1 %v9405_v18  ;;  %6408 = vmatpush1.bf16.msra.mxu0 %v6407_v10  ;;  %v3059_v10 = vld [vmem:[%s8284_s16 + $0x12d0] sm:$0xff]  ;;  %v3121_v56 = vld [vmem:[%s8284_s16 + $0x14c0] sm:$0xff]  ;;  %v6713_v46 = vpack.c.bf16 %v3188_v52, %v3180_v50 }
 0x305   : > { %6664 = vmatpush1.bf16.msra.mxu1 %v6663_v11  ;;  %6410 = vmatprep.subr.bf16.mxu0 %v6409_v13  ;;  %v3066_v11 = vld [vmem:[%s8284_s16 + $0x1308] sm:$0xff] }
 0x306   : > { %6666 = vmatprep.subr.bf16.mxu1 %v6665_v26  ;;  %v3074_v13 = vld [vmem:[%s8284_s16 + $0x1348] sm:$0xff]  ;;  %v6683_v26 = vpack.c.bf16 %v3059_v10, %v3051_v8  ;;  %v6443_v8 = vpack.c.bf16 %v3121_v56, %v3113_v1  ;;  %v3196_v1 = vld [vmem:[%s8284_s16 + $0x1718] sm:$0xff] }
 0x307   : > { %v6429_v19 = vpack.c.bf16 %v3074_v13, %v3066_v11  ;;  %v3129_v11 = vld [vmem:[%s8284_s16 + $0x1500] sm:$0xff]  ;;  %v3204_v56 = vld [vmem:[%s8284_s16 + $0x1758] sm:$0xff] }
 0x308   : > { %6412 = vmatpush1.bf16.msra.mxu0 %v6411_v28  ;;  %v3075_v28 = vld [vmem:[%s8284_s16 + $0x1350] sm:$0xff]  ;;  %v3137_v13 = vld [vmem:[%s8284_s16 + $0x1540] sm:$0xff]  ;;  %v6717_v7 = vpack.c.bf16 %v3204_v56, %v3196_v1 }
 0x309   : > { %6668 = vmatpush1.bf16.msra.mxu1 %v6667_v29  ;;  %6414 = vmatprep.subr.bf16.mxu0 %v6413_v30  ;;  %v3082_v29 = vld [vmem:[%s8284_s16 + $0x1388] sm:$0xff]  ;;  %v3227_v1 = vld [vmem:[%s8284_s16 + $0x1810] sm:$0xff] }
 0x30a   : > { %6670 = vmatprep.subr.bf16.mxu1 %v6669_v35  ;;  %v3090_v30 = vld [vmem:[%s8284_s16 + $0x13c8] sm:$0xff]  ;;  %v6687_v35 = vpack.c.bf16 %v3075_v28, %v3067_v23  ;;  %v6447_v23 = vpack.c.bf16 %v3137_v13, %v3129_v11  ;;  %v3212_v11 = vld [vmem:[%s8284_s16 + $0x1798] sm:$0xff]  ;;  %v3235_v56 = vld [vmem:[%s8284_s16 + $0x1850] sm:$0xff] }
 0x30b   : > { %v6433_v51 = vpack.c.bf16 %v3090_v30, %v3082_v29  ;;  %v3145_v29 = vld [vmem:[%s8284_s16 + $0x1580] sm:$0xff]  ;;  %v3220_v13 = vld [vmem:[%s8284_s16 + $0x17d8] sm:$0xff] }
 0x30c   : > { %6416 = vmatpush1.bf16.msra.mxu0 %v6415_v40  ;;  %v3091_v40 = vld [vmem:[%s8284_s16 + $0x13d0] sm:$0xff]  ;;  %v3153_v30 = vld [vmem:[%s8284_s16 + $0x15c0] sm:$0xff]  ;;  %v6721_v22 = vpack.c.bf16 %v3220_v13, %v3212_v11  ;;  %v3258_v13 = vld [vmem:[%s8284_s16 + $0x1908] sm:$0xff] }
 0x30d   : > { %6672 = vmatpush1.bf16.msra.mxu1 %v6671_v41  ;;  %6418 = vmatprep.subr.bf16.mxu0 %v6417_v42  ;;  %v3098_v41 = vld [vmem:[%s8284_s16 + $0x1408] sm:$0xff]  ;;  %v3251_v11 = vld [vmem:[%s8284_s16 + $0x18d0] sm:$0xff] }
 0x30e   : > { %6674 = vmatprep.subr.bf16.mxu1 %v6673_v48  ;;  %v3106_v42 = vld [vmem:[%s8284_s16 + $0x1448] sm:$0xff]  ;;  %v6691_v48 = vpack.c.bf16 %v3091_v40, %v3083_v38  ;;  %v6451_v38 = vpack.c.bf16 %v3153_v30, %v3145_v29  ;;  %v3228_v29 = vld [vmem:[%s8284_s16 + $0x1818] sm:$0xff] }
 0x30f   : > { %v6437_v49 = vpack.c.bf16 %v3106_v42, %v3098_v41  ;;  %v3161_v41 = vld [vmem:[%s8284_s16 + $0x1600] sm:$0xff]  ;;  %v3236_v30 = vld [vmem:[%s8284_s16 + $0x1858] sm:$0xff] }
 0x310   : > { %6420 = vmatpush1.bf16.msra.mxu0 %v6419_v55  ;;  %v3107_v55 = vld [vmem:[%s8284_s16 + $0x1450] sm:$0xff]  ;;  %v3169_v42 = vld [vmem:[%s8284_s16 + $0x1640] sm:$0xff] }
 0x311   : > { %6676 = vmatpush1.bf16.msra.mxu1 %v6675_v58  ;;  %6422 = vmatprep.subr.bf16.mxu0 %v6421_v59  ;;  %v3114_v58 = vld [vmem:[%s8284_s16 + $0x1488] sm:$0xff] }
 0x312   : > { %6678 = vmatprep.subr.bf16.mxu1 %v6677_v63  ;;  %v3122_v59 = vld [vmem:[%s8284_s16 + $0x14c8] sm:$0xff]  ;;  %v6695_v63 = vpack.c.bf16 %v3107_v55, %v3099_v53  ;;  %v6455_v53 = vpack.c.bf16 %v3169_v42, %v3161_v41 }
 0x313   : > { %v6441_v0 = vpack.c.bf16 %v3122_v59, %v3114_v58  ;;  %v3177_v58 = vld [vmem:[%s8284_s16 + $0x1680] sm:$0xff] }
 0x314   : > { %6424 = vmatpush1.bf16.msra.mxu0 %v6423_v4  ;;  %v3123_v4 = vld [vmem:[%s8284_s16 + $0x14d0] sm:$0xff]  ;;  %v3185_v59 = vld [vmem:[%s8284_s16 + $0x16c0] sm:$0xff] }
 0x315   : > { %6680 = vmatpush1.bf16.msra.mxu1 %v6679_v25  ;;  %6426 = vmatprep.subr.bf16.mxu0 %v6425_v5  ;;  %v3130_v25 = vld [vmem:[%s8284_s16 + $0x1508] sm:$0xff] }
 0x316   : > { %6682 = vmatprep.subr.bf16.mxu1 %v6681_v9  ;;  %v3138_v5 = vld [vmem:[%s8284_s16 + $0x1548] sm:$0xff]  ;;  %v6699_v9 = vpack.c.bf16 %v3123_v4, %v3115_v2  ;;  %v6459_v2 = vpack.c.bf16 %v3185_v59, %v3177_v58 }
 0x317   : > { %v6445_v10 = vpack.c.bf16 %v3138_v5, %v3130_v25  ;;  %v3193_v25 = vld [vmem:[%s8284_s16 + $0x1700] sm:$0xff] }
 0x318   : > { %6428 = vmatpush1.bf16.msra.mxu0 %v6427_v17  ;;  %v3139_v17 = vld [vmem:[%s8284_s16 + $0x1550] sm:$0xff]  ;;  %v3201_v5 = vld [vmem:[%s8284_s16 + $0x1740] sm:$0xff] }
 0x319   : > { %6684 = vmatpush1.bf16.msra.mxu1 %v6683_v26  ;;  %6430 = vmatprep.subr.bf16.mxu0 %v6429_v19  ;;  %v3146_v26 = vld [vmem:[%s8284_s16 + $0x1588] sm:$0xff] }
 0x31a   : > { %6686 = vmatprep.subr.bf16.mxu1 %v6685_v24  ;;  %v3154_v19 = vld [vmem:[%s8284_s16 + $0x15c8] sm:$0xff]  ;;  %v6703_v24 = vpack.c.bf16 %v3139_v17, %v3131_v14  ;;  %v6463_v14 = vpack.c.bf16 %v3201_v5, %v3193_v25  ;;  %v3252_v25 = vld [vmem:[%s8284_s16 + $0x18d8] sm:$0xff] }
 0x31b   : > { %v6449_v28 = vpack.c.bf16 %v3154_v19, %v3146_v26  ;;  %v3209_v26 = vld [vmem:[%s8284_s16 + $0x1780] sm:$0xff] }
 0x31c   : > { %6432 = vmatpush1.bf16.msra.mxu0 %v6431_v34  ;;  %v3155_v34 = vld [vmem:[%s8284_s16 + $0x15d0] sm:$0xff]  ;;  %v3217_v19 = vld [vmem:[%s8284_s16 + $0x17c0] sm:$0xff] }
 0x31d   : > { %6688 = vmatpush1.bf16.msra.mxu1 %v6687_v35  ;;  %6434 = vmatprep.subr.bf16.mxu0 %v6433_v51  ;;  %v3162_v35 = vld [vmem:[%s8284_s16 + $0x1608] sm:$0xff] }
 0x31e   : > { %6690 = vmatprep.subr.bf16.mxu1 %v6689_v39  ;;  %v3170_v51 = vld [vmem:[%s8284_s16 + $0x1648] sm:$0xff]  ;;  %v6707_v39 = vpack.c.bf16 %v3155_v34, %v3147_v31  ;;  %v6467_v31 = vpack.c.bf16 %v3217_v19, %v3209_v26  ;;  %v3260_v19 = vld [vmem:[%s8284_s16 + $0x1918] sm:$0xff] }
 0x31f   : > { %v6453_v40 = vpack.c.bf16 %v3170_v51, %v3162_v35  ;;  %v6725_v35 = vpack.c.bf16 %v3236_v30, %v3228_v29  ;;  %v1239_v51 = vsub.s32 4, %v9112_v12  ;;  %v3266_v26 = vld [vmem:[%s8284_s16 + $0x1948] sm:$0xff]  ;;  %v3265_v29 = vld [vmem:[%s8284_s16 + $0x1940] sm:$0xff] }
 0x320   : > { %6436 = vmatpush1.bf16.msra.mxu0 %v6435_v45  ;;  %v3171_v45 = vld [vmem:[%s8284_s16 + $0x1650] sm:$0xff]  ;;  %v6477_v30 = vpack.c.bf16 %v3266_v26, %v3258_v13  ;;  %v3322_v26 = vld [vmem:[%s8284_s16 + $0x1b08] sm:$0xff] }
 0x321   : > { %6692 = vmatpush1.bf16.msra.mxu1 %v6691_v48  ;;  %6438 = vmatprep.subr.bf16.mxu0 %v6437_v49  ;;  %v3178_v48 = vld [vmem:[%s8284_s16 + $0x1688] sm:$0xff] }
 0x322   : > { %6694 = vmatprep.subr.bf16.mxu1 %v6693_v54  ;;  %v3186_v49 = vld [vmem:[%s8284_s16 + $0x16c8] sm:$0xff]  ;;  %v6711_v54 = vpack.c.bf16 %v3171_v45, %v3163_v43 }
 0x323   : > { %v6457_v55 = vpack.c.bf16 %v3186_v49, %v3178_v48 }
 0x324   : > { %6440 = vmatpush1.bf16.msra.mxu0 %v6439_v62  ;;  %v3187_v62 = vld [vmem:[%s8284_s16 + $0x16d0] sm:$0xff] }
 0x325   : > { %6696 = vmatpush1.bf16.msra.mxu1 %v6695_v63  ;;  %6442 = vmatprep.subr.bf16.mxu0 %v6441_v0  ;;  %v3194_v63 = vld [vmem:[%s8284_s16 + $0x1708] sm:$0xff] }
 0x326   : > { %6698 = vmatprep.subr.bf16.mxu1 %v6697_v3  ;;  %v3202_v0 = vld [vmem:[%s8284_s16 + $0x1748] sm:$0xff]  ;;  %v6715_v3 = vpack.c.bf16 %v3187_v62, %v3179_v60 }
 0x327   : > { %v6461_v4 = vpack.c.bf16 %v3202_v0, %v3194_v63  ;;  %v3225_v63 = vld [vmem:[%s8284_s16 + $0x1800] sm:$0xff] }
 0x328   : > { %6444 = vmatpush1.bf16.msra.mxu0 %v6443_v8  ;;  %v3203_v8 = vld [vmem:[%s8284_s16 + $0x1750] sm:$0xff]  ;;  %v3233_v0 = vld [vmem:[%s8284_s16 + $0x1840] sm:$0xff] }
 0x329   : > { %6700 = vmatpush1.bf16.msra.mxu1 %v6699_v9  ;;  %6446 = vmatprep.subr.bf16.mxu0 %v6445_v10  ;;  %v3210_v9 = vld [vmem:[%s8284_s16 + $0x1788] sm:$0xff]  ;;  %v6471_v5 = vpack.c.bf16 %v3233_v0, %v3225_v63  ;;  %v3297_v63 = vld [vmem:[%s8284_s16 + $0x1a40] sm:$0xff] }
 0x32a   : > { %6702 = vmatprep.subr.bf16.mxu1 %v6701_v15  ;;  %v3218_v10 = vld [vmem:[%s8284_s16 + $0x17c8] sm:$0xff]  ;;  %v6719_v15 = vpack.c.bf16 %v3203_v8, %v3195_v6  ;;  %v6727_v6 = vpack.c.bf16 %v3235_v56, %v3227_v1  ;;  %v3249_v8 = vld [vmem:[%s8284_s16 + $0x18c0] sm:$0xff]  ;;  %v3291_v56 = vld [vmem:[%s8284_s16 + $0x1a10] sm:$0xff] }
 0x32b   : > { %v6465_v17 = vpack.c.bf16 %v3218_v10, %v3210_v9  ;;  %v3243_v10 = vld [vmem:[%s8284_s16 + $0x1890] sm:$0xff] }
 0x32c   : > { %6448 = vmatpush1.bf16.msra.mxu0 %v6447_v23  ;;  %v3219_v23 = vld [vmem:[%s8284_s16 + $0x17d0] sm:$0xff] }
 0x32d   : > { %6704 = vmatpush1.bf16.msra.mxu1 %v6703_v24  ;;  %6450 = vmatprep.subr.bf16.mxu0 %v6449_v28  ;;  %v3226_v24 = vld [vmem:[%s8284_s16 + $0x1808] sm:$0xff] }
 0x32e   : > { %6706 = vmatprep.subr.bf16.mxu1 %v6705_v32  ;;  %v3234_v28 = vld [vmem:[%s8284_s16 + $0x1848] sm:$0xff]  ;;  %v6723_v32 = vpack.c.bf16 %v3219_v23, %v3211_v21  ;;  %v3268_v21 = vld [vmem:[%s8284_s16 + $0x1958] sm:$0xff] }
 0x32f   : > { %v6469_v34 = vpack.c.bf16 %v3234_v28, %v3226_v24  ;;  %v6731_v24 = vpack.c.bf16 %v3251_v11, %v3243_v10  ;;  %v3257_v28 = vld [vmem:[%s8284_s16 + $0x1900] sm:$0xff] }
 0x330   : > { %6452 = vmatpush1.bf16.msra.mxu0 %v6451_v38  ;;  %v9530_v38 = vld [vmem:[%s8282_s19] sm:$0xff]  ;;  %v3313_v10 = vld [vmem:[%s8284_s16 + $0x1ac0] sm:$0xff] }
 0x331   : > { %6708 = vmatpush1.bf16.msra.mxu1 %v6707_v39  ;;  %6454 = vmatprep.subr.bf16.mxu0 %v6453_v40  ;;  %v1240_v39 = vrot.slane %v9530_v38, %v1239_v51  ;;  %v1244_v40 = vrot.slane %v9530_v38, %v1243_v36  ;;  %v1252_v41 = vrot.slane %v9530_v38, %v1251_v37 }
 0x332   : > { %6710 = vmatprep.subr.bf16.mxu1 %v6709_v44 }
 0x334   : > { %6456 = vmatpush1.bf16.msra.mxu0 %v6455_v53 }
 0x335   : > { %6712 = vmatpush1.bf16.msra.mxu1 %v6711_v54  ;;  %6458 = vmatprep.subr.bf16.mxu0 %v6457_v55 }
 0x336   : > { %6714 = vmatprep.subr.bf16.mxu1 %v6713_v46 }
 0x338   : > { %6460 = vmatpush1.bf16.msra.mxu0 %v6459_v2  ;;  %v3242_v2 = vld [vmem:[%s8284_s16 + $0x1888] sm:$0xff] }
 0x339   : > { %6716 = vmatpush1.bf16.msra.mxu1 %v6715_v3  ;;  %6462 = vmatprep.subr.bf16.mxu0 %v6461_v4  ;;  %v3250_v3 = vld [vmem:[%s8284_s16 + $0x18c8] sm:$0xff]  ;;  %v3244_v4 = vld [vmem:[%s8284_s16 + $0x1898] sm:$0xff] }
 0x33a   : > { %6718 = vmatprep.subr.bf16.mxu1 %v6717_v7  ;;  %v3241_v7 = vld [vmem:[%s8284_s16 + $0x1880] sm:$0xff] }
 0x33b   : > { %v6475_v23 = vpack.c.bf16 %v3249_v8, %v3241_v7  ;;  %v3305_v8 = vld [vmem:[%s8284_s16 + $0x1a80] sm:$0xff] }
 0x33c   : > { %6464 = vmatpush1.bf16.msra.mxu0 %v6463_v14 }
 0x33d   : > { %6720 = vmatpush1.bf16.msra.mxu1 %v6719_v15  ;;  %6466 = vmatprep.subr.bf16.mxu0 %v6465_v17  ;;  %v6473_v15 = vpack.c.bf16 %v3250_v3, %v3242_v2  ;;  %v6729_v17 = vpack.c.bf16 %v3252_v25, %v3244_v4  ;;  %v3299_v2 = vld [vmem:[%s8284_s16 + $0x1a50] sm:$0xff]  ;;  %v3306_v3 = vld [vmem:[%s8284_s16 + $0x1a88] sm:$0xff]  ;;  %v3308_v25 = vld [vmem:[%s8284_s16 + $0x1a98] sm:$0xff] }
 0x33e   : > { %6722 = vmatprep.subr.bf16.mxu1 %v6721_v22  ;;  %v3314_v4 = vld [vmem:[%s8284_s16 + $0x1ac8] sm:$0xff]  ;;  %v6743_v7 = vpack.c.bf16 %v3299_v2, %v3291_v56  ;;  %v3361_v56 = vld [vmem:[%s8284_s16 + $0x1c40] sm:$0xff] }
 0x33f   : > { %v6489_v11 = vpack.c.bf16 %v3314_v4, %v3306_v3  ;;  %v3355_v4 = vld [vmem:[%s8284_s16 + $0x1c10] sm:$0xff] }
 0x340   : > { %6468 = vmatpush1.bf16.msra.mxu0 %v6467_v31  ;;  %v6733_v31 = vpack.c.bf16 %v3268_v21, %v3260_v19  ;;  %v3330_v19 = vld [vmem:[%s8284_s16 + $0x1b48] sm:$0xff]  ;;  %v3324_v21 = vld [vmem:[%s8284_s16 + $0x1b18] sm:$0xff] }
 0x341   : > { %6724 = vmatpush1.bf16.msra.mxu1 %v6723_v32  ;;  %6470 = vmatprep.subr.bf16.mxu0 %v6469_v34  ;;  %v3259_v32 = vld [vmem:[%s8284_s16 + $0x1910] sm:$0xff] }
 0x342   : > { %6726 = vmatprep.subr.bf16.mxu1 %v6725_v35  ;;  %v3267_v34 = vld [vmem:[%s8284_s16 + $0x1950] sm:$0xff]  ;;  %v3274_v35 = vld [vmem:[%s8284_s16 + $0x1988] sm:$0xff] }
 0x356   : > { %v2112_v42 = vpop.f32.mrb[2].mxu0 }
 0x357   : > { %v7433_v43 = vadd.f32 %v2112_v42, %v1240_v39  ;;  %v9541_v44 = vpop.f32.mrb[2].mxu1  ;;  %v2114_v45 = vpop.f32.mrb[3].mxu0  ;;  %v3282_v39 = vld [vmem:[%s8284_s16 + $0x19c8] sm:$0xff]  ;;  %v6479_v42 = vpack.c.bf16 %v3265_v29, %v3257_v28  ;;  %v3321_v29 = vld [vmem:[%s8284_s16 + $0x1b00] sm:$0xff] }
 0x358   : > { %v7434_v48 = vadd.f32 %v2114_v45, %v1244_v40  ;;  %v2398_v49 = vpop.f32.mrb[3].mxu1  ;;  %v3276_v40 = vld [vmem:[%s8284_s16 + $0x1998] sm:$0xff]  ;;  %v3273_v45 = vld [vmem:[%s8284_s16 + $0x1980] sm:$0xff] }
 0x359   : > { %v5331_v50 = vmul.f32 -1.442695, %v7433_v43  ;;  %v7436_v52 = vadd.f32 %v2398_v49, %v1252_v41  ;;  %v3284_v41 = vld [vmem:[%s8284_s16 + $0x19d8] sm:$0xff]  ;;  %v6735_v43 = vpack.c.bf16 %v3267_v34, %v3259_v32  ;;  %v6481_v49 = vpack.c.bf16 %v3282_v39, %v3274_v35  ;;  %v3323_v34 = vld [vmem:[%s8284_s16 + $0x1b10] sm:$0xff]  ;;  %v3338_v39 = vld [vmem:[%s8284_s16 + $0x1b88] sm:$0xff] }
 0x35a   : > { %v5332_v53 = vmul.f32 -1.442695, %v7434_v48  ;;  %v3281_v48 = vld [vmem:[%s8284_s16 + $0x19c0] sm:$0xff]  ;;  %v3331_v35 = vld [vmem:[%s8284_s16 + $0x1b50] sm:$0xff] }
 0x35b   : > { %7607 = vpow2.f32 %v5331_v50  ;;  %v5334_v54 = vmul.f32 -1.442695, %v7436_v52  ;;  %v6737_v50 = vpack.c.bf16 %v3284_v41, %v3276_v40  ;;  %v3275_v52 = vld [vmem:[%s8284_s16 + $0x1990] sm:$0xff]  ;;  %v3346_v40 = vld [vmem:[%s8284_s16 + $0x1bc8] sm:$0xff]  ;;  %v3340_v41 = vld [vmem:[%s8284_s16 + $0x1b98] sm:$0xff] }
 0x35c   : > { %7609 = vpow2.f32 %v5332_v53  ;;  %v3283_v53 = vld [vmem:[%s8284_s16 + $0x19d0] sm:$0xff] }
 0x35d   : > { %7611 = vpow2.f32 %v5334_v54  ;;  %v3290_v54 = vld [vmem:[%s8284_s16 + $0x1a08] sm:$0xff] }
 0x365   : > { %v7608_v55 = vpop.eup %7607 }
 0x366   : > { %v7610_v58 = vpop.eup %7609  ;;  %v2429_v59 = vadd.f32 1.0, %v7608_v55  ;;  %v3298_v55 = vld [vmem:[%s8284_s16 + $0x1a48] sm:$0xff] }
 0x367   : > { %v7612_v60 = vpop.eup %7611  ;;  %v2430_v46 = vadd.f32 1.0, %v7610_v58  ;;  %v3292_v58 = vld [vmem:[%s8284_s16 + $0x1a18] sm:$0xff]  ;;  %v6485_v0 = vpack.c.bf16 %v3298_v55, %v3290_v54  ;;  %v3339_v54 = vld [vmem:[%s8284_s16 + $0x1b90] sm:$0xff] }
 0x368   : > { %v2432_v62 = vadd.f32 1.0, %v7612_v60  ;;  %v6483_v60 = vpack.c.bf16 %v3281_v48, %v3273_v45  ;;  %v6751_v48 = vpack.c.bf16 %v3331_v35, %v3323_v34  ;;  %v3347_v55 = vld [vmem:[%s8284_s16 + $0x1bd0] sm:$0xff]  ;;  %v3393_v34 = vld [vmem:[%s8284_s16 + $0x1d40] sm:$0xff] }
 0x369   : > { %7613 = vrcp.f32 %v2430_v46  ;;  %v6739_v46 = vpack.c.bf16 %v3283_v53, %v3275_v52  ;;  %v6497_v52 = vpack.c.bf16 %v3346_v40, %v3338_v39  ;;  %v3387_v40 = vld [vmem:[%s8284_s16 + $0x1d10] sm:$0xff] }
 0x36a   : > { %7615 = vrcp.f32 %v2429_v59  ;;  %v3300_v59 = vld [vmem:[%s8284_s16 + $0x1a58] sm:$0xff] }
 0x36b   : > { %7617 = vrcp.f32 %v2432_v62  ;;  %v3289_v62 = vld [vmem:[%s8284_s16 + $0x1a00] sm:$0xff]  ;;  %v6741_v1 = vpack.c.bf16 %v3300_v59, %v3292_v58  ;;  %v3354_v58 = vld [vmem:[%s8284_s16 + $0x1c08] sm:$0xff] }
 0x36c   : > { %v3362_v59 = vld [vmem:[%s8284_s16 + $0x1c48] sm:$0xff] }
 0x36d   : > { %v6501_v2 = vpack.c.bf16 %v3362_v59, %v3354_v58  ;;  %v3403_v59 = vld [vmem:[%s8284_s16 + $0x1d90] sm:$0xff] }
 0x373   : > { %v9553_v9 = vpop.eup %7613 }
 0x374   : > { %v9558_v14 = vpop.eup %7615  ;;  %3687 = vmatprep.mubr.f32.mxu0 %v9553_v9  ;;  %3971 = vmatprep.mubr.f32.mxu1 %v9553_v9 }
 0x375   : > { %3688 = vmatmul.mubr.f32.vlgmr.msra.gmra.mrb[4].mxu0 %v9558_v14  ;;  %3972 = vmatmul.mubr.f32.vlgmr.msra.gmra.mrb[4].mxu1 %v9558_v14  ;;  %v9567_v22 = vpop.eup %7617 }
 0x376   : > { %6472 = vmatpush1.bf16.msra.mxu0 %v6471_v5  ;;  %6728 = vmatpush1.bf16.msra.mxu1 %v6727_v6  ;;  %v3316_v5 = vld [vmem:[%s8284_s16 + $0x1ad8] sm:$0xff]  ;;  %v6487_v6 = vpack.c.bf16 %v3297_v63, %v3289_v62 }
 0x377   : > { %3758 = vmatprep.mubr.f32.mxu0 %v9567_v22  ;;  %4042 = vmatprep.mubr.f32.mxu1 %v9567_v22  ;;  %v6745_v13 = vpack.c.bf16 %v3316_v5, %v3308_v25  ;;  %v3363_v25 = vld [vmem:[%s8284_s16 + $0x1c50] sm:$0xff]  ;;  %v3370_v5 = vld [vmem:[%s8284_s16 + $0x1c88] sm:$0xff] }
 0x378   : > { %6474 = vmatprep.subr.bf16.mxu0 %v6473_v15  ;;  %6730 = vmatprep.subr.bf16.mxu1 %v6729_v17  ;;  %v3307_v15 = vld [vmem:[%s8284_s16 + $0x1a90] sm:$0xff] }
 0x379   : > { %v3315_v17 = vld [vmem:[%s8284_s16 + $0x1ad0] sm:$0xff] }
 0x37a   : > { %6476 = vmatpush1.bf16.msra.mxu0 %v6475_v23  ;;  %6732 = vmatpush1.bf16.msra.mxu1 %v6731_v24  ;;  %v3332_v23 = vld [vmem:[%s8284_s16 + $0x1b58] sm:$0xff]  ;;  %v6491_v24 = vpack.c.bf16 %v3313_v10, %v3305_v8  ;;  %v6747_v28 = vpack.c.bf16 %v3315_v17, %v3307_v15  ;;  %v3377_v15 = vld [vmem:[%s8284_s16 + $0x1cc0] sm:$0xff] }
 0x37b   : > { %6478 = vmatprep.subr.bf16.mxu0 %v6477_v30  ;;  %6734 = vmatprep.subr.bf16.mxu1 %v6733_v31  ;;  %v3329_v30 = vld [vmem:[%s8284_s16 + $0x1b40] sm:$0xff]  ;;  %v6493_v31 = vpack.c.bf16 %v3330_v19, %v3322_v26  ;;  %v6749_v32 = vpack.c.bf16 %v3332_v23, %v3324_v21  ;;  %v3371_v19 = vld [vmem:[%s8284_s16 + $0x1c90] sm:$0xff]  ;;  %v3386_v23 = vld [vmem:[%s8284_s16 + $0x1d08] sm:$0xff] }
 0x37c   : > { %v6495_v45 = vpack.c.bf16 %v3329_v30, %v3321_v29  ;;  %v3379_v21 = vld [vmem:[%s8284_s16 + $0x1cd0] sm:$0xff] }
 0x37e   : > { %6480 = vmatpush1.bf16.msra.mxu0 %v6479_v42  ;;  %6736 = vmatpush1.bf16.msra.mxu1 %v6735_v43  ;;  %v3348_v42 = vld [vmem:[%s8284_s16 + $0x1bd8] sm:$0xff]  ;;  %v1247_v43 = vsub.s32 6, %v9112_v12  ;;  %v4858_v12 = vld [vmem:[#allocation12 + $0x398] sm:$0xff] (!%p5335_p6) }
 0x37f   : > { %6482 = vmatprep.subr.bf16.mxu0 %v6481_v49  ;;  %6738 = vmatprep.subr.bf16.mxu1 %v6737_v50  ;;  %v3337_v49 = vld [vmem:[%s8284_s16 + $0x1b80] sm:$0xff]  ;;  %v6753_v53 = vpack.c.bf16 %v3348_v42, %v3340_v41  ;;  %v3395_v41 = vld [vmem:[%s8284_s16 + $0x1d50] sm:$0xff]  ;;  %v3402_v42 = vld [vmem:[%s8284_s16 + $0x1d88] sm:$0xff] }
 0x380   : > { %v3345_v50 = vld [vmem:[%s8284_s16 + $0x1bc0] sm:$0xff]  ;;  %v1248_v62 = vrot.slane %v9530_v38, %v1247_v43  ;;  %v3372_v38 = vld [vmem:[%s8284_s16 + $0x1c98] sm:$0xff] }
 0x381   : > { %v6499_v63 = vpack.c.bf16 %v3345_v50, %v3337_v49  ;;  %v3412_v49 = vld [vmem:[%s8284_s16 + $0x1dd8] sm:$0xff] }
 0x382   : > { %6484 = vmatpush1.bf16.msra.mxu0 %v6483_v60  ;;  %6740 = vmatpush1.bf16.msra.mxu1 %v6739_v46  ;;  %v3356_v60 = vld [vmem:[%s8284_s16 + $0x1c18] sm:$0xff]  ;;  %v7435_v8 = vadd.f32 %v9541_v44, %v1248_v62  ;;  %v3426_v62 = vld [vmem:[%s8284_s16 + $0x1e48] sm:$0xff] }
 0x383   : > { %6486 = vmatprep.subr.bf16.mxu0 %v6485_v0  ;;  %6742 = vmatprep.subr.bf16.mxu1 %v6741_v1  ;;  %v3364_v46 = vld [vmem:[%s8284_s16 + $0x1c58] sm:$0xff]  ;;  %v6755_v0 = vpack.c.bf16 %v3347_v55, %v3339_v54  ;;  %v3353_v1 = vld [vmem:[%s8284_s16 + $0x1c00] sm:$0xff] }
 0x384   : > { %v6757_v3 = vpack.c.bf16 %v3364_v46, %v3356_v60  ;;  %v6503_v10 = vpack.c.bf16 %v3361_v56, %v3353_v1  ;;  %v3388_v44 = vld [vmem:[%s8284_s16 + $0x1d18] sm:$0xff]  ;;  %v5333_v29 = vmul.f32 -1.442695, %v7435_v8  ;;  %v3409_v54 = vld [vmem:[%s8284_s16 + $0x1dc0] sm:$0xff]  ;;  %v3411_v60 = vld [vmem:[%s8284_s16 + $0x1dd0] sm:$0xff] }
 0x385   : > { %v3418_v46 = vld [vmem:[%s8284_s16 + $0x1e08] sm:$0xff]  ;;  %v6771_v56 = vpack.c.bf16 %v3411_v60, %v3403_v59  ;;  %v3436_v8 = vld [vmem:[%s8284_s16 + $0x1e98] sm:$0xff] }
 0x386   : > { %6488 = vmatpush1.bf16.msra.mxu0 %v6487_v6  ;;  %6744 = vmatpush1.bf16.msra.mxu1 %v6743_v7  ;;  %v3378_v6 = vld [vmem:[%s8284_s16 + $0x1cc8] sm:$0xff]  ;;  %v3380_v7 = vld [vmem:[%s8284_s16 + $0x1cd8] sm:$0xff]  ;;  %7619 = vpow2.f32 %v5333_v29 }
 0x387   : > { %6490 = vmatprep.subr.bf16.mxu0 %v6489_v11  ;;  %6746 = vmatprep.subr.bf16.mxu1 %v6745_v13  ;;  %v6759_v11 = vpack.c.bf16 %v3363_v25, %v3355_v4  ;;  %v3369_v13 = vld [vmem:[%s8284_s16 + $0x1c80] sm:$0xff]  ;;  %v6505_v17 = vpack.c.bf16 %v3378_v6, %v3370_v5  ;;  %v6761_v26 = vpack.c.bf16 %v3380_v7, %v3372_v38  ;;  %v3419_v5 = vld [vmem:[%s8284_s16 + $0x1e10] sm:$0xff]  ;;  %v3434_v38 = vld [vmem:[%s8284_s16 + $0x1e88] sm:$0xff] }
 0x388   : > { %v6507_v30 = vpack.c.bf16 %v3377_v15, %v3369_v13  ;;  %v6517_v4 = vpack.c.bf16 %v3426_v62, %v3418_v46  ;;  %v3427_v6 = vld [vmem:[%s8284_s16 + $0x1e50] sm:$0xff]  ;;  %v3442_v7 = vld [vmem:[%s8284_s16 + $0x1ec8] sm:$0xff]  ;;  %v3433_v15 = vld [vmem:[%s8284_s16 + $0x1e80] sm:$0xff] }
 0x389   : > { %v6775_v13 = vpack.c.bf16 %v3427_v6, %v3419_v5  ;;  %v3452_v29 = vld [vmem:[%s8284_s16 + $0x1f18] sm:$0xff]  ;;  %v3467_v46 = vld [vmem:[%s8284_s16 + $0x1f90] sm:$0xff]  ;;  %v2461_v5 = vld [vmem:[%s8284_s16 + $0x20] sm:$0xff] }
 0x38a   : > { %6492 = vmatpush1.bf16.msra.mxu0 %v6491_v24  ;;  %6748 = vmatpush1.bf16.msra.mxu1 %v6747_v28  ;;  %v3394_v24 = vld [vmem:[%s8284_s16 + $0x1d48] sm:$0xff]  ;;  %v3396_v28 = vld [vmem:[%s8284_s16 + $0x1d58] sm:$0xff]  ;;  %v3475_v62 = vld [vmem:[%s8284_s16 + $0x1fd0] sm:$0xff] }
 0x38b   : > { %6494 = vmatprep.subr.bf16.mxu0 %v6493_v31  ;;  %6750 = vmatprep.subr.bf16.mxu1 %v6749_v32  ;;  %v6763_v31 = vpack.c.bf16 %v3379_v21, %v3371_v19  ;;  %v3385_v32 = vld [vmem:[%s8284_s16 + $0x1d00] sm:$0xff]  ;;  %v6509_v35 = vpack.c.bf16 %v3394_v24, %v3386_v23  ;;  %v6765_v39 = vpack.c.bf16 %v3396_v28, %v3388_v44  ;;  %v3435_v23 = vld [vmem:[%s8284_s16 + $0x1e90] sm:$0xff]  ;;  %v3450_v44 = vld [vmem:[%s8284_s16 + $0x1f08] sm:$0xff] }
 0x38c   : > { %v6511_v50 = vpack.c.bf16 %v3393_v34, %v3385_v32  ;;  %v6521_v19 = vpack.c.bf16 %v3442_v7, %v3434_v38  ;;  %v3443_v24 = vld [vmem:[%s8284_s16 + $0x1ed0] sm:$0xff]  ;;  %v3458_v28 = vld [vmem:[%s8284_s16 + $0x1f48] sm:$0xff]  ;;  %v2469_v6 = vld [vmem:[%s8284_s16 + $0x60] sm:$0xff] }
 0x38d   : > { %v6779_v34 = vpack.c.bf16 %v3443_v24, %v3435_v23  ;;  %v2463_v38 = vld [vmem:[%s8284_s16 + $0x30] sm:$0xff] }
 0x38e   : > { %6496 = vmatpush1.bf16.msra.mxu0 %v6495_v45  ;;  %6752 = vmatpush1.bf16.msra.mxu1 %v6751_v48  ;;  %v3410_v45 = vld [vmem:[%s8284_s16 + $0x1dc8] sm:$0xff]  ;;  %v3404_v48 = vld [vmem:[%s8284_s16 + $0x1d98] sm:$0xff]  ;;  %v2471_v7 = vld [vmem:[%s8284_s16 + $0x70] sm:$0xff] }
 0x38f   : > { %6498 = vmatprep.subr.bf16.mxu0 %v6497_v52  ;;  %6754 = vmatprep.subr.bf16.mxu1 %v6753_v53  ;;  %v6767_v52 = vpack.c.bf16 %v3395_v41, %v3387_v40  ;;  %v3401_v53 = vld [vmem:[%s8284_s16 + $0x1d80] sm:$0xff]  ;;  %v6513_v55 = vpack.c.bf16 %v3410_v45, %v3402_v42  ;;  %v6769_v58 = vpack.c.bf16 %v3412_v49, %v3404_v48  ;;  %v3451_v42 = vld [vmem:[%s8284_s16 + $0x1f10] sm:$0xff]  ;;  %v3466_v48 = vld [vmem:[%s8284_s16 + $0x1f88] sm:$0xff] }
 0x390   : > { %v6515_v1 = vpack.c.bf16 %v3409_v54, %v3401_v53  ;;  %v6525_v40 = vpack.c.bf16 %v3458_v28, %v3450_v44  ;;  %v3459_v45 = vld [vmem:[%s8284_s16 + $0x1f50] sm:$0xff]  ;;  %v3474_v49 = vld [vmem:[%s8284_s16 + $0x1fc8] sm:$0xff] }
 0x391   : > { %v6783_v54 = vpack.c.bf16 %v3459_v45, %v3451_v42  ;;  %v6529_v59 = vpack.c.bf16 %v3474_v49, %v3466_v48  ;;  %v2487_v28 = vld [vmem:[%s8284_s16 + $0xf0] sm:$0xff]  ;;  %v2510_v49 = vld [vmem:[%s8284_s16 + $0x1a8] sm:$0xff] }
 0x392   : > { %6500 = vmatpush1.bf16.msra.mxu0 %v6499_v63  ;;  %6756 = vmatpush1.bf16.msra.mxu1 %v6755_v0  ;;  %v3420_v63 = vld [vmem:[%s8284_s16 + $0x1e18] sm:$0xff]  ;;  %v2495_v42 = vld [vmem:[%s8284_s16 + $0x130] sm:$0xff] }
 0x393   : > { %6502 = vmatprep.subr.bf16.mxu0 %v6501_v2  ;;  %6758 = vmatprep.subr.bf16.mxu1 %v6757_v3  ;;  %v3428_v0 = vld [vmem:[%s8284_s16 + $0x1e58] sm:$0xff]  ;;  %v3417_v2 = vld [vmem:[%s8284_s16 + $0x1e00] sm:$0xff]  ;;  %v2503_v48 = vld [vmem:[%s8284_s16 + $0x170] sm:$0xff] }
 0x394   : > { %v3425_v3 = vld [vmem:[%s8284_s16 + $0x1e40] sm:$0xff]  ;;  %v6773_v25 = vpack.c.bf16 %v3428_v0, %v3420_v63  ;;  %v2462_v63 = vld [vmem:[%s8284_s16 + $0x28] sm:$0xff] }
 0x395   : > { %v2470_v0 = vld [vmem:[%s8284_s16 + $0x68] sm:$0xff] }
 0x396   : > { %6504 = vmatpush1.bf16.msra.mxu0 %v6503_v10  ;;  %6760 = vmatpush1.bf16.msra.mxu1 %v6759_v11  ;;  %v3444_v10 = vld [vmem:[%s8284_s16 + $0x1ed8] sm:$0xff]  ;;  %v6519_v11 = vpack.c.bf16 %v3425_v3, %v3417_v2  ;;  %v6787_v3 = vpack.c.bf16 %v3475_v62, %v3467_v46  ;;  %v2519_v62 = vld [vmem:[%s8284_s16 + $0x1f0] sm:$0xff] }
 0x397   : > { %6506 = vmatprep.subr.bf16.mxu0 %v6505_v17  ;;  %6762 = vmatprep.subr.bf16.mxu1 %v6761_v26  ;;  %v3441_v17 = vld [vmem:[%s8284_s16 + $0x1ec0] sm:$0xff]  ;;  %v7620_v26 = vpop.eup %7619  ;;  %v6777_v21 = vpack.c.bf16 %v3444_v10, %v3436_v8  ;;  %v2478_v8 = vld [vmem:[%s8284_s16 + $0xa8] sm:$0xff] }
 0x398   : > { %v6523_v32 = vpack.c.bf16 %v3441_v17, %v3433_v15  ;;  %v2486_v10 = vld [vmem:[%s8284_s16 + $0xe8] sm:$0xff]  ;;  %v6791_v15 = vpack.c.bf16 %v2469_v6, %v2461_v5  ;;  %v7047_v17 = vpack.c.bf16 %v2471_v7, %v2463_v38  ;;  %v2533_v5 = vld [vmem:[%s8284_s16 + $0x260] sm:$0xff]  ;;  %v2527_v6 = vld [vmem:[%s8284_s16 + $0x230] sm:$0xff] }
 0x399   : > { %v6793_v24 = vpack.c.bf16 %v2486_v10, %v2478_v8  ;;  %v2535_v7 = vld [vmem:[%s8284_s16 + $0x270] sm:$0xff]  ;;  %v2542_v8 = vld [vmem:[%s8284_s16 + $0x2a8] sm:$0xff] }
 0x39a   : > { %6508 = vmatpush1.bf16.msra.mxu0 %v6507_v30  ;;  %6764 = vmatpush1.bf16.msra.mxu1 %v6763_v31  ;;  %v3460_v30 = vld [vmem:[%s8284_s16 + $0x1f58] sm:$0xff]  ;;  %v2431_v31 = vadd.f32 1.0, %v7620_v26  ;;  %v2477_v26 = vld [vmem:[%s8284_s16 + $0xa0] sm:$0xff]  ;;  %v2550_v10 = vld [vmem:[%s8284_s16 + $0x2e8] sm:$0xff] }
 0x39b   : > { %6510 = vmatprep.subr.bf16.mxu0 %v6509_v35  ;;  %6766 = vmatprep.subr.bf16.mxu1 %v6765_v39  ;;  %v3449_v35 = vld [vmem:[%s8284_s16 + $0x1f00] sm:$0xff]  ;;  %v6781_v41 = vpack.c.bf16 %v3460_v30, %v3452_v29  ;;  %v2494_v29 = vld [vmem:[%s8284_s16 + $0x128] sm:$0xff] }
 0x39c   : > { %v3457_v39 = vld [vmem:[%s8284_s16 + $0x1f40] sm:$0xff]  ;;  %7621 = vrcp.f32 %v2431_v31  ;;  %v2502_v30 = vld [vmem:[%s8284_s16 + $0x168] sm:$0xff]  ;;  %v2496_v31 = vld [vmem:[%s8284_s16 + $0x138] sm:$0xff] }
 0x39d   : > { %v6527_v53 = vpack.c.bf16 %v3457_v39, %v3449_v35  ;;  %v6797_v39 = vpack.c.bf16 %v2502_v30, %v2494_v29  ;;  %v2558_v29 = vld [vmem:[%s8284_s16 + $0x328] sm:$0xff] }
 0x39e   : > { %6512 = vmatpush1.bf16.msra.mxu0 %v6511_v50  ;;  %6768 = vmatpush1.bf16.msra.mxu1 %v6767_v52  ;;  %v3468_v50 = vld [vmem:[%s8284_s16 + $0x1f98] sm:$0xff]  ;;  %v2566_v30 = vld [vmem:[%s8284_s16 + $0x368] sm:$0xff] }
 0x39f   : > { %6514 = vmatprep.subr.bf16.mxu0 %v6513_v55  ;;  %6770 = vmatprep.subr.bf16.mxu1 %v6769_v58  ;;  %v3476_v52 = vld [vmem:[%s8284_s16 + $0x1fd8] sm:$0xff]  ;;  %v3465_v55 = vld [vmem:[%s8284_s16 + $0x1f80] sm:$0xff] }
 0x3a0   : > { %v3473_v58 = vld [vmem:[%s8284_s16 + $0x1fc0] sm:$0xff]  ;;  %v6785_v60 = vpack.c.bf16 %v3476_v52, %v3468_v50  ;;  %v2518_v50 = vld [vmem:[%s8284_s16 + $0x1e8] sm:$0xff]  ;;  %v2512_v52 = vld [vmem:[%s8284_s16 + $0x1b8] sm:$0xff] }
 0x3a1   : > { %v6531_v2 = vpack.c.bf16 %v3473_v58, %v3465_v55  ;;  %v6801_v55 = vpack.c.bf16 %v2518_v50, %v2510_v49  ;;  %v2509_v58 = vld [vmem:[%s8284_s16 + $0x1a0] sm:$0xff]  ;;  %v2574_v49 = vld [vmem:[%s8284_s16 + $0x3a8] sm:$0xff] }
 0x3a2   : > { %6516 = vmatpush1.bf16.msra.mxu0 %v6515_v1  ;;  %6772 = vmatpush1.bf16.msra.mxu1 %v6771_v56  ;;  %v2464_v1 = vld [vmem:[%s8284_s16 + $0x38] sm:$0xff]  ;;  %v2582_v50 = vld [vmem:[%s8284_s16 + $0x3e8] sm:$0xff] }
 0x3a3   : > { %6518 = vmatprep.subr.bf16.mxu0 %v6517_v4  ;;  %6774 = vmatprep.subr.bf16.mxu1 %v6773_v25  ;;  %v2472_v56 = vld [vmem:[%s8284_s16 + $0x78] sm:$0xff]  ;;  %v6789_v4 = vpack.c.bf16 %v2470_v0, %v2462_v63  ;;  %v2526_v63 = vld [vmem:[%s8284_s16 + $0x228] sm:$0xff] }
 0x3a4   : > { %v7045_v25 = vpack.c.bf16 %v2472_v56, %v2464_v1  ;;  %v2534_v0 = vld [vmem:[%s8284_s16 + $0x268] sm:$0xff]  ;;  %v2528_v1 = vld [vmem:[%s8284_s16 + $0x238] sm:$0xff] }
 0x3a5   : > { %v2536_v56 = vld [vmem:[%s8284_s16 + $0x278] sm:$0xff] }
 0x3a6   : > { %6520 = vmatpush1.bf16.msra.mxu0 %v6519_v11  ;;  %6776 = vmatpush1.bf16.msra.mxu1 %v6775_v13  ;;  %v2480_v11 = vld [vmem:[%s8284_s16 + $0xb8] sm:$0xff]  ;;  %v9699_v23 = vpop.eup %7621  ;;  %v7061_v38 = vpack.c.bf16 %v2536_v56, %v2528_v1 }
 0x3a7   : > { %6522 = vmatprep.subr.bf16.mxu0 %v6521_v19  ;;  %6778 = vmatprep.subr.bf16.mxu1 %v6777_v21  ;;  %v2488_v13 = vld [vmem:[%s8284_s16 + $0xf8] sm:$0xff]  ;;  %v2485_v19 = vld [vmem:[%s8284_s16 + $0xe0] sm:$0xff]  ;;  %v2479_v21 = vld [vmem:[%s8284_s16 + $0xb0] sm:$0xff] }
 0x3a8   : > { %v7049_v44 = vpack.c.bf16 %v2488_v13, %v2480_v11  ;;  %v7051_v35 = vpack.c.bf16 %v2487_v28, %v2479_v21  ;;  %v2544_v11 = vld [vmem:[%s8284_s16 + $0x2b8] sm:$0xff]  ;;  %v2549_v21 = vld [vmem:[%s8284_s16 + $0x2e0] sm:$0xff]  ;;  %v2551_v28 = vld [vmem:[%s8284_s16 + $0x2f0] sm:$0xff] }
 0x3a9   : > { %v2552_v13 = vld [vmem:[%s8284_s16 + $0x2f8] sm:$0xff] }
 0x3aa   : > { %6524 = vmatpush1.bf16.msra.mxu0 %v6523_v32  ;;  %6780 = vmatpush1.bf16.msra.mxu1 %v6779_v34  ;;  %v2504_v32 = vld [vmem:[%s8284_s16 + $0x178] sm:$0xff]  ;;  %v6795_v34 = vpack.c.bf16 %v2485_v19, %v2477_v26  ;;  %v6809_v26 = vpack.c.bf16 %v2550_v10, %v2542_v8  ;;  %v2541_v19 = vld [vmem:[%s8284_s16 + $0x2a0] sm:$0xff]  ;;  %v2606_v8 = vld [vmem:[%s8284_s16 + $0x4a8] sm:$0xff] }
 0x3ab   : > { %6526 = vmatprep.subr.bf16.mxu0 %v6525_v40  ;;  %6782 = vmatprep.subr.bf16.mxu1 %v6781_v41  ;;  %v2493_v40 = vld [vmem:[%s8284_s16 + $0x120] sm:$0xff]  ;;  %v7053_v45 = vpack.c.bf16 %v2504_v32, %v2496_v31  ;;  %v2560_v31 = vld [vmem:[%s8284_s16 + $0x338] sm:$0xff]  ;;  %v2614_v10 = vld [vmem:[%s8284_s16 + $0x4e8] sm:$0xff] }
 0x3ac   : > { %v2501_v41 = vld [vmem:[%s8284_s16 + $0x160] sm:$0xff]  ;;  %v2568_v32 = vld [vmem:[%s8284_s16 + $0x378] sm:$0xff] }
 0x3ad   : > { %v2592_v1 = vld [vmem:[%s8284_s16 + $0x438] sm:$0xff] }
 0x3ae   : > { %6528 = vmatpush1.bf16.msra.mxu0 %v6527_v53  ;;  %6784 = vmatpush1.bf16.msra.mxu1 %v6783_v54  ;;  %v6799_v53 = vpack.c.bf16 %v2501_v41, %v2493_v40  ;;  %v7055_v54 = vpack.c.bf16 %v2503_v48, %v2495_v42  ;;  %v2557_v40 = vld [vmem:[%s8284_s16 + $0x320] sm:$0xff]  ;;  %v2559_v42 = vld [vmem:[%s8284_s16 + $0x330] sm:$0xff]  ;;  %v2600_v56 = vld [vmem:[%s8284_s16 + $0x478] sm:$0xff] }
 0x3af   : > { %6530 = vmatprep.subr.bf16.mxu0 %v6529_v59  ;;  %6786 = vmatprep.subr.bf16.mxu1 %v6785_v60  ;;  %v2517_v59 = vld [vmem:[%s8284_s16 + $0x1e0] sm:$0xff]  ;;  %v2511_v60 = vld [vmem:[%s8284_s16 + $0x1b0] sm:$0xff] }
 0x3b0   : > { %v2565_v41 = vld [vmem:[%s8284_s16 + $0x360] sm:$0xff]  ;;  %v2567_v48 = vld [vmem:[%s8284_s16 + $0x370] sm:$0xff] }
 0x3b2   : > { %6532 = vmatpush1.bf16.msra.mxu0 %v6531_v2  ;;  %6788 = vmatpush1.bf16.msra.mxu1 %v6787_v3  ;;  %v6803_v2 = vpack.c.bf16 %v2517_v59, %v2509_v58  ;;  %v7059_v3 = vpack.c.bf16 %v2519_v62, %v2511_v60  ;;  %v2573_v58 = vld [vmem:[%s8284_s16 + $0x3a0] sm:$0xff]  ;;  %v2575_v60 = vld [vmem:[%s8284_s16 + $0x3b0] sm:$0xff] }
 0x3b3   : > { %6790 = vmatprep.subr.bf16.mxu0 %v6789_v4  ;;  %7046 = vmatprep.subr.bf16.mxu1 %v7045_v25  ;;  %v6805_v4 = vpack.c.bf16 %v2534_v0, %v2526_v63  ;;  %v2525_v25 = vld [vmem:[%s8284_s16 + $0x220] sm:$0xff]  ;;  %v2583_v62 = vld [vmem:[%s8284_s16 + $0x3f0] sm:$0xff]  ;;  %v2590_v63 = vld [vmem:[%s8284_s16 + $0x428] sm:$0xff] }
 0x3b4   : > { %v2581_v59 = vld [vmem:[%s8284_s16 + $0x3e0] sm:$0xff]  ;;  %v2598_v0 = vld [vmem:[%s8284_s16 + $0x468] sm:$0xff] }
 0x3b5   : > { %3759 = vmatmul.mubr.f32.vlgmr.msra.gmra.mrb[4].mxu0 %v9699_v23  ;;  %4043 = vmatmul.mubr.f32.vlgmr.msra.gmra.mrb[4].mxu1 %v9699_v23 }
 0x3b6   : > { %6792 = vmatpush1.bf16.msra.mxu0 %v6791_v15  ;;  %4113 = vmatprep.mubr.f32.mxu0 %v9217_v33  ;;  %v6807_v15 = vpack.c.bf16 %v2533_v5, %v2525_v25  ;;  %v2589_v25 = vld [vmem:[%s8284_s16 + $0x420] sm:$0xff] }
 0x3b7   : > { %7048 = vmatpush1.bf16.msra.mxu1 %v7047_v17  ;;  %4397 = vmatprep.mubr.f32.mxu1 %v9217_v33  ;;  %v2520_v33 = vld [vmem:[%s8284_s16 + $0x1f8] sm:$0xff]  ;;  %v7063_v17 = vpack.c.bf16 %v2535_v7, %v2527_v6  ;;  %v2597_v5 = vld [vmem:[%s8284_s16 + $0x460] sm:$0xff]  ;;  %v2591_v6 = vld [vmem:[%s8284_s16 + $0x430] sm:$0xff] }
 0x3b8   : > { %6794 = vmatprep.subr.bf16.mxu0 %v6793_v24  ;;  %7050 = vmatprep.subr.bf16.mxu1 %v7049_v44  ;;  %v7057_v46 = vpack.c.bf16 %v2520_v33, %v2512_v52  ;;  %v2543_v24 = vld [vmem:[%s8284_s16 + $0x2b0] sm:$0xff]  ;;  %v7065_v44 = vpack.c.bf16 %v2552_v13, %v2544_v11  ;;  %v2576_v52 = vld [vmem:[%s8284_s16 + $0x3b8] sm:$0xff] }
 0x3b9   : > { %v2584_v33 = vld [vmem:[%s8284_s16 + $0x3f8] sm:$0xff]  ;;  %v2599_v7 = vld [vmem:[%s8284_s16 + $0x470] sm:$0xff] }
 0x3ba   : > { %6796 = vmatpush1.bf16.msra.mxu0 %v6795_v34  ;;  %v6811_v34 = vpack.c.bf16 %v2549_v21, %v2541_v19  ;;  %v2608_v11 = vld [vmem:[%s8284_s16 + $0x4b8] sm:$0xff]  ;;  %v2605_v19 = vld [vmem:[%s8284_s16 + $0x4a0] sm:$0xff] }
 0x3bb   : > { %7052 = vmatpush1.bf16.msra.mxu1 %v7051_v35  ;;  %6798 = vmatprep.subr.bf16.mxu0 %v6797_v39  ;;  %v7067_v35 = vpack.c.bf16 %v2551_v28, %v2543_v24  ;;  %v6813_v39 = vpack.c.bf16 %v2566_v30, %v2558_v29  ;;  %v2616_v13 = vld [vmem:[%s8284_s16 + $0x4f8] sm:$0xff]  ;;  %v2613_v21 = vld [vmem:[%s8284_s16 + $0x4e0] sm:$0xff]  ;;  %v2607_v24 = vld [vmem:[%s8284_s16 + $0x4b0] sm:$0xff] }
 0x3bc   : > { %7054 = vmatprep.subr.bf16.mxu1 %v7053_v45  ;;  %v7069_v45 = vpack.c.bf16 %v2568_v32, %v2560_v31  ;;  %v2615_v28 = vld [vmem:[%s8284_s16 + $0x4f0] sm:$0xff]  ;;  %v2622_v29 = vld [vmem:[%s8284_s16 + $0x528] sm:$0xff]  ;;  %v2624_v31 = vld [vmem:[%s8284_s16 + $0x538] sm:$0xff] }
 0x3bd   : > { %v2630_v30 = vld [vmem:[%s8284_s16 + $0x568] sm:$0xff]  ;;  %v2632_v32 = vld [vmem:[%s8284_s16 + $0x578] sm:$0xff] }
 0x3be   : > { %6800 = vmatpush1.bf16.msra.mxu0 %v6799_v53  ;;  %v6815_v53 = vpack.c.bf16 %v2565_v41, %v2557_v40  ;;  %v2621_v40 = vld [vmem:[%s8284_s16 + $0x520] sm:$0xff] }
 0x3bf   : > { %7056 = vmatpush1.bf16.msra.mxu1 %v7055_v54  ;;  %6802 = vmatprep.subr.bf16.mxu0 %v6801_v55  ;;  %v7071_v54 = vpack.c.bf16 %v2567_v48, %v2559_v42  ;;  %v6817_v55 = vpack.c.bf16 %v2582_v50, %v2574_v49  ;;  %v2629_v41 = vld [vmem:[%s8284_s16 + $0x560] sm:$0xff]  ;;  %v2623_v42 = vld [vmem:[%s8284_s16 + $0x530] sm:$0xff]  ;;  %v2638_v49 = vld [vmem:[%s8284_s16 + $0x5a8] sm:$0xff] }
 0x3c0   : > { %7058 = vmatprep.subr.bf16.mxu1 %v7057_v46  ;;  %v7073_v46 = vpack.c.bf16 %v2584_v33, %v2576_v52  ;;  %v2631_v48 = vld [vmem:[%s8284_s16 + $0x570] sm:$0xff]  ;;  %v2646_v50 = vld [vmem:[%s8284_s16 + $0x5e8] sm:$0xff]  ;;  %v2640_v52 = vld [vmem:[%s8284_s16 + $0x5b8] sm:$0xff] }
 0x3c1   : > { %v2648_v33 = vld [vmem:[%s8284_s16 + $0x5f8] sm:$0xff] }
 0x3c2   : > { %6804 = vmatpush1.bf16.msra.mxu0 %v6803_v2  ;;  %v6819_v2 = vpack.c.bf16 %v2581_v59, %v2573_v58  ;;  %v2637_v58 = vld [vmem:[%s8284_s16 + $0x5a0] sm:$0xff] }
 0x3c3   : > { %7060 = vmatpush1.bf16.msra.mxu1 %v7059_v3  ;;  %6806 = vmatprep.subr.bf16.mxu0 %v6805_v4  ;;  %v7075_v3 = vpack.c.bf16 %v2583_v62, %v2575_v60  ;;  %v6821_v4 = vpack.c.bf16 %v2598_v0, %v2590_v63  ;;  %v2645_v59 = vld [vmem:[%s8284_s16 + $0x5e0] sm:$0xff]  ;;  %v2639_v60 = vld [vmem:[%s8284_s16 + $0x5b0] sm:$0xff]  ;;  %v2654_v63 = vld [vmem:[%s8284_s16 + $0x628] sm:$0xff] }
 0x3c4   : > { %7062 = vmatprep.subr.bf16.mxu1 %v7061_v38  ;;  %v7077_v38 = vpack.c.bf16 %v2600_v56, %v2592_v1  ;;  %v2647_v62 = vld [vmem:[%s8284_s16 + $0x5f0] sm:$0xff]  ;;  %v2662_v0 = vld [vmem:[%s8284_s16 + $0x668] sm:$0xff]  ;;  %v2656_v1 = vld [vmem:[%s8284_s16 + $0x638] sm:$0xff] }
 0x3c5   : > { %v2664_v56 = vld [vmem:[%s8284_s16 + $0x678] sm:$0xff] }
 0x3c6   : > { %6808 = vmatpush1.bf16.msra.mxu0 %v6807_v15  ;;  %v6823_v15 = vpack.c.bf16 %v2597_v5, %v2589_v25  ;;  %v2653_v25 = vld [vmem:[%s8284_s16 + $0x620] sm:$0xff] }
 0x3c7   : > { %7064 = vmatpush1.bf16.msra.mxu1 %v7063_v17  ;;  %6810 = vmatprep.subr.bf16.mxu0 %v6809_v26  ;;  %v7079_v17 = vpack.c.bf16 %v2599_v7, %v2591_v6  ;;  %v6825_v26 = vpack.c.bf16 %v2614_v10, %v2606_v8  ;;  %v2661_v5 = vld [vmem:[%s8284_s16 + $0x660] sm:$0xff]  ;;  %v2655_v6 = vld [vmem:[%s8284_s16 + $0x630] sm:$0xff]  ;;  %v2670_v8 = vld [vmem:[%s8284_s16 + $0x6a8] sm:$0xff] }
 0x3c8   : > { %7066 = vmatprep.subr.bf16.mxu1 %v7065_v44  ;;  %v7081_v44 = vpack.c.bf16 %v2616_v13, %v2608_v11  ;;  %v2663_v7 = vld [vmem:[%s8284_s16 + $0x670] sm:$0xff]  ;;  %v2678_v10 = vld [vmem:[%s8284_s16 + $0x6e8] sm:$0xff]  ;;  %v2672_v11 = vld [vmem:[%s8284_s16 + $0x6b8] sm:$0xff] }
 0x3c9   : > { %v2680_v13 = vld [vmem:[%s8284_s16 + $0x6f8] sm:$0xff] }
 0x3ca   : > { %6812 = vmatpush1.bf16.msra.mxu0 %v6811_v34  ;;  %v6827_v34 = vpack.c.bf16 %v2613_v21, %v2605_v19  ;;  %v2669_v19 = vld [vmem:[%s8284_s16 + $0x6a0] sm:$0xff] }
 0x3cb   : > { %7068 = vmatpush1.bf16.msra.mxu1 %v7067_v35  ;;  %6814 = vmatprep.subr.bf16.mxu0 %v6813_v39  ;;  %v7083_v35 = vpack.c.bf16 %v2615_v28, %v2607_v24  ;;  %v6829_v39 = vpack.c.bf16 %v2630_v30, %v2622_v29  ;;  %v2677_v21 = vld [vmem:[%s8284_s16 + $0x6e0] sm:$0xff]  ;;  %v2671_v24 = vld [vmem:[%s8284_s16 + $0x6b0] sm:$0xff]  ;;  %v2686_v29 = vld [vmem:[%s8284_s16 + $0x728] sm:$0xff] }
 0x3cc   : > { %7070 = vmatprep.subr.bf16.mxu1 %v7069_v45  ;;  %v7085_v45 = vpack.c.bf16 %v2632_v32, %v2624_v31  ;;  %v2679_v28 = vld [vmem:[%s8284_s16 + $0x6f0] sm:$0xff]  ;;  %v2694_v30 = vld [vmem:[%s8284_s16 + $0x768] sm:$0xff]  ;;  %v2688_v31 = vld [vmem:[%s8284_s16 + $0x738] sm:$0xff] }
 0x3cd   : > { %v2696_v32 = vld [vmem:[%s8284_s16 + $0x778] sm:$0xff] }
 0x3ce   : > { %6816 = vmatpush1.bf16.msra.mxu0 %v6815_v53  ;;  %v6831_v53 = vpack.c.bf16 %v2629_v41, %v2621_v40  ;;  %v2685_v40 = vld [vmem:[%s8284_s16 + $0x720] sm:$0xff] }
 0x3cf   : > { %7072 = vmatpush1.bf16.msra.mxu1 %v7071_v54  ;;  %6818 = vmatprep.subr.bf16.mxu0 %v6817_v55  ;;  %v7087_v54 = vpack.c.bf16 %v2631_v48, %v2623_v42  ;;  %v6833_v55 = vpack.c.bf16 %v2646_v50, %v2638_v49  ;;  %v2693_v41 = vld [vmem:[%s8284_s16 + $0x760] sm:$0xff]  ;;  %v2687_v42 = vld [vmem:[%s8284_s16 + $0x730] sm:$0xff]  ;;  %v2702_v49 = vld [vmem:[%s8284_s16 + $0x7a8] sm:$0xff] }
 0x3d0   : > { %7074 = vmatprep.subr.bf16.mxu1 %v7073_v46  ;;  %v7089_v46 = vpack.c.bf16 %v2648_v33, %v2640_v52  ;;  %v2695_v48 = vld [vmem:[%s8284_s16 + $0x770] sm:$0xff]  ;;  %v2710_v50 = vld [vmem:[%s8284_s16 + $0x7e8] sm:$0xff]  ;;  %v2704_v52 = vld [vmem:[%s8284_s16 + $0x7b8] sm:$0xff] }
 0x3d1   : > { %v2712_v33 = vld [vmem:[%s8284_s16 + $0x7f8] sm:$0xff] }
 0x3d2   : > { %6820 = vmatpush1.bf16.msra.mxu0 %v6819_v2  ;;  %v6835_v2 = vpack.c.bf16 %v2645_v59, %v2637_v58  ;;  %v2701_v58 = vld [vmem:[%s8284_s16 + $0x7a0] sm:$0xff] }
 0x3d3   : > { %7076 = vmatpush1.bf16.msra.mxu1 %v7075_v3  ;;  %6822 = vmatprep.subr.bf16.mxu0 %v6821_v4  ;;  %v7091_v3 = vpack.c.bf16 %v2647_v62, %v2639_v60  ;;  %v6837_v4 = vpack.c.bf16 %v2662_v0, %v2654_v63  ;;  %v2709_v59 = vld [vmem:[%s8284_s16 + $0x7e0] sm:$0xff]  ;;  %v2703_v60 = vld [vmem:[%s8284_s16 + $0x7b0] sm:$0xff]  ;;  %v2718_v63 = vld [vmem:[%s8284_s16 + $0x828] sm:$0xff] }
 0x3d4   : > { %7078 = vmatprep.subr.bf16.mxu1 %v7077_v38  ;;  %v7093_v38 = vpack.c.bf16 %v2664_v56, %v2656_v1  ;;  %v2711_v62 = vld [vmem:[%s8284_s16 + $0x7f0] sm:$0xff]  ;;  %v2726_v0 = vld [vmem:[%s8284_s16 + $0x868] sm:$0xff]  ;;  %v2720_v1 = vld [vmem:[%s8284_s16 + $0x838] sm:$0xff] }
 0x3d5   : > { %v2728_v56 = vld [vmem:[%s8284_s16 + $0x878] sm:$0xff] }
 0x3d6   : > { %6824 = vmatpush1.bf16.msra.mxu0 %v6823_v15  ;;  %v6839_v15 = vpack.c.bf16 %v2661_v5, %v2653_v25  ;;  %v2717_v25 = vld [vmem:[%s8284_s16 + $0x820] sm:$0xff] }
 0x3d7   : > { %7080 = vmatpush1.bf16.msra.mxu1 %v7079_v17  ;;  %6826 = vmatprep.subr.bf16.mxu0 %v6825_v26  ;;  %v7095_v17 = vpack.c.bf16 %v2663_v7, %v2655_v6  ;;  %v6841_v26 = vpack.c.bf16 %v2678_v10, %v2670_v8  ;;  %v2725_v5 = vld [vmem:[%s8284_s16 + $0x860] sm:$0xff]  ;;  %v7109_v6 = vpack.c.bf16 %v2728_v56, %v2720_v1  ;;  %v2727_v7 = vld [vmem:[%s8284_s16 + $0x870] sm:$0xff]  ;;  %v2734_v8 = vld [vmem:[%s8284_s16 + $0x8a8] sm:$0xff] }
 0x3d8   : > { %7082 = vmatprep.subr.bf16.mxu1 %v7081_v44  ;;  %v7097_v44 = vpack.c.bf16 %v2680_v13, %v2672_v11  ;;  %v2742_v10 = vld [vmem:[%s8284_s16 + $0x8e8] sm:$0xff]  ;;  %v6855_v11 = vpack.c.bf16 %v2725_v5, %v2717_v25  ;;  %v2736_v13 = vld [vmem:[%s8284_s16 + $0x8b8] sm:$0xff]  ;;  %v2783_v25 = vld [vmem:[%s8284_s16 + $0xa30] sm:$0xff] }
 0x3da   : > { %6828 = vmatpush1.bf16.msra.mxu0 %v6827_v34  ;;  %v6843_v34 = vpack.c.bf16 %v2677_v21, %v2669_v19  ;;  %v2741_v19 = vld [vmem:[%s8284_s16 + $0x8e0] sm:$0xff]  ;;  %v2735_v21 = vld [vmem:[%s8284_s16 + $0x8b0] sm:$0xff] }
 0x3db   : > { %7084 = vmatpush1.bf16.msra.mxu1 %v7083_v35  ;;  %6830 = vmatprep.subr.bf16.mxu0 %v6829_v39  ;;  %v7099_v35 = vpack.c.bf16 %v2679_v28, %v2671_v24  ;;  %v6845_v39 = vpack.c.bf16 %v2694_v30, %v2686_v29  ;;  %v6857_v24 = vpack.c.bf16 %v2742_v10, %v2734_v8  ;;  %v2750_v28 = vld [vmem:[%s8284_s16 + $0x928] sm:$0xff]  ;;  %v2800_v8 = vld [vmem:[%s8284_s16 + $0xab8] sm:$0xff] }
 0x3dc   : > { %7086 = vmatprep.subr.bf16.mxu1 %v7085_v45  ;;  %v7101_v45 = vpack.c.bf16 %v2696_v32, %v2688_v31  ;;  %v2758_v29 = vld [vmem:[%s8284_s16 + $0x968] sm:$0xff]  ;;  %v2752_v31 = vld [vmem:[%s8284_s16 + $0x938] sm:$0xff] }
 0x3dd   : > { %v2760_v32 = vld [vmem:[%s8284_s16 + $0x978] sm:$0xff] }
 0x3de   : > { %6832 = vmatpush1.bf16.msra.mxu0 %v6831_v53  ;;  %v6847_v53 = vpack.c.bf16 %v2693_v41, %v2685_v40  ;;  %v2749_v40 = vld [vmem:[%s8284_s16 + $0x920] sm:$0xff]  ;;  %v2808_v10 = vld [vmem:[%s8284_s16 + $0xaf8] sm:$0xff] }
 0x3df   : > { %7088 = vmatpush1.bf16.msra.mxu1 %v7087_v54  ;;  %6834 = vmatprep.subr.bf16.mxu0 %v6833_v55  ;;  %v7103_v54 = vpack.c.bf16 %v2695_v48, %v2687_v42  ;;  %v6849_v55 = vpack.c.bf16 %v2710_v50, %v2702_v49  ;;  %v2757_v41 = vld [vmem:[%s8284_s16 + $0x960] sm:$0xff]  ;;  %v2751_v42 = vld [vmem:[%s8284_s16 + $0x930] sm:$0xff]  ;;  %v2766_v48 = vld [vmem:[%s8284_s16 + $0x9a8] sm:$0xff] }
 0x3e0   : > { %7090 = vmatprep.subr.bf16.mxu1 %v7089_v46  ;;  %v7105_v46 = vpack.c.bf16 %v2712_v33, %v2704_v52  ;;  %v2774_v49 = vld [vmem:[%s8284_s16 + $0x9e8] sm:$0xff]  ;;  %v2768_v50 = vld [vmem:[%s8284_s16 + $0x9b8] sm:$0xff]  ;;  %v6863_v33 = vpack.c.bf16 %v2757_v41, %v2749_v40  ;;  %v2815_v40 = vld [vmem:[%s8284_s16 + $0xb30] sm:$0xff] }
 0x3e1   : > { %v2776_v52 = vld [vmem:[%s8284_s16 + $0x9f8] sm:$0xff] }
 0x3e2   : > { %6836 = vmatpush1.bf16.msra.mxu0 %v6835_v2  ;;  %v6851_v2 = vpack.c.bf16 %v2709_v59, %v2701_v58  ;;  %v2767_v58 = vld [vmem:[%s8284_s16 + $0x9b0] sm:$0xff]  ;;  %v7121_v59 = vpack.c.bf16 %v2776_v52, %v2768_v50 }
 0x3e3   : > { %7092 = vmatpush1.bf16.msra.mxu1 %v7091_v3  ;;  %6838 = vmatprep.subr.bf16.mxu0 %v6837_v4  ;;  %v7107_v3 = vpack.c.bf16 %v2711_v62, %v2703_v60  ;;  %v6853_v4 = vpack.c.bf16 %v2726_v0, %v2718_v63  ;;  %v2775_v60 = vld [vmem:[%s8284_s16 + $0x9f0] sm:$0xff]  ;;  %v2790_v62 = vld [vmem:[%s8284_s16 + $0xa68] sm:$0xff]  ;;  %v2784_v63 = vld [vmem:[%s8284_s16 + $0xa38] sm:$0xff] }
 0x3e4   : > { %7094 = vmatprep.subr.bf16.mxu1 %v7093_v38  ;;  %v2719_v38 = vld [vmem:[%s8284_s16 + $0x830] sm:$0xff]  ;;  %v2792_v0 = vld [vmem:[%s8284_s16 + $0xa78] sm:$0xff]  ;;  %v7123_v56 = vpack.c.bf16 %v2775_v60, %v2767_v58  ;;  %v2854_v60 = vld [vmem:[%s8284_s16 + $0xc68] sm:$0xff] }
 0x3e5   : > { %v7125_v5 = vpack.c.bf16 %v2792_v0, %v2784_v63  ;;  %v2839_v58 = vld [vmem:[%s8284_s16 + $0xbf0] sm:$0xff] }
 0x3e6   : > { %6840 = vmatpush1.bf16.msra.mxu0 %v6839_v15  ;;  %v2744_v15 = vld [vmem:[%s8284_s16 + $0x8f8] sm:$0xff] }
 0x3e7   : > { %7096 = vmatpush1.bf16.msra.mxu1 %v7095_v17  ;;  %6842 = vmatprep.subr.bf16.mxu0 %v6841_v26  ;;  %v7111_v17 = vpack.c.bf16 %v2727_v7, %v2719_v38  ;;  %v2733_v26 = vld [vmem:[%s8284_s16 + $0x8a0] sm:$0xff]  ;;  %v7113_v30 = vpack.c.bf16 %v2744_v15, %v2736_v13  ;;  %v2798_v38 = vld [vmem:[%s8284_s16 + $0xaa8] sm:$0xff] }
 0x3e8   : > { %7098 = vmatprep.subr.bf16.mxu1 %v7097_v44  ;;  %v2743_v44 = vld [vmem:[%s8284_s16 + $0x8f0] sm:$0xff]  ;;  %v2806_v7 = vld [vmem:[%s8284_s16 + $0xae8] sm:$0xff] }
 0x3e9   : > { %v6873_v15 = vpack.c.bf16 %v2806_v7, %v2798_v38  ;;  %v2864_v38 = vld [vmem:[%s8284_s16 + $0xcb8] sm:$0xff] }
 0x3ea   : > { %6844 = vmatpush1.bf16.msra.mxu0 %v6843_v34  ;;  %v6859_v34 = vpack.c.bf16 %v2741_v19, %v2733_v26  ;;  %v2805_v26 = vld [vmem:[%s8284_s16 + $0xae0] sm:$0xff]  ;;  %v2799_v19 = vld [vmem:[%s8284_s16 + $0xab0] sm:$0xff]  ;;  %v2872_v7 = vld [vmem:[%s8284_s16 + $0xcf8] sm:$0xff] }
 0x3eb   : > { %7100 = vmatpush1.bf16.msra.mxu1 %v7099_v35  ;;  %6846 = vmatprep.subr.bf16.mxu0 %v6845_v39  ;;  %v7115_v35 = vpack.c.bf16 %v2743_v44, %v2735_v21  ;;  %v6861_v39 = vpack.c.bf16 %v2758_v29, %v2750_v28  ;;  %v7129_v21 = vpack.c.bf16 %v2808_v10, %v2800_v8  ;;  %v2814_v44 = vld [vmem:[%s8284_s16 + $0xb28] sm:$0xff]  ;;  %v2816_v29 = vld [vmem:[%s8284_s16 + $0xb38] sm:$0xff] }
 0x3ec   : > { %7102 = vmatprep.subr.bf16.mxu1 %v7101_v45  ;;  %v7117_v45 = vpack.c.bf16 %v2760_v32, %v2752_v31  ;;  %v2822_v28 = vld [vmem:[%s8284_s16 + $0xb68] sm:$0xff] }
 0x3ee   : > { %6848 = vmatpush1.bf16.msra.mxu0 %v6847_v53  ;;  %v6865_v53 = vpack.c.bf16 %v2774_v49, %v2766_v48  ;;  %v2832_v48 = vld [vmem:[%s8284_s16 + $0xbb8] sm:$0xff] }
 0x3ef   : > { %7104 = vmatpush1.bf16.msra.mxu1 %v7103_v54  ;;  %6850 = vmatprep.subr.bf16.mxu0 %v6849_v55  ;;  %v2765_v54 = vld [vmem:[%s8284_s16 + $0x9a0] sm:$0xff]  ;;  %v2840_v49 = vld [vmem:[%s8284_s16 + $0xbf8] sm:$0xff] }
 0x3f0   : > { %7106 = vmatprep.subr.bf16.mxu1 %v7105_v46  ;;  %v2773_v55 = vld [vmem:[%s8284_s16 + $0x9e0] sm:$0xff]  ;;  %v2782_v46 = vld [vmem:[%s8284_s16 + $0xa28] sm:$0xff] }
 0x3f1   : > { %v6867_v1 = vpack.c.bf16 %v2773_v55, %v2765_v54  ;;  %v2831_v54 = vld [vmem:[%s8284_s16 + $0xbb0] sm:$0xff]  ;;  %v7137_v55 = vpack.c.bf16 %v2840_v49, %v2832_v48 }
 0x3f2   : > { %6852 = vmatpush1.bf16.msra.mxu0 %v6851_v2  ;;  %v6869_v2 = vpack.c.bf16 %v2790_v62, %v2782_v46  ;;  %v2848_v46 = vld [vmem:[%s8284_s16 + $0xc38] sm:$0xff]  ;;  %v7139_v0 = vpack.c.bf16 %v2839_v58, %v2831_v54  ;;  %v2903_v54 = vld [vmem:[%s8284_s16 + $0xdf0] sm:$0xff]  ;;  %v2918_v58 = vld [vmem:[%s8284_s16 + $0xe68] sm:$0xff] }
 0x3f3   : > { %7108 = vmatpush1.bf16.msra.mxu1 %v7107_v3  ;;  %6854 = vmatprep.subr.bf16.mxu0 %v6853_v4  ;;  %v2781_v3 = vld [vmem:[%s8284_s16 + $0xa20] sm:$0xff]  ;;  %v2856_v62 = vld [vmem:[%s8284_s16 + $0xc78] sm:$0xff] }
 0x3f4   : > { %7110 = vmatprep.subr.bf16.mxu1 %v7109_v6  ;;  %v2789_v4 = vld [vmem:[%s8284_s16 + $0xa60] sm:$0xff]  ;;  %v2791_v6 = vld [vmem:[%s8284_s16 + $0xa70] sm:$0xff] }
 0x3f5   : > { %4114 = vmatmul.mubr.f32.vlgmr.msra.gmra.mrb[6].mxu0 %v9264_v47  ;;  %v7127_v13 = vpack.c.bf16 %v2791_v6, %v2783_v25  ;;  %v2855_v25 = vld [vmem:[%s8284_s16 + $0xc70] sm:$0xff]  ;;  %v2870_v6 = vld [vmem:[%s8284_s16 + $0xce8] sm:$0xff] }
 0x3f6   : > { %4398 = vmatmul.mubr.f32.vlgmr.msra.gmra.mrb[6].mxu1 %v9264_v47  ;;  %6856 = vmatpush1.bf16.msra.mxu0 %v6855_v11  ;;  %v2759_v47 = vld [vmem:[%s8284_s16 + $0x970] sm:$0xff]  ;;  %v6871_v11 = vpack.c.bf16 %v2789_v4, %v2781_v3  ;;  %v7141_v4 = vpack.c.bf16 %v2856_v62, %v2848_v46 }
 0x3f7   : > { %4184 = vmatprep.mubr.f32.mxu0 %v9272_v57  ;;  %7112 = vmatpush1.bf16.msra.mxu1 %v7111_v17  ;;  %v2797_v17 = vld [vmem:[%s8284_s16 + $0xaa0] sm:$0xff]  ;;  %v2847_v3 = vld [vmem:[%s8284_s16 + $0xc30] sm:$0xff] }
 0x3f8   : > { %4468 = vmatprep.mubr.f32.mxu1 %v9272_v57  ;;  %6858 = vmatprep.subr.bf16.mxu0 %v6857_v24  ;;  %v7119_v57 = vpack.c.bf16 %v2759_v47, %v2751_v42  ;;  %v2807_v24 = vld [vmem:[%s8284_s16 + $0xaf0] sm:$0xff]  ;;  %v6875_v31 = vpack.c.bf16 %v2805_v26, %v2797_v17  ;;  %v2838_v47 = vld [vmem:[%s8284_s16 + $0xbe8] sm:$0xff]  ;;  %v7143_v10 = vpack.c.bf16 %v2855_v25, %v2847_v3 }
 0x3f9   : > { %7114 = vmatprep.subr.bf16.mxu1 %v7113_v30  ;;  %v2824_v30 = vld [vmem:[%s8284_s16 + $0xb78] sm:$0xff]  ;;  %v7131_v32 = vpack.c.bf16 %v2807_v24, %v2799_v19  ;;  %v2823_v42 = vld [vmem:[%s8284_s16 + $0xb70] sm:$0xff]  ;;  %v7145_v26 = vpack.c.bf16 %v2872_v7, %v2864_v38  ;;  %v2886_v24 = vld [vmem:[%s8284_s16 + $0xd68] sm:$0xff] }
 0x3fa   : > { %6860 = vmatpush1.bf16.msra.mxu0 %v6859_v34  ;;  %v6877_v34 = vpack.c.bf16 %v2822_v28, %v2814_v44  ;;  %v7133_v41 = vpack.c.bf16 %v2824_v30, %v2816_v29  ;;  %v7135_v52 = vpack.c.bf16 %v2823_v42, %v2815_v40  ;;  %v2863_v17 = vld [vmem:[%s8284_s16 + $0xcb0] sm:$0xff]  ;;  %v2880_v44 = vld [vmem:[%s8284_s16 + $0xd38] sm:$0xff]  ;;  %v2902_v42 = vld [vmem:[%s8284_s16 + $0xde8] sm:$0xff] }
 0x3fb   : > { %7116 = vmatpush1.bf16.msra.mxu1 %v7115_v35  ;;  %6862 = vmatprep.subr.bf16.mxu0 %v6861_v39  ;;  %v2813_v35 = vld [vmem:[%s8284_s16 + $0xb20] sm:$0xff]  ;;  %v2871_v19 = vld [vmem:[%s8284_s16 + $0xcf0] sm:$0xff]  ;;  %v2888_v28 = vld [vmem:[%s8284_s16 + $0xd78] sm:$0xff] }
 0x3fc   : > { %7118 = vmatprep.subr.bf16.mxu1 %v7117_v45  ;;  %v2821_v39 = vld [vmem:[%s8284_s16 + $0xb60] sm:$0xff]  ;;  %v2830_v45 = vld [vmem:[%s8284_s16 + $0xba8] sm:$0xff]  ;;  %v7147_v30 = vpack.c.bf16 %v2871_v19, %v2863_v17  ;;  %v2887_v40 = vld [vmem:[%s8284_s16 + $0xd70] sm:$0xff] }
 0x3fd   : > { %v6879_v50 = vpack.c.bf16 %v2821_v39, %v2813_v35  ;;  %v2879_v35 = vld [vmem:[%s8284_s16 + $0xd30] sm:$0xff]  ;;  %v7149_v39 = vpack.c.bf16 %v2888_v28, %v2880_v44  ;;  %v2934_v25 = vld [vmem:[%s8284_s16 + $0xee8] sm:$0xff] }
 0x3fe   : > { %6864 = vmatpush1.bf16.msra.mxu0 %v6863_v33  ;;  %v6881_v33 = vpack.c.bf16 %v2838_v47, %v2830_v45  ;;  %v2896_v45 = vld [vmem:[%s8284_s16 + $0xdb8] sm:$0xff]  ;;  %v7151_v49 = vpack.c.bf16 %v2887_v40, %v2879_v35  ;;  %v2919_v3 = vld [vmem:[%s8284_s16 + $0xe70] sm:$0xff]  ;;  %v2950_v19 = vld [vmem:[%s8284_s16 + $0xf68] sm:$0xff] }
 0x3ff   : > { %7120 = vmatpush1.bf16.msra.mxu1 %v7119_v57  ;;  %6866 = vmatprep.subr.bf16.mxu0 %v6865_v53  ;;  %v2829_v57 = vld [vmem:[%s8284_s16 + $0xba0] sm:$0xff]  ;;  %v2904_v47 = vld [vmem:[%s8284_s16 + $0xdf8] sm:$0xff]  ;;  %v2935_v17 = vld [vmem:[%s8284_s16 + $0xef0] sm:$0xff] }
 0x400   : > { %7122 = vmatprep.subr.bf16.mxu1 %v7121_v59  ;;  %v2837_v53 = vld [vmem:[%s8284_s16 + $0xbe0] sm:$0xff]  ;;  %v2846_v59 = vld [vmem:[%s8284_s16 + $0xc28] sm:$0xff]  ;;  %v2951_v35 = vld [vmem:[%s8284_s16 + $0xf70] sm:$0xff] }
 0x401   : > { %v6883_v63 = vpack.c.bf16 %v2837_v53, %v2829_v57  ;;  %v2895_v57 = vld [vmem:[%s8284_s16 + $0xdb0] sm:$0xff]  ;;  %v7153_v53 = vpack.c.bf16 %v2904_v47, %v2896_v45  ;;  %v2966_v40 = vld [vmem:[%s8284_s16 + $0xfe8] sm:$0xff] }
 0x402   : > { %6868 = vmatpush1.bf16.msra.mxu0 %v6867_v1  ;;  %v6885_v1 = vpack.c.bf16 %v2854_v60, %v2846_v59  ;;  %v2912_v59 = vld [vmem:[%s8284_s16 + $0xe38] sm:$0xff]  ;;  %v7155_v62 = vpack.c.bf16 %v2903_v54, %v2895_v57  ;;  %v2967_v57 = vld [vmem:[%s8284_s16 + $0xff0] sm:$0xff]  ;;  %v2982_v54 = vld [vmem:[%s8284_s16 + $0x1068] sm:$0xff] }
 0x403   : > { %7124 = vmatpush1.bf16.msra.mxu1 %v7123_v56  ;;  %6870 = vmatprep.subr.bf16.mxu0 %v6869_v2  ;;  %v2845_v56 = vld [vmem:[%s8284_s16 + $0xc20] sm:$0xff]  ;;  %v2920_v60 = vld [vmem:[%s8284_s16 + $0xe78] sm:$0xff] }
 0x404   : > { %7126 = vmatprep.subr.bf16.mxu1 %v7125_v5  ;;  %v2853_v2 = vld [vmem:[%s8284_s16 + $0xc60] sm:$0xff]  ;;  %v2862_v5 = vld [vmem:[%s8284_s16 + $0xca8] sm:$0xff] }
 0x405   : > { %v6887_v8 = vpack.c.bf16 %v2853_v2, %v2845_v56  ;;  %v2911_v56 = vld [vmem:[%s8284_s16 + $0xe30] sm:$0xff]  ;;  %v7157_v2 = vpack.c.bf16 %v2920_v60, %v2912_v59 }
 0x406   : > { %6872 = vmatpush1.bf16.msra.mxu0 %v6871_v11  ;;  %v6889_v11 = vpack.c.bf16 %v2870_v6, %v2862_v5  ;;  %v2928_v5 = vld [vmem:[%s8284_s16 + $0xeb8] sm:$0xff]  ;;  %v7159_v7 = vpack.c.bf16 %v2919_v3, %v2911_v56  ;;  %v2983_v56 = vld [vmem:[%s8284_s16 + $0x1070] sm:$0xff]  ;;  %v2998_v3 = vld [vmem:[%s8284_s16 + $0x10e8] sm:$0xff] }
 0x407   : > { %7128 = vmatpush1.bf16.msra.mxu1 %v7127_v13  ;;  %6874 = vmatprep.subr.bf16.mxu0 %v6873_v15  ;;  %v2861_v13 = vld [vmem:[%s8284_s16 + $0xca0] sm:$0xff]  ;;  %v2936_v6 = vld [vmem:[%s8284_s16 + $0xef8] sm:$0xff] }
 0x408   : > { %7130 = vmatprep.subr.bf16.mxu1 %v7129_v21  ;;  %v2869_v15 = vld [vmem:[%s8284_s16 + $0xce0] sm:$0xff]  ;;  %v2878_v21 = vld [vmem:[%s8284_s16 + $0xd28] sm:$0xff] }
 0x409   : > { %v6891_v29 = vpack.c.bf16 %v2869_v15, %v2861_v13  ;;  %v2927_v13 = vld [vmem:[%s8284_s16 + $0xeb0] sm:$0xff]  ;;  %v7161_v15 = vpack.c.bf16 %v2936_v6, %v2928_v5  ;;  %v3000_v5 = vld [vmem:[%s8284_s16 + $0x10f8] sm:$0xff] }
 0x40a   : > { %6876 = vmatpush1.bf16.msra.mxu0 %v6875_v31  ;;  %v6893_v31 = vpack.c.bf16 %v2886_v24, %v2878_v21  ;;  %v2944_v21 = vld [vmem:[%s8284_s16 + $0xf38] sm:$0xff]  ;;  %v7163_v28 = vpack.c.bf16 %v2935_v17, %v2927_v13  ;;  %v3006_v13 = vld [vmem:[%s8284_s16 + $0x1128] sm:$0xff] }
 0x40b   : > { %7132 = vmatpush1.bf16.msra.mxu1 %v7131_v32  ;;  %6878 = vmatprep.subr.bf16.mxu0 %v6877_v34  ;;  %v2877_v32 = vld [vmem:[%s8284_s16 + $0xd20] sm:$0xff]  ;;  %v2952_v24 = vld [vmem:[%s8284_s16 + $0xf78] sm:$0xff] }
 0x40c   : > { %7134 = vmatprep.subr.bf16.mxu1 %v7133_v41  ;;  %v2885_v34 = vld [vmem:[%s8284_s16 + $0xd60] sm:$0xff]  ;;  %v2894_v41 = vld [vmem:[%s8284_s16 + $0xda8] sm:$0xff] }
 0x40d   : > { %v6895_v48 = vpack.c.bf16 %v2885_v34, %v2877_v32  ;;  %v2943_v32 = vld [vmem:[%s8284_s16 + $0xf30] sm:$0xff]  ;;  %v7165_v34 = vpack.c.bf16 %v2952_v24, %v2944_v21 }
 0x40e   : > { %6880 = vmatpush1.bf16.msra.mxu0 %v6879_v50  ;;  %v6897_v50 = vpack.c.bf16 %v2902_v42, %v2894_v41  ;;  %v2960_v41 = vld [vmem:[%s8284_s16 + $0xfb8] sm:$0xff]  ;;  %v7167_v47 = vpack.c.bf16 %v2951_v35, %v2943_v32  ;;  %v3022_v32 = vld [vmem:[%s8284_s16 + $0x11a8] sm:$0xff] }
 0x40f   : > { %7136 = vmatpush1.bf16.msra.mxu1 %v7135_v52  ;;  %6882 = vmatprep.subr.bf16.mxu0 %v6881_v33  ;;  %v2893_v52 = vld [vmem:[%s8284_s16 + $0xda0] sm:$0xff]  ;;  %v2968_v42 = vld [vmem:[%s8284_s16 + $0xff8] sm:$0xff] }
 0x410   : > { %7138 = vmatprep.subr.bf16.mxu1 %v7137_v55  ;;  %v2901_v33 = vld [vmem:[%s8284_s16 + $0xde0] sm:$0xff]  ;;  %v2910_v55 = vld [vmem:[%s8284_s16 + $0xe28] sm:$0xff]  ;;  %v3024_v35 = vld [vmem:[%s8284_s16 + $0x11b8] sm:$0xff] }
 0x411   : > { %v6899_v46 = vpack.c.bf16 %v2901_v33, %v2893_v52  ;;  %v2959_v52 = vld [vmem:[%s8284_s16 + $0xfb0] sm:$0xff]  ;;  %v7169_v33 = vpack.c.bf16 %v2968_v42, %v2960_v41  ;;  %v3021_v42 = vld [vmem:[%s8284_s16 + $0x11a0] sm:$0xff] }
 0x412   : > { %6884 = vmatpush1.bf16.msra.mxu0 %v6883_v63  ;;  %v6901_v63 = vpack.c.bf16 %v2918_v58, %v2910_v55  ;;  %v2976_v55 = vld [vmem:[%s8284_s16 + $0x1038] sm:$0xff]  ;;  %v7171_v60 = vpack.c.bf16 %v2967_v57, %v2959_v52  ;;  %v3046_v52 = vld [vmem:[%s8284_s16 + $0x1268] sm:$0xff] }
 0x413   : > { %7140 = vmatpush1.bf16.msra.mxu1 %v7139_v0  ;;  %6886 = vmatprep.subr.bf16.mxu0 %v6885_v1  ;;  %v2909_v0 = vld [vmem:[%s8284_s16 + $0xe20] sm:$0xff]  ;;  %v2984_v58 = vld [vmem:[%s8284_s16 + $0x1078] sm:$0xff] }
 0x414   : > { %7142 = vmatprep.subr.bf16.mxu1 %v7141_v4  ;;  %v2917_v1 = vld [vmem:[%s8284_s16 + $0xe60] sm:$0xff]  ;;  %v2926_v4 = vld [vmem:[%s8284_s16 + $0xea8] sm:$0xff]  ;;  %v3048_v57 = vld [vmem:[%s8284_s16 + $0x1278] sm:$0xff] }
 0x415   : > { %v6903_v38 = vpack.c.bf16 %v2917_v1, %v2909_v0  ;;  %v7173_v0 = vpack.c.bf16 %v2984_v58, %v2976_v55  ;;  %v2975_v1 = vld [vmem:[%s8284_s16 + $0x1030] sm:$0xff]  ;;  %v3037_v58 = vld [vmem:[%s8284_s16 + $0x1220] sm:$0xff] }
 0x416   : > { %6888 = vmatpush1.bf16.msra.mxu0 %v6887_v8  ;;  %v6905_v8 = vpack.c.bf16 %v2934_v25, %v2926_v4  ;;  %v2992_v25 = vld [vmem:[%s8284_s16 + $0x10b8] sm:$0xff]  ;;  %v7175_v6 = vpack.c.bf16 %v2983_v56, %v2975_v1 }
 0x417   : > { %7144 = vmatpush1.bf16.msra.mxu1 %v7143_v10  ;;  %6890 = vmatprep.subr.bf16.mxu0 %v6889_v11  ;;  %v2925_v10 = vld [vmem:[%s8284_s16 + $0xea0] sm:$0xff]  ;;  %v7177_v17 = vpack.c.bf16 %v3000_v5, %v2992_v25  ;;  %v3056_v1 = vld [vmem:[%s8284_s16 + $0x12b8] sm:$0xff] }
 0x418   : > { %7146 = vmatprep.subr.bf16.mxu1 %v7145_v26  ;;  %v2933_v11 = vld [vmem:[%s8284_s16 + $0xee0] sm:$0xff]  ;;  %v2942_v26 = vld [vmem:[%s8284_s16 + $0xf28] sm:$0xff]  ;;  %v3064_v56 = vld [vmem:[%s8284_s16 + $0x12f8] sm:$0xff] }
 0x419   : > { %v6907_v44 = vpack.c.bf16 %v2933_v11, %v2925_v10  ;;  %v2999_v11 = vld [vmem:[%s8284_s16 + $0x10f0] sm:$0xff]  ;;  %v3053_v25 = vld [vmem:[%s8284_s16 + $0x12a0] sm:$0xff] }
 0x41a   : > { %6892 = vmatpush1.bf16.msra.mxu0 %v6891_v29  ;;  %v6909_v29 = vpack.c.bf16 %v2950_v19, %v2942_v26  ;;  %v3008_v26 = vld [vmem:[%s8284_s16 + $0x1138] sm:$0xff]  ;;  %v3061_v5 = vld [vmem:[%s8284_s16 + $0x12e0] sm:$0xff] }
 0x41b   : > { %7148 = vmatpush1.bf16.msra.mxu1 %v7147_v30  ;;  %6894 = vmatprep.subr.bf16.mxu0 %v6893_v31  ;;  %v2941_v30 = vld [vmem:[%s8284_s16 + $0xf20] sm:$0xff]  ;;  %v3016_v19 = vld [vmem:[%s8284_s16 + $0x1178] sm:$0xff] }
 0x41c   : > { %7150 = vmatprep.subr.bf16.mxu1 %v7149_v39  ;;  %v2949_v31 = vld [vmem:[%s8284_s16 + $0xf60] sm:$0xff]  ;;  %v2958_v39 = vld [vmem:[%s8284_s16 + $0xfa8] sm:$0xff] }
 0x41d   : > { %v6911_v45 = vpack.c.bf16 %v2949_v31, %v2941_v30  ;;  %v3007_v30 = vld [vmem:[%s8284_s16 + $0x1130] sm:$0xff]  ;;  %v7181_v31 = vpack.c.bf16 %v3016_v19, %v3008_v26  ;;  %v3069_v19 = vld [vmem:[%s8284_s16 + $0x1320] sm:$0xff] }
 0x41e   : > { %6896 = vmatpush1.bf16.msra.mxu0 %v6895_v48  ;;  %v6913_v48 = vpack.c.bf16 %v2966_v40, %v2958_v39  ;;  %v3032_v39 = vld [vmem:[%s8284_s16 + $0x11f8] sm:$0xff] }
 0x41f   : > { %7152 = vmatpush1.bf16.msra.mxu1 %v7151_v49  ;;  %6898 = vmatprep.subr.bf16.mxu0 %v6897_v50  ;;  %v2957_v49 = vld [vmem:[%s8284_s16 + $0xfa0] sm:$0xff] }
 0x420   : > { %7154 = vmatprep.subr.bf16.mxu1 %v7153_v53  ;;  %v2965_v50 = vld [vmem:[%s8284_s16 + $0xfe0] sm:$0xff]  ;;  %v2974_v53 = vld [vmem:[%s8284_s16 + $0x1028] sm:$0xff] }
 0x421   : > { %v6915_v59 = vpack.c.bf16 %v2965_v50, %v2957_v49  ;;  %v3031_v49 = vld [vmem:[%s8284_s16 + $0x11f0] sm:$0xff]  ;;  %v3038_v50 = vld [vmem:[%s8284_s16 + $0x1228] sm:$0xff] }
 0x422   : > { %6900 = vmatpush1.bf16.msra.mxu0 %v6899_v46  ;;  %v6917_v46 = vpack.c.bf16 %v2982_v54, %v2974_v53  ;;  %v6933_v55 = vpack.c.bf16 %v3046_v52, %v3038_v50 }
 0x423   : > { %7156 = vmatpush1.bf16.msra.mxu1 %v7155_v62  ;;  %6902 = vmatprep.subr.bf16.mxu0 %v6901_v63  ;;  %v2973_v62 = vld [vmem:[%s8284_s16 + $0x1020] sm:$0xff] }
 0x424   : > { %7158 = vmatprep.subr.bf16.mxu1 %v7157_v2  ;;  %v2981_v63 = vld [vmem:[%s8284_s16 + $0x1060] sm:$0xff]  ;;  %v2990_v2 = vld [vmem:[%s8284_s16 + $0x10a8] sm:$0xff] }
 0x425   : > { %v6919_v4 = vpack.c.bf16 %v2981_v63, %v2973_v62  ;;  %v6921_v10 = vpack.c.bf16 %v2998_v3, %v2990_v2  ;;  %v3047_v62 = vld [vmem:[%s8284_s16 + $0x1270] sm:$0xff]  ;;  %v3054_v63 = vld [vmem:[%s8284_s16 + $0x12a8] sm:$0xff] }
 0x426   : > { %6904 = vmatpush1.bf16.msra.mxu0 %v6903_v38  ;;  %v2989_v38 = vld [vmem:[%s8284_s16 + $0x10a0] sm:$0xff] }
 0x427   : > { %7160 = vmatpush1.bf16.msra.mxu1 %v7159_v7  ;;  %6906 = vmatprep.subr.bf16.mxu0 %v6905_v8  ;;  %v2997_v7 = vld [vmem:[%s8284_s16 + $0x10e0] sm:$0xff]  ;;  %v2991_v8 = vld [vmem:[%s8284_s16 + $0x10b0] sm:$0xff] }
 0x428   : > { %7162 = vmatprep.subr.bf16.mxu1 %v7161_v15  ;;  %v3014_v15 = vld [vmem:[%s8284_s16 + $0x1168] sm:$0xff]  ;;  %v6923_v21 = vpack.c.bf16 %v2997_v7, %v2989_v38  ;;  %v7179_v24 = vpack.c.bf16 %v2999_v11, %v2991_v8  ;;  %v7193_v38 = vpack.c.bf16 %v3064_v56, %v3056_v1  ;;  %v3063_v7 = vld [vmem:[%s8284_s16 + $0x12f0] sm:$0xff]  ;;  %v3072_v11 = vld [vmem:[%s8284_s16 + $0x1338] sm:$0xff] }
 0x429   : > { %v3070_v8 = vld [vmem:[%s8284_s16 + $0x1328] sm:$0xff]  ;;  %v3117_v56 = vld [vmem:[%s8284_s16 + $0x14a0] sm:$0xff] }
 0x42a   : > { %6908 = vmatpush1.bf16.msra.mxu0 %v6907_v44  ;;  %v6925_v44 = vpack.c.bf16 %v3014_v15, %v3006_v13  ;;  %v3080_v13 = vld [vmem:[%s8284_s16 + $0x1378] sm:$0xff]  ;;  %v6939_v15 = vpack.c.bf16 %v3061_v5, %v3053_v25  ;;  %v3127_v25 = vld [vmem:[%s8284_s16 + $0x14f0] sm:$0xff]  ;;  %v3134_v5 = vld [vmem:[%s8284_s16 + $0x1528] sm:$0xff] }
 0x42b   : > { %7164 = vmatpush1.bf16.msra.mxu1 %v7163_v28  ;;  %6910 = vmatprep.subr.bf16.mxu0 %v6909_v29  ;;  %v3005_v28 = vld [vmem:[%s8284_s16 + $0x1120] sm:$0xff] }
 0x42c   : > { %7166 = vmatprep.subr.bf16.mxu1 %v7165_v34  ;;  %v3013_v29 = vld [vmem:[%s8284_s16 + $0x1160] sm:$0xff]  ;;  %v3030_v34 = vld [vmem:[%s8284_s16 + $0x11e8] sm:$0xff] }
 0x42d   : > { %v6927_v40 = vpack.c.bf16 %v3013_v29, %v3005_v28  ;;  %v6929_v41 = vpack.c.bf16 %v3030_v34, %v3022_v32  ;;  %v3079_v28 = vld [vmem:[%s8284_s16 + $0x1370] sm:$0xff]  ;;  %v3086_v29 = vld [vmem:[%s8284_s16 + $0x13a8] sm:$0xff] }
 0x42e   : > { %6912 = vmatpush1.bf16.msra.mxu0 %v6911_v45  ;;  %v3029_v45 = vld [vmem:[%s8284_s16 + $0x11e0] sm:$0xff] }
 0x42f   : > { %7168 = vmatpush1.bf16.msra.mxu1 %v7167_v47  ;;  %6914 = vmatprep.subr.bf16.mxu0 %v6913_v48  ;;  %v3023_v47 = vld [vmem:[%s8284_s16 + $0x11b0] sm:$0xff]  ;;  %v7185_v48 = vpack.c.bf16 %v3032_v39, %v3024_v35  ;;  %v6931_v53 = vpack.c.bf16 %v3029_v45, %v3021_v42  ;;  %v3085_v39 = vld [vmem:[%s8284_s16 + $0x13a0] sm:$0xff]  ;;  %v3102_v45 = vld [vmem:[%s8284_s16 + $0x1428] sm:$0xff] }
 0x430   : > { %7170 = vmatprep.subr.bf16.mxu1 %v7169_v33  ;;  %v3040_v33 = vld [vmem:[%s8284_s16 + $0x1238] sm:$0xff]  ;;  %v7187_v54 = vpack.c.bf16 %v3031_v49, %v3023_v47  ;;  %v3095_v42 = vld [vmem:[%s8284_s16 + $0x13f0] sm:$0xff]  ;;  %v3110_v47 = vld [vmem:[%s8284_s16 + $0x1468] sm:$0xff] }
 0x431   : > { %v3112_v49 = vld [vmem:[%s8284_s16 + $0x1478] sm:$0xff] }
 0x432   : > { %6916 = vmatpush1.bf16.msra.mxu0 %v6915_v59  ;;  %v3045_v59 = vld [vmem:[%s8284_s16 + $0x1260] sm:$0xff] }
 0x433   : > { %7172 = vmatpush1.bf16.msra.mxu1 %v7171_v60  ;;  %6918 = vmatprep.subr.bf16.mxu0 %v6917_v46  ;;  %v3039_v60 = vld [vmem:[%s8284_s16 + $0x1230] sm:$0xff]  ;;  %v7189_v46 = vpack.c.bf16 %v3048_v57, %v3040_v33  ;;  %v6935_v2 = vpack.c.bf16 %v3045_v59, %v3037_v58  ;;  %v6949_v33 = vpack.c.bf16 %v3110_v47, %v3102_v45  ;;  %v3101_v57 = vld [vmem:[%s8284_s16 + $0x1420] sm:$0xff]  ;;  %v3118_v59 = vld [vmem:[%s8284_s16 + $0x14a8] sm:$0xff] }
 0x434   : > { %7174 = vmatprep.subr.bf16.mxu1 %v7173_v0  ;;  %v3062_v0 = vld [vmem:[%s8284_s16 + $0x12e8] sm:$0xff]  ;;  %v7191_v3 = vpack.c.bf16 %v3047_v62, %v3039_v60  ;;  %v3111_v58 = vld [vmem:[%s8284_s16 + $0x1470] sm:$0xff]  ;;  %v3128_v62 = vld [vmem:[%s8284_s16 + $0x14f8] sm:$0xff] }
 0x435   : > { %4185 = vmatmul.mubr.f32.vlgmr.msra.gmra.mrb[6].mxu0 %v9405_v18  ;;  %v3126_v60 = vld [vmem:[%s8284_s16 + $0x14e8] sm:$0xff] }
 0x436   : > { %4469 = vmatmul.mubr.f32.vlgmr.msra.gmra.mrb[6].mxu1 %v9405_v18  ;;  %6920 = vmatpush1.bf16.msra.mxu0 %v6919_v4  ;;  %v3015_v18 = vld [vmem:[%s8284_s16 + $0x1170] sm:$0xff]  ;;  %v6937_v4 = vpack.c.bf16 %v3062_v0, %v3054_v63  ;;  %v6953_v1 = vpack.c.bf16 %v3126_v60, %v3118_v59 }
 0x437   : > { %4255 = vmatprep.mubr.f32.mxu0 %v9553_v9  ;;  %7176 = vmatpush1.bf16.msra.mxu1 %v7175_v6  ;;  %v3055_v6 = vld [vmem:[%s8284_s16 + $0x12b0] sm:$0xff] }
 0x438   : > { %4539 = vmatprep.mubr.f32.mxu1 %v9553_v9  ;;  %6922 = vmatprep.subr.bf16.mxu0 %v6921_v10  ;;  %v7183_v9 = vpack.c.bf16 %v3015_v18, %v3007_v30  ;;  %v3078_v10 = vld [vmem:[%s8284_s16 + $0x1368] sm:$0xff]  ;;  %v3096_v18 = vld [vmem:[%s8284_s16 + $0x13f8] sm:$0xff] }
 0x439   : > { %7178 = vmatprep.subr.bf16.mxu1 %v7177_v17  ;;  %v7195_v17 = vpack.c.bf16 %v3063_v7, %v3055_v6  ;;  %v6941_v26 = vpack.c.bf16 %v3078_v10, %v3070_v8  ;;  %v3094_v30 = vld [vmem:[%s8284_s16 + $0x13e8] sm:$0xff]  ;;  %v3144_v7 = vld [vmem:[%s8284_s16 + $0x1578] sm:$0xff] }
 0x43a   : > { %6924 = vmatpush1.bf16.msra.mxu0 %v6923_v21  ;;  %v3077_v21 = vld [vmem:[%s8284_s16 + $0x1360] sm:$0xff]  ;;  %v6945_v35 = vpack.c.bf16 %v3094_v30, %v3086_v29  ;;  %v3142_v6 = vld [vmem:[%s8284_s16 + $0x1568] sm:$0xff] }
 0x43b   : > { %7180 = vmatpush1.bf16.msra.mxu1 %v7179_v24  ;;  %6926 = vmatprep.subr.bf16.mxu0 %v6925_v44  ;;  %v3071_v24 = vld [vmem:[%s8284_s16 + $0x1330] sm:$0xff]  ;;  %v7197_v44 = vpack.c.bf16 %v3080_v13, %v3072_v11  ;;  %v6943_v32 = vpack.c.bf16 %v3077_v21, %v3069_v19  ;;  %v6957_v11 = vpack.c.bf16 %v3142_v6, %v3134_v5  ;;  %v3133_v13 = vld [vmem:[%s8284_s16 + $0x1520] sm:$0xff]  ;;  %v3150_v21 = vld [vmem:[%s8284_s16 + $0x15a8] sm:$0xff] }
 0x43c   : > { %7182 = vmatprep.subr.bf16.mxu1 %v7181_v31  ;;  %v3088_v31 = vld [vmem:[%s8284_s16 + $0x13b8] sm:$0xff]  ;;  %v7199_v34 = vpack.c.bf16 %v3079_v28, %v3071_v24  ;;  %v3143_v19 = vld [vmem:[%s8284_s16 + $0x1570] sm:$0xff]  ;;  %v3158_v24 = vld [vmem:[%s8284_s16 + $0x15e8] sm:$0xff] }
 0x43d   : > { %v3160_v28 = vld [vmem:[%s8284_s16 + $0x15f8] sm:$0xff] }
 0x43e   : > { %6928 = vmatpush1.bf16.msra.mxu0 %v6927_v40  ;;  %v3093_v40 = vld [vmem:[%s8284_s16 + $0x13e0] sm:$0xff] }
 0x43f   : > { %7184 = vmatpush1.bf16.msra.mxu1 %v7183_v9  ;;  %6930 = vmatprep.subr.bf16.mxu0 %v6929_v41  ;;  %v3087_v9 = vld [vmem:[%s8284_s16 + $0x13b0] sm:$0xff]  ;;  %v7201_v41 = vpack.c.bf16 %v3096_v18, %v3088_v31  ;;  %v6947_v50 = vpack.c.bf16 %v3093_v40, %v3085_v39  ;;  %v6961_v31 = vpack.c.bf16 %v3158_v24, %v3150_v21  ;;  %v3149_v18 = vld [vmem:[%s8284_s16 + $0x15a0] sm:$0xff]  ;;  %v3166_v40 = vld [vmem:[%s8284_s16 + $0x1628] sm:$0xff] }
 0x440   : > { %7186 = vmatprep.subr.bf16.mxu1 %v7185_v48  ;;  %v3104_v48 = vld [vmem:[%s8284_s16 + $0x1438] sm:$0xff]  ;;  %v7203_v52 = vpack.c.bf16 %v3095_v42, %v3087_v9  ;;  %v3159_v39 = vld [vmem:[%s8284_s16 + $0x15f0] sm:$0xff]  ;;  %v3174_v9 = vld [vmem:[%s8284_s16 + $0x1668] sm:$0xff] }
 0x441   : > { %v3176_v42 = vld [vmem:[%s8284_s16 + $0x1678] sm:$0xff] }
 0x442   : > { %6932 = vmatpush1.bf16.msra.mxu0 %v6931_v53  ;;  %v3109_v53 = vld [vmem:[%s8284_s16 + $0x1460] sm:$0xff] }
 0x443   : > { %7188 = vmatpush1.bf16.msra.mxu1 %v7187_v54  ;;  %6934 = vmatprep.subr.bf16.mxu0 %v6933_v55  ;;  %v3103_v54 = vld [vmem:[%s8284_s16 + $0x1430] sm:$0xff]  ;;  %v7205_v55 = vpack.c.bf16 %v3112_v49, %v3104_v48  ;;  %v6951_v63 = vpack.c.bf16 %v3109_v53, %v3101_v57  ;;  %v6965_v48 = vpack.c.bf16 %v3174_v9, %v3166_v40  ;;  %v3165_v49 = vld [vmem:[%s8284_s16 + $0x1620] sm:$0xff]  ;;  %v3182_v53 = vld [vmem:[%s8284_s16 + $0x16a8] sm:$0xff] }
 0x444   : > { %7190 = vmatprep.subr.bf16.mxu1 %v7189_v46  ;;  %v3120_v46 = vld [vmem:[%s8284_s16 + $0x14b8] sm:$0xff]  ;;  %v7207_v0 = vpack.c.bf16 %v3111_v58, %v3103_v54  ;;  %v3175_v57 = vld [vmem:[%s8284_s16 + $0x1670] sm:$0xff]  ;;  %v3190_v54 = vld [vmem:[%s8284_s16 + $0x16e8] sm:$0xff] }
 0x445   : > { %v3192_v58 = vld [vmem:[%s8284_s16 + $0x16f8] sm:$0xff] }
 0x446   : > { %6936 = vmatpush1.bf16.msra.mxu0 %v6935_v2  ;;  %v3125_v2 = vld [vmem:[%s8284_s16 + $0x14e0] sm:$0xff] }
 0x447   : > { %7192 = vmatpush1.bf16.msra.mxu1 %v7191_v3  ;;  %6938 = vmatprep.subr.bf16.mxu0 %v6937_v4  ;;  %v3119_v3 = vld [vmem:[%s8284_s16 + $0x14b0] sm:$0xff]  ;;  %v7209_v4 = vpack.c.bf16 %v3128_v62, %v3120_v46  ;;  %v6955_v8 = vpack.c.bf16 %v3125_v2, %v3117_v56  ;;  %v6969_v46 = vpack.c.bf16 %v3190_v54, %v3182_v53  ;;  %v3181_v62 = vld [vmem:[%s8284_s16 + $0x16a0] sm:$0xff]  ;;  %v3198_v2 = vld [vmem:[%s8284_s16 + $0x1728] sm:$0xff] }
 0x448   : > { %7194 = vmatprep.subr.bf16.mxu1 %v7193_v38  ;;  %v3136_v38 = vld [vmem:[%s8284_s16 + $0x1538] sm:$0xff]  ;;  %v7211_v10 = vpack.c.bf16 %v3127_v25, %v3119_v3  ;;  %v3191_v56 = vld [vmem:[%s8284_s16 + $0x16f0] sm:$0xff]  ;;  %v3206_v3 = vld [vmem:[%s8284_s16 + $0x1768] sm:$0xff] }
 0x449   : > { %v3208_v25 = vld [vmem:[%s8284_s16 + $0x1778] sm:$0xff] }
 0x44a   : > { %6940 = vmatpush1.bf16.msra.mxu0 %v6939_v15  ;;  %v3141_v15 = vld [vmem:[%s8284_s16 + $0x1560] sm:$0xff]  ;;  %v3256_v53 = vld [vmem:[%s8284_s16 + $0x18f8] sm:$0xff] }
 0x44b   : > { %7196 = vmatpush1.bf16.msra.mxu1 %v7195_v17  ;;  %6942 = vmatprep.subr.bf16.mxu0 %v6941_v26  ;;  %v3135_v17 = vld [vmem:[%s8284_s16 + $0x1530] sm:$0xff]  ;;  %v7213_v26 = vpack.c.bf16 %v3144_v7, %v3136_v38  ;;  %v6959_v29 = vpack.c.bf16 %v3141_v15, %v3133_v13  ;;  %v6973_v38 = vpack.c.bf16 %v3206_v3, %v3198_v2  ;;  %v3197_v7 = vld [vmem:[%s8284_s16 + $0x1720] sm:$0xff]  ;;  %v3214_v15 = vld [vmem:[%s8284_s16 + $0x17a8] sm:$0xff] }
 0x44c   : > { %7198 = vmatprep.subr.bf16.mxu1 %v7197_v44  ;;  %v3152_v44 = vld [vmem:[%s8284_s16 + $0x15b8] sm:$0xff]  ;;  %v7215_v30 = vpack.c.bf16 %v3143_v19, %v3135_v17  ;;  %v3207_v13 = vld [vmem:[%s8284_s16 + $0x1770] sm:$0xff]  ;;  %v3222_v17 = vld [vmem:[%s8284_s16 + $0x17e8] sm:$0xff] }
 0x44d   : > { %v3224_v19 = vld [vmem:[%s8284_s16 + $0x17f8] sm:$0xff] }
 0x44e   : > { %6944 = vmatpush1.bf16.msra.mxu0 %v6943_v32  ;;  %v3157_v32 = vld [vmem:[%s8284_s16 + $0x15e0] sm:$0xff] }
 0x44f   : > { %7200 = vmatpush1.bf16.msra.mxu1 %v7199_v34  ;;  %6946 = vmatprep.subr.bf16.mxu0 %v6945_v35  ;;  %v3151_v34 = vld [vmem:[%s8284_s16 + $0x15b0] sm:$0xff]  ;;  %v7217_v35 = vpack.c.bf16 %v3160_v28, %v3152_v44  ;;  %v6963_v45 = vpack.c.bf16 %v3157_v32, %v3149_v18  ;;  %v6977_v44 = vpack.c.bf16 %v3222_v17, %v3214_v15  ;;  %v3213_v28 = vld [vmem:[%s8284_s16 + $0x17a0] sm:$0xff]  ;;  %v3230_v32 = vld [vmem:[%s8284_s16 + $0x1828] sm:$0xff] }
 0x450   : > { %7202 = vmatprep.subr.bf16.mxu1 %v7201_v41  ;;  %v3168_v41 = vld [vmem:[%s8284_s16 + $0x1638] sm:$0xff]  ;;  %v7219_v47 = vpack.c.bf16 %v3159_v39, %v3151_v34  ;;  %v3223_v18 = vld [vmem:[%s8284_s16 + $0x17f0] sm:$0xff]  ;;  %v3238_v34 = vld [vmem:[%s8284_s16 + $0x1868] sm:$0xff] }
 0x451   : > { %v3240_v39 = vld [vmem:[%s8284_s16 + $0x1878] sm:$0xff]  ;;  %v3277_v17 = vld [vmem:[%s8284_s16 + $0x19a0] sm:$0xff] }
 0x452   : > { %6948 = vmatpush1.bf16.msra.mxu0 %v6947_v50  ;;  %v3173_v50 = vld [vmem:[%s8284_s16 + $0x1660] sm:$0xff] }
 0x453   : > { %7204 = vmatpush1.bf16.msra.mxu1 %v7203_v52  ;;  %6950 = vmatprep.subr.bf16.mxu0 %v6949_v33  ;;  %v3167_v52 = vld [vmem:[%s8284_s16 + $0x1630] sm:$0xff]  ;;  %v7221_v33 = vpack.c.bf16 %v3176_v42, %v3168_v41  ;;  %v6967_v59 = vpack.c.bf16 %v3173_v50, %v3165_v49  ;;  %v6981_v41 = vpack.c.bf16 %v3238_v34, %v3230_v32  ;;  %v3229_v42 = vld [vmem:[%s8284_s16 + $0x1820] sm:$0xff]  ;;  %v3246_v50 = vld [vmem:[%s8284_s16 + $0x18a8] sm:$0xff] }
 0x454   : > { %7206 = vmatprep.subr.bf16.mxu1 %v7205_v55  ;;  %v3184_v55 = vld [vmem:[%s8284_s16 + $0x16b8] sm:$0xff]  ;;  %v7223_v60 = vpack.c.bf16 %v3175_v57, %v3167_v52  ;;  %v3239_v49 = vld [vmem:[%s8284_s16 + $0x1870] sm:$0xff]  ;;  %v3254_v52 = vld [vmem:[%s8284_s16 + $0x18e8] sm:$0xff] }
 0x455   : > { %v3248_v57 = vld [vmem:[%s8284_s16 + $0x18b8] sm:$0xff]  ;;  %v3293_v34 = vld [vmem:[%s8284_s16 + $0x1a20] sm:$0xff] }
 0x456   : > { %6952 = vmatpush1.bf16.msra.mxu0 %v6951_v63  ;;  %v3189_v63 = vld [vmem:[%s8284_s16 + $0x16e0] sm:$0xff] }
 0x457   : > { %7208 = vmatpush1.bf16.msra.mxu1 %v7207_v0  ;;  %6954 = vmatprep.subr.bf16.mxu0 %v6953_v1  ;;  %v3183_v0 = vld [vmem:[%s8284_s16 + $0x16b0] sm:$0xff]  ;;  %v7225_v1 = vpack.c.bf16 %v3192_v58, %v3184_v55  ;;  %v6971_v5 = vpack.c.bf16 %v3189_v63, %v3181_v62  ;;  %v3245_v55 = vld [vmem:[%s8284_s16 + $0x18a0] sm:$0xff]  ;;  %v3262_v62 = vld [vmem:[%s8284_s16 + $0x1928] sm:$0xff] }
 0x458   : > { %7210 = vmatprep.subr.bf16.mxu1 %v7209_v4  ;;  %v3200_v4 = vld [vmem:[%s8284_s16 + $0x1738] sm:$0xff]  ;;  %v7227_v6 = vpack.c.bf16 %v3191_v56, %v3183_v0  ;;  %v3253_v58 = vld [vmem:[%s8284_s16 + $0x18e0] sm:$0xff]  ;;  %v3270_v63 = vld [vmem:[%s8284_s16 + $0x1968] sm:$0xff]  ;;  %v7241_v0 = vpack.c.bf16 %v3256_v53, %v3248_v57 }
 0x459   : > { %v3272_v56 = vld [vmem:[%s8284_s16 + $0x1978] sm:$0xff]  ;;  %v6987_v2 = vpack.c.bf16 %v3253_v58, %v3245_v55  ;;  %v3311_v57 = vld [vmem:[%s8284_s16 + $0x1ab0] sm:$0xff]  ;;  %v3326_v55 = vld [vmem:[%s8284_s16 + $0x1b28] sm:$0xff] }
 0x45a   : > { %6956 = vmatpush1.bf16.msra.mxu0 %v6955_v8  ;;  %v3205_v8 = vld [vmem:[%s8284_s16 + $0x1760] sm:$0xff]  ;;  %v3334_v58 = vld [vmem:[%s8284_s16 + $0x1b68] sm:$0xff] }
 0x45b   : > { %7212 = vmatpush1.bf16.msra.mxu1 %v7211_v10  ;;  %6958 = vmatprep.subr.bf16.mxu0 %v6957_v11  ;;  %v3199_v10 = vld [vmem:[%s8284_s16 + $0x1730] sm:$0xff]  ;;  %v7229_v11 = vpack.c.bf16 %v3208_v25, %v3200_v4  ;;  %v6975_v21 = vpack.c.bf16 %v3205_v8, %v3197_v7  ;;  %v6989_v4 = vpack.c.bf16 %v3270_v63, %v3262_v62  ;;  %v3261_v25 = vld [vmem:[%s8284_s16 + $0x1920] sm:$0xff]  ;;  %v3278_v7 = vld [vmem:[%s8284_s16 + $0x19a8] sm:$0xff] }
 0x45c   : > { %7214 = vmatprep.subr.bf16.mxu1 %v7213_v26  ;;  %v3216_v26 = vld [vmem:[%s8284_s16 + $0x17b8] sm:$0xff]  ;;  %v7231_v24 = vpack.c.bf16 %v3207_v13, %v3199_v10  ;;  %v3286_v8 = vld [vmem:[%s8284_s16 + $0x19e8] sm:$0xff]  ;;  %v2450_v63 = vld [vmem:[#allocation2 + $0x8] sm:$0xff] }
 0x45d   : > { %v3280_v10 = vld [vmem:[%s8284_s16 + $0x19b8] sm:$0xff]  ;;  %v6993_v15 = vpack.c.bf16 %v3286_v8, %v3278_v7  ;;  %v2451_v62 = vld [vmem:[#allocation2 + $0x10] sm:$0xff] }
 0x45e   : > { %6960 = vmatpush1.bf16.msra.mxu0 %v6959_v29  ;;  %v3221_v29 = vld [vmem:[%s8284_s16 + $0x17e0] sm:$0xff]  ;;  %v3342_v7 = vld [vmem:[%s8284_s16 + $0x1ba8] sm:$0xff] }
 0x45f   : > { %7216 = vmatpush1.bf16.msra.mxu1 %v7215_v30  ;;  %6962 = vmatprep.subr.bf16.mxu0 %v6961_v31  ;;  %v3215_v30 = vld [vmem:[%s8284_s16 + $0x17b0] sm:$0xff]  ;;  %v7233_v31 = vpack.c.bf16 %v3224_v19, %v3216_v26  ;;  %v6979_v40 = vpack.c.bf16 %v3221_v29, %v3213_v28  ;;  %v3285_v26 = vld [vmem:[%s8284_s16 + $0x19e0] sm:$0xff]  ;;  %v3302_v28 = vld [vmem:[%s8284_s16 + $0x1a68] sm:$0xff] }
 0x460   : > { %7218 = vmatprep.subr.bf16.mxu1 %v7217_v35  ;;  %v3232_v35 = vld [vmem:[%s8284_s16 + $0x1838] sm:$0xff]  ;;  %v7235_v9 = vpack.c.bf16 %v3223_v18, %v3215_v30  ;;  %v3279_v19 = vld [vmem:[%s8284_s16 + $0x19b0] sm:$0xff]  ;;  %v3350_v8 = vld [vmem:[%s8284_s16 + $0x1be8] sm:$0xff] }
 0x461   : > { %v3296_v29 = vld [vmem:[%s8284_s16 + $0x1a38] sm:$0xff] }
 0x462   : > { %6964 = vmatpush1.bf16.msra.mxu0 %v6963_v45  ;;  %v3237_v45 = vld [vmem:[%s8284_s16 + $0x1860] sm:$0xff]  ;;  %v3304_v30 = vld [vmem:[%s8284_s16 + $0x1a78] sm:$0xff] }
 0x463   : > { %7220 = vmatpush1.bf16.msra.mxu1 %v7219_v47  ;;  %6966 = vmatprep.subr.bf16.mxu0 %v6965_v48  ;;  %v7237_v47 = vpack.c.bf16 %v3240_v39, %v3232_v35  ;;  %v3231_v48 = vld [vmem:[%s8284_s16 + $0x1830] sm:$0xff]  ;;  %v3301_v35 = vld [vmem:[%s8284_s16 + $0x1a60] sm:$0xff] }
 0x464   : > { %7222 = vmatprep.subr.bf16.mxu1 %v7221_v33  ;;  %v6983_v33 = vpack.c.bf16 %v3237_v45, %v3229_v42  ;;  %v7239_v54 = vpack.c.bf16 %v3239_v49, %v3231_v48  ;;  %v3295_v39 = vld [vmem:[%s8284_s16 + $0x1a30] sm:$0xff]  ;;  %v3318_v42 = vld [vmem:[%s8284_s16 + $0x1ae8] sm:$0xff]  ;;  %v3312_v45 = vld [vmem:[%s8284_s16 + $0x1ab8] sm:$0xff]  ;;  %v6999_v48 = vpack.c.bf16 %v3301_v35, %v3293_v34 }
 0x465   : > { %v3366_v34 = vld [vmem:[%s8284_s16 + $0x1c68] sm:$0xff]  ;;  %v3360_v35 = vld [vmem:[%s8284_s16 + $0x1c38] sm:$0xff] }
 0x466   : > { %6968 = vmatpush1.bf16.msra.mxu0 %v6967_v59  ;;  %v3247_v59 = vld [vmem:[%s8284_s16 + $0x18b0] sm:$0xff] }
 0x467   : > { %7224 = vmatpush1.bf16.msra.mxu1 %v7223_v60  ;;  %6970 = vmatprep.subr.bf16.mxu0 %v6969_v46  ;;  %v6985_v60 = vpack.c.bf16 %v3254_v52, %v3246_v50  ;;  %v3255_v46 = vld [vmem:[%s8284_s16 + $0x18f0] sm:$0xff]  ;;  %v3309_v52 = vld [vmem:[%s8284_s16 + $0x1aa0] sm:$0xff] }
 0x468   : > { %7226 = vmatprep.subr.bf16.mxu1 %v7225_v1  ;;  %v3264_v1 = vld [vmem:[%s8284_s16 + $0x1938] sm:$0xff]  ;;  %v7243_v3 = vpack.c.bf16 %v3255_v46, %v3247_v59 }
 0x469   : > { %v2449_v59 = vld [vmem:[#allocation2] sm:$0xff] }
 0x46a   : > { %6972 = vmatpush1.bf16.msra.mxu0 %v6971_v5  ;;  %v3269_v5 = vld [vmem:[%s8284_s16 + $0x1960] sm:$0xff]  ;;  %v3336_v46 = vld [vmem:[%s8284_s16 + $0x1b78] sm:$0xff] }
 0x46b   : > { %7228 = vmatpush1.bf16.msra.mxu1 %v7227_v6  ;;  %6974 = vmatprep.subr.bf16.mxu0 %v6973_v38  ;;  %v3263_v6 = vld [vmem:[%s8284_s16 + $0x1930] sm:$0xff]  ;;  %v7245_v38 = vpack.c.bf16 %v3272_v56, %v3264_v1  ;;  %v6991_v13 = vpack.c.bf16 %v3269_v5, %v3261_v25 }
 0x46c   : > { %7230 = vmatprep.subr.bf16.mxu1 %v7229_v11  ;;  %v3288_v11 = vld [vmem:[%s8284_s16 + $0x19f8] sm:$0xff]  ;;  %v3327_v25 = vld [vmem:[%s8284_s16 + $0x1b30] sm:$0xff] }
 0x46e   : > { %6976 = vmatpush1.bf16.msra.mxu0 %v6975_v21  ;;  %v7249_v21 = vpack.c.bf16 %v3288_v11, %v3280_v10 }
 0x46f   : > { %7232 = vmatpush1.bf16.msra.mxu1 %v7231_v24  ;;  %6978 = vmatprep.subr.bf16.mxu0 %v6977_v44  ;;  %v3287_v24 = vld [vmem:[%s8284_s16 + $0x19f0] sm:$0xff]  ;;  %v3294_v44 = vld [vmem:[%s8284_s16 + $0x1a28] sm:$0xff] }
 0x470   : > { %7234 = vmatprep.subr.bf16.mxu1 %v7233_v31  ;;  %v6995_v31 = vpack.c.bf16 %v3285_v26, %v3277_v17  ;;  %v7251_v18 = vpack.c.bf16 %v3287_v24, %v3279_v19  ;;  %v6997_v32 = vpack.c.bf16 %v3302_v28, %v3294_v44  ;;  %v3352_v17 = vld [vmem:[%s8284_s16 + $0x1bf8] sm:$0xff]  ;;  %v7009_v44 = vpack.c.bf16 %v3350_v8, %v3342_v7  ;;  %v3341_v28 = vld [vmem:[%s8284_s16 + $0x1ba0] sm:$0xff]  ;;  %v3406_v7 = vld [vmem:[%s8284_s16 + $0x1da8] sm:$0xff] }
 0x471   : > { %v3414_v8 = vld [vmem:[%s8284_s16 + $0x1de8] sm:$0xff] }
 0x472   : > { %6980 = vmatpush1.bf16.msra.mxu0 %v6979_v40  ;;  %v7253_v40 = vpack.c.bf16 %v3304_v30, %v3296_v29  ;;  %v3349_v29 = vld [vmem:[%s8284_s16 + $0x1be0] sm:$0xff]  ;;  %v3343_v30 = vld [vmem:[%s8284_s16 + $0x1bb0] sm:$0xff] }
 0x473   : > { %7236 = vmatpush1.bf16.msra.mxu1 %v7235_v9  ;;  %6982 = vmatprep.subr.bf16.mxu0 %v6981_v41  ;;  %v3303_v9 = vld [vmem:[%s8284_s16 + $0x1a70] sm:$0xff]  ;;  %v3310_v41 = vld [vmem:[%s8284_s16 + $0x1aa8] sm:$0xff] }
 0x474   : > { %7238 = vmatprep.subr.bf16.mxu1 %v7237_v47  ;;  %v3320_v47 = vld [vmem:[%s8284_s16 + $0x1af8] sm:$0xff]  ;;  %v7255_v49 = vpack.c.bf16 %v3303_v9, %v3295_v39  ;;  %v7001_v50 = vpack.c.bf16 %v3318_v42, %v3310_v41  ;;  %v3357_v42 = vld [vmem:[%s8284_s16 + $0x1c20] sm:$0xff] }
 0x475   : > { %4256 = vmatmul.mubr.f32.vlgmr.msra.gmra.mrb[6].mxu0 %v9558_v14  ;;  %v7257_v53 = vpack.c.bf16 %v3320_v47, %v3312_v45  ;;  %v3368_v39 = vld [vmem:[%s8284_s16 + $0x1c78] sm:$0xff]  ;;  %v3365_v45 = vld [vmem:[%s8284_s16 + $0x1c60] sm:$0xff]  ;;  %v3359_v47 = vld [vmem:[%s8284_s16 + $0x1c30] sm:$0xff] }
 0x476   : > { %4540 = vmatmul.mubr.f32.vlgmr.msra.gmra.mrb[6].mxu1 %v9558_v14  ;;  %6984 = vmatpush1.bf16.msra.mxu0 %v6983_v33  ;;  %v3271_v14 = vld [vmem:[%s8284_s16 + $0x1970] sm:$0xff]  ;;  %v3317_v33 = vld [vmem:[%s8284_s16 + $0x1ae0] sm:$0xff] }
 0x477   : > { %4326 = vmatprep.mubr.f32.mxu0 %v9567_v22  ;;  %7240 = vmatpush1.bf16.msra.mxu1 %v7239_v54  ;;  %v3319_v54 = vld [vmem:[%s8284_s16 + $0x1af0] sm:$0xff]  ;;  %v7003_v1 = vpack.c.bf16 %v3317_v33, %v3309_v52  ;;  %v3382_v52 = vld [vmem:[%s8284_s16 + $0x1ce8] sm:$0xff]  ;;  %v3376_v33 = vld [vmem:[%s8284_s16 + $0x1cb8] sm:$0xff] }
 0x478   : > { %4610 = vmatprep.mubr.f32.mxu1 %v9567_v22  ;;  %6986 = vmatprep.subr.bf16.mxu0 %v6985_v60  ;;  %v7247_v22 = vpack.c.bf16 %v3271_v14, %v3263_v6  ;;  %v3328_v60 = vld [vmem:[%s8284_s16 + $0x1b38] sm:$0xff]  ;;  %v7259_v56 = vpack.c.bf16 %v3319_v54, %v3311_v57  ;;  %v3335_v14 = vld [vmem:[%s8284_s16 + $0x1b70] sm:$0xff] }
 0x479   : > { %7242 = vmatprep.subr.bf16.mxu1 %v7241_v0  ;;  %v2452_v0 = vld [vmem:[#allocation2 + $0x18] sm:$0xff]  ;;  %v7263_v24 = vpack.c.bf16 %v3335_v14, %v3327_v25  ;;  %v3384_v57 = vld [vmem:[%s8284_s16 + $0x1cf8] sm:$0xff]  ;;  %v3389_v25 = vld [vmem:[%s8284_s16 + $0x1d20] sm:$0xff] }
 0x47a   : > { %6988 = vmatpush1.bf16.msra.mxu0 %v6987_v2  ;;  %v7005_v2 = vpack.c.bf16 %v3334_v58, %v3326_v55  ;;  %v3373_v58 = vld [vmem:[%s8284_s16 + $0x1ca0] sm:$0xff]  ;;  %v3399_v14 = vld [vmem:[%s8284_s16 + $0x1d70] sm:$0xff] }
 0x47b   : > { %7244 = vmatpush1.bf16.msra.mxu1 %v7243_v3  ;;  %6990 = vmatprep.subr.bf16.mxu0 %v6989_v4  ;;  %v3325_v3 = vld [vmem:[%s8284_s16 + $0x1b20] sm:$0xff] }
 0x47c   : > { %7246 = vmatprep.subr.bf16.mxu1 %v7245_v38  ;;  %v3333_v4 = vld [vmem:[%s8284_s16 + $0x1b60] sm:$0xff]  ;;  %v7261_v38 = vpack.c.bf16 %v3336_v46, %v3328_v60  ;;  %v3375_v60 = vld [vmem:[%s8284_s16 + $0x1cb0] sm:$0xff]  ;;  %v7273_v46 = vpack.c.bf16 %v3384_v57, %v3376_v33 }
 0x47d   : > { %v3445_v33 = vld [vmem:[%s8284_s16 + $0x1ee0] sm:$0xff]  ;;  %v3439_v57 = vld [vmem:[%s8284_s16 + $0x1eb0] sm:$0xff] }
 0x47e   : > { %6992 = vmatpush1.bf16.msra.mxu0 %v6991_v13 }
 0x47f   : > { %7248 = vmatpush1.bf16.msra.mxu1 %v7247_v22  ;;  %6994 = vmatprep.subr.bf16.mxu0 %v6993_v15  ;;  %v3344_v15 = vld [vmem:[%s8284_s16 + $0x1bb8] sm:$0xff] }
 0x480   : > { %7250 = vmatprep.subr.bf16.mxu1 %v7249_v21  ;;  %v7007_v21 = vpack.c.bf16 %v3333_v4, %v3325_v3 }
 0x482   : > { %6996 = vmatpush1.bf16.msra.mxu0 %v6995_v31  ;;  %v7265_v31 = vpack.c.bf16 %v3352_v17, %v3344_v15  ;;  %v7025_v15 = vpack.c.bf16 %v3414_v8, %v3406_v7  ;;  %v3405_v17 = vld [vmem:[%s8284_s16 + $0x1da0] sm:$0xff] }
 0x483   : > { %7252 = vmatpush1.bf16.msra.mxu1 %v7251_v18  ;;  %6998 = vmatprep.subr.bf16.mxu0 %v6997_v32  ;;  %v3351_v18 = vld [vmem:[%s8284_s16 + $0x1bf0] sm:$0xff]  ;;  %v3358_v32 = vld [vmem:[%s8284_s16 + $0x1c28] sm:$0xff]  ;;  %v3469_v8 = vld [vmem:[%s8284_s16 + $0x1fa0] sm:$0xff] }
 0x484   : > { %7254 = vmatprep.subr.bf16.mxu1 %v7253_v40  ;;  %v7011_v40 = vpack.c.bf16 %v3349_v29, %v3341_v28  ;;  %v7267_v9 = vpack.c.bf16 %v3351_v18, %v3343_v30  ;;  %v7013_v41 = vpack.c.bf16 %v3366_v34, %v3358_v32  ;;  %v3430_v28 = vld [vmem:[%s8284_s16 + $0x1e68] sm:$0xff]  ;;  %v3424_v29 = vld [vmem:[%s8284_s16 + $0x1e38] sm:$0xff]  ;;  %v3421_v34 = vld [vmem:[%s8284_s16 + $0x1e20] sm:$0xff] }
 0x485   : > { %v3432_v30 = vld [vmem:[%s8284_s16 + $0x1e78] sm:$0xff] }
 0x486   : > { %7000 = vmatpush1.bf16.msra.mxu0 %v6999_v48  ;;  %v7269_v48 = vpack.c.bf16 %v3368_v39, %v3360_v35  ;;  %v3429_v35 = vld [vmem:[%s8284_s16 + $0x1e60] sm:$0xff]  ;;  %v3423_v39 = vld [vmem:[%s8284_s16 + $0x1e30] sm:$0xff] }
 0x487   : > { %7256 = vmatpush1.bf16.msra.mxu1 %v7255_v49  ;;  %7002 = vmatprep.subr.bf16.mxu0 %v7001_v50  ;;  %v3367_v49 = vld [vmem:[%s8284_s16 + $0x1c70] sm:$0xff]  ;;  %v3374_v50 = vld [vmem:[%s8284_s16 + $0x1ca8] sm:$0xff] }
 0x488   : > { %v3760_v5 = vpop.f32.mrb[4].mxu0  ;;  %v4044_v6 = vpop.f32.mrb[4].mxu1  ;;  %7258 = vmatprep.subr.bf16.mxu1 %v7257_v53  ;;  %v7015_v53 = vpack.c.bf16 %v3365_v45, %v3357_v42  ;;  %v7271_v54 = vpack.c.bf16 %v3367_v49, %v3359_v47  ;;  %v7017_v55 = vpack.c.bf16 %v3382_v52, %v3374_v50  ;;  %v3446_v42 = vld [vmem:[%s8284_s16 + $0x1ee8] sm:$0xff]  ;;  %v3440_v45 = vld [vmem:[%s8284_s16 + $0x1eb8] sm:$0xff]  ;;  %v3437_v52 = vld [vmem:[%s8284_s16 + $0x1ea0] sm:$0xff] }
 0x489   : > { %v4617_v10 = vadd.f32 %v3760_v5, %v2449_v59  ;;  %v4619_v11 = vadd.f32 %v4044_v6, %v2451_v62  ;;  %v3762_v13 = vpop.f32.mrb[5].mxu0  ;;  %v4046_v22 = vpop.f32.mrb[5].mxu1  ;;  %v3381_v59 = vld [vmem:[%s8284_s16 + $0x1ce0] sm:$0xff]  ;;  %v3383_v62 = vld [vmem:[%s8284_s16 + $0x1cf0] sm:$0xff]  ;;  %v3448_v47 = vld [vmem:[%s8284_s16 + $0x1ef8] sm:$0xff] }
 0x48a   : > { %v4618_v26 = vadd.f32 %v3762_v13, %v2450_v63  ;;  %v4620_v19 = vadd.f32 %v4046_v22, %v2452_v0  ;;  %7004 = vmatpush1.bf16.msra.mxu0 %v7003_v1  ;;  %v3390_v63 = vld [vmem:[%s8284_s16 + $0x1d28] sm:$0xff]  ;;  %v3392_v1 = vld [vmem:[%s8284_s16 + $0x1d38] sm:$0xff]  ;;  %v7275_v3 = vpack.c.bf16 %v3383_v62, %v3375_v60  ;;  %v3397_v5 = vld [vmem:[%s8284_s16 + $0x1d60] sm:$0xff] }
 0x48b   : > { %4625 = vst [vmem:[#allocation2] sm:$0xff] %v4617_v10  ;;  %4627 = vst [vmem:[#allocation2 + $0x10] sm:$0xff] %v4619_v11  ;;  %7260 = vmatpush1.bf16.msra.mxu1 %v7259_v56  ;;  %7006 = vmatprep.subr.bf16.mxu0 %v7005_v2  ;;  %v3398_v0 = vld [vmem:[%s8284_s16 + $0x1d68] sm:$0xff]  ;;  %v3400_v56 = vld [vmem:[%s8284_s16 + $0x1d78] sm:$0xff]  ;;  %v7019_v2 = vpack.c.bf16 %v3381_v59, %v3373_v58  ;;  %v7023_v13 = vpack.c.bf16 %v3397_v5, %v3389_v25 }
 0x48c   : > { %4626 = vst [vmem:[#allocation2 + $0x8] sm:$0xff] %v4618_v26  ;;  %4628 = vst [vmem:[#allocation2 + $0x18] sm:$0xff] %v4620_v19  ;;  %7262 = vmatprep.subr.bf16.mxu1 %v7261_v38  ;;  %v7021_v4 = vpack.c.bf16 %v3398_v0, %v3390_v63  ;;  %v3391_v6 = vld [vmem:[%s8284_s16 + $0x1d30] sm:$0xff]  ;;  %v7277_v38 = vpack.c.bf16 %v3400_v56, %v3392_v1  ;;  %v3408_v10 = vld [vmem:[%s8284_s16 + $0x1db8] sm:$0xff] }
 0x48d   : > { %v3416_v11 = vld [vmem:[%s8284_s16 + $0x1df8] sm:$0xff]  ;;  %v7279_v22 = vpack.c.bf16 %v3399_v14, %v3391_v6  ;;  %v3413_v26 = vld [vmem:[%s8284_s16 + $0x1de0] sm:$0xff]  ;;  %v3407_v19 = vld [vmem:[%s8284_s16 + $0x1db0] sm:$0xff] }
 0x48e   : > { %7008 = vmatpush1.bf16.msra.mxu0 %v7007_v21  ;;  %v7281_v21 = vpack.c.bf16 %v3416_v11, %v3408_v10  ;;  %v3462_v58 = vld [vmem:[%s8284_s16 + $0x1f68] sm:$0xff]  ;;  %v3456_v59 = vld [vmem:[%s8284_s16 + $0x1f38] sm:$0xff]  ;;  %v3453_v0 = vld [vmem:[%s8284_s16 + $0x1f20] sm:$0xff] }
 0x48f   : > { %7264 = vmatpush1.bf16.msra.mxu1 %v7263_v24  ;;  %7010 = vmatprep.subr.bf16.mxu0 %v7009_v44  ;;  %v3415_v24 = vld [vmem:[%s8284_s16 + $0x1df0] sm:$0xff]  ;;  %v3422_v44 = vld [vmem:[%s8284_s16 + $0x1e28] sm:$0xff]  ;;  %v3464_v60 = vld [vmem:[%s8284_s16 + $0x1f78] sm:$0xff] }
 0x490   : > { %7266 = vmatprep.subr.bf16.mxu1 %v7265_v31  ;;  %v7027_v31 = vpack.c.bf16 %v3413_v26, %v3405_v17  ;;  %v7283_v18 = vpack.c.bf16 %v3415_v24, %v3407_v19  ;;  %v7029_v32 = vpack.c.bf16 %v3430_v28, %v3422_v44  ;;  %v3461_v1 = vld [vmem:[%s8284_s16 + $0x1f60] sm:$0xff]  ;;  %v3455_v56 = vld [vmem:[%s8284_s16 + $0x1f30] sm:$0xff]  ;;  %v3478_v25 = vld [vmem:[%s8284_s16 + $0x1fe8] sm:$0xff] }
 0x491   : > { %v3472_v5 = vld [vmem:[%s8284_s16 + $0x1fb8] sm:$0xff]  ;;  %v3477_v10 = vld [vmem:[%s8284_s16 + $0x1fe0] sm:$0xff]  ;;  %v2455_v19 = vld [vmem:[#allocation2 + $0x30] sm:$0xff] }
 0x492   : > { %7012 = vmatpush1.bf16.msra.mxu0 %v7011_v40  ;;  %v7285_v40 = vpack.c.bf16 %v3432_v30, %v3424_v29  ;;  %v3480_v6 = vld [vmem:[%s8284_s16 + $0x1ff8] sm:$0xff]  ;;  %v2456_v44 = vld [vmem:[#allocation2 + $0x38] sm:$0xff] }
 0x493   : > { %7268 = vmatpush1.bf16.msra.mxu1 %v7267_v9  ;;  %7014 = vmatprep.subr.bf16.mxu0 %v7013_v41  ;;  %v3431_v9 = vld [vmem:[%s8284_s16 + $0x1e70] sm:$0xff]  ;;  %v3438_v41 = vld [vmem:[%s8284_s16 + $0x1ea8] sm:$0xff]  ;;  %v7297_v11 = vpack.c.bf16 %v3480_v6, %v3472_v5  ;;  %v2453_v26 = vld [vmem:[#allocation2 + $0x20] sm:$0xff] }
 0x494   : > { %7270 = vmatprep.subr.bf16.mxu1 %v7269_v48  ;;  %v7031_v48 = vpack.c.bf16 %v3429_v35, %v3421_v34  ;;  %v7287_v49 = vpack.c.bf16 %v3431_v9, %v3423_v39  ;;  %v7033_v50 = vpack.c.bf16 %v3446_v42, %v3438_v41  ;;  %v4760_v35 = vld [vmem:[#allocation12 + $0x88] sm:$0xff] (!%p5335_p6)  ;;  %v4743_v39 = vld [vmem:[#allocation12] sm:$0xff] (!%p5335_p6) }
 0x495   : > { %v4744_v9 = vld [vmem:[#allocation12 + $0x8] sm:$0xff] (!%p5335_p6)  ;;  %v4791_v41 = vld [vmem:[#allocation12 + $0x180] sm:$0xff] (!%p5335_p6) }
 0x496   : > { %7016 = vmatpush1.bf16.msra.mxu0 %v7015_v53  ;;  %v7289_v53 = vpack.c.bf16 %v3448_v47, %v3440_v45  ;;  %v4792_v42 = vld [vmem:[#allocation12 + $0x188] sm:$0xff] (!%p5335_p6)  ;;  %v7303_v45 = vpack.c.bf16 (!%p5335_p6), %v4744_v9, %v4743_v39  ;;  %v4779_v5 = vld [vmem:[#allocation12 + $0x120] sm:$0xff] (!%p5335_p6)  ;;  %v4770_v9 = vld [vmem:[#allocation12 + $0xd8] sm:$0xff] (!%p5335_p6) }
 0x497   : > { %7272 = vmatpush1.bf16.msra.mxu1 %v7271_v54  ;;  %7018 = vmatprep.subr.bf16.mxu0 %v7017_v55  ;;  %v3447_v54 = vld [vmem:[%s8284_s16 + $0x1ef0] sm:$0xff]  ;;  %v3454_v55 = vld [vmem:[%s8284_s16 + $0x1f28] sm:$0xff]  ;;  %v7333_v47 = vpack.c.bf16 (!%p5335_p6), %v4792_v42, %v4791_v41  ;;  %v4801_v41 = vld [vmem:[#allocation12 + $0x1d0] sm:$0xff] (!%p5335_p6) }
 0x498   : > { %7274 = vmatprep.subr.bf16.mxu1 %v7273_v46  ;;  %v7035_v46 = vpack.c.bf16 %v3445_v33, %v3437_v52  ;;  %v7291_v62 = vpack.c.bf16 %v3447_v54, %v3439_v57  ;;  %v7037_v63 = vpack.c.bf16 %v3462_v58, %v3454_v55  ;;  %v4762_v33 = vld [vmem:[#allocation12 + $0x98] sm:$0xff] (!%p5335_p6)  ;;  %v4745_v57 = vld [vmem:[#allocation12 + $0x10] sm:$0xff] (!%p5335_p6)  ;;  %v4780_v6 = vld [vmem:[#allocation12 + $0x128] sm:$0xff] (!%p5335_p6) }
 0x499   : > { %v4793_v58 = vld [vmem:[#allocation12 + $0x190] sm:$0xff] (!%p5335_p6)  ;;  %v4784_v39 = vld [vmem:[#allocation12 + $0x148] sm:$0xff] (!%p5335_p6)  ;;  %v4802_v42 = vld [vmem:[#allocation12 + $0x1d8] sm:$0xff] (!%p5335_p6) }
 0x49a   : > { %7020 = vmatpush1.bf16.msra.mxu0 %v7019_v2  ;;  %v7293_v2 = vpack.c.bf16 %v3464_v60, %v3456_v59  ;;  %v4794_v59 = vld [vmem:[#allocation12 + $0x198] sm:$0xff] (!%p5335_p6)  ;;  %v4777_v60 = vld [vmem:[#allocation12 + $0x110] sm:$0xff] (!%p5335_p6) }
 0x49b   : > { %7276 = vmatpush1.bf16.msra.mxu1 %v7275_v3  ;;  %7022 = vmatprep.subr.bf16.mxu0 %v7021_v4  ;;  %v3463_v3 = vld [vmem:[%s8284_s16 + $0x1f70] sm:$0xff]  ;;  %v3470_v4 = vld [vmem:[%s8284_s16 + $0x1fa8] sm:$0xff] }
 0x49c   : > { %7278 = vmatprep.subr.bf16.mxu1 %v7277_v38  ;;  %v7039_v38 = vpack.c.bf16 %v3461_v1, %v3453_v0  ;;  %v7295_v14 = vpack.c.bf16 %v3463_v3, %v3455_v56  ;;  %v7041_v7 = vpack.c.bf16 %v3478_v25, %v3470_v4  ;;  %v4764_v0 = vld [vmem:[#allocation12 + $0xa8] sm:$0xff] (!%p5335_p6)  ;;  %v4795_v4 = vld [vmem:[#allocation12 + $0x1a0] sm:$0xff] (!%p5335_p6) }
 0x49d   : > { %v4748_v3 = vld [vmem:[#allocation12 + $0x28] sm:$0xff] (!%p5335_p6) }
 0x49e   : > { %7024 = vmatpush1.bf16.msra.mxu0 %v7023_v13  ;;  %v3471_v13 = vld [vmem:[%s8284_s16 + $0x1fb0] sm:$0xff] }
 0x49f   : > { %7280 = vmatpush1.bf16.msra.mxu1 %v7279_v22  ;;  %7026 = vmatprep.subr.bf16.mxu0 %v7025_v15  ;;  %v3479_v22 = vld [vmem:[%s8284_s16 + $0x1ff0] sm:$0xff]  ;;  %v7043_v15 = vpack.c.bf16 %v3477_v10, %v3469_v8  ;;  %v4766_v8 = vld [vmem:[#allocation12 + $0xb8] sm:$0xff] (!%p5335_p6)  ;;  %v4749_v10 = vld [vmem:[#allocation12 + $0x30] sm:$0xff] (!%p5335_p6) }
 0x4a0   : > { %7282 = vmatprep.subr.bf16.mxu1 %v7281_v21  ;;  %v7299_v17 = vpack.c.bf16 %v3479_v22, %v3471_v13  ;;  %v2454_v21 = vld [vmem:[#allocation2 + $0x28] sm:$0xff]  ;;  %v4796_v25 = vld [vmem:[#allocation12 + $0x1a8] sm:$0xff] (!%p5335_p6) }
 0x4a1   : > { %v4750_v22 = vld [vmem:[#allocation12 + $0x38] sm:$0xff] (!%p5335_p6) }
 0x4a2   : > { %7028 = vmatpush1.bf16.msra.mxu0 %v7027_v31 }
 0x4a3   : > { %7284 = vmatpush1.bf16.msra.mxu1 %v7283_v18  ;;  %7030 = vmatprep.subr.bf16.mxu0 %v7029_v32 }
 0x4a4   : > { %7286 = vmatprep.subr.bf16.mxu1 %v7285_v40 }
 0x4a6   : > { %7032 = vmatpush1.bf16.msra.mxu0 %v7031_v48  ;;  %v4775_v48 = vld [vmem:[#allocation12 + $0x100] sm:$0xff] (!%p5335_p6) }
 0x4a7   : > { %7288 = vmatpush1.bf16.msra.mxu1 %v7287_v49  ;;  %7034 = vmatprep.subr.bf16.mxu0 %v7033_v50  ;;  %v4776_v49 = vld [vmem:[#allocation12 + $0x108] sm:$0xff] (!%p5335_p6)  ;;  %v4761_v50 = vld [vmem:[#allocation12 + $0x90] sm:$0xff] (!%p5335_p6) }
 0x4a8   : > { %7290 = vmatprep.subr.bf16.mxu1 %v7289_v53  ;;  %v7335_v52 = vpack.c.bf16 (!%p5335_p6), %v4776_v49, %v4775_v48  ;;  %v4746_v53 = vld [vmem:[#allocation12 + $0x18] sm:$0xff] (!%p5335_p6)  ;;  %v7305_v54 = vpack.c.bf16 (!%p5335_p6), %v4762_v33, %v4761_v50  ;;  %v4753_v49 = vld [vmem:[#allocation12 + $0x50] sm:$0xff] (!%p5335_p6)  ;;  %v7353_v33 = vpack.c.bf16 (!%p5335_p6), %v4802_v42, %v4801_v41 }
 0x4a9   : > { %v7307_v55 = vpack.c.bf16 (!%p5335_p6), %v4746_v53, %v4745_v57  ;;  %v4754_v50 = vld [vmem:[#allocation12 + $0x58] sm:$0xff] (!%p5335_p6)  ;;  %v4771_v53 = vld [vmem:[#allocation12 + $0xe0] sm:$0xff] (!%p5335_p6) }
 0x4aa   : > { %7036 = vmatpush1.bf16.msra.mxu0 %v7035_v46  ;;  %v7337_v46 = vpack.c.bf16 (!%p5335_p6), %v4794_v59, %v4793_v58  ;;  %v4786_v57 = vld [vmem:[#allocation12 + $0x158] sm:$0xff] (!%p5335_p6)  ;;  %v4804_v58 = vld [vmem:[#allocation12 + $0x1e8] sm:$0xff] (!%p5335_p6)  ;;  %v7323_v59 = vpack.c.bf16 (!%p5335_p6), %v4754_v50, %v4753_v49 }
 0x4ab   : > { %7292 = vmatpush1.bf16.msra.mxu1 %v7291_v62  ;;  %7038 = vmatprep.subr.bf16.mxu0 %v7037_v63  ;;  %v4778_v62 = vld [vmem:[#allocation12 + $0x118] sm:$0xff] (!%p5335_p6)  ;;  %v4763_v63 = vld [vmem:[#allocation12 + $0xa0] sm:$0xff] (!%p5335_p6) }
 0x4ac   : > { %7294 = vmatprep.subr.bf16.mxu1 %v7293_v2  ;;  %v7339_v1 = vpack.c.bf16 (!%p5335_p6), %v4778_v62, %v4777_v60  ;;  %v7309_v56 = vpack.c.bf16 (!%p5335_p6), %v4764_v0, %v4763_v63  ;;  %v4747_v2 = vld [vmem:[#allocation12 + $0x20] sm:$0xff] (!%p5335_p6) }
 0x4ad   : > { %v4755_v60 = vld [vmem:[#allocation12 + $0x60] sm:$0xff] (!%p5335_p6) }
 0x4ae   : > { %7040 = vmatpush1.bf16.msra.mxu0 %v7039_v38  ;;  %v7311_v38 = vpack.c.bf16 (!%p5335_p6), %v4748_v3, %v4747_v2  ;;  %v4787_v62 = vld [vmem:[#allocation12 + $0x160] sm:$0xff] (!%p5335_p6)  ;;  %v4774_v2 = vld [vmem:[#allocation12 + $0xf8] sm:$0xff] (!%p5335_p6) }
 0x4af   : > { %7296 = vmatpush1.bf16.msra.mxu1 %v7295_v14  ;;  %7042 = vmatprep.subr.bf16.mxu0 %v7041_v7  ;;  %v7341_v14 = vpack.c.bf16 (!%p5335_p6), %v4796_v25, %v4795_v4  ;;  %v4765_v7 = vld [vmem:[#allocation12 + $0xb0] sm:$0xff] (!%p5335_p6)  ;;  %v4638_v25 = vld [vmem:[#allocation2 + $0x8] sm:$0xff] (!%p5335_p6) }
 0x4b0   : > { %7298 = vmatprep.subr.bf16.mxu1 %v7297_v11  ;;  %v7343_v11 = vpack.c.bf16 (!%p5335_p6), %v4780_v6, %v4779_v5  ;;  %v7313_v13 = vpack.c.bf16 (!%p5335_p6), %v4766_v8, %v4765_v7  ;;  %v4805_v4 = vld [vmem:[#allocation12 + $0x1f0] sm:$0xff] (!%p5335_p6)  ;;  %v10217_v5 = vld [vmem:[#allocation11] sm:$0xff] (!%p5335_p6)  ;;  %v4640_v8 = vld [vmem:[#allocation2 + $0x18] sm:$0xff] (!%p5335_p6) }
 0x4b1   : > { %v4806_v6 = vld [vmem:[#allocation12 + $0x1f8] sm:$0xff] (!%p5335_p6)  ;;  %v4650_v7 = vrot.slane (!%p5335_p6), %v10217_v5, %v1223_v16  ;;  %v4639_v16 = vld [vmem:[#allocation2 + $0x10] sm:$0xff] (!%p5335_p6)  ;;  %v4670_v49 = vrot.slane (!%p5335_p6), %v10217_v5, %v1243_v36  ;;  %v4678_v50 = vrot.slane (!%p5335_p6), %v10217_v5, %v1251_v37  ;;  %v4674_v36 = vrot.slane (!%p5335_p6), %v10217_v5, %v1247_v43 }
 0x4b2   : > { %7044 = vmatpush1.bf16.msra.mxu0 %v7043_v15  ;;  %v4797_v15 = vld [vmem:[#allocation12 + $0x1b0] sm:$0xff] (!%p5335_p6) }
 0x4b3   : > { %7300 = vmatpush1.bf16.msra.mxu1 %v7299_v17  ;;  %v4798_v17 = vld [vmem:[#allocation12 + $0x1b8] sm:$0xff] (!%p5335_p6) }
 0x4b4   : > { %7334 = vmatprep.subr.bf16.mxu1 (!%p5335_p6), %v7333_v47 }
 0x4b5   : > { %4327 = vmatmul.mubr.f32.vlgmr.msra.gmra.mrb[6].mxu0 %v9699_v23 }
 0x4b6   : > { %4611 = vmatmul.mubr.f32.vlgmr.msra.gmra.mrb[6].mxu1 %v9699_v23  ;;  %v4759_v23 = vld [vmem:[#allocation12 + $0x80] sm:$0xff] (!%p5335_p6) }
 0x4b7   : > { %v7301_v40 = vpack.c.bf16 (!%p5335_p6), %v4760_v35, %v4759_v23  ;;  %7336 = vmatpush3.bf16.msra.mxu1 (!%p5335_p6), %v7335_v52  ;;  %v4783_v23 = vld [vmem:[#allocation12 + $0x140] sm:$0xff] (!%p5335_p6)  ;;  %v4785_v52 = vld [vmem:[#allocation12 + $0x150] sm:$0xff] (!%p5335_p6) }
 0x4b8   : > { %7338 = vmatprep.subr.bf16.mxu1 (!%p5335_p6), %v7337_v46  ;;  %v7351_v47 = vpack.c.bf16 (!%p5335_p6), %v4784_v39, %v4783_v23  ;;  %v4756_v46 = vld [vmem:[#allocation12 + $0x68] sm:$0xff] (!%p5335_p6)  ;;  %v7355_v63 = vpack.c.bf16 (!%p5335_p6), %v4786_v57, %v4785_v52 }
 0x4b9   : > { %7302 = vmatprep.subr.bf16.mxu0 (!%p5335_p6), %v7301_v40  ;;  %v4769_v40 = vld [vmem:[#allocation12 + $0xd0] sm:$0xff] (!%p5335_p6) }
 0x4ba   : > { %7304 = vmatpush3.bf16.msra.mxu0 (!%p5335_p6), %v7303_v45  ;;  %v7321_v48 = vpack.c.bf16 (!%p5335_p6), %v4770_v9, %v4769_v40 }
 0x4bb   : > { %7306 = vmatprep.subr.bf16.mxu0 (!%p5335_p6), %v7305_v54  ;;  %7340 = vmatpush3.bf16.msra.mxu1 (!%p5335_p6), %v7339_v1  ;;  %v4772_v54 = vld [vmem:[#allocation12 + $0xe8] sm:$0xff] (!%p5335_p6) }
 0x4bc   : > { %7342 = vmatprep.subr.bf16.mxu1 (!%p5335_p6), %v7341_v14  ;;  %v7325_v0 = vpack.c.bf16 (!%p5335_p6), %v4772_v54, %v4771_v53  ;;  %v4788_v1 = vld [vmem:[#allocation12 + $0x168] sm:$0xff] (!%p5335_p6)  ;;  %v4637_v14 = vld [vmem:[#allocation2] sm:$0xff] (!%p5335_p6)  ;;  %v4666_v53 = vrot.slane (!%p5335_p6), %v10217_v5, %v1239_v51 }
 0x4be   : > { %7308 = vmatpush3.bf16.msra.mxu0 (!%p5335_p6), %v7307_v55  ;;  %v4803_v55 = vld [vmem:[#allocation12 + $0x1e0] sm:$0xff] (!%p5335_p6) }
 0x4bf   : > { %7310 = vmatprep.subr.bf16.mxu0 (!%p5335_p6), %v7309_v56  ;;  %7344 = vmatpush3.bf16.msra.mxu1 (!%p5335_p6), %v7343_v11  ;;  %v4773_v56 = vld [vmem:[#allocation12 + $0xf0] sm:$0xff] (!%p5335_p6)  ;;  %v7357_v3 = vpack.c.bf16 (!%p5335_p6), %v4804_v58, %v4803_v55 }
 0x4c0   : > { %v4757_v11 = vld [vmem:[#allocation12 + $0x70] sm:$0xff] (!%p5335_p6) }
 0x4c2   : > { %7312 = vmatpush3.bf16.msra.mxu0 (!%p5335_p6), %v7311_v38  ;;  %v4654_v38 = vrot.slane (!%p5335_p6), %v10217_v5, %v1227_v27  ;;  %v7359_v27 = vpack.c.bf16 (!%p5335_p6), %v4788_v1, %v4787_v62  ;;  %v4808_v1 = vld [vmem:[#allocation12 + $0x208] sm:$0xff] (!%p5335_p6) }
 0x4c3   : > { %7314 = vmatprep.subr.bf16.mxu0 (!%p5335_p6), %v7313_v13  ;;  %v4662_v13 = vrot.slane (!%p5335_p6), %v10217_v5, %v1235_v20 }
 0x587   : > { %4636 = sbr.rel (%p5335_p6) target bundleno = 1702 (0x6a6), region = 84 }
 0x588   : > { %v4328_v24 = vpop.f32.mrb[6].mxu0 }
 0x589   : > { %v4621_v28 = vadd.f32 %v4328_v24, %v2453_v26  ;;  %v4612_v29 = vpop.f32.mrb[6].mxu1  ;;  %v4330_v30 = vpop.f32.mrb[7].mxu0  ;;  %v7345_v26 = vpack.c.bf16 (!%p5335_p6), %v4798_v17, %v4797_v15  ;;  %v4767_v24 = vld [vmem:[#allocation12 + $0xc0] sm:$0xff] (!%p5335_p6)  ;;  %v7329_v15 = vpack.c.bf16 (!%p5335_p6), %v4774_v2, %v4773_v56  ;;  %v4758_v17 = vld [vmem:[#allocation12 + $0x78] sm:$0xff] (!%p5335_p6)  ;;  %v4825_v56 = vld [vmem:[#allocation12 + $0x290] sm:$0xff] (!%p5335_p6) }
 0x58a   : > { %v4623_v31 = vadd.f32 %v4612_v29, %v2455_v19  ;;  %v4622_v18 = vadd.f32 %v4330_v30, %v2454_v21  ;;  %v4614_v32 = vpop.f32.mrb[7].mxu1  ;;  %v4781_v19 = vld [vmem:[#allocation12 + $0x130] sm:$0xff] (!%p5335_p6)  ;;  %v4782_v21 = vld [vmem:[#allocation12 + $0x138] sm:$0xff] (!%p5335_p6)  ;;  %v4799_v29 = vld [vmem:[#allocation12 + $0x1c0] sm:$0xff] (!%p5335_p6) }
 0x58b   : > { %4629 = vst [vmem:[#allocation2 + $0x20] sm:$0xff] %v4621_v28  ;;  %v4624_v34 = vadd.f32 %v4614_v32, %v2456_v44  ;;  %v4768_v44 = vld [vmem:[#allocation12 + $0xc8] sm:$0xff] (!%p5335_p6)  ;;  %v7315_v28 = vpack.c.bf16 (!%p5335_p6), %v4750_v22, %v4749_v10  ;;  %v4751_v32 = vld [vmem:[#allocation12 + $0x40] sm:$0xff] (!%p5335_p6)  ;;  %7346 = vmatprep.subr.bf16.mxu1 (!%p5335_p6), %v7345_v26  ;;  %v7327_v10 = vpack.c.bf16 (!%p5335_p6), %v4756_v46, %v4755_v60  ;;  %v4789_v26 = vld [vmem:[#allocation12 + $0x170] sm:$0xff] (!%p5335_p6) }
 0x58c   : > { %4631 = vst [vmem:[#allocation2 + $0x30] sm:$0xff] %v4623_v31  ;;  %4630 = vst [vmem:[#allocation2 + $0x28] sm:$0xff] %v4622_v18  ;;  %v4800_v30 = vld [vmem:[#allocation12 + $0x1c8] sm:$0xff] (!%p5335_p6)  ;;  %v7347_v31 = vpack.c.bf16 (!%p5335_p6), %v4782_v21, %v4781_v19  ;;  %v7317_v18 = vpack.c.bf16 (!%p5335_p6), %v4768_v44, %v4767_v24  ;;  %v4658_v22 = vrot.slane (!%p5335_p6), %v10217_v5, %v1231_v61  ;;  %v4790_v24 = vld [vmem:[#allocation12 + $0x178] sm:$0xff] (!%p5335_p6) }
 0x58d   : > { %4632 = vst [vmem:[#allocation2 + $0x38] sm:$0xff] %v4624_v34  ;;  %v4752_v34 = vld [vmem:[#allocation12 + $0x48] sm:$0xff] (!%p5335_p6)  ;;  %v7349_v35 = vpack.c.bf16 (!%p5335_p6), %v4800_v30, %v4799_v29  ;;  %7316 = vmatpush3.bf16.msra.mxu0 (!%p5335_p6), %v7315_v28  ;;  %v4688_v19 = vadd.f32 (!%p5335_p6), %v4654_v38, %v4638_v25  ;;  %v7361_v21 = vpack.c.bf16 (!%p5335_p6), %v4806_v6, %v4805_v4  ;;  %v4823_v28 = vld [vmem:[#allocation12 + $0x280] sm:$0xff] (!%p5335_p6)  ;;  %v4826_v2 = vld [vmem:[#allocation12 + $0x298] sm:$0xff] (!%p5335_p6) }
 0x58e   : > { %v7319_v45 = vpack.c.bf16 %v4752_v34, %v4751_v32  ;;  %7348 = vmatpush3.bf16.msra.mxu1 %v7347_v31  ;;  %7318 = vmatprep.subr.bf16.mxu0 %v7317_v18  ;;  %v4687_v44 = vadd.f32 %v4650_v7, %v4637_v14  ;;  %v4824_v29 = vld [vmem:[#allocation12 + $0x288] sm:$0xff]  ;;  %v4690_v30 = vadd.f32 %v4662_v13, %v4640_v8  ;;  %v4855_v31 = vld [vmem:[#allocation12 + $0x380] sm:$0xff]  ;;  %v4857_v38 = vld [vmem:[#allocation12 + $0x390] sm:$0xff] }
 0x58f   : > { %7350 = vmatprep.subr.bf16.mxu1 %v7349_v35  ;;  %v5337_v20 = vmul.f32 -1.442695, %v4688_v19  ;;  %v4856_v18 = vld [vmem:[#allocation12 + $0x388] sm:$0xff]  ;;  %v4689_v32 = vadd.f32 %v4658_v22, %v4639_v16  ;;  %v7331_v61 = vpack.c.bf16 %v4758_v17, %v4757_v11  ;;  %v7363_v23 = vpack.c.bf16 %v4790_v24, %v4789_v26  ;;  %v4839_v4 = vld [vmem:[#allocation12 + $0x300] sm:$0xff]  ;;  %v4809_v5 = vld [vmem:[#allocation12 + $0x210] sm:$0xff] }
 0x590   : > { %v5336_v34 = vmul.f32 -1.442695, %v4687_v44  ;;  %v7365_v35 = vpack.c.bf16 %v4824_v29, %v4823_v28  ;;  %v5339_v39 = vmul.f32 -1.442695, %v4690_v30  ;;  %v7397_v40 = vpack.c.bf16 %v4856_v18, %v4855_v31  ;;  %v4840_v25 = vld [vmem:[#allocation12 + $0x308] sm:$0xff]  ;;  %v4810_v7 = vld [vmem:[#allocation12 + $0x218] sm:$0xff] }
 0x591   : > { %7320 = vmatpush3.bf16.msra.mxu0 %v7319_v45  ;;  %7631 = vpow2.f32 %v5337_v20  ;;  %v5338_v9 = vmul.f32 -1.442695, %v4689_v32  ;;  %v7369_v43 = vpack.c.bf16 %v4826_v2, %v4825_v56  ;;  %v4827_v11 = vld [vmem:[#allocation12 + $0x2a0] sm:$0xff]  ;;  %v4828_v13 = vld [vmem:[#allocation12 + $0x2a8] sm:$0xff]  ;;  %v4841_v17 = vld [vmem:[#allocation12 + $0x310] sm:$0xff]  ;;  %v7371_v16 = vpack.c.bf16 %v4810_v7, %v4809_v5 }
 0x592   : > { %7352 = vmatpush3.bf16.msra.mxu1 %v7351_v47  ;;  %7322 = vmatprep.subr.bf16.mxu0 %v7321_v48  ;;  %7633 = vpow2.f32 %v5336_v34  ;;  %v4641_v58 = vld [vmem:[#allocation2 + $0x20] sm:$0xff]  ;;  %v4842_v26 = vld [vmem:[#allocation12 + $0x318] sm:$0xff]  ;;  %v4860_v24 = vld [vmem:[#allocation12 + $0x3a8] sm:$0xff]  ;;  %v7373_v44 = vpack.c.bf16 %v4828_v13, %v4827_v11 }
 0x593   : > { %7354 = vmatprep.subr.bf16.mxu1 %v7353_v33  ;;  %7635 = vpow2.f32 %v5339_v39  ;;  %v4642_v54 = vld [vmem:[#allocation2 + $0x28] sm:$0xff]  ;;  %v4643_v37 = vld [vmem:[#allocation2 + $0x30] sm:$0xff]  ;;  %v4812_v29 = vld [vmem:[#allocation12 + $0x228] sm:$0xff]  ;;  %v7403_v30 = vpack.c.bf16 %v4842_v26, %v4841_v17 }
 0x594   : > { %7637 = vpow2.f32 %v5338_v9  ;;  %v4644_v55 = vld [vmem:[#allocation2 + $0x38] sm:$0xff]  ;;  %v4811_v28 = vld [vmem:[#allocation12 + $0x220] sm:$0xff]  ;;  %v4829_v20 = vld [vmem:[#allocation12 + $0x2b0] sm:$0xff] }
 0x595   : > { %7324 = vmatpush3.bf16.msra.mxu0 %v7323_v59  ;;  %v4692_v59 = vadd.f32 %v4670_v49, %v4642_v54  ;;  %v4694_v60 = vadd.f32 %v4678_v50, %v4644_v55  ;;  %v4830_v31 = vld [vmem:[#allocation12 + $0x2b8] sm:$0xff]  ;;  %v4843_v32 = vld [vmem:[#allocation12 + $0x320] sm:$0xff]  ;;  %v4832_v49 = vld [vmem:[#allocation12 + $0x2c8] sm:$0xff] }
 0x596   : > { %7356 = vmatpush3.bf16.msra.mxu1 %v7355_v63  ;;  %7326 = vmatprep.subr.bf16.mxu0 %v7325_v0  ;;  %v4691_v63 = vadd.f32 %v4666_v53, %v4641_v58  ;;  %v4807_v0 = vld [vmem:[#allocation12 + $0x200] sm:$0xff]  ;;  %v4862_v39 = vld [vmem:[#allocation12 + $0x3b8] sm:$0xff]  ;;  %v7377_v9 = vpack.c.bf16 %v4830_v31, %v4829_v20  ;;  %v4864_v55 = vld [vmem:[#allocation12 + $0x3c8] sm:$0xff] }
 0x597   : > { %7358 = vmatprep.subr.bf16.mxu1 %v7357_v3  ;;  %v5341_v46 = vmul.f32 -1.442695, %v4692_v59  ;;  %v5343_v62 = vmul.f32 -1.442695, %v4694_v60  ;;  %v4693_v3 = vadd.f32 %v4674_v36, %v4643_v37  ;;  %v7367_v6 = vpack.c.bf16 %v4808_v1, %v4807_v0  ;;  %v4863_v54 = vld [vmem:[#allocation12 + $0x3c0] sm:$0xff]  ;;  %v4816_v60 = vld [vmem:[#allocation12 + $0x248] sm:$0xff] }
 0x598   : > { %v5340_v14 = vmul.f32 -1.442695, %v4691_v63  ;;  %v4815_v59 = vld [vmem:[#allocation12 + $0x240] sm:$0xff]  ;;  %v4833_v37 = vld [vmem:[#allocation12 + $0x2d0] sm:$0xff]  ;;  %v7413_v63 = vpack.c.bf16 %v4864_v55, %v4863_v54  ;;  %v4848_v1 = vld [vmem:[#allocation12 + $0x348] sm:$0xff] }
 0x599   : > { %7328 = vmatpush3.bf16.msra.mxu0 %v7327_v10  ;;  %v7399_v10 = vpack.c.bf16 %v4840_v25, %v4839_v4  ;;  %v4847_v0 = vld [vmem:[#allocation12 + $0x340] sm:$0xff]  ;;  %v7383_v56 = vpack.c.bf16 %v4816_v60, %v4815_v59  ;;  %v4865_v2 = vld [vmem:[#allocation12 + $0x3d0] sm:$0xff]  ;;  %v4868_v13 = vld [vmem:[#allocation12 + $0x3e8] sm:$0xff] }
 0x59a   : > { %7360 = vmatpush3.bf16.msra.mxu1 %v7359_v27  ;;  %7330 = vmatprep.subr.bf16.mxu0 %v7329_v15  ;;  %v5342_v27 = vmul.f32 -1.442695, %v4693_v3  ;;  %v7401_v15 = vpack.c.bf16 %v4858_v12, %v4857_v38  ;;  %v4817_v25 = vld [vmem:[#allocation12 + $0x250] sm:$0xff]  ;;  %v7415_v38 = vpack.c.bf16 %v4848_v1, %v4847_v0  ;;  %v4835_v12 = vld [vmem:[#allocation12 + $0x2e0] sm:$0xff]  ;;  %v4820_v26 = vld [vmem:[#allocation12 + $0x268] sm:$0xff] }
 0x59b   : > { %7362 = vmatprep.subr.bf16.mxu1 %v7361_v21  ;;  %v7632_v41 = vpop.eup %7631  ;;  %v4859_v21 = vld [vmem:[#allocation12 + $0x3a0] sm:$0xff]  ;;  %v4849_v7 = vld [vmem:[#allocation12 + $0x350] sm:$0xff]  ;;  %v4870_v31 = vld [vmem:[#allocation12 + $0x3f8] sm:$0xff] }
 0x59c   : > { %v4720_v42 = vadd.f32 1.0, %v7632_v41  ;;  %v7634_v45 = vpop.eup %7633  ;;  %v7405_v18 = vpack.c.bf16 %v4860_v24, %v4859_v21  ;;  %v4813_v41 = vld [vmem:[#allocation12 + $0x230] sm:$0xff]  ;;  %v4867_v11 = vld [vmem:[#allocation12 + $0x3e0] sm:$0xff]  ;;  %v4838_v24 = vld [vmem:[#allocation12 + $0x2f8] sm:$0xff] }
 0x59d   : > { %7332 = vmatpush3.bf16.msra.mxu0 %v7331_v61  ;;  %v7636_v47 = vpop.eup %7635  ;;  %v4719_v48 = vadd.f32 1.0, %v7634_v45  ;;  %v4844_v61 = vld [vmem:[#allocation12 + $0x328] sm:$0xff]  ;;  %v4819_v17 = vld [vmem:[#allocation12 + $0x260] sm:$0xff]  ;;  %v4837_v21 = vld [vmem:[#allocation12 + $0x2f0] sm:$0xff] }
 0x59e   : > { %7364 = vmatpush3.bf16.msra.mxu1 %v7363_v23  ;;  %7366 = vmatprep.subr.bf16.mxu0 %v7365_v35  ;;  %7639 = vrcp.f32 %v4720_v42  ;;  %v7638_v52 = vpop.eup %7637  ;;  %v4722_v33 = vadd.f32 1.0, %v7636_v47  ;;  %v7375_v23 = vpack.c.bf16 %v4812_v29, %v4811_v28  ;;  %v4861_v35 = vld [vmem:[#allocation12 + $0x3b0] sm:$0xff]  ;;  %v4814_v42 = vld [vmem:[#allocation12 + $0x238] sm:$0xff]  ;;  %v7407_v47 = vpack.c.bf16 %v4844_v61, %v4843_v32  ;;  %v4851_v28 = vld [vmem:[#allocation12 + $0x360] sm:$0xff] }
 0x59f   : > { %7398 = vmatprep.subr.bf16.mxu1 %v7397_v40  ;;  %7641 = vrcp.f32 %v4719_v48  ;;  %v4721_v57 = vadd.f32 1.0, %v7638_v52  ;;  %v4831_v48 = vld [vmem:[#allocation12 + $0x2c0] sm:$0xff]  ;;  %v7409_v52 = vpack.c.bf16 %v4862_v39, %v4861_v35  ;;  %v7379_v53 = vpack.c.bf16 %v4814_v42, %v4813_v41  ;;  %v4852_v29 = vld [vmem:[#allocation12 + $0x368] sm:$0xff]  ;;  %v4869_v20 = vld [vmem:[#allocation12 + $0x3f0] sm:$0xff] }
 0x5a0   : > { %7643 = vrcp.f32 %v4722_v33  ;;  %v4845_v33 = vld [vmem:[#allocation12 + $0x330] sm:$0xff]  ;;  %v7381_v58 = vpack.c.bf16 %v4832_v49, %v4831_v48  ;;  %v4822_v61 = vld [vmem:[#allocation12 + $0x278] sm:$0xff] }
 0x5a1   : > { %7645 = vrcp.f32 %v4721_v57  ;;  %v4846_v57 = vld [vmem:[#allocation12 + $0x338] sm:$0xff]  ;;  %v4821_v32 = vld [vmem:[#allocation12 + $0x270] sm:$0xff] }
 0x5a2   : > { %7647 = vpow2.f32 %v5341_v46  ;;  %v7411_v36 = vpack.c.bf16 %v4846_v57, %v4845_v33  ;;  %v4834_v46 = vld [vmem:[#allocation12 + $0x2d8] sm:$0xff]  ;;  %v4853_v35 = vld [vmem:[#allocation12 + $0x370] sm:$0xff] }
 0x5a3   : > { %7649 = vpow2.f32 %v5343_v62  ;;  %v7385_v4 = vpack.c.bf16 %v4834_v46, %v4833_v37  ;;  %v4854_v39 = vld [vmem:[#allocation12 + $0x378] sm:$0xff] }
 0x5a4   : > { %7651 = vpow2.f32 %v5340_v14  ;;  %v4836_v14 = vld [vmem:[#allocation12 + $0x2e8] sm:$0xff] }
 0x5a5   : > { %7653 = vpow2.f32 %v5342_v27 }
 0x5a8   : > { %v7640_v51 = vpop.eup %7639 }
 0x5a9   : > { %4942 = vmatprep.mubr.f32.mxu0 %v7640_v51  ;;  %v7642_v8 = vpop.eup %7641  ;;  %v4866_v51 = vld [vmem:[#allocation12 + $0x3d8] sm:$0xff] }
 0x5aa   : > { %v7644_v22 = vpop.eup %7643  ;;  %4943 = vmatmul.mubr.f32.vlgmr.msra.gmra.mrb[0].mxu0 %v7642_v8  ;;  %v7417_v5 = vpack.c.bf16 %v4866_v51, %v4865_v2  ;;  %v4850_v8 = vld [vmem:[#allocation12 + $0x358] sm:$0xff] }
 0x5ab   : > { %v7646_v19 = vpop.eup %7645  ;;  %5012 = vmatprep.mubr.f32.mxu1 %v7644_v22  ;;  %7368 = vmatpush3.bf16.msra.mxu0 %v7367_v6  ;;  %v4818_v6 = vld [vmem:[#allocation12 + $0x258] sm:$0xff] }
 0x5ac   : > { %5013 = vmatmul.mubr.f32.vlgmr.msra.gmra.mrb[0].mxu1 %v7646_v19  ;;  %7370 = vmatprep.subr.bf16.mxu0 %v7369_v43  ;;  %v7648_v34 = vpop.eup %7647 }
 0x5ad   : > { %7400 = vmatpush3.bf16.msra.mxu1 %v7399_v10  ;;  %v7650_v40 = vpop.eup %7649  ;;  %v4724_v45 = vadd.f32 1.0, %v7648_v34  ;;  %v7387_v10 = vpack.c.bf16 %v4818_v6, %v4817_v25  ;;  %v7423_v34 = vpack.c.bf16 %v4852_v29, %v4851_v28 }
 0x5ae   : > { %7402 = vmatprep.subr.bf16.mxu1 %v7401_v15  ;;  %v4726_v50 = vadd.f32 1.0, %v7650_v40  ;;  %v7652_v62 = vpop.eup %7651  ;;  %v7389_v15 = vpack.c.bf16 %v4836_v14, %v4835_v12  ;;  %v7395_v40 = vpack.c.bf16 %v4822_v61, %v4821_v32 }
 0x5af   : > { %7372 = vmatpush3.bf16.msra.mxu0 %v7371_v16  ;;  %7655 = vrcp.f32 %v4724_v45  ;;  %v7654_v3 = vpop.eup %7653  ;;  %v4723_v43 = vadd.f32 1.0, %v7652_v62  ;;  %v7419_v16 = vpack.c.bf16 %v4850_v8, %v4849_v7 }
 0x5b0   : > { %7374 = vmatprep.subr.bf16.mxu0 %v7373_v44  ;;  %7657 = vrcp.f32 %v4726_v50  ;;  %v4725_v22 = vadd.f32 1.0, %v7654_v3  ;;  %v7421_v44 = vpack.c.bf16 %v4868_v13, %v4867_v11 }
 0x5b1   : > { %7404 = vmatpush3.bf16.msra.mxu1 %v7403_v30  ;;  %7659 = vrcp.f32 %v4723_v43  ;;  %v7391_v30 = vpack.c.bf16 %v4820_v26, %v4819_v17 }
 0x5b2   : > { %7406 = vmatprep.subr.bf16.mxu1 %v7405_v18  ;;  %7661 = vrcp.f32 %v4725_v22  ;;  %v7393_v18 = vpack.c.bf16 %v4838_v24, %v4837_v21 }
 0x5b3   : > { %7376 = vmatpush3.bf16.msra.mxu0 %v7375_v23  ;;  %v7425_v23 = vpack.c.bf16 %v4870_v31, %v4869_v20 }
 0x5b4   : > { %7378 = vmatprep.subr.bf16.mxu0 %v7377_v9  ;;  %v7427_v9 = vpack.c.bf16 %v4854_v39, %v4853_v35 }
 0x5b5   : > { %7408 = vmatpush3.bf16.msra.mxu1 %v7407_v47  ;;  %v5344_v47 = vld [vmem:[#allocation14] ss:$0 sm:$0xff] }
 0x5b6   : > { %7410 = vmatprep.subr.bf16.mxu1 %v7409_v52 }
 0x5b7   : > { %7380 = vmatpush3.bf16.msra.mxu0 %v7379_v53 }
 0x5b8   : > { %7382 = vmatprep.subr.bf16.mxu0 %v7381_v58 }
 0x5b9   : > { %7412 = vmatpush3.bf16.msra.mxu1 %v7411_v36  ;;  %v7656_v27 = vpop.eup %7655 }
 0x5ba   : > { %7414 = vmatprep.subr.bf16.mxu1 %v7413_v63  ;;  %v7658_v19 = vpop.eup %7657  ;;  %5082 = vmatprep.mubr.f32.mxu0 %v7656_v27 }
 0x5bb   : > { %7384 = vmatpush3.bf16.msra.mxu0 %v7383_v56  ;;  %5152 = vmatprep.mubr.f32.mxu1 %v7658_v19  ;;  %v7660_v41 = vpop.eup %7659 }
 0x5bc   : > { %7386 = vmatprep.subr.bf16.mxu0 %v7385_v4  ;;  %v7662_v42 = vpop.eup %7661 }
 0x5bd   : > { %7416 = vmatpush3.bf16.msra.mxu1 %v7415_v38 }
 0x5be   : > { %7418 = vmatprep.subr.bf16.mxu1 %v7417_v5 }
 0x5bf   : > { %7388 = vmatpush3.bf16.msra.mxu0 %v7387_v10 }
 0x5c0   : > { %7390 = vmatprep.subr.bf16.mxu0 %v7389_v15 }
 0x5c1   : > { %7420 = vmatpush3.bf16.msra.mxu1 %v7419_v16 }
 0x5c2   : > { %7422 = vmatprep.subr.bf16.mxu1 %v7421_v44 }
 0x5c3   : > { %7392 = vmatpush3.bf16.msra.mxu0 %v7391_v30 }
 0x5c4   : > { %7394 = vmatprep.subr.bf16.mxu0 %v7393_v18 }
 0x5c5   : > { %7424 = vmatpush3.bf16.msra.mxu1 %v7423_v34 }
 0x5c6   : > { %7426 = vmatprep.subr.bf16.mxu1 %v7425_v23 }
 0x5c7   : > { %7396 = vmatpush3.bf16.msra.mxu0 %v7395_v40 }
 0x5c9   : > { %7428 = vmatpush3.bf16.msra.mxu1 %v7427_v9 }
 0x5ca   : > { %5083 = vmatmul.mubr.f32.vlgmr.msra.gmra.mrb[2].mxu0 %v7660_v41 }
 0x5cc   : > { %5153 = vmatmul.mubr.f32.vlgmr.msra.gmra.mrb[2].mxu1 %v7662_v42 }
 0x67d   : > { %v5385_v45 = vpop.f32.mrb[0].mxu0 }
 0x67e   : > { %v5386_v48 = vpop.f32.mrb[1].mxu0 }
 0x67f   : > { %v5387_v49 = vadd.f32 %v5386_v48, %v5385_v45  ;;  %v5420_v50 = vpop.f32.mrb[0].mxu1 }
 0x680   : > { %v5421_v52 = vpop.f32.mrb[1].mxu1 }
 0x681   : > { %v4945_v33 = vadd.f32 %v5387_v49, %v5344_v47  ;;  %v5422_v57 = vadd.f32 %v5421_v52, %v5420_v50 }
 0x683   : > { %v5015_v53 = vadd.f32 %v5422_v57, %v4945_v33 }
 0x69d   : > { %v5455_v54 = vpop.f32.mrb[2].mxu0 }
 0x69e   : > { %v5456_v55 = vpop.f32.mrb[3].mxu0 }
 0x69f   : > { %v5457_v58 = vadd.f32 %v5456_v55, %v5455_v54  ;;  %v5490_v59 = vpop.f32.mrb[2].mxu1 }
 0x6a0   : > { %v5491_v60 = vpop.f32.mrb[3].mxu1 }
 0x6a1   : > { %v5085_v36 = vadd.f32 %v5457_v58, %v5015_v53  ;;  %v5492_v37 = vadd.f32 %v5491_v60, %v5490_v59 }
 0x6a3   : > { %v5155_v46 = vadd.f32 %v5492_v37, %v5085_v36 }
 0x6a5   : > { %5158 = vst [vmem:[#allocation15] sm:$0xff] %v5155_v46 }
 0x6a6 PF: > { %p7545_p8 = scmp.eq.s32.totalorder %s8021_s28, 1  ;;  %s7961_s29 = smov [#allocation15]  }
 0x6a7   : > { %s5166_s1 = sshll.u32 %s7961_s29, 4  ;;  %s5167_s1 = int_to_ptr.vmem [resolvable:$true] %s5166_s1 }
 0x6a8   : > { %s7865_s9 = scalar_lea.vmem %s5167_s1, 128  ;;  %p7872_p13 = scmp.lt.s32.totalorder %s5167_s1, %s5167_s1 }
 0x6a9   : > { %p7866_p1 = scmp.ne.s32.totalorder %s5167_s1, %s7865_s9  ;;  %p7873_p4 = scmp.lt.s32.totalorder %s7865_s9, %s7865_s9 }
 0x6ab   : > { %p7867_p5 = pnand %p7866_p1, %p7545_p8  ;;  %p7874_p0 = por %p7873_p4, %p7872_p13 }
 0x6ad   : > { %p7868_p12 = pneg %p7867_p5 }
 0x6af   : > { %p7875_p3 = pnand %p7874_p0, %p7868_p12 }
 0x6b1   : > { %7878 = shalt.err (!%p7875_p3)
}
 0x6b2   : > { %s7879_s21 = scalar_lea.hbm %s10286_s7, 128 }
 0x6b3   : > { %p7880_p11 = scmp.ne.s32.totalorder %s10286_s7, %s7879_s21  ;;  %p7885_p10 = scmp.lt.u32.totalorder %s7879_s21, %s10286_s7 }
 0x6b5   : > { %p7881_p7 = pnand %p7880_p11, %p7545_p8 }
 0x6b7   : > { %p7882_p2 = pneg %p7881_p7 }
 0x6b9   : > { %p7887_p9 = pnand %p7885_p10, %p7882_p2 }
 0x6bb   : > { %7890 = shalt.err (!%p7887_p9)
}
 0x6bc   : > { %7510 = dma.vmem_to_hbm [thread:$0]  (%p7545_p8), %s5167_s1, 128, %s10286_s7, [#allocation5]  }
 0x6bd   : > { %7928 = dma.done.wait (%p7545_p8), [#allocation5], 128  }
 0x6be   : > { %7930 = vsyncadd (%p7545_p8), [#allocation5], 4294967168 }
 0x6bf PF: > { %s10328_s27 = sld [smem:[#allocation23_spill]]  ;;  %s10329_s10 = sld [smem:[#allocation22_spill]] }
 0x6c0   : > { %s10330_s26 = sld [smem:[#allocation24_spill]]  ;;  %s10331_s24 = smov %s7937_s25 }
 0x6c5   : > { %p23_p6 = scmp.ge.s32.totalorder %s10328_s27, 4   ;;  %s10332_s25 = smov %s10329_s10 }
 0x6c7   :  { %25 = sbr.rel (!%p23_p6) target bundleno = 12 (0xc), region = 134 }
 0x6ce   :  { %5179 = vsyncpa [#allocation4], 1 }
 0x6cf   :  { %5181 = vsyncpa [#allocation4 + $0x1], 1 }
 0x6d0   :  { %5182 = vsyncpa [#allocation7], 1 }
 0x6d1   :  { %5184 = vsyncpa [#allocation7 + $0x1], 1 }
 0x6d2   :  { %5185 = vsyncpa [#allocation10], 1 }
 0x6d3   :  { %5187 = vsyncpa [#allocation10 + $0x1], 1 }
 0x6d4   :  { %5188 = vsyncpa [#allocation13], 1 }
 0x6d5   :  { %5189 = vsyncpa [#allocation5], 1 }
 0x6d6   :  { %5191 = vsyncpa [#allocation5 + $0x1], 1 }

</bundles_post_ra>
